<compile_context>
chip_gen: v7x
topology: tpu7x:2x2x1
jax: 0.10.0
libtpu: 0.0.40
codegen_flags: <defaults>
</compile_context>

<pallas_src>
import jax
import jax.numpy as jnp
from jax.experimental import pallas as pl
from jax.experimental.pallas import tpu as pltpu

# MXU operand / inter-layer activation dtype.  bf16 halves activation HBM bytes
# and feeds the bf16 MXU on all generations; accumulation is always f32.
# (Set to jnp.float32 to compare against an f32 PyTorch reference bit-tightly.)
MXU_DTYPE = jnp.bfloat16
ACT_DTYPE = jnp.bfloat16
BN_EPS = 1e-5
VMEM_LIMIT = 64 * 1024 * 1024   # explicit cap for the per-image fused kernels


# ----------------------------------------------------------------------------
# small helpers
# ----------------------------------------------------------------------------

def _round_up(x, m):
    return ((x + m - 1) // m) * m


def _pick_tile_m(m):
    """Row tile for the stem matmul: largest divisor <=512 that still leaves
    >=2 grid steps (keeps both v7x TensorCores busy)."""
    for t in (512, 256, 128, 64, 32, 16, 8):
        if m % t == 0 and m // t >= 2:
            return t
    for t in (512, 256, 128, 64, 32, 16, 8):
        if m >= t and m % t == 0:
            return t
    return min(512, _round_up(m, 8))


def _pick_tile_rows(r):
    """Row tile for the lane-dense pooling reduce; callers pad R up to it."""
    for t in (1024, 512, 256, 128, 64, 32, 16, 8):
        if r % t == 0:
            return t
    return min(512, _round_up(r, 8))


def _bn_scale_bias(bn_params, eps=BN_EPS):
    """Eval-mode BN folded into per-channel (scale, bias), f32."""
    gamma, beta, mean, var = bn_params
    scale = gamma * jax.lax.rsqrt(var + eps)
    bias = beta - mean * scale
    return scale.astype(jnp.float32), bias.astype(jnp.float32)


def _offsets(ch_list):
    offs = [0]
    for c in ch_list[:-1]:
        offs.append(offs[-1] + c)
    return offs


# ----------------------------------------------------------------------------
# Kernel 1: stem matmul (im2col conv0) with fused BN0+ReLU0 epilogue, bf16 out
# ----------------------------------------------------------------------------

def _stem_matmul_kernel(a_ref, b_ref, s_ref, bias_ref, o_ref):
    acc = jnp.dot(a_ref[...].astype(MXU_DTYPE), b_ref[...],
                  preferred_element_type=jnp.float32)
    o_ref[...] = jnp.maximum(acc * s_ref[...] + bias_ref[...], 0.0
                             ).astype(o_ref.dtype)


def stem_conv_bn_relu(x, w, norm0, stride, pad):
    """7x7/s2 conv0 (no bias) + norm0 + relu0, via im2col (stem runs once)."""
    N, H, W, Cin = x.shape
    kh, kw, _, Cout = w.shape
    Ho = (H + 2 * pad - kh) // stride + 1
    Wo = (W + 2 * pad - kw) // stride + 1
    xp = jnp.pad(x, ((0, 0), (pad, pad), (pad, pad), (0, 0)))
    cols = []
    for dy in range(kh):
        for dx in range(kw):
            cols.append(xp[:, dy:dy + stride * (Ho - 1) + 1:stride,
                           dx:dx + stride * (Wo - 1) + 1:stride, :])
    K = kh * kw * Cin
    M = N * Ho * Wo
    a = jnp.concatenate(cols, axis=-1).reshape(M, K)

    tm = _pick_tile_m(M)
    Mp = _round_up(M, tm)
    if Mp != M:
        a = jnp.pad(a, ((0, Mp - M), (0, 0)))
    s, b = _bn_scale_bias(norm0)

    out = pl.pallas_call(
        _stem_matmul_kernel,
        out_shape=jax.ShapeDtypeStruct((Mp, Cout), ACT_DTYPE),
        grid=(Mp // tm,),
        in_specs=[pl.BlockSpec((tm, K), lambda i: (i, 0)),
                  pl.BlockSpec((K, Cout), lambda i: (0, 0)),
                  pl.BlockSpec((1, Cout), lambda i: (0, 0)),
                  pl.BlockSpec((1, Cout), lambda i: (0, 0))],
        out_specs=pl.BlockSpec((tm, Cout), lambda i: (i, 0)),
        compiler_params=pltpu.CompilerParams(
            dimension_semantics=("parallel",)),
    )(a, w.reshape(K, Cout).astype(MXU_DTYPE),
      s.reshape(1, Cout), b.reshape(1, Cout))
    out = out[:M] if Mp != M else out
    return out.reshape(N, Ho, Wo, Cout)


# ----------------------------------------------------------------------------
# Kernel 2: 3x3/s2 max pool (stem only), lane-dense (R, 128) elementwise max
# ----------------------------------------------------------------------------

def _make_window_max_kernel(n_in):
    def kernel(*refs):
        o_ref = refs[n_in]
        acc = refs[0][...]
        for t in range(1, n_in):
            acc = jnp.maximum(acc, refs[t][...])
        o_ref[...] = acc
    return kernel


def maxpool3x3_s2(x):
    N, H, W, C = x.shape
    Ho = (H + 2 - 3) // 2 + 1
    Wo = (W + 2 - 3) // 2 + 1
    xp = jnp.pad(x, ((0, 0), (1, 1), (1, 1), (0, 0)), constant_values=-1e30)
    M = N * Ho * Wo
    slabs = []
    for dy in range(3):
        for dx in range(3):
            slabs.append(xp[:, dy:dy + 2 * (Ho - 1) + 1:2,
                            dx:dx + 2 * (Wo - 1) + 1:2, :].reshape(M, C))
    total = M * C
    if total % 128 == 0:                      # repack to full 128-lane rows
        R, L = total // 128, 128
        slabs = [s.reshape(R, L) for s in slabs]
    else:
        R, L = M, C
    tr = _pick_tile_rows(R)
    Rp = _round_up(R, tr)                     # pad to tile (no full-array block)
    if Rp != R:
        slabs = [jnp.pad(s, ((0, Rp - R), (0, 0))) for s in slabs]
    out = pl.pallas_call(
        _make_window_max_kernel(len(slabs)),
        out_shape=jax.ShapeDtypeStruct((Rp, L), x.dtype),
        grid=(Rp // tr,),
        in_specs=[pl.BlockSpec((tr, L), lambda i: (i, 0))] * len(slabs),
        out_specs=pl.BlockSpec((tr, L), lambda i: (i, 0)),
        compiler_params=pltpu.CompilerParams(
            dimension_semantics=("parallel",)),
    )(*slabs)
    out = out[:R] if Rp != R else out
    return out.reshape(M, C).reshape(N, Ho, Wo, C)


# ----------------------------------------------------------------------------
# Kernel 3: fused _DenseLayer
#   concat + norm1 + relu1 + conv1(1x1) + norm2 + relu2 + conv2(3x3, pad 1)
# One grid step per image; the bottleneck never leaves VMEM.
# ----------------------------------------------------------------------------

def _make_dense_layer_kernel(ch_list, offs, H, W, cmid, cout):
    n = len(ch_list)
    HW = H * W

    def kernel(*refs):
        feats = refs[:n]
        w1_ref = refs[n]
        s1_ref, b1_ref = refs[n + 1], refs[n + 2]
        s2_ref, b2_ref = refs[n + 3], refs[n + 4]
        w2_ref = refs[n + 5]
        o_ref = refs[n + 6]
        pad_ref = refs[n + 7]                      # (H+2, W+2, cmid) scratch

        s1, b1 = s1_ref[...], b1_ref[...]          # (1, cin_total) f32
        s2, b2 = s2_ref[...], b2_ref[...]          # (1, cmid) f32

        # concat fused: each feature is one unrolled K step of the 1x1 conv.
        acc = jnp.zeros((HW, cmid), jnp.float32)
        for j in range(n):
            ck, off = ch_list[j], offs[j]
            x = feats[j][0].astype(jnp.float32)                  # (HW, ck)
            y = jnp.maximum(x * s1[:, off:off + ck] + b1[:, off:off + ck], 0.0)
            acc = acc + jnp.dot(y.astype(MXU_DTYPE), w1_ref[off:off + ck, :],
                                preferred_element_type=jnp.float32)

        # norm2 + relu2 on the VMEM-resident bottleneck.
        bott = jnp.maximum(acc * s2 + b2, 0.0)

        # zero-padded halo copy in VMEM, then 9 shifted-tap dots (3x3, pad 1).
        # TODO(synk): the 9 K=cmid dots could be merged into 3 fatter dots by
        # concatenating the dx taps along lanes; MXU is not the binding unit
        # at these widths so it is left simple.
        pad_ref[...] = jnp.zeros_like(pad_ref)
        pad_ref[1:H + 1, 1:W + 1, :] = bott.reshape(H, W, cmid
                                                    ).astype(pad_ref.dtype)
        acc2 = jnp.zeros((HW, cout), jnp.float32)
        for t in range(9):
            dy, dx = divmod(t, 3)
            tap = pad_ref[dy:dy + H, dx:dx + W, :]
            acc2 = acc2 + jnp.dot(tap.reshape(HW, cmid), w2_ref[t],
                                  preferred_element_type=jnp.float32)
        # TODO(synk): cout=growth_rate is lane-sparse (v5e store slot); kept so
        # the next layer can consume this feature with its own weight slice.
        o_ref[0] = acc2.astype(o_ref.dtype)

    return kernel


def dense_layer_fused(feats, layer, H, W):
    N = feats[0].shape[0]
    HW = H * W
    ch_list = [int(f.shape[-1]) for f in feats]
    offs = _offsets(ch_list)
    cin = sum(ch_list)
    cmid = layer["conv1"].shape[-1]
    cout = layer["conv2"].shape[-1]
    s1, b1 = _bn_scale_bias(layer["norm1"])
    s2, b2 = _bn_scale_bias(layer["norm2"])

    in_specs = [pl.BlockSpec((1, HW, c), lambda i: (i, 0, 0)) for c in ch_list]
    in_specs += [pl.BlockSpec((cin, cmid), lambda i: (0, 0)),
                 pl.BlockSpec((1, cin), lambda i: (0, 0)),
                 pl.BlockSpec((1, cin), lambda i: (0, 0)),
                 pl.BlockSpec((1, cmid), lambda i: (0, 0)),
                 pl.BlockSpec((1, cmid), lambda i: (0, 0)),
                 pl.BlockSpec((9, cmid, cout), lambda i: (0, 0, 0))]

    return pl.pallas_call(
        _make_dense_layer_kernel(ch_list, offs, H, W, cmid, cout),
        out_shape=jax.ShapeDtypeStruct((N, HW, cout), ACT_DTYPE),
        grid=(N,),
        in_specs=in_specs,
        out_specs=pl.BlockSpec((1, HW, cout), lambda i: (i, 0, 0)),
        scratch_shapes=[pltpu.VMEM((H + 2, W + 2, cmid), MXU_DTYPE)],
        compiler_params=pltpu.CompilerParams(
            dimension_semantics=("parallel",),
            vmem_limit_bytes=VMEM_LIMIT),
    )(*feats,
      layer["conv1"].reshape(cin, cmid).astype(MXU_DTYPE),
      s1.reshape(1, cin), b1.reshape(1, cin),
      s2.reshape(1, cmid), b2.reshape(1, cmid),
      layer["conv2"].reshape(9, cmid, cout).astype(MXU_DTYPE))


# ----------------------------------------------------------------------------
# Kernel 4: fused _Transition  (concat + norm + relu + conv(1x1) + 2x2 avgpool)
# Only the 4x-smaller pooled output is written to HBM.
# ----------------------------------------------------------------------------

def _make_transition_kernel(ch_list, offs, H, W, cout):
    n = len(ch_list)
    HW = H * W
    Ho, Wo = H // 2, W // 2

    def kernel(*refs):
        feats = refs[:n]
        w_ref = refs[n]
        s_ref, b_ref = refs[n + 1], refs[n + 2]
        o_ref = refs[n + 3]

        s, b = s_ref[...], b_ref[...]

        acc = jnp.zeros((HW, cout), jnp.float32)
        for j in range(n):
            ck, off = ch_list[j], offs[j]
            x = feats[j][0].astype(jnp.float32)
            y = jnp.maximum(x * s[:, off:off + ck] + b[:, off:off + ck], 0.0)
            acc = acc + jnp.dot(y.astype(MXU_DTYPE), w_ref[off:off + ck, :],
                                preferred_element_type=jnp.float32)

        # 2x2 / stride-2 average pool on the VMEM-resident conv output.
        a4 = acc.reshape(H * Wo, 2, cout)
        h2 = a4[:, 0, :] + a4[:, 1, :]               # horizontal pair sums
        v4 = h2.reshape(Ho, 2, Wo, cout)
        pooled = (v4[:, 0] + v4[:, 1]) * 0.25        # vertical pair sums / 4
        o_ref[0] = pooled.reshape(Ho * Wo, cout).astype(o_ref.dtype)

    return kernel


def transition_fused(feats, trans, H, W):
    assert H % 2 == 0 and W % 2 == 0
    N = feats[0].shape[0]
    HW = H * W
    ch_list = [int(f.shape[-1]) for f in feats]
    offs = _offsets(ch_list)
    cin = sum(ch_list)
    cout = trans["conv"].shape[-1]
    s, b = _bn_scale_bias(trans["norm"])

    in_specs = [pl.BlockSpec((1, HW, c), lambda i: (i, 0, 0)) for c in ch_list]
    in_specs += [pl.BlockSpec((cin, cout), lambda i: (0, 0)),
                 pl.BlockSpec((1, cin), lambda i: (0, 0)),
                 pl.BlockSpec((1, cin), lambda i: (0, 0))]

    return pl.pallas_call(
        _make_transition_kernel(ch_list, offs, H, W, cout),
        out_shape=jax.ShapeDtypeStruct((N, (H // 2) * (W // 2), cout), ACT_DTYPE),
        grid=(N,),
        in_specs=in_specs,
        out_specs=pl.BlockSpec((1, (H // 2) * (W // 2), cout),
                               lambda i: (i, 0, 0)),
        compiler_params=pltpu.CompilerParams(
            dimension_semantics=("parallel",),
            vmem_limit_bytes=VMEM_LIMIT),
    )(*feats,
      trans["conv"].reshape(cin, cout).astype(MXU_DTYPE),
      s.reshape(1, cin), b.reshape(1, cin))


# ----------------------------------------------------------------------------
# Kernel 5: fused head (concat + norm5 + relu + global avg pool + classifier)
# ----------------------------------------------------------------------------

def _make_head_kernel(ch_list, offs):
    n = len(ch_list)

    def kernel(*refs):
        feats = refs[:n]
        s_ref, b_ref = refs[n], refs[n + 1]
        w_ref = refs[n + 2]
        cb_ref = refs[n + 3]
        o_ref = refs[n + 4]

        s, b = s_ref[...], b_ref[...]
        acc = cb_ref[...]                                   # (1, NC) f32 bias
        for j in range(n):
            ck, off = ch_list[j], offs[j]
            x = feats[j][0].astype(jnp.float32)             # (HW, ck)
            y = jnp.maximum(x * s[:, off:off + ck] + b[:, off:off + ck], 0.0)
            pooled = jnp.mean(y, axis=0, keepdims=True)     # global HW mean
            acc = acc + jnp.dot(pooled, w_ref[off:off + ck, :],
                                preferred_element_type=jnp.float32)
        o_ref[0] = acc

    return kernel


def classifier_head_fused(feats, norm5, w_cls, b_cls, H, W):
    N = feats[0].shape[0]
    HW = H * W
    ch_list = [int(f.shape[-1]) for f in feats]
    offs = _offsets(ch_list)
    cin = sum(ch_list)
    num_classes = w_cls.shape[1]
    nc = _round_up(num_classes, 128)          # lane-dense classifier output
    wp = jnp.pad(w_cls, ((0, 0), (0, nc - num_classes))).astype(jnp.float32)
    bp = jnp.pad(b_cls, (0, nc - num_classes)).reshape(1, nc).astype(jnp.float32)
    s, b = _bn_scale_bias(norm5)

    in_specs = [pl.BlockSpec((1, HW, c), lambda i: (i, 0, 0)) for c in ch_list]
    in_specs += [pl.BlockSpec((1, cin), lambda i: (0, 0)),
                 pl.BlockSpec((1, cin), lambda i: (0, 0)),
                 pl.BlockSpec((cin, nc), lambda i: (0, 0)),
                 pl.BlockSpec((1, nc), lambda i: (0, 0))]

    out = pl.pallas_call(
        _make_head_kernel(ch_list, offs),
        out_shape=jax.ShapeDtypeStruct((N, 1, nc), jnp.float32),
        grid=(N,),
        in_specs=in_specs,
        out_specs=pl.BlockSpec((1, 1, nc), lambda i: (i, 0, 0)),
        compiler_params=pltpu.CompilerParams(
            dimension_semantics=("parallel",),
            vmem_limit_bytes=VMEM_LIMIT),
    )(*feats, s.reshape(1, cin), b.reshape(1, cin), wp, bp)
    return out.reshape(N, nc)[:, :num_classes]


# ----------------------------------------------------------------------------
# DenseNet model
# ----------------------------------------------------------------------------

def densenet_forward(params, x_nchw):
    x = jnp.transpose(x_nchw, (0, 2, 3, 1))             # NCHW -> NHWC
    # stem: conv0 + norm0 + relu0 (fused epilogue), then 3x3/s2 max pool.
    x = stem_conv_bn_relu(x, params["conv0"], params["norm0"], stride=2, pad=3)
    x = maxpool3x3_s2(x)
    N, H, W, C = x.shape
    # activations are kept as flattened (N, H*W, C) bf16 feature tensors; the
    # channel concat is never materialized -- consumers fuse it over the list.
    feats = [x.reshape(N, H * W, C)]
    for block in params["blocks"]:
        for layer in block["layers"]:
            # TODO(synk): dropout (drop_rate>0, training) not implemented;
            # module default drop_rate=0 makes it an identity.
            feats.append(dense_layer_fused(feats, layer, H, W))
        if block["transition"] is not None:
            pooled = transition_fused(feats, block["transition"], H, W)
            H, W = H // 2, W // 2
            feats = [pooled]
    # norm5 + F.relu + adaptive_avg_pool2d((1,1)) + flatten + Linear, fused.
    return classifier_head_fused(feats, params["norm5"],
                                 params["classifier_w"],
                                 params["classifier_b"], H, W)


def init_params(key, growth_rate=8, block_config=(2, 2),
                num_init_features=16, bn_size=2, num_classes=10):
    def conv_w(k, kh, kw, cin, cout):
        std = (2.0 / (kh * kw * cin)) ** 0.5            # kaiming_normal_ fan_in
        return jax.random.normal(k, (kh, kw, cin, cout), jnp.float32) * std

    def bn_p(c):
        return (jnp.ones((c,), jnp.float32), jnp.zeros((c,), jnp.float32),
                jnp.zeros((c,), jnp.float32), jnp.ones((c,), jnp.float32))

    keys = iter(jax.random.split(key, 256))
    params = {
        "conv0": conv_w(next(keys), 7, 7, 3, num_init_features),
        "norm0": bn_p(num_init_features),
    }
    nf = num_init_features
    blocks = []
    for i, n_layers in enumerate(block_config):
        layers = []
        for j in range(n_layers):
            cin = nf + j * growth_rate
            layers.append({
                "norm1": bn_p(cin),
                "conv1": conv_w(next(keys), 1, 1, cin, bn_size * growth_rate),
                "norm2": bn_p(bn_size * growth_rate),
                "conv2": conv_w(next(keys), 3, 3, bn_size * growth_rate,
                                growth_rate),
            })
        nf = nf + n_layers * growth_rate
        block = {"layers": layers, "transition": None}
        if i != len(block_config) - 1:
            block["transition"] = {
                "norm": bn_p(nf),
                "conv": conv_w(next(keys), 1, 1, nf, nf // 2),
            }
            nf = nf // 2
        blocks.append(block)
    params["blocks"] = blocks
    params["norm5"] = bn_p(nf)
    bound = 1.0 / (nf ** 0.5)
    params["classifier_w"] = jax.random.uniform(
        next(keys), (nf, num_classes), jnp.float32, -bound, bound)
    params["classifier_b"] = jnp.zeros((num_classes,), jnp.float32)
    return params


if __name__ == "__main__":
    key = jax.random.PRNGKey(0)
    pkey, xkey = jax.random.split(key)
    # Small DenseNet-BC: growth_rate=8, block_config=(2, 2), num_init_features=16,
    # bn_size=2, num_classes=10; NCHW input (PyTorch convention).
    params = init_params(pkey, growth_rate=8, block_config=(2, 2),
                         num_init_features=16, bn_size=2, num_classes=10)
    x = jax.random.normal(xkey, (2, 3, 32, 32), jnp.float32)

    fwd = jax.jit(densenet_forward)
    out = fwd(params, x)
    out = jax.block_until_ready(out)
    assert out.shape == (2, 10)
    assert bool(jnp.all(jnp.isfinite(out)))
    print("KERNEL_OK")
</pallas_src>

<mosaic_0001>
module attributes {stable_mosaic.version = 11 : i64} {
  func.func @_stem_matmul_kernel(%arg0: i32, %arg1: memref<256x147xf32, #tpu.memory_space<vmem>>, %arg2: memref<147x16xbf16, #tpu.memory_space<vmem>>, %arg3: memref<1x16xf32, #tpu.memory_space<vmem>>, %arg4: memref<1x16xf32, #tpu.memory_space<vmem>>, %arg5: memref<256x16xbf16, #tpu.memory_space<vmem>>) attributes {dimension_semantics = [#tpu.dimension_semantics<parallel>], iteration_bounds = array<i64: 2>, scalar_prefetch = 0 : i64, scratch_operands = 0 : i64, tpu.core_type = #tpu.core_type<tc>, window_params = [{transform_indices = @transform_0, window_bounds = array<i64: 256, 147>}, {pipeline_mode = #tpu.pipeline_mode<synchronous>, transform_indices = @transform_1, window_bounds = array<i64: 147, 16>}, {pipeline_mode = #tpu.pipeline_mode<synchronous>, transform_indices = @transform_2, window_bounds = array<i64: 1, 16>}, {pipeline_mode = #tpu.pipeline_mode<synchronous>, transform_indices = @transform_3, window_bounds = array<i64: 1, 16>}, {transform_indices = @transform_4, window_bounds = array<i64: 256, 16>}]} {
    %c0 = arith.constant 0 : index
    %c0_0 = arith.constant 0 : index
    %0 = vector.load %arg1[%c0, %c0_0] : memref<256x147xf32, #tpu.memory_space<vmem>>, vector<256x147xf32>
    %1 = arith.truncf %0 : vector<256x147xf32> to vector<256x147xbf16>
    %c0_1 = arith.constant 0 : index
    %c0_2 = arith.constant 0 : index
    %2 = vector.load %arg2[%c0_1, %c0_2] : memref<147x16xbf16, #tpu.memory_space<vmem>>, vector<147x16xbf16>
    %cst = arith.constant dense<0.000000e+00> : vector<256x16xf32>
    %3 = tpu.matmul %1, %2, %cst {dimension_numbers = #tpu.dot_dimension_numbers<[1], [0], [0], [1], [0, 0, 1, 1], [], []>} : vector<256x147xbf16>, vector<147x16xbf16>, vector<256x16xf32> -> vector<256x16xf32>
    %c0_3 = arith.constant 0 : index
    %c0_4 = arith.constant 0 : index
    %4 = vector.load %arg3[%c0_3, %c0_4] : memref<1x16xf32, #tpu.memory_space<vmem>>, vector<1x16xf32>
    %5 = vector.broadcast %4 : vector<1x16xf32> to vector<256x16xf32>
    %6 = arith.mulf %3, %5 : vector<256x16xf32>
    %c0_5 = arith.constant 0 : index
    %c0_6 = arith.constant 0 : index
    %7 = vector.load %arg4[%c0_5, %c0_6] : memref<1x16xf32, #tpu.memory_space<vmem>>, vector<1x16xf32>
    %8 = vector.broadcast %7 : vector<1x16xf32> to vector<256x16xf32>
    %9 = arith.addf %6, %8 : vector<256x16xf32>
    %cst_7 = arith.constant 0.000000e+00 : f32
    %10 = vector.broadcast %cst_7 : f32 to vector<256x16xf32>
    %11 = arith.maximumf %9, %10 : vector<256x16xf32>
    %12 = arith.truncf %11 : vector<256x16xf32> to vector<256x16xbf16>
    %c0_8 = arith.constant 0 : index
    %c0_9 = arith.constant 0 : index
    %13 = vector.load %arg5[%c0_8, %c0_9] : memref<256x16xbf16, #tpu.memory_space<vmem>>, vector<256x16xbf16>
    tpu.vector_store %arg5[%c0_8, %c0_9], %12 {strides = array<i32>} : memref<256x16xbf16, #tpu.memory_space<vmem>>, vector<256x16xbf16>,
    return
  }
  func.func @transform_0(%arg0: i32) -> (i32, i32) {
    %c0_i32 = arith.constant 0 : i32
    %c0_i32_0 = arith.constant 0 : i32
    return %arg0, %c0_i32 : i32, i32
  }
  func.func @transform_1(%arg0: i32) -> (i32, i32) {
    %c0_i32 = arith.constant 0 : i32
    %c0_i32_0 = arith.constant 0 : i32
    %c0_i32_1 = arith.constant 0 : i32
    return %c0_i32, %c0_i32_0 : i32, i32
  }
  func.func @transform_2(%arg0: i32) -> (i32, i32) {
    %c0_i32 = arith.constant 0 : i32
    %c0_i32_0 = arith.constant 0 : i32
    %c0_i32_1 = arith.constant 0 : i32
    return %c0_i32, %c0_i32_0 : i32, i32
  }
  func.func @transform_3(%arg0: i32) -> (i32, i32) {
    %c0_i32 = arith.constant 0 : i32
    %c0_i32_0 = arith.constant 0 : i32
    %c0_i32_1 = arith.constant 0 : i32
    return %c0_i32, %c0_i32_0 : i32, i32
  }
  func.func @transform_4(%arg0: i32) -> (i32, i32) {
    %c0_i32 = arith.constant 0 : i32
    %c0_i32_0 = arith.constant 0 : i32
    return %arg0, %c0_i32 : i32, i32
  }
}

module attributes {stable_mosaic.version = 11 : i64} {
  func.func @kernel(%arg0: i32, %arg1: memref<16x128xbf16, #tpu.memory_space<vmem>>, %arg2: memref<16x128xbf16, #tpu.memory_space<vmem>>, %arg3: memref<16x128xbf16, #tpu.memory_space<vmem>>, %arg4: memref<16x128xbf16, #tpu.memory_space<vmem>>, %arg5: memref<16x128xbf16, #tpu.memory_space<vmem>>, %arg6: memref<16x128xbf16, #tpu.memory_space<vmem>>, %arg7: memref<16x128xbf16, #tpu.memory_space<vmem>>, %arg8: memref<16x128xbf16, #tpu.memory_space<vmem>>, %arg9: memref<16x128xbf16, #tpu.memory_space<vmem>>, %arg10: memref<16x128xbf16, #tpu.memory_space<vmem>>) attributes {dimension_semantics = [#tpu.dimension_semantics<parallel>], iteration_bounds = array<i64: 1>, scalar_prefetch = 0 : i64, scratch_operands = 0 : i64, tpu.core_type = #tpu.core_type<tc>, window_params = [{transform_indices = @transform_0, window_bounds = array<i64: 16, 128>}, {transform_indices = @transform_1, window_bounds = array<i64: 16, 128>}, {transform_indices = @transform_2, window_bounds = array<i64: 16, 128>}, {transform_indices = @transform_3, window_bounds = array<i64: 16, 128>}, {transform_indices = @transform_4, window_bounds = array<i64: 16, 128>}, {transform_indices = @transform_5, window_bounds = array<i64: 16, 128>}, {transform_indices = @transform_6, window_bounds = array<i64: 16, 128>}, {transform_indices = @transform_7, window_bounds = array<i64: 16, 128>}, {transform_indices = @transform_8, window_bounds = array<i64: 16, 128>}, {transform_indices = @transform_9, window_bounds = array<i64: 16, 128>}]} {
    %c0 = arith.constant 0 : index
    %c0_0 = arith.constant 0 : index
    %0 = vector.load %arg1[%c0, %c0_0] : memref<16x128xbf16, #tpu.memory_space<vmem>>, vector<16x128xbf16>
    %c0_1 = arith.constant 0 : index
    %c0_2 = arith.constant 0 : index
    %1 = vector.load %arg2[%c0_1, %c0_2] : memref<16x128xbf16, #tpu.memory_space<vmem>>, vector<16x128xbf16>
    %2 = arith.maximumf %0, %1 : vector<16x128xbf16>
    %c0_3 = arith.constant 0 : index
    %c0_4 = arith.constant 0 : index
    %3 = vector.load %arg3[%c0_3, %c0_4] : memref<16x128xbf16, #tpu.memory_space<vmem>>, vector<16x128xbf16>
    %4 = arith.maximumf %2, %3 : vector<16x128xbf16>
    %c0_5 = arith.constant 0 : index
    %c0_6 = arith.constant 0 : index
    %5 = vector.load %arg4[%c0_5, %c0_6] : memref<16x128xbf16, #tpu.memory_space<vmem>>, vector<16x128xbf16>
    %6 = arith.maximumf %4, %5 : vector<16x128xbf16>
    %c0_7 = arith.constant 0 : index
    %c0_8 = arith.constant 0 : index
    %7 = vector.load %arg5[%c0_7, %c0_8] : memref<16x128xbf16, #tpu.memory_space<vmem>>, vector<16x128xbf16>
    %8 = arith.maximumf %6, %7 : vector<16x128xbf16>
    %c0_9 = arith.constant 0 : index
    %c0_10 = arith.constant 0 : index
    %9 = vector.load %arg6[%c0_9, %c0_10] : memref<16x128xbf16, #tpu.memory_space<vmem>>, vector<16x128xbf16>
    %10 = arith.maximumf %8, %9 : vector<16x128xbf16>
    %c0_11 = arith.constant 0 : index
    %c0_12 = arith.constant 0 : index
    %11 = vector.load %arg7[%c0_11, %c0_12] : memref<16x128xbf16, #tpu.memory_space<vmem>>, vector<16x128xbf16>
    %12 = arith.maximumf %10, %11 : vector<16x128xbf16>
    %c0_13 = arith.constant 0 : index
    %c0_14 = arith.constant 0 : index
    %13 = vector.load %arg8[%c0_13, %c0_14] : memref<16x128xbf16, #tpu.memory_space<vmem>>, vector<16x128xbf16>
    %14 = arith.maximumf %12, %13 : vector<16x128xbf16>
    %c0_15 = arith.constant 0 : index
    %c0_16 = arith.constant 0 : index
    %15 = vector.load %arg9[%c0_15, %c0_16] : memref<16x128xbf16, #tpu.memory_space<vmem>>, vector<16x128xbf16>
    %16 = arith.maximumf %14, %15 : vector<16x128xbf16>
    %c0_17 = arith.constant 0 : index
    %c0_18 = arith.constant 0 : index
    %17 = vector.load %arg10[%c0_17, %c0_18] : memref<16x128xbf16, #tpu.memory_space<vmem>>, vector<16x128xbf16>
    tpu.vector_store %arg10[%c0_17, %c0_18], %16 {strides = array<i32>} : memref<16x128xbf16, #tpu.memory_space<vmem>>, vector<16x128xbf16>,
    return
  }
  func.func @transform_0(%arg0: i32) -> (i32, i32) {
    %c0_i32 = arith.constant 0 : i32
    %c0_i32_0 = arith.constant 0 : i32
    return %arg0, %c0_i32 : i32, i32
  }
  func.func @transform_1(%arg0: i32) -> (i32, i32) {
    %c0_i32 = arith.constant 0 : i32
    %c0_i32_0 = arith.constant 0 : i32
    return %arg0, %c0_i32 : i32, i32
  }
  func.func @transform_2(%arg0: i32) -> (i32, i32) {
    %c0_i32 = arith.constant 0 : i32
    %c0_i32_0 = arith.constant 0 : i32
    return %arg0, %c0_i32 : i32, i32
  }
  func.func @transform_3(%arg0: i32) -> (i32, i32) {
    %c0_i32 = arith.constant 0 : i32
    %c0_i32_0 = arith.constant 0 : i32
    return %arg0, %c0_i32 : i32, i32
  }
  func.func @transform_4(%arg0: i32) -> (i32, i32) {
    %c0_i32 = arith.constant 0 : i32
    %c0_i32_0 = arith.constant 0 : i32
    return %arg0, %c0_i32 : i32, i32
  }
  func.func @transform_5(%arg0: i32) -> (i32, i32) {
    %c0_i32 = arith.constant 0 : i32
    %c0_i32_0 = arith.constant 0 : i32
    return %arg0, %c0_i32 : i32, i32
  }
  func.func @transform_6(%arg0: i32) -> (i32, i32) {
    %c0_i32 = arith.constant 0 : i32
    %c0_i32_0 = arith.constant 0 : i32
    return %arg0, %c0_i32 : i32, i32
  }
  func.func @transform_7(%arg0: i32) -> (i32, i32) {
    %c0_i32 = arith.constant 0 : i32
    %c0_i32_0 = arith.constant 0 : i32
    return %arg0, %c0_i32 : i32, i32
  }
  func.func @transform_8(%arg0: i32) -> (i32, i32) {
    %c0_i32 = arith.constant 0 : i32
    %c0_i32_0 = arith.constant 0 : i32
    return %arg0, %c0_i32 : i32, i32
  }
  func.func @transform_9(%arg0: i32) -> (i32, i32) {
    %c0_i32 = arith.constant 0 : i32
    %c0_i32_0 = arith.constant 0 : i32
    return %arg0, %c0_i32 : i32, i32
  }
}

module attributes {stable_mosaic.version = 11 : i64} {
  func.func @kernel(%arg0: i32, %arg1: memref<1x64x16xbf16, #tpu.memory_space<vmem>>, %arg2: memref<16x16xbf16, #tpu.memory_space<vmem>>, %arg3: memref<1x16xf32, #tpu.memory_space<vmem>>, %arg4: memref<1x16xf32, #tpu.memory_space<vmem>>, %arg5: memref<1x16xf32, #tpu.memory_space<vmem>>, %arg6: memref<1x16xf32, #tpu.memory_space<vmem>>, %arg7: memref<9x16x8xbf16, #tpu.memory_space<vmem>>, %arg8: memref<1x64x8xbf16, #tpu.memory_space<vmem>>, %arg9: memref<10x10x16xbf16, #tpu.memory_space<vmem>>) attributes {dimension_semantics = [#tpu.dimension_semantics<parallel>], iteration_bounds = array<i64: 2>, scalar_prefetch = 0 : i64, scratch_operands = 1 : i64, tpu.core_type = #tpu.core_type<tc>, window_params = [{transform_indices = @transform_0, window_bounds = array<i64: 1, 64, 16>}, {pipeline_mode = #tpu.pipeline_mode<synchronous>, transform_indices = @transform_1, window_bounds = array<i64: 16, 16>}, {pipeline_mode = #tpu.pipeline_mode<synchronous>, transform_indices = @transform_2, window_bounds = array<i64: 1, 16>}, {pipeline_mode = #tpu.pipeline_mode<synchronous>, transform_indices = @transform_3, window_bounds = array<i64: 1, 16>}, {pipeline_mode = #tpu.pipeline_mode<synchronous>, transform_indices = @transform_4, window_bounds = array<i64: 1, 16>}, {pipeline_mode = #tpu.pipeline_mode<synchronous>, transform_indices = @transform_5, window_bounds = array<i64: 1, 16>}, {pipeline_mode = #tpu.pipeline_mode<synchronous>, transform_indices = @transform_6, window_bounds = array<i64: 9, 16, 8>}, {transform_indices = @transform_7, window_bounds = array<i64: 1, 64, 8>}]} {
    %c0 = arith.constant 0 : index
    %c0_0 = arith.constant 0 : index
    %0 = vector.load %arg3[%c0, %c0_0] : memref<1x16xf32, #tpu.memory_space<vmem>>, vector<1x16xf32>
    %c0_1 = arith.constant 0 : index
    %c0_2 = arith.constant 0 : index
    %1 = vector.load %arg4[%c0_1, %c0_2] : memref<1x16xf32, #tpu.memory_space<vmem>>, vector<1x16xf32>
    %c0_3 = arith.constant 0 : index
    %c0_4 = arith.constant 0 : index
    %2 = vector.load %arg5[%c0_3, %c0_4] : memref<1x16xf32, #tpu.memory_space<vmem>>, vector<1x16xf32>
    %c0_5 = arith.constant 0 : index
    %c0_6 = arith.constant 0 : index
    %3 = vector.load %arg6[%c0_5, %c0_6] : memref<1x16xf32, #tpu.memory_space<vmem>>, vector<1x16xf32>
    %cst = arith.constant 0.000000e+00 : f32
    %4 = vector.broadcast %cst : f32 to vector<64x16xf32>
    %c0_7 = arith.constant 0 : index
    %c0_8 = arith.constant 0 : index
    %c0_9 = arith.constant 0 : index
    %5 = vector.load %arg1[%c0_7, %c0_8, %c0_9] : memref<1x64x16xbf16, #tpu.memory_space<vmem>>, vector<1x64x16xbf16>
    %6 = vector.shape_cast %5 : vector<1x64x16xbf16> to vector<64x16xbf16>
    %7 = arith.extf %6 : vector<64x16xbf16> to vector<64x16xf32>
    %8 = vector.broadcast %0 : vector<1x16xf32> to vector<64x16xf32>
    %9 = arith.mulf %7, %8 : vector<64x16xf32>
    %10 = vector.broadcast %1 : vector<1x16xf32> to vector<64x16xf32>
    %11 = arith.addf %9, %10 : vector<64x16xf32>
    %cst_10 = arith.constant 0.000000e+00 : f32
    %12 = vector.broadcast %cst_10 : f32 to vector<64x16xf32>
    %13 = arith.maximumf %11, %12 : vector<64x16xf32>
    %14 = arith.truncf %13 : vector<64x16xf32> to vector<64x16xbf16>
    %c0_11 = arith.constant 0 : index
    %c0_12 = arith.constant 0 : index
    %15 = vector.load %arg2[%c0_11, %c0_12] : memref<16x16xbf16, #tpu.memory_space<vmem>>, vector<16x16xbf16>
    %cst_13 = arith.constant dense<0.000000e+00> : vector<64x16xf32>
    %16 = tpu.matmul %14, %15, %cst_13 {dimension_numbers = #tpu.dot_dimension_numbers<[1], [0], [0], [1], [0, 0, 1, 1], [], []>} : vector<64x16xbf16>, vector<16x16xbf16>, vector<64x16xf32> -> vector<64x16xf32>
    %17 = arith.addf %4, %16 : vector<64x16xf32>
    %18 = vector.broadcast %2 : vector<1x16xf32> to vector<64x16xf32>
    %19 = arith.mulf %17, %18 : vector<64x16xf32>
    %20 = vector.broadcast %3 : vector<1x16xf32> to vector<64x16xf32>
    %21 = arith.addf %19, %20 : vector<64x16xf32>
    %cst_14 = arith.constant 0.000000e+00 : f32
    %22 = vector.broadcast %cst_14 : f32 to vector<64x16xf32>
    %23 = arith.maximumf %21, %22 : vector<64x16xf32>
    %cst_15 = arith.constant 0.000000e+00 : bf16
    %24 = vector.broadcast %cst_15 : bf16 to vector<10x10x16xbf16>
    %c0_16 = arith.constant 0 : index
    %c0_17 = arith.constant 0 : index
    %c0_18 = arith.constant 0 : index
    %25 = vector.load %arg9[%c0_16, %c0_17, %c0_18] : memref<10x10x16xbf16, #tpu.memory_space<vmem>>, vector<10x10x16xbf16>
    tpu.vector_store %arg9[%c0_16, %c0_17, %c0_18], %24 {strides = array<i32>} : memref<10x10x16xbf16, #tpu.memory_space<vmem>>, vector<10x10x16xbf16>,
    %26 = vector.shape_cast %23 : vector<64x16xf32> to vector<8x8x16xf32>
    %27 = arith.truncf %26 : vector<8x8x16xf32> to vector<8x8x16xbf16>
    %c1 = arith.constant 1 : index
    %c1_19 = arith.constant 1 : index
    %c0_20 = arith.constant 0 : index
    %28 = vector.load %arg9[%c1, %c1_19, %c0_20] : memref<10x10x16xbf16, #tpu.memory_space<vmem>>, vector<8x8x16xbf16>
    tpu.vector_store %arg9[%c1, %c1_19, %c0_20], %27 {strides = array<i32>} : memref<10x10x16xbf16, #tpu.memory_space<vmem>>, vector<8x8x16xbf16>,
    %cst_21 = arith.constant 0.000000e+00 : f32
    %29 = vector.broadcast %cst_21 : f32 to vector<64x8xf32>
    %c0_22 = arith.constant 0 : index
    %c0_23 = arith.constant 0 : index
    %c0_24 = arith.constant 0 : index
    %30 = vector.load %arg9[%c0_22, %c0_23, %c0_24] : memref<10x10x16xbf16, #tpu.memory_space<vmem>>, vector<8x8x16xbf16>
    %31 = vector.shape_cast %30 : vector<8x8x16xbf16> to vector<64x16xbf16>
    %c0_25 = arith.constant 0 : index
    %c0_26 = arith.constant 0 : index
    %c0_27 = arith.constant 0 : index
    %32 = vector.load %arg7[%c0_25, %c0_26, %c0_27] : memref<9x16x8xbf16, #tpu.memory_space<vmem>>, vector<1x16x8xbf16>
    %33 = vector.shape_cast %32 : vector<1x16x8xbf16> to vector<16x8xbf16>
    %cst_28 = arith.constant dense<0.000000e+00> : vector<64x8xf32>
    %34 = tpu.matmul %31, %33, %cst_28 {dimension_numbers = #tpu.dot_dimension_numbers<[1], [0], [0], [1], [0, 0, 1, 1], [], []>} : vector<64x16xbf16>, vector<16x8xbf16>, vector<64x8xf32> -> vector<64x8xf32>
    %35 = arith.addf %29, %34 : vector<64x8xf32>
    %c0_29 = arith.constant 0 : index
    %c1_30 = arith.constant 1 : index
    %c0_31 = arith.constant 0 : index
    %36 = vector.load %arg9[%c0_29, %c1_30, %c0_31] : memref<10x10x16xbf16, #tpu.memory_space<vmem>>, vector<8x8x16xbf16>
    %37 = vector.shape_cast %36 : vector<8x8x16xbf16> to vector<64x16xbf16>
    %c1_32 = arith.constant 1 : index
    %c0_33 = arith.constant 0 : index
    %c0_34 = arith.constant 0 : index
    %38 = vector.load %arg7[%c1_32, %c0_33, %c0_34] : memref<9x16x8xbf16, #tpu.memory_space<vmem>>, vector<1x16x8xbf16>
    %39 = vector.shape_cast %38 : vector<1x16x8xbf16> to vector<16x8xbf16>
    %cst_35 = arith.constant dense<0.000000e+00> : vector<64x8xf32>
    %40 = tpu.matmul %37, %39, %cst_35 {dimension_numbers = #tpu.dot_dimension_numbers<[1], [0], [0], [1], [0, 0, 1, 1], [], []>} : vector<64x16xbf16>, vector<16x8xbf16>, vector<64x8xf32> -> vector<64x8xf32>
    %41 = arith.addf %35, %40 : vector<64x8xf32>
    %c0_36 = arith.constant 0 : index
    %c2 = arith.constant 2 : index
    %c0_37 = arith.constant 0 : index
    %42 = vector.load %arg9[%c0_36, %c2, %c0_37] : memref<10x10x16xbf16, #tpu.memory_space<vmem>>, vector<8x8x16xbf16>
    %43 = vector.shape_cast %42 : vector<8x8x16xbf16> to vector<64x16xbf16>
    %c2_38 = arith.constant 2 : index
    %c0_39 = arith.constant 0 : index
    %c0_40 = arith.constant 0 : index
    %44 = vector.load %arg7[%c2_38, %c0_39, %c0_40] : memref<9x16x8xbf16, #tpu.memory_space<vmem>>, vector<1x16x8xbf16>
    %45 = vector.shape_cast %44 : vector<1x16x8xbf16> to vector<16x8xbf16>
    %cst_41 = arith.constant dense<0.000000e+00> : vector<64x8xf32>
    %46 = tpu.matmul %43, %45, %cst_41 {dimension_numbers = #tpu.dot_dimension_numbers<[1], [0], [0], [1], [0, 0, 1, 1], [], []>} : vector<64x16xbf16>, vector<16x8xbf16>, vector<64x8xf32> -> vector<64x8xf32>
    %47 = arith.addf %41, %46 : vector<64x8xf32>
    %c1_42 = arith.constant 1 : index
    %c0_43 = arith.constant 0 : index
    %c0_44 = arith.constant 0 : index
    %48 = vector.load %arg9[%c1_42, %c0_43, %c0_44] : memref<10x10x16xbf16, #tpu.memory_space<vmem>>, vector<8x8x16xbf16>
    %49 = vector.shape_cast %48 : vector<8x8x16xbf16> to vector<64x16xbf16>
    %c3 = arith.constant 3 : index
    %c0_45 = arith.constant 0 : index
    %c0_46 = arith.constant 0 : index
    %50 = vector.load %arg7[%c3, %c0_45, %c0_46] : memref<9x16x8xbf16, #tpu.memory_space<vmem>>, vector<1x16x8xbf16>
    %51 = vector.shape_cast %50 : vector<1x16x8xbf16> to vector<16x8xbf16>
    %cst_47 = arith.constant dense<0.000000e+00> : vector<64x8xf32>
    %52 = tpu.matmul %49, %51, %cst_47 {dimension_numbers = #tpu.dot_dimension_numbers<[1], [0], [0], [1], [0, 0, 1, 1], [], []>} : vector<64x16xbf16>, vector<16x8xbf16>, vector<64x8xf32> -> vector<64x8xf32>
    %53 = arith.addf %47, %52 : vector<64x8xf32>
    %c1_48 = arith.constant 1 : index
    %c1_49 = arith.constant 1 : index
    %c0_50 = arith.constant 0 : index
    %54 = vector.load %arg9[%c1_48, %c1_49, %c0_50] : memref<10x10x16xbf16, #tpu.memory_space<vmem>>, vector<8x8x16xbf16>
    %55 = vector.shape_cast %54 : vector<8x8x16xbf16> to vector<64x16xbf16>
    %c4 = arith.constant 4 : index
    %c0_51 = arith.constant 0 : index
    %c0_52 = arith.constant 0 : index
    %56 = vector.load %arg7[%c4, %c0_51, %c0_52] : memref<9x16x8xbf16, #tpu.memory_space<vmem>>, vector<1x16x8xbf16>
    %57 = vector.shape_cast %56 : vector<1x16x8xbf16> to vector<16x8xbf16>
    %cst_53 = arith.constant dense<0.000000e+00> : vector<64x8xf32>
    %58 = tpu.matmul %55, %57, %cst_53 {dimension_numbers = #tpu.dot_dimension_numbers<[1], [0], [0], [1], [0, 0, 1, 1], [], []>} : vector<64x16xbf16>, vector<16x8xbf16>, vector<64x8xf32> -> vector<64x8xf32>
    %59 = arith.addf %53, %58 : vector<64x8xf32>
    %c1_54 = arith.constant 1 : index
    %c2_55 = arith.constant 2 : index
    %c0_56 = arith.constant 0 : index
    %60 = vector.load %arg9[%c1_54, %c2_55, %c0_56] : memref<10x10x16xbf16, #tpu.memory_space<vmem>>, vector<8x8x16xbf16>
    %61 = vector.shape_cast %60 : vector<8x8x16xbf16> to vector<64x16xbf16>
    %c5 = arith.constant 5 : index
    %c0_57 = arith.constant 0 : index
    %c0_58 = arith.constant 0 : index
    %62 = vector.load %arg7[%c5, %c0_57, %c0_58] : memref<9x16x8xbf16, #tpu.memory_space<vmem>>, vector<1x16x8xbf16>
    %63 = vector.shape_cast %62 : vector<1x16x8xbf16> to vector<16x8xbf16>
    %cst_59 = arith.constant dense<0.000000e+00> : vector<64x8xf32>
    %64 = tpu.matmul %61, %63, %cst_59 {dimension_numbers = #tpu.dot_dimension_numbers<[1], [0], [0], [1], [0, 0, 1, 1], [], []>} : vector<64x16xbf16>, vector<16x8xbf16>, vector<64x8xf32> -> vector<64x8xf32>
    %65 = arith.addf %59, %64 : vector<64x8xf32>
    %c2_60 = arith.constant 2 : index
    %c0_61 = arith.constant 0 : index
    %c0_62 = arith.constant 0 : index
    %66 = vector.load %arg9[%c2_60, %c0_61, %c0_62] : memref<10x10x16xbf16, #tpu.memory_space<vmem>>, vector<8x8x16xbf16>
    %67 = vector.shape_cast %66 : vector<8x8x16xbf16> to vector<64x16xbf16>
    %c6 = arith.constant 6 : index
    %c0_63 = arith.constant 0 : index
    %c0_64 = arith.constant 0 : index
    %68 = vector.load %arg7[%c6, %c0_63, %c0_64] : memref<9x16x8xbf16, #tpu.memory_space<vmem>>, vector<1x16x8xbf16>
    %69 = vector.shape_cast %68 : vector<1x16x8xbf16> to vector<16x8xbf16>
    %cst_65 = arith.constant dense<0.000000e+00> : vector<64x8xf32>
    %70 = tpu.matmul %67, %69, %cst_65 {dimension_numbers = #tpu.dot_dimension_numbers<[1], [0], [0], [1], [0, 0, 1, 1], [], []>} : vector<64x16xbf16>, vector<16x8xbf16>, vector<64x8xf32> -> vector<64x8xf32>
    %71 = arith.addf %65, %70 : vector<64x8xf32>
    %c2_66 = arith.constant 2 : index
    %c1_67 = arith.constant 1 : index
    %c0_68 = arith.constant 0 : index
    %72 = vector.load %arg9[%c2_66, %c1_67, %c0_68] : memref<10x10x16xbf16, #tpu.memory_space<vmem>>, vector<8x8x16xbf16>
    %73 = vector.shape_cast %72 : vector<8x8x16xbf16> to vector<64x16xbf16>
    %c7 = arith.constant 7 : index
    %c0_69 = arith.constant 0 : index
    %c0_70 = arith.constant 0 : index
    %74 = vector.load %arg7[%c7, %c0_69, %c0_70] : memref<9x16x8xbf16, #tpu.memory_space<vmem>>, vector<1x16x8xbf16>
    %75 = vector.shape_cast %74 : vector<1x16x8xbf16> to vector<16x8xbf16>
    %cst_71 = arith.constant dense<0.000000e+00> : vector<64x8xf32>
    %76 = tpu.matmul %73, %75, %cst_71 {dimension_numbers = #tpu.dot_dimension_numbers<[1], [0], [0], [1], [0, 0, 1, 1], [], []>} : vector<64x16xbf16>, vector<16x8xbf16>, vector<64x8xf32> -> vector<64x8xf32>
    %77 = arith.addf %71, %76 : vector<64x8xf32>
    %c2_72 = arith.constant 2 : index
    %c2_73 = arith.constant 2 : index
    %c0_74 = arith.constant 0 : index
    %78 = vector.load %arg9[%c2_72, %c2_73, %c0_74] : memref<10x10x16xbf16, #tpu.memory_space<vmem>>, vector<8x8x16xbf16>
    %79 = vector.shape_cast %78 : vector<8x8x16xbf16> to vector<64x16xbf16>
    %c8 = arith.constant 8 : index
    %c0_75 = arith.constant 0 : index
    %c0_76 = arith.constant 0 : index
    %80 = vector.load %arg7[%c8, %c0_75, %c0_76] : memref<9x16x8xbf16, #tpu.memory_space<vmem>>, vector<1x16x8xbf16>
    %81 = vector.shape_cast %80 : vector<1x16x8xbf16> to vector<16x8xbf16>
    %cst_77 = arith.constant dense<0.000000e+00> : vector<64x8xf32>
    %82 = tpu.matmul %79, %81, %cst_77 {dimension_numbers = #tpu.dot_dimension_numbers<[1], [0], [0], [1], [0, 0, 1, 1], [], []>} : vector<64x16xbf16>, vector<16x8xbf16>, vector<64x8xf32> -> vector<64x8xf32>
    %83 = arith.addf %77, %82 : vector<64x8xf32>
    %84 = arith.truncf %83 : vector<64x8xf32> to vector<64x8xbf16>
    %c0_78 = arith.constant 0 : index
    %c0_79 = arith.constant 0 : index
    %c0_80 = arith.constant 0 : index
    %85 = vector.load %arg8[%c0_78, %c0_79, %c0_80] : memref<1x64x8xbf16, #tpu.memory_space<vmem>>, vector<1x64x8xbf16>
    %86 = vector.shape_cast %85 : vector<1x64x8xbf16> to vector<64x8xbf16>
    %87 = vector.shape_cast %84 : vector<64x8xbf16> to vector<1x64x8xbf16>
    tpu.vector_store %arg8[%c0_78, %c0_79, %c0_80], %87 {strides = array<i32>} : memref<1x64x8xbf16, #tpu.memory_space<vmem>>, vector<1x64x8xbf16>,
    return
  }
  func.func @transform_0(%arg0: i32) -> (i32, i32, i32) {
    %c0_i32 = arith.constant 0 : i32
    %c0_i32_0 = arith.constant 0 : i32
    %c0_i32_1 = arith.constant 0 : i32
    return %arg0, %c0_i32, %c0_i32_0 : i32, i32, i32
  }
  func.func @transform_1(%arg0: i32) -> (i32, i32) {
    %c0_i32 = arith.constant 0 : i32
    %c0_i32_0 = arith.constant 0 : i32
    %c0_i32_1 = arith.constant 0 : i32
    return %c0_i32, %c0_i32_0 : i32, i32
  }
  func.func @transform_2(%arg0: i32) -> (i32, i32) {
    %c0_i32 = arith.constant 0 : i32
    %c0_i32_0 = arith.constant 0 : i32
    %c0_i32_1 = arith.constant 0 : i32
    return %c0_i32, %c0_i32_0 : i32, i32
  }
  func.func @transform_3(%arg0: i32) -> (i32, i32) {
    %c0_i32 = arith.constant 0 : i32
    %c0_i32_0 = arith.constant 0 : i32
    %c0_i32_1 = arith.constant 0 : i32
    return %c0_i32, %c0_i32_0 : i32, i32
  }
  func.func @transform_4(%arg0: i32) -> (i32, i32) {
    %c0_i32 = arith.constant 0 : i32
    %c0_i32_0 = arith.constant 0 : i32
    %c0_i32_1 = arith.constant 0 : i32
    return %c0_i32, %c0_i32_0 : i32, i32
  }
  func.func @transform_5(%arg0: i32) -> (i32, i32) {
    %c0_i32 = arith.constant 0 : i32
    %c0_i32_0 = arith.constant 0 : i32
    %c0_i32_1 = arith.constant 0 : i32
    return %c0_i32, %c0_i32_0 : i32, i32
  }
  func.func @transform_6(%arg0: i32) -> (i32, i32, i32) {
    %c0_i32 = arith.constant 0 : i32
    %c0_i32_0 = arith.constant 0 : i32
    %c0_i32_1 = arith.constant 0 : i32
    %c0_i32_2 = arith.constant 0 : i32
    return %c0_i32, %c0_i32_0, %c0_i32_1 : i32, i32, i32
  }
  func.func @transform_7(%arg0: i32) -> (i32, i32, i32) {
    %c0_i32 = arith.constant 0 : i32
    %c0_i32_0 = arith.constant 0 : i32
    %c0_i32_1 = arith.constant 0 : i32
    return %arg0, %c0_i32, %c0_i32_0 : i32, i32, i32
  }
}

module attributes {stable_mosaic.version = 11 : i64} {
  func.func @kernel(%arg0: i32, %arg1: memref<1x64x16xbf16, #tpu.memory_space<vmem>>, %arg2: memref<1x64x8xbf16, #tpu.memory_space<vmem>>, %arg3: memref<24x16xbf16, #tpu.memory_space<vmem>>, %arg4: memref<1x24xf32, #tpu.memory_space<vmem>>, %arg5: memref<1x24xf32, #tpu.memory_space<vmem>>, %arg6: memref<1x16xf32, #tpu.memory_space<vmem>>, %arg7: memref<1x16xf32, #tpu.memory_space<vmem>>, %arg8: memref<9x16x8xbf16, #tpu.memory_space<vmem>>, %arg9: memref<1x64x8xbf16, #tpu.memory_space<vmem>>, %arg10: memref<10x10x16xbf16, #tpu.memory_space<vmem>>) attributes {dimension_semantics = [#tpu.dimension_semantics<parallel>], iteration_bounds = array<i64: 2>, scalar_prefetch = 0 : i64, scratch_operands = 1 : i64, tpu.core_type = #tpu.core_type<tc>, window_params = [{transform_indices = @transform_0, window_bounds = array<i64: 1, 64, 16>}, {transform_indices = @transform_1, window_bounds = array<i64: 1, 64, 8>}, {pipeline_mode = #tpu.pipeline_mode<synchronous>, transform_indices = @transform_2, window_bounds = array<i64: 24, 16>}, {pipeline_mode = #tpu.pipeline_mode<synchronous>, transform_indices = @transform_3, window_bounds = array<i64: 1, 24>}, {pipeline_mode = #tpu.pipeline_mode<synchronous>, transform_indices = @transform_4, window_bounds = array<i64: 1, 24>}, {pipeline_mode = #tpu.pipeline_mode<synchronous>, transform_indices = @transform_5, window_bounds = array<i64: 1, 16>}, {pipeline_mode = #tpu.pipeline_mode<synchronous>, transform_indices = @transform_6, window_bounds = array<i64: 1, 16>}, {pipeline_mode = #tpu.pipeline_mode<synchronous>, transform_indices = @transform_7, window_bounds = array<i64: 9, 16, 8>}, {transform_indices = @transform_8, window_bounds = array<i64: 1, 64, 8>}]} {
    %c0 = arith.constant 0 : index
    %c0_0 = arith.constant 0 : index
    %0 = vector.load %arg4[%c0, %c0_0] : memref<1x24xf32, #tpu.memory_space<vmem>>, vector<1x24xf32>
    %c0_1 = arith.constant 0 : index
    %c0_2 = arith.constant 0 : index
    %1 = vector.load %arg5[%c0_1, %c0_2] : memref<1x24xf32, #tpu.memory_space<vmem>>, vector<1x24xf32>
    %c0_3 = arith.constant 0 : index
    %c0_4 = arith.constant 0 : index
    %2 = vector.load %arg6[%c0_3, %c0_4] : memref<1x16xf32, #tpu.memory_space<vmem>>, vector<1x16xf32>
    %c0_5 = arith.constant 0 : index
    %c0_6 = arith.constant 0 : index
    %3 = vector.load %arg7[%c0_5, %c0_6] : memref<1x16xf32, #tpu.memory_space<vmem>>, vector<1x16xf32>
    %cst = arith.constant 0.000000e+00 : f32
    %4 = vector.broadcast %cst : f32 to vector<64x16xf32>
    %c0_7 = arith.constant 0 : index
    %c0_8 = arith.constant 0 : index
    %c0_9 = arith.constant 0 : index
    %5 = vector.load %arg1[%c0_7, %c0_8, %c0_9] : memref<1x64x16xbf16, #tpu.memory_space<vmem>>, vector<1x64x16xbf16>
    %6 = vector.shape_cast %5 : vector<1x64x16xbf16> to vector<64x16xbf16>
    %7 = arith.extf %6 : vector<64x16xbf16> to vector<64x16xf32>
    %8 = vector.extract_strided_slice %0 {offsets = [0, 0], sizes = [1, 16], strides = [1, 1]} : vector<1x24xf32> to vector<1x16xf32>
    %9 = vector.broadcast %8 : vector<1x16xf32> to vector<64x16xf32>
    %10 = arith.mulf %7, %9 : vector<64x16xf32>
    %11 = vector.extract_strided_slice %1 {offsets = [0, 0], sizes = [1, 16], strides = [1, 1]} : vector<1x24xf32> to vector<1x16xf32>
    %12 = vector.broadcast %11 : vector<1x16xf32> to vector<64x16xf32>
    %13 = arith.addf %10, %12 : vector<64x16xf32>
    %cst_10 = arith.constant 0.000000e+00 : f32
    %14 = vector.broadcast %cst_10 : f32 to vector<64x16xf32>
    %15 = arith.maximumf %13, %14 : vector<64x16xf32>
    %16 = arith.truncf %15 : vector<64x16xf32> to vector<64x16xbf16>
    %c0_11 = arith.constant 0 : index
    %c0_12 = arith.constant 0 : index
    %17 = vector.load %arg3[%c0_11, %c0_12] : memref<24x16xbf16, #tpu.memory_space<vmem>>, vector<16x16xbf16>
    %cst_13 = arith.constant dense<0.000000e+00> : vector<64x16xf32>
    %18 = tpu.matmul %16, %17, %cst_13 {dimension_numbers = #tpu.dot_dimension_numbers<[1], [0], [0], [1], [0, 0, 1, 1], [], []>} : vector<64x16xbf16>, vector<16x16xbf16>, vector<64x16xf32> -> vector<64x16xf32>
    %19 = arith.addf %4, %18 : vector<64x16xf32>
    %c0_14 = arith.constant 0 : index
    %c0_15 = arith.constant 0 : index
    %c0_16 = arith.constant 0 : index
    %20 = vector.load %arg2[%c0_14, %c0_15, %c0_16] : memref<1x64x8xbf16, #tpu.memory_space<vmem>>, vector<1x64x8xbf16>
    %21 = vector.shape_cast %20 : vector<1x64x8xbf16> to vector<64x8xbf16>
    %22 = arith.extf %21 : vector<64x8xbf16> to vector<64x8xf32>
    %23 = vector.extract_strided_slice %0 {offsets = [0, 16], sizes = [1, 8], strides = [1, 1]} : vector<1x24xf32> to vector<1x8xf32>
    %24 = vector.broadcast %23 : vector<1x8xf32> to vector<64x8xf32>
    %25 = arith.mulf %22, %24 : vector<64x8xf32>
    %26 = vector.extract_strided_slice %1 {offsets = [0, 16], sizes = [1, 8], strides = [1, 1]} : vector<1x24xf32> to vector<1x8xf32>
    %27 = vector.broadcast %26 : vector<1x8xf32> to vector<64x8xf32>
    %28 = arith.addf %25, %27 : vector<64x8xf32>
    %cst_17 = arith.constant 0.000000e+00 : f32
    %29 = vector.broadcast %cst_17 : f32 to vector<64x8xf32>
    %30 = arith.maximumf %28, %29 : vector<64x8xf32>
    %31 = arith.truncf %30 : vector<64x8xf32> to vector<64x8xbf16>
    %c16 = arith.constant 16 : index
    %c0_18 = arith.constant 0 : index
    %32 = vector.load %arg3[%c16, %c0_18] : memref<24x16xbf16, #tpu.memory_space<vmem>>, vector<8x16xbf16>
    %cst_19 = arith.constant dense<0.000000e+00> : vector<64x16xf32>
    %33 = tpu.matmul %31, %32, %cst_19 {dimension_numbers = #tpu.dot_dimension_numbers<[1], [0], [0], [1], [0, 0, 1, 1], [], []>} : vector<64x8xbf16>, vector<8x16xbf16>, vector<64x16xf32> -> vector<64x16xf32>
    %34 = arith.addf %19, %33 : vector<64x16xf32>
    %35 = vector.broadcast %2 : vector<1x16xf32> to vector<64x16xf32>
    %36 = arith.mulf %34, %35 : vector<64x16xf32>
    %37 = vector.broadcast %3 : vector<1x16xf32> to vector<64x16xf32>
    %38 = arith.addf %36, %37 : vector<64x16xf32>
    %cst_20 = arith.constant 0.000000e+00 : f32
    %39 = vector.broadcast %cst_20 : f32 to vector<64x16xf32>
    %40 = arith.maximumf %38, %39 : vector<64x16xf32>
    %cst_21 = arith.constant 0.000000e+00 : bf16
    %41 = vector.broadcast %cst_21 : bf16 to vector<10x10x16xbf16>
    %c0_22 = arith.constant 0 : index
    %c0_23 = arith.constant 0 : index
    %c0_24 = arith.constant 0 : index
    %42 = vector.load %arg10[%c0_22, %c0_23, %c0_24] : memref<10x10x16xbf16, #tpu.memory_space<vmem>>, vector<10x10x16xbf16>
    tpu.vector_store %arg10[%c0_22, %c0_23, %c0_24], %41 {strides = array<i32>} : memref<10x10x16xbf16, #tpu.memory_space<vmem>>, vector<10x10x16xbf16>,
    %43 = vector.shape_cast %40 : vector<64x16xf32> to vector<8x8x16xf32>
    %44 = arith.truncf %43 : vector<8x8x16xf32> to vector<8x8x16xbf16>
    %c1 = arith.constant 1 : index
    %c1_25 = arith.constant 1 : index
    %c0_26 = arith.constant 0 : index
    %45 = vector.load %arg10[%c1, %c1_25, %c0_26] : memref<10x10x16xbf16, #tpu.memory_space<vmem>>, vector<8x8x16xbf16>
    tpu.vector_store %arg10[%c1, %c1_25, %c0_26], %44 {strides = array<i32>} : memref<10x10x16xbf16, #tpu.memory_space<vmem>>, vector<8x8x16xbf16>,
    %cst_27 = arith.constant 0.000000e+00 : f32
    %46 = vector.broadcast %cst_27 : f32 to vector<64x8xf32>
    %c0_28 = arith.constant 0 : index
    %c0_29 = arith.constant 0 : index
    %c0_30 = arith.constant 0 : index
    %47 = vector.load %arg10[%c0_28, %c0_29, %c0_30] : memref<10x10x16xbf16, #tpu.memory_space<vmem>>, vector<8x8x16xbf16>
    %48 = vector.shape_cast %47 : vector<8x8x16xbf16> to vector<64x16xbf16>
    %c0_31 = arith.constant 0 : index
    %c0_32 = arith.constant 0 : index
    %c0_33 = arith.constant 0 : index
    %49 = vector.load %arg8[%c0_31, %c0_32, %c0_33] : memref<9x16x8xbf16, #tpu.memory_space<vmem>>, vector<1x16x8xbf16>
    %50 = vector.shape_cast %49 : vector<1x16x8xbf16> to vector<16x8xbf16>
    %cst_34 = arith.constant dense<0.000000e+00> : vector<64x8xf32>
    %51 = tpu.matmul %48, %50, %cst_34 {dimension_numbers = #tpu.dot_dimension_numbers<[1], [0], [0], [1], [0, 0, 1, 1], [], []>} : vector<64x16xbf16>, vector<16x8xbf16>, vector<64x8xf32> -> vector<64x8xf32>
    %52 = arith.addf %46, %51 : vector<64x8xf32>
    %c0_35 = arith.constant 0 : index
    %c1_36 = arith.constant 1 : index
    %c0_37 = arith.constant 0 : index
    %53 = vector.load %arg10[%c0_35, %c1_36, %c0_37] : memref<10x10x16xbf16, #tpu.memory_space<vmem>>, vector<8x8x16xbf16>
    %54 = vector.shape_cast %53 : vector<8x8x16xbf16> to vector<64x16xbf16>
    %c1_38 = arith.constant 1 : index
    %c0_39 = arith.constant 0 : index
    %c0_40 = arith.constant 0 : index
    %55 = vector.load %arg8[%c1_38, %c0_39, %c0_40] : memref<9x16x8xbf16, #tpu.memory_space<vmem>>, vector<1x16x8xbf16>
    %56 = vector.shape_cast %55 : vector<1x16x8xbf16> to vector<16x8xbf16>
    %cst_41 = arith.constant dense<0.000000e+00> : vector<64x8xf32>
    %57 = tpu.matmul %54, %56, %cst_41 {dimension_numbers = #tpu.dot_dimension_numbers<[1], [0], [0], [1], [0, 0, 1, 1], [], []>} : vector<64x16xbf16>, vector<16x8xbf16>, vector<64x8xf32> -> vector<64x8xf32>
    %58 = arith.addf %52, %57 : vector<64x8xf32>
    %c0_42 = arith.constant 0 : index
    %c2 = arith.constant 2 : index
    %c0_43 = arith.constant 0 : index
    %59 = vector.load %arg10[%c0_42, %c2, %c0_43] : memref<10x10x16xbf16, #tpu.memory_space<vmem>>, vector<8x8x16xbf16>
    %60 = vector.shape_cast %59 : vector<8x8x16xbf16> to vector<64x16xbf16>
    %c2_44 = arith.constant 2 : index
    %c0_45 = arith.constant 0 : index
    %c0_46 = arith.constant 0 : index
    %61 = vector.load %arg8[%c2_44, %c0_45, %c0_46] : memref<9x16x8xbf16, #tpu.memory_space<vmem>>, vector<1x16x8xbf16>
    %62 = vector.shape_cast %61 : vector<1x16x8xbf16> to vector<16x8xbf16>
    %cst_47 = arith.constant dense<0.000000e+00> : vector<64x8xf32>
    %63 = tpu.matmul %60, %62, %cst_47 {dimension_numbers = #tpu.dot_dimension_numbers<[1], [0], [0], [1], [0, 0, 1, 1], [], []>} : vector<64x16xbf16>, vector<16x8xbf16>, vector<64x8xf32> -> vector<64x8xf32>
    %64 = arith.addf %58, %63 : vector<64x8xf32>
    %c1_48 = arith.constant 1 : index
    %c0_49 = arith.constant 0 : index
    %c0_50 = arith.constant 0 : index
    %65 = vector.load %arg10[%c1_48, %c0_49, %c0_50] : memref<10x10x16xbf16, #tpu.memory_space<vmem>>, vector<8x8x16xbf16>
    %66 = vector.shape_cast %65 : vector<8x8x16xbf16> to vector<64x16xbf16>
    %c3 = arith.constant 3 : index
    %c0_51 = arith.constant 0 : index
    %c0_52 = arith.constant 0 : index
    %67 = vector.load %arg8[%c3, %c0_51, %c0_52] : memref<9x16x8xbf16, #tpu.memory_space<vmem>>, vector<1x16x8xbf16>
    %68 = vector.shape_cast %67 : vector<1x16x8xbf16> to vector<16x8xbf16>
    %cst_53 = arith.constant dense<0.000000e+00> : vector<64x8xf32>
    %69 = tpu.matmul %66, %68, %cst_53 {dimension_numbers = #tpu.dot_dimension_numbers<[1], [0], [0], [1], [0, 0, 1, 1], [], []>} : vector<64x16xbf16>, vector<16x8xbf16>, vector<64x8xf32> -> vector<64x8xf32>
    %70 = arith.addf %64, %69 : vector<64x8xf32>
    %c1_54 = arith.constant 1 : index
    %c1_55 = arith.constant 1 : index
    %c0_56 = arith.constant 0 : index
    %71 = vector.load %arg10[%c1_54, %c1_55, %c0_56] : memref<10x10x16xbf16, #tpu.memory_space<vmem>>, vector<8x8x16xbf16>
    %72 = vector.shape_cast %71 : vector<8x8x16xbf16> to vector<64x16xbf16>
    %c4 = arith.constant 4 : index
    %c0_57 = arith.constant 0 : index
    %c0_58 = arith.constant 0 : index
    %73 = vector.load %arg8[%c4, %c0_57, %c0_58] : memref<9x16x8xbf16, #tpu.memory_space<vmem>>, vector<1x16x8xbf16>
    %74 = vector.shape_cast %73 : vector<1x16x8xbf16> to vector<16x8xbf16>
    %cst_59 = arith.constant dense<0.000000e+00> : vector<64x8xf32>
    %75 = tpu.matmul %72, %74, %cst_59 {dimension_numbers = #tpu.dot_dimension_numbers<[1], [0], [0], [1], [0, 0, 1, 1], [], []>} : vector<64x16xbf16>, vector<16x8xbf16>, vector<64x8xf32> -> vector<64x8xf32>
    %76 = arith.addf %70, %75 : vector<64x8xf32>
    %c1_60 = arith.constant 1 : index
    %c2_61 = arith.constant 2 : index
    %c0_62 = arith.constant 0 : index
    %77 = vector.load %arg10[%c1_60, %c2_61, %c0_62] : memref<10x10x16xbf16, #tpu.memory_space<vmem>>, vector<8x8x16xbf16>
    %78 = vector.shape_cast %77 : vector<8x8x16xbf16> to vector<64x16xbf16>
    %c5 = arith.constant 5 : index
    %c0_63 = arith.constant 0 : index
    %c0_64 = arith.constant 0 : index
    %79 = vector.load %arg8[%c5, %c0_63, %c0_64] : memref<9x16x8xbf16, #tpu.memory_space<vmem>>, vector<1x16x8xbf16>
    %80 = vector.shape_cast %79 : vector<1x16x8xbf16> to vector<16x8xbf16>
    %cst_65 = arith.constant dense<0.000000e+00> : vector<64x8xf32>
    %81 = tpu.matmul %78, %80, %cst_65 {dimension_numbers = #tpu.dot_dimension_numbers<[1], [0], [0], [1], [0, 0, 1, 1], [], []>} : vector<64x16xbf16>, vector<16x8xbf16>, vector<64x8xf32> -> vector<64x8xf32>
    %82 = arith.addf %76, %81 : vector<64x8xf32>
    %c2_66 = arith.constant 2 : index
    %c0_67 = arith.constant 0 : index
    %c0_68 = arith.constant 0 : index
    %83 = vector.load %arg10[%c2_66, %c0_67, %c0_68] : memref<10x10x16xbf16, #tpu.memory_space<vmem>>, vector<8x8x16xbf16>
    %84 = vector.shape_cast %83 : vector<8x8x16xbf16> to vector<64x16xbf16>
    %c6 = arith.constant 6 : index
    %c0_69 = arith.constant 0 : index
    %c0_70 = arith.constant 0 : index
    %85 = vector.load %arg8[%c6, %c0_69, %c0_70] : memref<9x16x8xbf16, #tpu.memory_space<vmem>>, vector<1x16x8xbf16>
    %86 = vector.shape_cast %85 : vector<1x16x8xbf16> to vector<16x8xbf16>
    %cst_71 = arith.constant dense<0.000000e+00> : vector<64x8xf32>
    %87 = tpu.matmul %84, %86, %cst_71 {dimension_numbers = #tpu.dot_dimension_numbers<[1], [0], [0], [1], [0, 0, 1, 1], [], []>} : vector<64x16xbf16>, vector<16x8xbf16>, vector<64x8xf32> -> vector<64x8xf32>
    %88 = arith.addf %82, %87 : vector<64x8xf32>
    %c2_72 = arith.constant 2 : index
    %c1_73 = arith.constant 1 : index
    %c0_74 = arith.constant 0 : index
    %89 = vector.load %arg10[%c2_72, %c1_73, %c0_74] : memref<10x10x16xbf16, #tpu.memory_space<vmem>>, vector<8x8x16xbf16>
    %90 = vector.shape_cast %89 : vector<8x8x16xbf16> to vector<64x16xbf16>
    %c7 = arith.constant 7 : index
    %c0_75 = arith.constant 0 : index
    %c0_76 = arith.constant 0 : index
    %91 = vector.load %arg8[%c7, %c0_75, %c0_76] : memref<9x16x8xbf16, #tpu.memory_space<vmem>>, vector<1x16x8xbf16>
    %92 = vector.shape_cast %91 : vector<1x16x8xbf16> to vector<16x8xbf16>
    %cst_77 = arith.constant dense<0.000000e+00> : vector<64x8xf32>
    %93 = tpu.matmul %90, %92, %cst_77 {dimension_numbers = #tpu.dot_dimension_numbers<[1], [0], [0], [1], [0, 0, 1, 1], [], []>} : vector<64x16xbf16>, vector<16x8xbf16>, vector<64x8xf32> -> vector<64x8xf32>
    %94 = arith.addf %88, %93 : vector<64x8xf32>
    %c2_78 = arith.constant 2 : index
    %c2_79 = arith.constant 2 : index
    %c0_80 = arith.constant 0 : index
    %95 = vector.load %arg10[%c2_78, %c2_79, %c0_80] : memref<10x10x16xbf16, #tpu.memory_space<vmem>>, vector<8x8x16xbf16>
    %96 = vector.shape_cast %95 : vector<8x8x16xbf16> to vector<64x16xbf16>
    %c8 = arith.constant 8 : index
    %c0_81 = arith.constant 0 : index
    %c0_82 = arith.constant 0 : index
    %97 = vector.load %arg8[%c8, %c0_81, %c0_82] : memref<9x16x8xbf16, #tpu.memory_space<vmem>>, vector<1x16x8xbf16>
    %98 = vector.shape_cast %97 : vector<1x16x8xbf16> to vector<16x8xbf16>
    %cst_83 = arith.constant dense<0.000000e+00> : vector<64x8xf32>
    %99 = tpu.matmul %96, %98, %cst_83 {dimension_numbers = #tpu.dot_dimension_numbers<[1], [0], [0], [1], [0, 0, 1, 1], [], []>} : vector<64x16xbf16>, vector<16x8xbf16>, vector<64x8xf32> -> vector<64x8xf32>
    %100 = arith.addf %94, %99 : vector<64x8xf32>
    %101 = arith.truncf %100 : vector<64x8xf32> to vector<64x8xbf16>
    %c0_84 = arith.constant 0 : index
    %c0_85 = arith.constant 0 : index
    %c0_86 = arith.constant 0 : index
    %102 = vector.load %arg9[%c0_84, %c0_85, %c0_86] : memref<1x64x8xbf16, #tpu.memory_space<vmem>>, vector<1x64x8xbf16>
    %103 = vector.shape_cast %102 : vector<1x64x8xbf16> to vector<64x8xbf16>
    %104 = vector.shape_cast %101 : vector<64x8xbf16> to vector<1x64x8xbf16>
    tpu.vector_store %arg9[%c0_84, %c0_85, %c0_86], %104 {strides = array<i32>} : memref<1x64x8xbf16, #tpu.memory_space<vmem>>, vector<1x64x8xbf16>,
    return
  }
  func.func @transform_0(%arg0: i32) -> (i32, i32, i32) {
    %c0_i32 = arith.constant 0 : i32
    %c0_i32_0 = arith.constant 0 : i32
    %c0_i32_1 = arith.constant 0 : i32
    return %arg0, %c0_i32, %c0_i32_0 : i32, i32, i32
  }
  func.func @transform_1(%arg0: i32) -> (i32, i32, i32) {
    %c0_i32 = arith.constant 0 : i32
    %c0_i32_0 = arith.constant 0 : i32
    %c0_i32_1 = arith.constant 0 : i32
    return %arg0, %c0_i32, %c0_i32_0 : i32, i32, i32
  }
  func.func @transform_2(%arg0: i32) -> (i32, i32) {
    %c0_i32 = arith.constant 0 : i32
    %c0_i32_0 = arith.constant 0 : i32
    %c0_i32_1 = arith.constant 0 : i32
    return %c0_i32, %c0_i32_0 : i32, i32
  }
  func.func @transform_3(%arg0: i32) -> (i32, i32) {
    %c0_i32 = arith.constant 0 : i32
    %c0_i32_0 = arith.constant 0 : i32
    %c0_i32_1 = arith.constant 0 : i32
    return %c0_i32, %c0_i32_0 : i32, i32
  }
  func.func @transform_4(%arg0: i32) -> (i32, i32) {
    %c0_i32 = arith.constant 0 : i32
    %c0_i32_0 = arith.constant 0 : i32
    %c0_i32_1 = arith.constant 0 : i32
    return %c0_i32, %c0_i32_0 : i32, i32
  }
  func.func @transform_5(%arg0: i32) -> (i32, i32) {
    %c0_i32 = arith.constant 0 : i32
    %c0_i32_0 = arith.constant 0 : i32
    %c0_i32_1 = arith.constant 0 : i32
    return %c0_i32, %c0_i32_0 : i32, i32
  }
  func.func @transform_6(%arg0: i32) -> (i32, i32) {
    %c0_i32 = arith.constant 0 : i32
    %c0_i32_0 = arith.constant 0 : i32
    %c0_i32_1 = arith.constant 0 : i32
    return %c0_i32, %c0_i32_0 : i32, i32
  }
  func.func @transform_7(%arg0: i32) -> (i32, i32, i32) {
    %c0_i32 = arith.constant 0 : i32
    %c0_i32_0 = arith.constant 0 : i32
    %c0_i32_1 = arith.constant 0 : i32
    %c0_i32_2 = arith.constant 0 : i32
    return %c0_i32, %c0_i32_0, %c0_i32_1 : i32, i32, i32
  }
  func.func @transform_8(%arg0: i32) -> (i32, i32, i32) {
    %c0_i32 = arith.constant 0 : i32
    %c0_i32_0 = arith.constant 0 : i32
    %c0_i32_1 = arith.constant 0 : i32
    return %arg0, %c0_i32, %c0_i32_0 : i32, i32, i32
  }
}

module attributes {stable_mosaic.version = 11 : i64} {
  func.func @kernel(%arg0: i32, %arg1: memref<1x64x16xbf16, #tpu.memory_space<vmem>>, %arg2: memref<1x64x8xbf16, #tpu.memory_space<vmem>>, %arg3: memref<1x64x8xbf16, #tpu.memory_space<vmem>>, %arg4: memref<32x16xbf16, #tpu.memory_space<vmem>>, %arg5: memref<1x32xf32, #tpu.memory_space<vmem>>, %arg6: memref<1x32xf32, #tpu.memory_space<vmem>>, %arg7: memref<1x16x16xbf16, #tpu.memory_space<vmem>>) attributes {dimension_semantics = [#tpu.dimension_semantics<parallel>], iteration_bounds = array<i64: 2>, scalar_prefetch = 0 : i64, scratch_operands = 0 : i64, tpu.core_type = #tpu.core_type<tc>, window_params = [{transform_indices = @transform_0, window_bounds = array<i64: 1, 64, 16>}, {transform_indices = @transform_1, window_bounds = array<i64: 1, 64, 8>}, {transform_indices = @transform_2, window_bounds = array<i64: 1, 64, 8>}, {pipeline_mode = #tpu.pipeline_mode<synchronous>, transform_indices = @transform_3, window_bounds = array<i64: 32, 16>}, {pipeline_mode = #tpu.pipeline_mode<synchronous>, transform_indices = @transform_4, window_bounds = array<i64: 1, 32>}, {pipeline_mode = #tpu.pipeline_mode<synchronous>, transform_indices = @transform_5, window_bounds = array<i64: 1, 32>}, {transform_indices = @transform_6, window_bounds = array<i64: 1, 16, 16>}]} {
    %c0 = arith.constant 0 : index
    %c0_0 = arith.constant 0 : index
    %0 = vector.load %arg5[%c0, %c0_0] : memref<1x32xf32, #tpu.memory_space<vmem>>, vector<1x32xf32>
    %c0_1 = arith.constant 0 : index
    %c0_2 = arith.constant 0 : index
    %1 = vector.load %arg6[%c0_1, %c0_2] : memref<1x32xf32, #tpu.memory_space<vmem>>, vector<1x32xf32>
    %cst = arith.constant 0.000000e+00 : f32
    %2 = vector.broadcast %cst : f32 to vector<64x16xf32>
    %c0_3 = arith.constant 0 : index
    %c0_4 = arith.constant 0 : index
    %c0_5 = arith.constant 0 : index
    %3 = vector.load %arg1[%c0_3, %c0_4, %c0_5] : memref<1x64x16xbf16, #tpu.memory_space<vmem>>, vector<1x64x16xbf16>
    %4 = vector.shape_cast %3 : vector<1x64x16xbf16> to vector<64x16xbf16>
    %5 = arith.extf %4 : vector<64x16xbf16> to vector<64x16xf32>
    %6 = vector.extract_strided_slice %0 {offsets = [0, 0], sizes = [1, 16], strides = [1, 1]} : vector<1x32xf32> to vector<1x16xf32>
    %7 = vector.broadcast %6 : vector<1x16xf32> to vector<64x16xf32>
    %8 = arith.mulf %5, %7 : vector<64x16xf32>
    %9 = vector.extract_strided_slice %1 {offsets = [0, 0], sizes = [1, 16], strides = [1, 1]} : vector<1x32xf32> to vector<1x16xf32>
    %10 = vector.broadcast %9 : vector<1x16xf32> to vector<64x16xf32>
    %11 = arith.addf %8, %10 : vector<64x16xf32>
    %cst_6 = arith.constant 0.000000e+00 : f32
    %12 = vector.broadcast %cst_6 : f32 to vector<64x16xf32>
    %13 = arith.maximumf %11, %12 : vector<64x16xf32>
    %14 = arith.truncf %13 : vector<64x16xf32> to vector<64x16xbf16>
    %c0_7 = arith.constant 0 : index
    %c0_8 = arith.constant 0 : index
    %15 = vector.load %arg4[%c0_7, %c0_8] : memref<32x16xbf16, #tpu.memory_space<vmem>>, vector<16x16xbf16>
    %cst_9 = arith.constant dense<0.000000e+00> : vector<64x16xf32>
    %16 = tpu.matmul %14, %15, %cst_9 {dimension_numbers = #tpu.dot_dimension_numbers<[1], [0], [0], [1], [0, 0, 1, 1], [], []>} : vector<64x16xbf16>, vector<16x16xbf16>, vector<64x16xf32> -> vector<64x16xf32>
    %17 = arith.addf %2, %16 : vector<64x16xf32>
    %c0_10 = arith.constant 0 : index
    %c0_11 = arith.constant 0 : index
    %c0_12 = arith.constant 0 : index
    %18 = vector.load %arg2[%c0_10, %c0_11, %c0_12] : memref<1x64x8xbf16, #tpu.memory_space<vmem>>, vector<1x64x8xbf16>
    %19 = vector.shape_cast %18 : vector<1x64x8xbf16> to vector<64x8xbf16>
    %20 = arith.extf %19 : vector<64x8xbf16> to vector<64x8xf32>
    %21 = vector.extract_strided_slice %0 {offsets = [0, 16], sizes = [1, 8], strides = [1, 1]} : vector<1x32xf32> to vector<1x8xf32>
    %22 = vector.broadcast %21 : vector<1x8xf32> to vector<64x8xf32>
    %23 = arith.mulf %20, %22 : vector<64x8xf32>
    %24 = vector.extract_strided_slice %1 {offsets = [0, 16], sizes = [1, 8], strides = [1, 1]} : vector<1x32xf32> to vector<1x8xf32>
    %25 = vector.broadcast %24 : vector<1x8xf32> to vector<64x8xf32>
    %26 = arith.addf %23, %25 : vector<64x8xf32>
    %cst_13 = arith.constant 0.000000e+00 : f32
    %27 = vector.broadcast %cst_13 : f32 to vector<64x8xf32>
    %28 = arith.maximumf %26, %27 : vector<64x8xf32>
    %29 = arith.truncf %28 : vector<64x8xf32> to vector<64x8xbf16>
    %c16 = arith.constant 16 : index
    %c0_14 = arith.constant 0 : index
    %30 = vector.load %arg4[%c16, %c0_14] : memref<32x16xbf16, #tpu.memory_space<vmem>>, vector<8x16xbf16>
    %cst_15 = arith.constant dense<0.000000e+00> : vector<64x16xf32>
    %31 = tpu.matmul %29, %30, %cst_15 {dimension_numbers = #tpu.dot_dimension_numbers<[1], [0], [0], [1], [0, 0, 1, 1], [], []>} : vector<64x8xbf16>, vector<8x16xbf16>, vector<64x16xf32> -> vector<64x16xf32>
    %32 = arith.addf %17, %31 : vector<64x16xf32>
    %c0_16 = arith.constant 0 : index
    %c0_17 = arith.constant 0 : index
    %c0_18 = arith.constant 0 : index
    %33 = vector.load %arg3[%c0_16, %c0_17, %c0_18] : memref<1x64x8xbf16, #tpu.memory_space<vmem>>, vector<1x64x8xbf16>
    %34 = vector.shape_cast %33 : vector<1x64x8xbf16> to vector<64x8xbf16>
    %35 = arith.extf %34 : vector<64x8xbf16> to vector<64x8xf32>
    %36 = vector.extract_strided_slice %0 {offsets = [0, 24], sizes = [1, 8], strides = [1, 1]} : vector<1x32xf32> to vector<1x8xf32>
    %37 = vector.broadcast %36 : vector<1x8xf32> to vector<64x8xf32>
    %38 = arith.mulf %35, %37 : vector<64x8xf32>
    %39 = vector.extract_strided_slice %1 {offsets = [0, 24], sizes = [1, 8], strides = [1, 1]} : vector<1x32xf32> to vector<1x8xf32>
    %40 = vector.broadcast %39 : vector<1x8xf32> to vector<64x8xf32>
    %41 = arith.addf %38, %40 : vector<64x8xf32>
    %cst_19 = arith.constant 0.000000e+00 : f32
    %42 = vector.broadcast %cst_19 : f32 to vector<64x8xf32>
    %43 = arith.maximumf %41, %42 : vector<64x8xf32>
    %44 = arith.truncf %43 : vector<64x8xf32> to vector<64x8xbf16>
    %c24 = arith.constant 24 : index
    %c0_20 = arith.constant 0 : index
    %45 = vector.load %arg4[%c24, %c0_20] : memref<32x16xbf16, #tpu.memory_space<vmem>>, vector<8x16xbf16>
    %cst_21 = arith.constant dense<0.000000e+00> : vector<64x16xf32>
    %46 = tpu.matmul %44, %45, %cst_21 {dimension_numbers = #tpu.dot_dimension_numbers<[1], [0], [0], [1], [0, 0, 1, 1], [], []>} : vector<64x8xbf16>, vector<8x16xbf16>, vector<64x16xf32> -> vector<64x16xf32>
    %47 = arith.addf %32, %46 : vector<64x16xf32>
    %48 = vector.shape_cast %47 : vector<64x16xf32> to vector<32x2x16xf32>
    %49 = vector.extract_strided_slice %48 {offsets = [0, 0, 0], sizes = [32, 1, 16], strides = [1, 1, 1]} : vector<32x2x16xf32> to vector<32x1x16xf32>
    %50 = vector.shape_cast %49 : vector<32x1x16xf32> to vector<32x16xf32>
    %51 = vector.extract_strided_slice %48 {offsets = [0, 1, 0], sizes = [32, 1, 16], strides = [1, 1, 1]} : vector<32x2x16xf32> to vector<32x1x16xf32>
    %52 = vector.shape_cast %51 : vector<32x1x16xf32> to vector<32x16xf32>
    %53 = arith.addf %50, %52 : vector<32x16xf32>
    %54 = vector.shape_cast %53 : vector<32x16xf32> to vector<4x2x4x16xf32>
    %55 = vector.extract_strided_slice %54 {offsets = [0, 0, 0, 0], sizes = [4, 1, 4, 16], strides = [1, 1, 1, 1]} : vector<4x2x4x16xf32> to vector<4x1x4x16xf32>
    %56 = vector.shape_cast %55 : vector<4x1x4x16xf32> to vector<4x4x16xf32>
    %57 = vector.extract_strided_slice %54 {offsets = [0, 1, 0, 0], sizes = [4, 1, 4, 16], strides = [1, 1, 1, 1]} : vector<4x2x4x16xf32> to vector<4x1x4x16xf32>
    %58 = vector.shape_cast %57 : vector<4x1x4x16xf32> to vector<4x4x16xf32>
    %59 = arith.addf %56, %58 : vector<4x4x16xf32>
    %cst_22 = arith.constant 2.500000e-01 : f32
    %60 = vector.broadcast %cst_22 : f32 to vector<4x4x16xf32>
    %61 = arith.mulf %59, %60 : vector<4x4x16xf32>
    %62 = vector.shape_cast %61 : vector<4x4x16xf32> to vector<16x16xf32>
    %63 = arith.truncf %62 : vector<16x16xf32> to vector<16x16xbf16>
    %c0_23 = arith.constant 0 : index
    %c0_24 = arith.constant 0 : index
    %c0_25 = arith.constant 0 : index
    %64 = vector.load %arg7[%c0_23, %c0_24, %c0_25] : memref<1x16x16xbf16, #tpu.memory_space<vmem>>, vector<1x16x16xbf16>
    %65 = vector.shape_cast %64 : vector<1x16x16xbf16> to vector<16x16xbf16>
    %66 = vector.shape_cast %63 : vector<16x16xbf16> to vector<1x16x16xbf16>
    tpu.vector_store %arg7[%c0_23, %c0_24, %c0_25], %66 {strides = array<i32>} : memref<1x16x16xbf16, #tpu.memory_space<vmem>>, vector<1x16x16xbf16>,
    return
  }
  func.func @transform_0(%arg0: i32) -> (i32, i32, i32) {
    %c0_i32 = arith.constant 0 : i32
    %c0_i32_0 = arith.constant 0 : i32
    %c0_i32_1 = arith.constant 0 : i32
    return %arg0, %c0_i32, %c0_i32_0 : i32, i32, i32
  }
  func.func @transform_1(%arg0: i32) -> (i32, i32, i32) {
    %c0_i32 = arith.constant 0 : i32
    %c0_i32_0 = arith.constant 0 : i32
    %c0_i32_1 = arith.constant 0 : i32
    return %arg0, %c0_i32, %c0_i32_0 : i32, i32, i32
  }
  func.func @transform_2(%arg0: i32) -> (i32, i32, i32) {
    %c0_i32 = arith.constant 0 : i32
    %c0_i32_0 = arith.constant 0 : i32
    %c0_i32_1 = arith.constant 0 : i32
    return %arg0, %c0_i32, %c0_i32_0 : i32, i32, i32
  }
  func.func @transform_3(%arg0: i32) -> (i32, i32) {
    %c0_i32 = arith.constant 0 : i32
    %c0_i32_0 = arith.constant 0 : i32
    %c0_i32_1 = arith.constant 0 : i32
    return %c0_i32, %c0_i32_0 : i32, i32
  }
  func.func @transform_4(%arg0: i32) -> (i32, i32) {
    %c0_i32 = arith.constant 0 : i32
    %c0_i32_0 = arith.constant 0 : i32
    %c0_i32_1 = arith.constant 0 : i32
    return %c0_i32, %c0_i32_0 : i32, i32
  }
  func.func @transform_5(%arg0: i32) -> (i32, i32) {
    %c0_i32 = arith.constant 0 : i32
    %c0_i32_0 = arith.constant 0 : i32
    %c0_i32_1 = arith.constant 0 : i32
    return %c0_i32, %c0_i32_0 : i32, i32
  }
  func.func @transform_6(%arg0: i32) -> (i32, i32, i32) {
    %c0_i32 = arith.constant 0 : i32
    %c0_i32_0 = arith.constant 0 : i32
    %c0_i32_1 = arith.constant 0 : i32
    return %arg0, %c0_i32, %c0_i32_0 : i32, i32, i32
  }
}

module attributes {stable_mosaic.version = 11 : i64} {
  func.func @kernel(%arg0: i32, %arg1: memref<1x16x16xbf16, #tpu.memory_space<vmem>>, %arg2: memref<16x16xbf16, #tpu.memory_space<vmem>>, %arg3: memref<1x16xf32, #tpu.memory_space<vmem>>, %arg4: memref<1x16xf32, #tpu.memory_space<vmem>>, %arg5: memref<1x16xf32, #tpu.memory_space<vmem>>, %arg6: memref<1x16xf32, #tpu.memory_space<vmem>>, %arg7: memref<9x16x8xbf16, #tpu.memory_space<vmem>>, %arg8: memref<1x16x8xbf16, #tpu.memory_space<vmem>>, %arg9: memref<6x6x16xbf16, #tpu.memory_space<vmem>>) attributes {dimension_semantics = [#tpu.dimension_semantics<parallel>], iteration_bounds = array<i64: 2>, scalar_prefetch = 0 : i64, scratch_operands = 1 : i64, tpu.core_type = #tpu.core_type<tc>, window_params = [{transform_indices = @transform_0, window_bounds = array<i64: 1, 16, 16>}, {pipeline_mode = #tpu.pipeline_mode<synchronous>, transform_indices = @transform_1, window_bounds = array<i64: 16, 16>}, {pipeline_mode = #tpu.pipeline_mode<synchronous>, transform_indices = @transform_2, window_bounds = array<i64: 1, 16>}, {pipeline_mode = #tpu.pipeline_mode<synchronous>, transform_indices = @transform_3, window_bounds = array<i64: 1, 16>}, {pipeline_mode = #tpu.pipeline_mode<synchronous>, transform_indices = @transform_4, window_bounds = array<i64: 1, 16>}, {pipeline_mode = #tpu.pipeline_mode<synchronous>, transform_indices = @transform_5, window_bounds = array<i64: 1, 16>}, {pipeline_mode = #tpu.pipeline_mode<synchronous>, transform_indices = @transform_6, window_bounds = array<i64: 9, 16, 8>}, {transform_indices = @transform_7, window_bounds = array<i64: 1, 16, 8>}]} {
    %c0 = arith.constant 0 : index
    %c0_0 = arith.constant 0 : index
    %0 = vector.load %arg3[%c0, %c0_0] : memref<1x16xf32, #tpu.memory_space<vmem>>, vector<1x16xf32>
    %c0_1 = arith.constant 0 : index
    %c0_2 = arith.constant 0 : index
    %1 = vector.load %arg4[%c0_1, %c0_2] : memref<1x16xf32, #tpu.memory_space<vmem>>, vector<1x16xf32>
    %c0_3 = arith.constant 0 : index
    %c0_4 = arith.constant 0 : index
    %2 = vector.load %arg5[%c0_3, %c0_4] : memref<1x16xf32, #tpu.memory_space<vmem>>, vector<1x16xf32>
    %c0_5 = arith.constant 0 : index
    %c0_6 = arith.constant 0 : index
    %3 = vector.load %arg6[%c0_5, %c0_6] : memref<1x16xf32, #tpu.memory_space<vmem>>, vector<1x16xf32>
    %cst = arith.constant 0.000000e+00 : f32
    %4 = vector.broadcast %cst : f32 to vector<16x16xf32>
    %c0_7 = arith.constant 0 : index
    %c0_8 = arith.constant 0 : index
    %c0_9 = arith.constant 0 : index
    %5 = vector.load %arg1[%c0_7, %c0_8, %c0_9] : memref<1x16x16xbf16, #tpu.memory_space<vmem>>, vector<1x16x16xbf16>
    %6 = vector.shape_cast %5 : vector<1x16x16xbf16> to vector<16x16xbf16>
    %7 = arith.extf %6 : vector<16x16xbf16> to vector<16x16xf32>
    %8 = vector.broadcast %0 : vector<1x16xf32> to vector<16x16xf32>
    %9 = arith.mulf %7, %8 : vector<16x16xf32>
    %10 = vector.broadcast %1 : vector<1x16xf32> to vector<16x16xf32>
    %11 = arith.addf %9, %10 : vector<16x16xf32>
    %cst_10 = arith.constant 0.000000e+00 : f32
    %12 = vector.broadcast %cst_10 : f32 to vector<16x16xf32>
    %13 = arith.maximumf %11, %12 : vector<16x16xf32>
    %14 = arith.truncf %13 : vector<16x16xf32> to vector<16x16xbf16>
    %c0_11 = arith.constant 0 : index
    %c0_12 = arith.constant 0 : index
    %15 = vector.load %arg2[%c0_11, %c0_12] : memref<16x16xbf16, #tpu.memory_space<vmem>>, vector<16x16xbf16>
    %cst_13 = arith.constant dense<0.000000e+00> : vector<16x16xf32>
    %16 = tpu.matmul %14, %15, %cst_13 {dimension_numbers = #tpu.dot_dimension_numbers<[1], [0], [0], [1], [0, 0, 1, 1], [], []>} : vector<16x16xbf16>, vector<16x16xbf16>, vector<16x16xf32> -> vector<16x16xf32>
    %17 = arith.addf %4, %16 : vector<16x16xf32>
    %18 = vector.broadcast %2 : vector<1x16xf32> to vector<16x16xf32>
    %19 = arith.mulf %17, %18 : vector<16x16xf32>
    %20 = vector.broadcast %3 : vector<1x16xf32> to vector<16x16xf32>
    %21 = arith.addf %19, %20 : vector<16x16xf32>
    %cst_14 = arith.constant 0.000000e+00 : f32
    %22 = vector.broadcast %cst_14 : f32 to vector<16x16xf32>
    %23 = arith.maximumf %21, %22 : vector<16x16xf32>
    %cst_15 = arith.constant 0.000000e+00 : bf16
    %24 = vector.broadcast %cst_15 : bf16 to vector<6x6x16xbf16>
    %c0_16 = arith.constant 0 : index
    %c0_17 = arith.constant 0 : index
    %c0_18 = arith.constant 0 : index
    %25 = vector.load %arg9[%c0_16, %c0_17, %c0_18] : memref<6x6x16xbf16, #tpu.memory_space<vmem>>, vector<6x6x16xbf16>
    tpu.vector_store %arg9[%c0_16, %c0_17, %c0_18], %24 {strides = array<i32>} : memref<6x6x16xbf16, #tpu.memory_space<vmem>>, vector<6x6x16xbf16>,
    %26 = vector.shape_cast %23 : vector<16x16xf32> to vector<4x4x16xf32>
    %27 = arith.truncf %26 : vector<4x4x16xf32> to vector<4x4x16xbf16>
    %c1 = arith.constant 1 : index
    %c1_19 = arith.constant 1 : index
    %c0_20 = arith.constant 0 : index
    %28 = vector.load %arg9[%c1, %c1_19, %c0_20] : memref<6x6x16xbf16, #tpu.memory_space<vmem>>, vector<4x4x16xbf16>
    tpu.vector_store %arg9[%c1, %c1_19, %c0_20], %27 {strides = array<i32>} : memref<6x6x16xbf16, #tpu.memory_space<vmem>>, vector<4x4x16xbf16>,
    %cst_21 = arith.constant 0.000000e+00 : f32
    %29 = vector.broadcast %cst_21 : f32 to vector<16x8xf32>
    %c0_22 = arith.constant 0 : index
    %c0_23 = arith.constant 0 : index
    %c0_24 = arith.constant 0 : index
    %30 = vector.load %arg9[%c0_22, %c0_23, %c0_24] : memref<6x6x16xbf16, #tpu.memory_space<vmem>>, vector<4x4x16xbf16>
    %31 = vector.shape_cast %30 : vector<4x4x16xbf16> to vector<16x16xbf16>
    %c0_25 = arith.constant 0 : index
    %c0_26 = arith.constant 0 : index
    %c0_27 = arith.constant 0 : index
    %32 = vector.load %arg7[%c0_25, %c0_26, %c0_27] : memref<9x16x8xbf16, #tpu.memory_space<vmem>>, vector<1x16x8xbf16>
    %33 = vector.shape_cast %32 : vector<1x16x8xbf16> to vector<16x8xbf16>
    %cst_28 = arith.constant dense<0.000000e+00> : vector<16x8xf32>
    %34 = tpu.matmul %31, %33, %cst_28 {dimension_numbers = #tpu.dot_dimension_numbers<[1], [0], [0], [1], [0, 0, 1, 1], [], []>} : vector<16x16xbf16>, vector<16x8xbf16>, vector<16x8xf32> -> vector<16x8xf32>
    %35 = arith.addf %29, %34 : vector<16x8xf32>
    %c0_29 = arith.constant 0 : index
    %c1_30 = arith.constant 1 : index
    %c0_31 = arith.constant 0 : index
    %36 = vector.load %arg9[%c0_29, %c1_30, %c0_31] : memref<6x6x16xbf16, #tpu.memory_space<vmem>>, vector<4x4x16xbf16>
    %37 = vector.shape_cast %36 : vector<4x4x16xbf16> to vector<16x16xbf16>
    %c1_32 = arith.constant 1 : index
    %c0_33 = arith.constant 0 : index
    %c0_34 = arith.constant 0 : index
    %38 = vector.load %arg7[%c1_32, %c0_33, %c0_34] : memref<9x16x8xbf16, #tpu.memory_space<vmem>>, vector<1x16x8xbf16>
    %39 = vector.shape_cast %38 : vector<1x16x8xbf16> to vector<16x8xbf16>
    %cst_35 = arith.constant dense<0.000000e+00> : vector<16x8xf32>
    %40 = tpu.matmul %37, %39, %cst_35 {dimension_numbers = #tpu.dot_dimension_numbers<[1], [0], [0], [1], [0, 0, 1, 1], [], []>} : vector<16x16xbf16>, vector<16x8xbf16>, vector<16x8xf32> -> vector<16x8xf32>
    %41 = arith.addf %35, %40 : vector<16x8xf32>
    %c0_36 = arith.constant 0 : index
    %c2 = arith.constant 2 : index
    %c0_37 = arith.constant 0 : index
    %42 = vector.load %arg9[%c0_36, %c2, %c0_37] : memref<6x6x16xbf16, #tpu.memory_space<vmem>>, vector<4x4x16xbf16>
    %43 = vector.shape_cast %42 : vector<4x4x16xbf16> to vector<16x16xbf16>
    %c2_38 = arith.constant 2 : index
    %c0_39 = arith.constant 0 : index
    %c0_40 = arith.constant 0 : index
    %44 = vector.load %arg7[%c2_38, %c0_39, %c0_40] : memref<9x16x8xbf16, #tpu.memory_space<vmem>>, vector<1x16x8xbf16>
    %45 = vector.shape_cast %44 : vector<1x16x8xbf16> to vector<16x8xbf16>
    %cst_41 = arith.constant dense<0.000000e+00> : vector<16x8xf32>
    %46 = tpu.matmul %43, %45, %cst_41 {dimension_numbers = #tpu.dot_dimension_numbers<[1], [0], [0], [1], [0, 0, 1, 1], [], []>} : vector<16x16xbf16>, vector<16x8xbf16>, vector<16x8xf32> -> vector<16x8xf32>
    %47 = arith.addf %41, %46 : vector<16x8xf32>
    %c1_42 = arith.constant 1 : index
    %c0_43 = arith.constant 0 : index
    %c0_44 = arith.constant 0 : index
    %48 = vector.load %arg9[%c1_42, %c0_43, %c0_44] : memref<6x6x16xbf16, #tpu.memory_space<vmem>>, vector<4x4x16xbf16>
    %49 = vector.shape_cast %48 : vector<4x4x16xbf16> to vector<16x16xbf16>
    %c3 = arith.constant 3 : index
    %c0_45 = arith.constant 0 : index
    %c0_46 = arith.constant 0 : index
    %50 = vector.load %arg7[%c3, %c0_45, %c0_46] : memref<9x16x8xbf16, #tpu.memory_space<vmem>>, vector<1x16x8xbf16>
    %51 = vector.shape_cast %50 : vector<1x16x8xbf16> to vector<16x8xbf16>
    %cst_47 = arith.constant dense<0.000000e+00> : vector<16x8xf32>
    %52 = tpu.matmul %49, %51, %cst_47 {dimension_numbers = #tpu.dot_dimension_numbers<[1], [0], [0], [1], [0, 0, 1, 1], [], []>} : vector<16x16xbf16>, vector<16x8xbf16>, vector<16x8xf32> -> vector<16x8xf32>
    %53 = arith.addf %47, %52 : vector<16x8xf32>
    %c1_48 = arith.constant 1 : index
    %c1_49 = arith.constant 1 : index
    %c0_50 = arith.constant 0 : index
    %54 = vector.load %arg9[%c1_48, %c1_49, %c0_50] : memref<6x6x16xbf16, #tpu.memory_space<vmem>>, vector<4x4x16xbf16>
    %55 = vector.shape_cast %54 : vector<4x4x16xbf16> to vector<16x16xbf16>
    %c4 = arith.constant 4 : index
    %c0_51 = arith.constant 0 : index
    %c0_52 = arith.constant 0 : index
    %56 = vector.load %arg7[%c4, %c0_51, %c0_52] : memref<9x16x8xbf16, #tpu.memory_space<vmem>>, vector<1x16x8xbf16>
    %57 = vector.shape_cast %56 : vector<1x16x8xbf16> to vector<16x8xbf16>
    %cst_53 = arith.constant dense<0.000000e+00> : vector<16x8xf32>
    %58 = tpu.matmul %55, %57, %cst_53 {dimension_numbers = #tpu.dot_dimension_numbers<[1], [0], [0], [1], [0, 0, 1, 1], [], []>} : vector<16x16xbf16>, vector<16x8xbf16>, vector<16x8xf32> -> vector<16x8xf32>
    %59 = arith.addf %53, %58 : vector<16x8xf32>
    %c1_54 = arith.constant 1 : index
    %c2_55 = arith.constant 2 : index
    %c0_56 = arith.constant 0 : index
    %60 = vector.load %arg9[%c1_54, %c2_55, %c0_56] : memref<6x6x16xbf16, #tpu.memory_space<vmem>>, vector<4x4x16xbf16>
    %61 = vector.shape_cast %60 : vector<4x4x16xbf16> to vector<16x16xbf16>
    %c5 = arith.constant 5 : index
    %c0_57 = arith.constant 0 : index
    %c0_58 = arith.constant 0 : index
    %62 = vector.load %arg7[%c5, %c0_57, %c0_58] : memref<9x16x8xbf16, #tpu.memory_space<vmem>>, vector<1x16x8xbf16>
    %63 = vector.shape_cast %62 : vector<1x16x8xbf16> to vector<16x8xbf16>
    %cst_59 = arith.constant dense<0.000000e+00> : vector<16x8xf32>
    %64 = tpu.matmul %61, %63, %cst_59 {dimension_numbers = #tpu.dot_dimension_numbers<[1], [0], [0], [1], [0, 0, 1, 1], [], []>} : vector<16x16xbf16>, vector<16x8xbf16>, vector<16x8xf32> -> vector<16x8xf32>
    %65 = arith.addf %59, %64 : vector<16x8xf32>
    %c2_60 = arith.constant 2 : index
    %c0_61 = arith.constant 0 : index
    %c0_62 = arith.constant 0 : index
    %66 = vector.load %arg9[%c2_60, %c0_61, %c0_62] : memref<6x6x16xbf16, #tpu.memory_space<vmem>>, vector<4x4x16xbf16>
    %67 = vector.shape_cast %66 : vector<4x4x16xbf16> to vector<16x16xbf16>
    %c6 = arith.constant 6 : index
    %c0_63 = arith.constant 0 : index
    %c0_64 = arith.constant 0 : index
    %68 = vector.load %arg7[%c6, %c0_63, %c0_64] : memref<9x16x8xbf16, #tpu.memory_space<vmem>>, vector<1x16x8xbf16>
    %69 = vector.shape_cast %68 : vector<1x16x8xbf16> to vector<16x8xbf16>
    %cst_65 = arith.constant dense<0.000000e+00> : vector<16x8xf32>
    %70 = tpu.matmul %67, %69, %cst_65 {dimension_numbers = #tpu.dot_dimension_numbers<[1], [0], [0], [1], [0, 0, 1, 1], [], []>} : vector<16x16xbf16>, vector<16x8xbf16>, vector<16x8xf32> -> vector<16x8xf32>
    %71 = arith.addf %65, %70 : vector<16x8xf32>
    %c2_66 = arith.constant 2 : index
    %c1_67 = arith.constant 1 : index
    %c0_68 = arith.constant 0 : index
    %72 = vector.load %arg9[%c2_66, %c1_67, %c0_68] : memref<6x6x16xbf16, #tpu.memory_space<vmem>>, vector<4x4x16xbf16>
    %73 = vector.shape_cast %72 : vector<4x4x16xbf16> to vector<16x16xbf16>
    %c7 = arith.constant 7 : index
    %c0_69 = arith.constant 0 : index
    %c0_70 = arith.constant 0 : index
    %74 = vector.load %arg7[%c7, %c0_69, %c0_70] : memref<9x16x8xbf16, #tpu.memory_space<vmem>>, vector<1x16x8xbf16>
    %75 = vector.shape_cast %74 : vector<1x16x8xbf16> to vector<16x8xbf16>
    %cst_71 = arith.constant dense<0.000000e+00> : vector<16x8xf32>
    %76 = tpu.matmul %73, %75, %cst_71 {dimension_numbers = #tpu.dot_dimension_numbers<[1], [0], [0], [1], [0, 0, 1, 1], [], []>} : vector<16x16xbf16>, vector<16x8xbf16>, vector<16x8xf32> -> vector<16x8xf32>
    %77 = arith.addf %71, %76 : vector<16x8xf32>
    %c2_72 = arith.constant 2 : index
    %c2_73 = arith.constant 2 : index
    %c0_74 = arith.constant 0 : index
    %78 = vector.load %arg9[%c2_72, %c2_73, %c0_74] : memref<6x6x16xbf16, #tpu.memory_space<vmem>>, vector<4x4x16xbf16>
    %79 = vector.shape_cast %78 : vector<4x4x16xbf16> to vector<16x16xbf16>
    %c8 = arith.constant 8 : index
    %c0_75 = arith.constant 0 : index
    %c0_76 = arith.constant 0 : index
    %80 = vector.load %arg7[%c8, %c0_75, %c0_76] : memref<9x16x8xbf16, #tpu.memory_space<vmem>>, vector<1x16x8xbf16>
    %81 = vector.shape_cast %80 : vector<1x16x8xbf16> to vector<16x8xbf16>
    %cst_77 = arith.constant dense<0.000000e+00> : vector<16x8xf32>
    %82 = tpu.matmul %79, %81, %cst_77 {dimension_numbers = #tpu.dot_dimension_numbers<[1], [0], [0], [1], [0, 0, 1, 1], [], []>} : vector<16x16xbf16>, vector<16x8xbf16>, vector<16x8xf32> -> vector<16x8xf32>
    %83 = arith.addf %77, %82 : vector<16x8xf32>
    %84 = arith.truncf %83 : vector<16x8xf32> to vector<16x8xbf16>
    %c0_78 = arith.constant 0 : index
    %c0_79 = arith.constant 0 : index
    %c0_80 = arith.constant 0 : index
    %85 = vector.load %arg8[%c0_78, %c0_79, %c0_80] : memref<1x16x8xbf16, #tpu.memory_space<vmem>>, vector<1x16x8xbf16>
    %86 = vector.shape_cast %85 : vector<1x16x8xbf16> to vector<16x8xbf16>
    %87 = vector.shape_cast %84 : vector<16x8xbf16> to vector<1x16x8xbf16>
    tpu.vector_store %arg8[%c0_78, %c0_79, %c0_80], %87 {strides = array<i32>} : memref<1x16x8xbf16, #tpu.memory_space<vmem>>, vector<1x16x8xbf16>,
    return
  }
  func.func @transform_0(%arg0: i32) -> (i32, i32, i32) {
    %c0_i32 = arith.constant 0 : i32
    %c0_i32_0 = arith.constant 0 : i32
    %c0_i32_1 = arith.constant 0 : i32
    return %arg0, %c0_i32, %c0_i32_0 : i32, i32, i32
  }
  func.func @transform_1(%arg0: i32) -> (i32, i32) {
    %c0_i32 = arith.constant 0 : i32
    %c0_i32_0 = arith.constant 0 : i32
    %c0_i32_1 = arith.constant 0 : i32
    return %c0_i32, %c0_i32_0 : i32, i32
  }
  func.func @transform_2(%arg0: i32) -> (i32, i32) {
    %c0_i32 = arith.constant 0 : i32
    %c0_i32_0 = arith.constant 0 : i32
    %c0_i32_1 = arith.constant 0 : i32
    return %c0_i32, %c0_i32_0 : i32, i32
  }
  func.func @transform_3(%arg0: i32) -> (i32, i32) {
    %c0_i32 = arith.constant 0 : i32
    %c0_i32_0 = arith.constant 0 : i32
    %c0_i32_1 = arith.constant 0 : i32
    return %c0_i32, %c0_i32_0 : i32, i32
  }
  func.func @transform_4(%arg0: i32) -> (i32, i32) {
    %c0_i32 = arith.constant 0 : i32
    %c0_i32_0 = arith.constant 0 : i32
    %c0_i32_1 = arith.constant 0 : i32
    return %c0_i32, %c0_i32_0 : i32, i32
  }
  func.func @transform_5(%arg0: i32) -> (i32, i32) {
    %c0_i32 = arith.constant 0 : i32
    %c0_i32_0 = arith.constant 0 : i32
    %c0_i32_1 = arith.constant 0 : i32
    return %c0_i32, %c0_i32_0 : i32, i32
  }
  func.func @transform_6(%arg0: i32) -> (i32, i32, i32) {
    %c0_i32 = arith.constant 0 : i32
    %c0_i32_0 = arith.constant 0 : i32
    %c0_i32_1 = arith.constant 0 : i32
    %c0_i32_2 = arith.constant 0 : i32
    return %c0_i32, %c0_i32_0, %c0_i32_1 : i32, i32, i32
  }
  func.func @transform_7(%arg0: i32) -> (i32, i32, i32) {
    %c0_i32 = arith.constant 0 : i32
    %c0_i32_0 = arith.constant 0 : i32
    %c0_i32_1 = arith.constant 0 : i32
    return %arg0, %c0_i32, %c0_i32_0 : i32, i32, i32
  }
}

module attributes {stable_mosaic.version = 11 : i64} {
  func.func @kernel(%arg0: i32, %arg1: memref<1x16x16xbf16, #tpu.memory_space<vmem>>, %arg2: memref<1x16x8xbf16, #tpu.memory_space<vmem>>, %arg3: memref<24x16xbf16, #tpu.memory_space<vmem>>, %arg4: memref<1x24xf32, #tpu.memory_space<vmem>>, %arg5: memref<1x24xf32, #tpu.memory_space<vmem>>, %arg6: memref<1x16xf32, #tpu.memory_space<vmem>>, %arg7: memref<1x16xf32, #tpu.memory_space<vmem>>, %arg8: memref<9x16x8xbf16, #tpu.memory_space<vmem>>, %arg9: memref<1x16x8xbf16, #tpu.memory_space<vmem>>, %arg10: memref<6x6x16xbf16, #tpu.memory_space<vmem>>) attributes {dimension_semantics = [#tpu.dimension_semantics<parallel>], iteration_bounds = array<i64: 2>, scalar_prefetch = 0 : i64, scratch_operands = 1 : i64, tpu.core_type = #tpu.core_type<tc>, window_params = [{transform_indices = @transform_0, window_bounds = array<i64: 1, 16, 16>}, {transform_indices = @transform_1, window_bounds = array<i64: 1, 16, 8>}, {pipeline_mode = #tpu.pipeline_mode<synchronous>, transform_indices = @transform_2, window_bounds = array<i64: 24, 16>}, {pipeline_mode = #tpu.pipeline_mode<synchronous>, transform_indices = @transform_3, window_bounds = array<i64: 1, 24>}, {pipeline_mode = #tpu.pipeline_mode<synchronous>, transform_indices = @transform_4, window_bounds = array<i64: 1, 24>}, {pipeline_mode = #tpu.pipeline_mode<synchronous>, transform_indices = @transform_5, window_bounds = array<i64: 1, 16>}, {pipeline_mode = #tpu.pipeline_mode<synchronous>, transform_indices = @transform_6, window_bounds = array<i64: 1, 16>}, {pipeline_mode = #tpu.pipeline_mode<synchronous>, transform_indices = @transform_7, window_bounds = array<i64: 9, 16, 8>}, {transform_indices = @transform_8, window_bounds = array<i64: 1, 16, 8>}]} {
    %c0 = arith.constant 0 : index
    %c0_0 = arith.constant 0 : index
    %0 = vector.load %arg4[%c0, %c0_0] : memref<1x24xf32, #tpu.memory_space<vmem>>, vector<1x24xf32>
    %c0_1 = arith.constant 0 : index
    %c0_2 = arith.constant 0 : index
    %1 = vector.load %arg5[%c0_1, %c0_2] : memref<1x24xf32, #tpu.memory_space<vmem>>, vector<1x24xf32>
    %c0_3 = arith.constant 0 : index
    %c0_4 = arith.constant 0 : index
    %2 = vector.load %arg6[%c0_3, %c0_4] : memref<1x16xf32, #tpu.memory_space<vmem>>, vector<1x16xf32>
    %c0_5 = arith.constant 0 : index
    %c0_6 = arith.constant 0 : index
    %3 = vector.load %arg7[%c0_5, %c0_6] : memref<1x16xf32, #tpu.memory_space<vmem>>, vector<1x16xf32>
    %cst = arith.constant 0.000000e+00 : f32
    %4 = vector.broadcast %cst : f32 to vector<16x16xf32>
    %c0_7 = arith.constant 0 : index
    %c0_8 = arith.constant 0 : index
    %c0_9 = arith.constant 0 : index
    %5 = vector.load %arg1[%c0_7, %c0_8, %c0_9] : memref<1x16x16xbf16, #tpu.memory_space<vmem>>, vector<1x16x16xbf16>
    %6 = vector.shape_cast %5 : vector<1x16x16xbf16> to vector<16x16xbf16>
    %7 = arith.extf %6 : vector<16x16xbf16> to vector<16x16xf32>
    %8 = vector.extract_strided_slice %0 {offsets = [0, 0], sizes = [1, 16], strides = [1, 1]} : vector<1x24xf32> to vector<1x16xf32>
    %9 = vector.broadcast %8 : vector<1x16xf32> to vector<16x16xf32>
    %10 = arith.mulf %7, %9 : vector<16x16xf32>
    %11 = vector.extract_strided_slice %1 {offsets = [0, 0], sizes = [1, 16], strides = [1, 1]} : vector<1x24xf32> to vector<1x16xf32>
    %12 = vector.broadcast %11 : vector<1x16xf32> to vector<16x16xf32>
    %13 = arith.addf %10, %12 : vector<16x16xf32>
    %cst_10 = arith.constant 0.000000e+00 : f32
    %14 = vector.broadcast %cst_10 : f32 to vector<16x16xf32>
    %15 = arith.maximumf %13, %14 : vector<16x16xf32>
    %16 = arith.truncf %15 : vector<16x16xf32> to vector<16x16xbf16>
    %c0_11 = arith.constant 0 : index
    %c0_12 = arith.constant 0 : index
    %17 = vector.load %arg3[%c0_11, %c0_12] : memref<24x16xbf16, #tpu.memory_space<vmem>>, vector<16x16xbf16>
    %cst_13 = arith.constant dense<0.000000e+00> : vector<16x16xf32>
    %18 = tpu.matmul %16, %17, %cst_13 {dimension_numbers = #tpu.dot_dimension_numbers<[1], [0], [0], [1], [0, 0, 1, 1], [], []>} : vector<16x16xbf16>, vector<16x16xbf16>, vector<16x16xf32> -> vector<16x16xf32>
    %19 = arith.addf %4, %18 : vector<16x16xf32>
    %c0_14 = arith.constant 0 : index
    %c0_15 = arith.constant 0 : index
    %c0_16 = arith.constant 0 : index
    %20 = vector.load %arg2[%c0_14, %c0_15, %c0_16] : memref<1x16x8xbf16, #tpu.memory_space<vmem>>, vector<1x16x8xbf16>
    %21 = vector.shape_cast %20 : vector<1x16x8xbf16> to vector<16x8xbf16>
    %22 = arith.extf %21 : vector<16x8xbf16> to vector<16x8xf32>
    %23 = vector.extract_strided_slice %0 {offsets = [0, 16], sizes = [1, 8], strides = [1, 1]} : vector<1x24xf32> to vector<1x8xf32>
    %24 = vector.broadcast %23 : vector<1x8xf32> to vector<16x8xf32>
    %25 = arith.mulf %22, %24 : vector<16x8xf32>
    %26 = vector.extract_strided_slice %1 {offsets = [0, 16], sizes = [1, 8], strides = [1, 1]} : vector<1x24xf32> to vector<1x8xf32>
    %27 = vector.broadcast %26 : vector<1x8xf32> to vector<16x8xf32>
    %28 = arith.addf %25, %27 : vector<16x8xf32>
    %cst_17 = arith.constant 0.000000e+00 : f32
    %29 = vector.broadcast %cst_17 : f32 to vector<16x8xf32>
    %30 = arith.maximumf %28, %29 : vector<16x8xf32>
    %31 = arith.truncf %30 : vector<16x8xf32> to vector<16x8xbf16>
    %c16 = arith.constant 16 : index
    %c0_18 = arith.constant 0 : index
    %32 = vector.load %arg3[%c16, %c0_18] : memref<24x16xbf16, #tpu.memory_space<vmem>>, vector<8x16xbf16>
    %cst_19 = arith.constant dense<0.000000e+00> : vector<16x16xf32>
    %33 = tpu.matmul %31, %32, %cst_19 {dimension_numbers = #tpu.dot_dimension_numbers<[1], [0], [0], [1], [0, 0, 1, 1], [], []>} : vector<16x8xbf16>, vector<8x16xbf16>, vector<16x16xf32> -> vector<16x16xf32>
    %34 = arith.addf %19, %33 : vector<16x16xf32>
    %35 = vector.broadcast %2 : vector<1x16xf32> to vector<16x16xf32>
    %36 = arith.mulf %34, %35 : vector<16x16xf32>
    %37 = vector.broadcast %3 : vector<1x16xf32> to vector<16x16xf32>
    %38 = arith.addf %36, %37 : vector<16x16xf32>
    %cst_20 = arith.constant 0.000000e+00 : f32
    %39 = vector.broadcast %cst_20 : f32 to vector<16x16xf32>
    %40 = arith.maximumf %38, %39 : vector<16x16xf32>
    %cst_21 = arith.constant 0.000000e+00 : bf16
    %41 = vector.broadcast %cst_21 : bf16 to vector<6x6x16xbf16>
    %c0_22 = arith.constant 0 : index
    %c0_23 = arith.constant 0 : index
    %c0_24 = arith.constant 0 : index
    %42 = vector.load %arg10[%c0_22, %c0_23, %c0_24] : memref<6x6x16xbf16, #tpu.memory_space<vmem>>, vector<6x6x16xbf16>
    tpu.vector_store %arg10[%c0_22, %c0_23, %c0_24], %41 {strides = array<i32>} : memref<6x6x16xbf16, #tpu.memory_space<vmem>>, vector<6x6x16xbf16>,
    %43 = vector.shape_cast %40 : vector<16x16xf32> to vector<4x4x16xf32>
    %44 = arith.truncf %43 : vector<4x4x16xf32> to vector<4x4x16xbf16>
    %c1 = arith.constant 1 : index
    %c1_25 = arith.constant 1 : index
    %c0_26 = arith.constant 0 : index
    %45 = vector.load %arg10[%c1, %c1_25, %c0_26] : memref<6x6x16xbf16, #tpu.memory_space<vmem>>, vector<4x4x16xbf16>
    tpu.vector_store %arg10[%c1, %c1_25, %c0_26], %44 {strides = array<i32>} : memref<6x6x16xbf16, #tpu.memory_space<vmem>>, vector<4x4x16xbf16>,
    %cst_27 = arith.constant 0.000000e+00 : f32
    %46 = vector.broadcast %cst_27 : f32 to vector<16x8xf32>
    %c0_28 = arith.constant 0 : index
    %c0_29 = arith.constant 0 : index
    %c0_30 = arith.constant 0 : index
    %47 = vector.load %arg10[%c0_28, %c0_29, %c0_30] : memref<6x6x16xbf16, #tpu.memory_space<vmem>>, vector<4x4x16xbf16>
    %48 = vector.shape_cast %47 : vector<4x4x16xbf16> to vector<16x16xbf16>
    %c0_31 = arith.constant 0 : index
    %c0_32 = arith.constant 0 : index
    %c0_33 = arith.constant 0 : index
    %49 = vector.load %arg8[%c0_31, %c0_32, %c0_33] : memref<9x16x8xbf16, #tpu.memory_space<vmem>>, vector<1x16x8xbf16>
    %50 = vector.shape_cast %49 : vector<1x16x8xbf16> to vector<16x8xbf16>
    %cst_34 = arith.constant dense<0.000000e+00> : vector<16x8xf32>
    %51 = tpu.matmul %48, %50, %cst_34 {dimension_numbers = #tpu.dot_dimension_numbers<[1], [0], [0], [1], [0, 0, 1, 1], [], []>} : vector<16x16xbf16>, vector<16x8xbf16>, vector<16x8xf32> -> vector<16x8xf32>
    %52 = arith.addf %46, %51 : vector<16x8xf32>
    %c0_35 = arith.constant 0 : index
    %c1_36 = arith.constant 1 : index
    %c0_37 = arith.constant 0 : index
    %53 = vector.load %arg10[%c0_35, %c1_36, %c0_37] : memref<6x6x16xbf16, #tpu.memory_space<vmem>>, vector<4x4x16xbf16>
    %54 = vector.shape_cast %53 : vector<4x4x16xbf16> to vector<16x16xbf16>
    %c1_38 = arith.constant 1 : index
    %c0_39 = arith.constant 0 : index
    %c0_40 = arith.constant 0 : index
    %55 = vector.load %arg8[%c1_38, %c0_39, %c0_40] : memref<9x16x8xbf16, #tpu.memory_space<vmem>>, vector<1x16x8xbf16>
    %56 = vector.shape_cast %55 : vector<1x16x8xbf16> to vector<16x8xbf16>
    %cst_41 = arith.constant dense<0.000000e+00> : vector<16x8xf32>
    %57 = tpu.matmul %54, %56, %cst_41 {dimension_numbers = #tpu.dot_dimension_numbers<[1], [0], [0], [1], [0, 0, 1, 1], [], []>} : vector<16x16xbf16>, vector<16x8xbf16>, vector<16x8xf32> -> vector<16x8xf32>
    %58 = arith.addf %52, %57 : vector<16x8xf32>
    %c0_42 = arith.constant 0 : index
    %c2 = arith.constant 2 : index
    %c0_43 = arith.constant 0 : index
    %59 = vector.load %arg10[%c0_42, %c2, %c0_43] : memref<6x6x16xbf16, #tpu.memory_space<vmem>>, vector<4x4x16xbf16>
    %60 = vector.shape_cast %59 : vector<4x4x16xbf16> to vector<16x16xbf16>
    %c2_44 = arith.constant 2 : index
    %c0_45 = arith.constant 0 : index
    %c0_46 = arith.constant 0 : index
    %61 = vector.load %arg8[%c2_44, %c0_45, %c0_46] : memref<9x16x8xbf16, #tpu.memory_space<vmem>>, vector<1x16x8xbf16>
    %62 = vector.shape_cast %61 : vector<1x16x8xbf16> to vector<16x8xbf16>
    %cst_47 = arith.constant dense<0.000000e+00> : vector<16x8xf32>
    %63 = tpu.matmul %60, %62, %cst_47 {dimension_numbers = #tpu.dot_dimension_numbers<[1], [0], [0], [1], [0, 0, 1, 1], [], []>} : vector<16x16xbf16>, vector<16x8xbf16>, vector<16x8xf32> -> vector<16x8xf32>
    %64 = arith.addf %58, %63 : vector<16x8xf32>
    %c1_48 = arith.constant 1 : index
    %c0_49 = arith.constant 0 : index
    %c0_50 = arith.constant 0 : index
    %65 = vector.load %arg10[%c1_48, %c0_49, %c0_50] : memref<6x6x16xbf16, #tpu.memory_space<vmem>>, vector<4x4x16xbf16>
    %66 = vector.shape_cast %65 : vector<4x4x16xbf16> to vector<16x16xbf16>
    %c3 = arith.constant 3 : index
    %c0_51 = arith.constant 0 : index
    %c0_52 = arith.constant 0 : index
    %67 = vector.load %arg8[%c3, %c0_51, %c0_52] : memref<9x16x8xbf16, #tpu.memory_space<vmem>>, vector<1x16x8xbf16>
    %68 = vector.shape_cast %67 : vector<1x16x8xbf16> to vector<16x8xbf16>
    %cst_53 = arith.constant dense<0.000000e+00> : vector<16x8xf32>
    %69 = tpu.matmul %66, %68, %cst_53 {dimension_numbers = #tpu.dot_dimension_numbers<[1], [0], [0], [1], [0, 0, 1, 1], [], []>} : vector<16x16xbf16>, vector<16x8xbf16>, vector<16x8xf32> -> vector<16x8xf32>
    %70 = arith.addf %64, %69 : vector<16x8xf32>
    %c1_54 = arith.constant 1 : index
    %c1_55 = arith.constant 1 : index
    %c0_56 = arith.constant 0 : index
    %71 = vector.load %arg10[%c1_54, %c1_55, %c0_56] : memref<6x6x16xbf16, #tpu.memory_space<vmem>>, vector<4x4x16xbf16>
    %72 = vector.shape_cast %71 : vector<4x4x16xbf16> to vector<16x16xbf16>
    %c4 = arith.constant 4 : index
    %c0_57 = arith.constant 0 : index
    %c0_58 = arith.constant 0 : index
    %73 = vector.load %arg8[%c4, %c0_57, %c0_58] : memref<9x16x8xbf16, #tpu.memory_space<vmem>>, vector<1x16x8xbf16>
    %74 = vector.shape_cast %73 : vector<1x16x8xbf16> to vector<16x8xbf16>
    %cst_59 = arith.constant dense<0.000000e+00> : vector<16x8xf32>
    %75 = tpu.matmul %72, %74, %cst_59 {dimension_numbers = #tpu.dot_dimension_numbers<[1], [0], [0], [1], [0, 0, 1, 1], [], []>} : vector<16x16xbf16>, vector<16x8xbf16>, vector<16x8xf32> -> vector<16x8xf32>
    %76 = arith.addf %70, %75 : vector<16x8xf32>
    %c1_60 = arith.constant 1 : index
    %c2_61 = arith.constant 2 : index
    %c0_62 = arith.constant 0 : index
    %77 = vector.load %arg10[%c1_60, %c2_61, %c0_62] : memref<6x6x16xbf16, #tpu.memory_space<vmem>>, vector<4x4x16xbf16>
    %78 = vector.shape_cast %77 : vector<4x4x16xbf16> to vector<16x16xbf16>
    %c5 = arith.constant 5 : index
    %c0_63 = arith.constant 0 : index
    %c0_64 = arith.constant 0 : index
    %79 = vector.load %arg8[%c5, %c0_63, %c0_64] : memref<9x16x8xbf16, #tpu.memory_space<vmem>>, vector<1x16x8xbf16>
    %80 = vector.shape_cast %79 : vector<1x16x8xbf16> to vector<16x8xbf16>
    %cst_65 = arith.constant dense<0.000000e+00> : vector<16x8xf32>
    %81 = tpu.matmul %78, %80, %cst_65 {dimension_numbers = #tpu.dot_dimension_numbers<[1], [0], [0], [1], [0, 0, 1, 1], [], []>} : vector<16x16xbf16>, vector<16x8xbf16>, vector<16x8xf32> -> vector<16x8xf32>
    %82 = arith.addf %76, %81 : vector<16x8xf32>
    %c2_66 = arith.constant 2 : index
    %c0_67 = arith.constant 0 : index
    %c0_68 = arith.constant 0 : index
    %83 = vector.load %arg10[%c2_66, %c0_67, %c0_68] : memref<6x6x16xbf16, #tpu.memory_space<vmem>>, vector<4x4x16xbf16>
    %84 = vector.shape_cast %83 : vector<4x4x16xbf16> to vector<16x16xbf16>
    %c6 = arith.constant 6 : index
    %c0_69 = arith.constant 0 : index
    %c0_70 = arith.constant 0 : index
    %85 = vector.load %arg8[%c6, %c0_69, %c0_70] : memref<9x16x8xbf16, #tpu.memory_space<vmem>>, vector<1x16x8xbf16>
    %86 = vector.shape_cast %85 : vector<1x16x8xbf16> to vector<16x8xbf16>
    %cst_71 = arith.constant dense<0.000000e+00> : vector<16x8xf32>
    %87 = tpu.matmul %84, %86, %cst_71 {dimension_numbers = #tpu.dot_dimension_numbers<[1], [0], [0], [1], [0, 0, 1, 1], [], []>} : vector<16x16xbf16>, vector<16x8xbf16>, vector<16x8xf32> -> vector<16x8xf32>
    %88 = arith.addf %82, %87 : vector<16x8xf32>
    %c2_72 = arith.constant 2 : index
    %c1_73 = arith.constant 1 : index
    %c0_74 = arith.constant 0 : index
    %89 = vector.load %arg10[%c2_72, %c1_73, %c0_74] : memref<6x6x16xbf16, #tpu.memory_space<vmem>>, vector<4x4x16xbf16>
    %90 = vector.shape_cast %89 : vector<4x4x16xbf16> to vector<16x16xbf16>
    %c7 = arith.constant 7 : index
    %c0_75 = arith.constant 0 : index
    %c0_76 = arith.constant 0 : index
    %91 = vector.load %arg8[%c7, %c0_75, %c0_76] : memref<9x16x8xbf16, #tpu.memory_space<vmem>>, vector<1x16x8xbf16>
    %92 = vector.shape_cast %91 : vector<1x16x8xbf16> to vector<16x8xbf16>
    %cst_77 = arith.constant dense<0.000000e+00> : vector<16x8xf32>
    %93 = tpu.matmul %90, %92, %cst_77 {dimension_numbers = #tpu.dot_dimension_numbers<[1], [0], [0], [1], [0, 0, 1, 1], [], []>} : vector<16x16xbf16>, vector<16x8xbf16>, vector<16x8xf32> -> vector<16x8xf32>
    %94 = arith.addf %88, %93 : vector<16x8xf32>
    %c2_78 = arith.constant 2 : index
    %c2_79 = arith.constant 2 : index
    %c0_80 = arith.constant 0 : index
    %95 = vector.load %arg10[%c2_78, %c2_79, %c0_80] : memref<6x6x16xbf16, #tpu.memory_space<vmem>>, vector<4x4x16xbf16>
    %96 = vector.shape_cast %95 : vector<4x4x16xbf16> to vector<16x16xbf16>
    %c8 = arith.constant 8 : index
    %c0_81 = arith.constant 0 : index
    %c0_82 = arith.constant 0 : index
    %97 = vector.load %arg8[%c8, %c0_81, %c0_82] : memref<9x16x8xbf16, #tpu.memory_space<vmem>>, vector<1x16x8xbf16>
    %98 = vector.shape_cast %97 : vector<1x16x8xbf16> to vector<16x8xbf16>
    %cst_83 = arith.constant dense<0.000000e+00> : vector<16x8xf32>
    %99 = tpu.matmul %96, %98, %cst_83 {dimension_numbers = #tpu.dot_dimension_numbers<[1], [0], [0], [1], [0, 0, 1, 1], [], []>} : vector<16x16xbf16>, vector<16x8xbf16>, vector<16x8xf32> -> vector<16x8xf32>
    %100 = arith.addf %94, %99 : vector<16x8xf32>
    %101 = arith.truncf %100 : vector<16x8xf32> to vector<16x8xbf16>
    %c0_84 = arith.constant 0 : index
    %c0_85 = arith.constant 0 : index
    %c0_86 = arith.constant 0 : index
    %102 = vector.load %arg9[%c0_84, %c0_85, %c0_86] : memref<1x16x8xbf16, #tpu.memory_space<vmem>>, vector<1x16x8xbf16>
    %103 = vector.shape_cast %102 : vector<1x16x8xbf16> to vector<16x8xbf16>
    %104 = vector.shape_cast %101 : vector<16x8xbf16> to vector<1x16x8xbf16>
    tpu.vector_store %arg9[%c0_84, %c0_85, %c0_86], %104 {strides = array<i32>} : memref<1x16x8xbf16, #tpu.memory_space<vmem>>, vector<1x16x8xbf16>,
    return
  }
  func.func @transform_0(%arg0: i32) -> (i32, i32, i32) {
    %c0_i32 = arith.constant 0 : i32
    %c0_i32_0 = arith.constant 0 : i32
    %c0_i32_1 = arith.constant 0 : i32
    return %arg0, %c0_i32, %c0_i32_0 : i32, i32, i32
  }
  func.func @transform_1(%arg0: i32) -> (i32, i32, i32) {
    %c0_i32 = arith.constant 0 : i32
    %c0_i32_0 = arith.constant 0 : i32
    %c0_i32_1 = arith.constant 0 : i32
    return %arg0, %c0_i32, %c0_i32_0 : i32, i32, i32
  }
  func.func @transform_2(%arg0: i32) -> (i32, i32) {
    %c0_i32 = arith.constant 0 : i32
    %c0_i32_0 = arith.constant 0 : i32
    %c0_i32_1 = arith.constant 0 : i32
    return %c0_i32, %c0_i32_0 : i32, i32
  }
  func.func @transform_3(%arg0: i32) -> (i32, i32) {
    %c0_i32 = arith.constant 0 : i32
    %c0_i32_0 = arith.constant 0 : i32
    %c0_i32_1 = arith.constant 0 : i32
    return %c0_i32, %c0_i32_0 : i32, i32
  }
  func.func @transform_4(%arg0: i32) -> (i32, i32) {
    %c0_i32 = arith.constant 0 : i32
    %c0_i32_0 = arith.constant 0 : i32
    %c0_i32_1 = arith.constant 0 : i32
    return %c0_i32, %c0_i32_0 : i32, i32
  }
  func.func @transform_5(%arg0: i32) -> (i32, i32) {
    %c0_i32 = arith.constant 0 : i32
    %c0_i32_0 = arith.constant 0 : i32
    %c0_i32_1 = arith.constant 0 : i32
    return %c0_i32, %c0_i32_0 : i32, i32
  }
  func.func @transform_6(%arg0: i32) -> (i32, i32) {
    %c0_i32 = arith.constant 0 : i32
    %c0_i32_0 = arith.constant 0 : i32
    %c0_i32_1 = arith.constant 0 : i32
    return %c0_i32, %c0_i32_0 : i32, i32
  }
  func.func @transform_7(%arg0: i32) -> (i32, i32, i32) {
    %c0_i32 = arith.constant 0 : i32
    %c0_i32_0 = arith.constant 0 : i32
    %c0_i32_1 = arith.constant 0 : i32
    %c0_i32_2 = arith.constant 0 : i32
    return %c0_i32, %c0_i32_0, %c0_i32_1 : i32, i32, i32
  }
  func.func @transform_8(%arg0: i32) -> (i32, i32, i32) {
    %c0_i32 = arith.constant 0 : i32
    %c0_i32_0 = arith.constant 0 : i32
    %c0_i32_1 = arith.constant 0 : i32
    return %arg0, %c0_i32, %c0_i32_0 : i32, i32, i32
  }
}

module attributes {stable_mosaic.version = 11 : i64} {
  func.func @kernel(%arg0: i32, %arg1: memref<1x16x16xbf16, #tpu.memory_space<vmem>>, %arg2: memref<1x16x8xbf16, #tpu.memory_space<vmem>>, %arg3: memref<1x16x8xbf16, #tpu.memory_space<vmem>>, %arg4: memref<1x32xf32, #tpu.memory_space<vmem>>, %arg5: memref<1x32xf32, #tpu.memory_space<vmem>>, %arg6: memref<32x128xf32, #tpu.memory_space<vmem>>, %arg7: memref<1x128xf32, #tpu.memory_space<vmem>>, %arg8: memref<1x1x128xf32, #tpu.memory_space<vmem>>) attributes {dimension_semantics = [#tpu.dimension_semantics<parallel>], iteration_bounds = array<i64: 2>, scalar_prefetch = 0 : i64, scratch_operands = 0 : i64, tpu.core_type = #tpu.core_type<tc>, window_params = [{transform_indices = @transform_0, window_bounds = array<i64: 1, 16, 16>}, {transform_indices = @transform_1, window_bounds = array<i64: 1, 16, 8>}, {transform_indices = @transform_2, window_bounds = array<i64: 1, 16, 8>}, {pipeline_mode = #tpu.pipeline_mode<synchronous>, transform_indices = @transform_3, window_bounds = array<i64: 1, 32>}, {pipeline_mode = #tpu.pipeline_mode<synchronous>, transform_indices = @transform_4, window_bounds = array<i64: 1, 32>}, {pipeline_mode = #tpu.pipeline_mode<synchronous>, transform_indices = @transform_5, window_bounds = array<i64: 32, 128>}, {pipeline_mode = #tpu.pipeline_mode<synchronous>, transform_indices = @transform_6, window_bounds = array<i64: 1, 128>}, {transform_indices = @transform_7, window_bounds = array<i64: 1, 1, 128>}]} {
    %c0 = arith.constant 0 : index
    %c0_0 = arith.constant 0 : index
    %0 = vector.load %arg4[%c0, %c0_0] : memref<1x32xf32, #tpu.memory_space<vmem>>, vector<1x32xf32>
    %c0_1 = arith.constant 0 : index
    %c0_2 = arith.constant 0 : index
    %1 = vector.load %arg5[%c0_1, %c0_2] : memref<1x32xf32, #tpu.memory_space<vmem>>, vector<1x32xf32>
    %c0_3 = arith.constant 0 : index
    %c0_4 = arith.constant 0 : index
    %2 = vector.load %arg7[%c0_3, %c0_4] : memref<1x128xf32, #tpu.memory_space<vmem>>, vector<1x128xf32>
    %c0_5 = arith.constant 0 : index
    %c0_6 = arith.constant 0 : index
    %c0_7 = arith.constant 0 : index
    %3 = vector.load %arg1[%c0_5, %c0_6, %c0_7] : memref<1x16x16xbf16, #tpu.memory_space<vmem>>, vector<1x16x16xbf16>
    %4 = vector.shape_cast %3 : vector<1x16x16xbf16> to vector<16x16xbf16>
    %5 = arith.extf %4 : vector<16x16xbf16> to vector<16x16xf32>
    %6 = vector.extract_strided_slice %0 {offsets = [0, 0], sizes = [1, 16], strides = [1, 1]} : vector<1x32xf32> to vector<1x16xf32>
    %7 = vector.broadcast %6 : vector<1x16xf32> to vector<16x16xf32>
    %8 = arith.mulf %5, %7 : vector<16x16xf32>
    %9 = vector.extract_strided_slice %1 {offsets = [0, 0], sizes = [1, 16], strides = [1, 1]} : vector<1x32xf32> to vector<1x16xf32>
    %10 = vector.broadcast %9 : vector<1x16xf32> to vector<16x16xf32>
    %11 = arith.addf %8, %10 : vector<16x16xf32>
    %cst = arith.constant 0.000000e+00 : f32
    %12 = vector.broadcast %cst : f32 to vector<16x16xf32>
    %13 = arith.maximumf %11, %12 : vector<16x16xf32>
    %cst_8 = arith.constant dense<0.000000e+00> : vector<16xf32>
    %14 = vector.multi_reduction <add>, %13, %cst_8 [0] : vector<16x16xf32> to vector<16xf32>
    %15 = vector.shape_cast %14 : vector<16xf32> to vector<1x16xf32>
    %cst_9 = arith.constant 1.600000e+01 : f32
    %16 = vector.broadcast %cst_9 : f32 to vector<1x16xf32>
    %17 = arith.divf %15, %16 : vector<1x16xf32>
    %c0_10 = arith.constant 0 : index
    %c0_11 = arith.constant 0 : index
    %18 = vector.load %arg6[%c0_10, %c0_11] : memref<32x128xf32, #tpu.memory_space<vmem>>, vector<16x128xf32>
    %cst_12 = arith.constant dense<0.000000e+00> : vector<1x128xf32>
    %19 = tpu.matmul %17, %18, %cst_12 {dimension_numbers = #tpu.dot_dimension_numbers<[1], [0], [0], [1], [0, 0, 1, 1], [], []>} : vector<1x16xf32>, vector<16x128xf32>, vector<1x128xf32> -> vector<1x128xf32>
    %20 = arith.addf %2, %19 : vector<1x128xf32>
    %c0_13 = arith.constant 0 : index
    %c0_14 = arith.constant 0 : index
    %c0_15 = arith.constant 0 : index
    %21 = vector.load %arg2[%c0_13, %c0_14, %c0_15] : memref<1x16x8xbf16, #tpu.memory_space<vmem>>, vector<1x16x8xbf16>
    %22 = vector.shape_cast %21 : vector<1x16x8xbf16> to vector<16x8xbf16>
    %23 = arith.extf %22 : vector<16x8xbf16> to vector<16x8xf32>
    %24 = vector.extract_strided_slice %0 {offsets = [0, 16], sizes = [1, 8], strides = [1, 1]} : vector<1x32xf32> to vector<1x8xf32>
    %25 = vector.broadcast %24 : vector<1x8xf32> to vector<16x8xf32>
    %26 = arith.mulf %23, %25 : vector<16x8xf32>
    %27 = vector.extract_strided_slice %1 {offsets = [0, 16], sizes = [1, 8], strides = [1, 1]} : vector<1x32xf32> to vector<1x8xf32>
    %28 = vector.broadcast %27 : vector<1x8xf32> to vector<16x8xf32>
    %29 = arith.addf %26, %28 : vector<16x8xf32>
    %cst_16 = arith.constant 0.000000e+00 : f32
    %30 = vector.broadcast %cst_16 : f32 to vector<16x8xf32>
    %31 = arith.maximumf %29, %30 : vector<16x8xf32>
    %cst_17 = arith.constant dense<0.000000e+00> : vector<8xf32>
    %32 = vector.multi_reduction <add>, %31, %cst_17 [0] : vector<16x8xf32> to vector<8xf32>
    %33 = vector.shape_cast %32 : vector<8xf32> to vector<1x8xf32>
    %cst_18 = arith.constant 1.600000e+01 : f32
    %34 = vector.broadcast %cst_18 : f32 to vector<1x8xf32>
    %35 = arith.divf %33, %34 : vector<1x8xf32>
    %c16 = arith.constant 16 : index
    %c0_19 = arith.constant 0 : index
    %36 = vector.load %arg6[%c16, %c0_19] : memref<32x128xf32, #tpu.memory_space<vmem>>, vector<8x128xf32>
    %cst_20 = arith.constant dense<0.000000e+00> : vector<1x128xf32>
    %37 = tpu.matmul %35, %36, %cst_20 {dimension_numbers = #tpu.dot_dimension_numbers<[1], [0], [0], [1], [0, 0, 1, 1], [], []>} : vector<1x8xf32>, vector<8x128xf32>, vector<1x128xf32> -> vector<1x128xf32>
    %38 = arith.addf %20, %37 : vector<1x128xf32>
    %c0_21 = arith.constant 0 : index
    %c0_22 = arith.constant 0 : index
    %c0_23 = arith.constant 0 : index
    %39 = vector.load %arg3[%c0_21, %c0_22, %c0_23] : memref<1x16x8xbf16, #tpu.memory_space<vmem>>, vector<1x16x8xbf16>
    %40 = vector.shape_cast %39 : vector<1x16x8xbf16> to vector<16x8xbf16>
    %41 = arith.extf %40 : vector<16x8xbf16> to vector<16x8xf32>
    %42 = vector.extract_strided_slice %0 {offsets = [0, 24], sizes = [1, 8], strides = [1, 1]} : vector<1x32xf32> to vector<1x8xf32>
    %43 = vector.broadcast %42 : vector<1x8xf32> to vector<16x8xf32>
    %44 = arith.mulf %41, %43 : vector<16x8xf32>
    %45 = vector.extract_strided_slice %1 {offsets = [0, 24], sizes = [1, 8], strides = [1, 1]} : vector<1x32xf32> to vector<1x8xf32>
    %46 = vector.broadcast %45 : vector<1x8xf32> to vector<16x8xf32>
    %47 = arith.addf %44, %46 : vector<16x8xf32>
    %cst_24 = arith.constant 0.000000e+00 : f32
    %48 = vector.broadcast %cst_24 : f32 to vector<16x8xf32>
    %49 = arith.maximumf %47, %48 : vector<16x8xf32>
    %cst_25 = arith.constant dense<0.000000e+00> : vector<8xf32>
    %50 = vector.multi_reduction <add>, %49, %cst_25 [0] : vector<16x8xf32> to vector<8xf32>
    %51 = vector.shape_cast %50 : vector<8xf32> to vector<1x8xf32>
    %cst_26 = arith.constant 1.600000e+01 : f32
    %52 = vector.broadcast %cst_26 : f32 to vector<1x8xf32>
    %53 = arith.divf %51, %52 : vector<1x8xf32>
    %c24 = arith.constant 24 : index
    %c0_27 = arith.constant 0 : index
    %54 = vector.load %arg6[%c24, %c0_27] : memref<32x128xf32, #tpu.memory_space<vmem>>, vector<8x128xf32>
    %cst_28 = arith.constant dense<0.000000e+00> : vector<1x128xf32>
    %55 = tpu.matmul %53, %54, %cst_28 {dimension_numbers = #tpu.dot_dimension_numbers<[1], [0], [0], [1], [0, 0, 1, 1], [], []>} : vector<1x8xf32>, vector<8x128xf32>, vector<1x128xf32> -> vector<1x128xf32>
    %56 = arith.addf %38, %55 : vector<1x128xf32>
    %c0_29 = arith.constant 0 : index
    %c0_30 = arith.constant 0 : index
    %c0_31 = arith.constant 0 : index
    %57 = vector.load %arg8[%c0_29, %c0_30, %c0_31] : memref<1x1x128xf32, #tpu.memory_space<vmem>>, vector<1x1x128xf32>
    %58 = vector.shape_cast %57 : vector<1x1x128xf32> to vector<1x128xf32>
    %59 = vector.shape_cast %56 : vector<1x128xf32> to vector<1x1x128xf32>
    tpu.vector_store %arg8[%c0_29, %c0_30, %c0_31], %59 {strides = array<i32>} : memref<1x1x128xf32, #tpu.memory_space<vmem>>, vector<1x1x128xf32>,
    return
  }
  func.func @transform_0(%arg0: i32) -> (i32, i32, i32) {
    %c0_i32 = arith.constant 0 : i32
    %c0_i32_0 = arith.constant 0 : i32
    %c0_i32_1 = arith.constant 0 : i32
    return %arg0, %c0_i32, %c0_i32_0 : i32, i32, i32
  }
  func.func @transform_1(%arg0: i32) -> (i32, i32, i32) {
    %c0_i32 = arith.constant 0 : i32
    %c0_i32_0 = arith.constant 0 : i32
    %c0_i32_1 = arith.constant 0 : i32
    return %arg0, %c0_i32, %c0_i32_0 : i32, i32, i32
  }
  func.func @transform_2(%arg0: i32) -> (i32, i32, i32) {
    %c0_i32 = arith.constant 0 : i32
    %c0_i32_0 = arith.constant 0 : i32
    %c0_i32_1 = arith.constant 0 : i32
    return %arg0, %c0_i32, %c0_i32_0 : i32, i32, i32
  }
  func.func @transform_3(%arg0: i32) -> (i32, i32) {
    %c0_i32 = arith.constant 0 : i32
    %c0_i32_0 = arith.constant 0 : i32
    %c0_i32_1 = arith.constant 0 : i32
    return %c0_i32, %c0_i32_0 : i32, i32
  }
  func.func @transform_4(%arg0: i32) -> (i32, i32) {
    %c0_i32 = arith.constant 0 : i32
    %c0_i32_0 = arith.constant 0 : i32
    %c0_i32_1 = arith.constant 0 : i32
    return %c0_i32, %c0_i32_0 : i32, i32
  }
  func.func @transform_5(%arg0: i32) -> (i32, i32) {
    %c0_i32 = arith.constant 0 : i32
    %c0_i32_0 = arith.constant 0 : i32
    %c0_i32_1 = arith.constant 0 : i32
    return %c0_i32, %c0_i32_0 : i32, i32
  }
  func.func @transform_6(%arg0: i32) -> (i32, i32) {
    %c0_i32 = arith.constant 0 : i32
    %c0_i32_0 = arith.constant 0 : i32
    %c0_i32_1 = arith.constant 0 : i32
    return %c0_i32, %c0_i32_0 : i32, i32
  }
  func.func @transform_7(%arg0: i32) -> (i32, i32, i32) {
    %c0_i32 = arith.constant 0 : i32
    %c0_i32_0 = arith.constant 0 : i32
    %c0_i32_1 = arith.constant 0 : i32
    return %arg0, %c0_i32, %c0_i32_0 : i32, i32, i32
  }
}

</mosaic_0001>

<bundles_post_ra>
// kernel: densenet_forward.9
= control target key start
LH: loop header
LB: loop body
LE: loop exit
PB: predicated region body
PF: predicated region fallthrough
CT: control target
= control target key end

     0   :  { %s185_s0 = inlined_call_operand.vmem [shape: bf16[16,128], index: 0, kind: input, shape index: {}]   ;;  %s186_s1 = inlined_call_operand.vmem [shape: bf16[16,128], index: 1, kind: input, shape index: {}]   ;;  %s187_s2 = inlined_call_operand.vmem [shape: bf16[16,128], index: 2, kind: input, shape index: {}]   ;;  %s188_s3 = inlined_call_operand.vmem [shape: bf16[16,128], index: 3, kind: input, shape index: {}]   ;;  %s189_s4 = inlined_call_operand.vmem [shape: bf16[16,128], index: 4, kind: input, shape index: {}]   ;;  %s190_s5 = inlined_call_operand.vmem [shape: bf16[16,128], index: 5, kind: input, shape index: {}]   ;;  %s191_s6 = inlined_call_operand.vmem [shape: bf16[16,128], index: 6, kind: input, shape index: {}]   ;;  %s192_s7 = inlined_call_operand.vmem [shape: bf16[16,128], index: 7, kind: input, shape index: {}]   ;;  %s193_s8 = inlined_call_operand.vmem [shape: bf16[16,128], index: 8, kind: input, shape index: {}]   ;;  %s194_s9 = inlined_call_operand.vmem [shape: bf16[16,128], index: 9, kind: output, shape index: {}]  }
   0x1   :  { %v32_v0 = vld [vmem:[%s185_s0] sm:$0xf]  ;;  %v33_v1 = vld [vmem:[%s185_s0 + $0x4] sm:$0xf] }
   0x2   :  { %v34_v2 = vld [vmem:[%s186_s1] sm:$0xf]  ;;  %v35_v3 = vld [vmem:[%s186_s1 + $0x4] sm:$0xf] }
   0x3   :  { %v36_v4 = vmax.bf16 %v34_v2, %v32_v0  ;;  %v38_v5 = vld [vmem:[%s187_s2] sm:$0xf]  ;;  %v39_v6 = vld [vmem:[%s187_s2 + $0x4] sm:$0xf]  ;;  %v37_v7 = vmax.bf16 %v35_v3, %v33_v1 }
   0x4   :  { %v42_v8 = vld [vmem:[%s188_s3] sm:$0xf]  ;;  %v43_v10 = vld [vmem:[%s188_s3 + $0x4] sm:$0xf] }
   0x5   :  { %v40_v9 = vmax.bf16 %v38_v5, %v36_v4  ;;  %v41_v11 = vmax.bf16 %v39_v6, %v37_v7  ;;  %v46_v12 = vld [vmem:[%s189_s4] sm:$0xf]  ;;  %v47_v14 = vld [vmem:[%s189_s4 + $0x4] sm:$0xf] }
   0x6   :  { %v50_v16 = vld [vmem:[%s190_s5] sm:$0xf]  ;;  %v51_v18 = vld [vmem:[%s190_s5 + $0x4] sm:$0xf] }
   0x7   :  { %v44_v13 = vmax.bf16 %v42_v8, %v40_v9  ;;  %v45_v15 = vmax.bf16 %v43_v10, %v41_v11  ;;  %v54_v20 = vld [vmem:[%s191_s6] sm:$0xf]  ;;  %v55_v22 = vld [vmem:[%s191_s6 + $0x4] sm:$0xf] }
   0x8   :  { %v58_v24 = vld [vmem:[%s192_s7] sm:$0xf]  ;;  %v59_v26 = vld [vmem:[%s192_s7 + $0x4] sm:$0xf] }
   0x9   :  { %v48_v17 = vmax.bf16 %v46_v12, %v44_v13  ;;  %v49_v19 = vmax.bf16 %v47_v14, %v45_v15  ;;  %v62_v28 = vld [vmem:[%s193_s8] sm:$0xf]  ;;  %v63_v30 = vld [vmem:[%s193_s8 + $0x4] sm:$0xf] }
   0xb   :  { %v52_v21 = vmax.bf16 %v50_v16, %v48_v17  ;;  %v53_v23 = vmax.bf16 %v51_v18, %v49_v19 }
   0xd   :  { %v56_v25 = vmax.bf16 %v54_v20, %v52_v21  ;;  %v57_v27 = vmax.bf16 %v55_v22, %v53_v23 }
   0xf   :  { %v60_v29 = vmax.bf16 %v58_v24, %v56_v25  ;;  %v61_v31 = vmax.bf16 %v59_v26, %v57_v27 }
  0x11   :  { %v64_v32 = vmax.bf16 %v62_v28, %v60_v29  ;;  %v65_v33 = vmax.bf16 %v63_v30, %v61_v31 }
  0x13   :  { %v77_v34 = vcombine.low %v64_v32, %v65_v33 }
  0x15   :  { %76 = vst [vmem:[%s194_s9] sm:$0xff] %v77_v34  }

// kernel: densenet_forward.8
= control target key start
LH: loop header
LB: loop body
LE: loop exit
PB: predicated region body
PF: predicated region fallthrough
CT: control target
= control target key end

     0   :  { %s1101_s15 = smov 0   ;;  %s1394_s0 = inlined_call_operand.vmem [shape: f32[512,147], index: 0, kind: input, shape index: {}]   ;;  %s1395_s1 = inlined_call_operand.vmem [shape: bf16[147,16], index: 1, kind: input, shape index: {}]   ;;  %s1396_s2 = inlined_call_operand.vmem [shape: f32[1,16], index: 2, kind: input, shape index: {}]   ;;  %s1397_s3 = inlined_call_operand.vmem [shape: f32[1,16], index: 3, kind: input, shape index: {}]   ;;  %s1398_s4 = inlined_call_operand.vmem [shape: bf16[512,16], index: 4, kind: output, shape index: {}]  }
   0x1 LB: > { %s921_s16 = sadd.s32 4294967295, %s1072_s15   ;;  %p925_p0 = scmp.ge.s32.totalorder %s1072_s15, 1  ;;  %s1072_s15 = sphi %s1101_s15, %s14_s15  }
   0x2   : > { %p164_p1 = scmp.lt.s32.totalorder %s1072_s15, 3 }
   0x4   : > { %p165_p2 = pnand %p925_p0, %p164_p1 }
   0x5   : > { %v1056_v0 = vld [vmem:[%s1395_s1] sm:$0xff] (!%p165_p2)   ;;  %v1074_v1 = vmov (!%p165_p2), 0   ;;  %v1057_v2 = vld [vmem:[%s1395_s1 + $0x8] sm:$0xff] (!%p165_p2)   ;;  %v1058_v3 = vld [vmem:[%s1395_s1 + $0x10] sm:$0xff] (!%p165_p2)   ;;  %s926_s23 = sshll.u32 (!%p165_p2), %s921_s16, 5  ;;  %vm377_vm0 = vcmask (!%p165_p2), 154624  }
   0x6   : > { %168 = sbr.rel (%p165_p2) target bundleno = 325 (0x145), region = 36  ;;  %433 = vmatprep.subr.bf16.mxu0 (!%p165_p2), %v1074_v1  ;;  %1026 = vmatprep.subr.bf16.mxu1 (!%p165_p2), %v1074_v1  ;;  %p192_p3 = scmp.lt.s32.totalorder (!%p165_p2), %s926_s23, 63  ;;  %v1059_v4 = vld [vmem:[%s1395_s1 + $0x18] sm:$0xff] (!%p165_p2)   ;;  %v1060_v8 = vld [vmem:[%s1395_s1 + $0x20] sm:$0xff] (!%p165_p2)   ;;  %v1061_v12 = vld [vmem:[%s1395_s1 + $0x28] sm:$0xff] (!%p165_p2)   ;;  %vm426_vm1 = vcmask (!%p165_p2), 1040384  }
   0x7   : > { %434 = vmatpush1.bf16.msra.mxu0 (!%p165_p2), %v1056_v0  ;;  %1036 = vmatpush1.bf16.msra.mxu1 (!%p165_p2), %v1056_v0  ;;  %v1062_v13 = vld [vmem:[%s1395_s1 + $0x30] sm:$0xff] (!%p165_p2)   ;;  %v1063_v14 = vld [vmem:[%s1395_s1 + $0x38] sm:$0xff] (!%p165_p2)   ;;  %vm427_vm2 = vcmask (!%p165_p2), 1041408   ;;  %v1075_v15 = vmov (!%p165_p2), 65535   ;;  %v1064_v17 = vld [vmem:[%s1395_s1 + $0x40] sm:$0xff] (!%p165_p2)   ;;  %vm832_vm3 = vcmask (!%p165_p2), 125952  }
   0x8   : > { %435 = vmatprep.subr.bf16.mxu0 (!%p165_p2), %v1074_v1  ;;  %1027 = vmatprep.subr.bf16.mxu1 (!%p165_p2), %v1074_v1  ;;  %v428_v16 = vsel (!%p165_p2), %vm426_vm1, 4294967295, %v1075_v15  ;;  %v1065_v18 = vld [vmem:[%s1395_s1 + $0x48] ss:$0 sps:$4 sm:$0x33] (!%p165_p2)  }
   0x9   : > { %v429_v19 = vsel (!%p165_p2), %vm427_vm2, %v428_v16, 0 }
   0xa   : > { %v431_v22 = vand.u32 (!%p165_p2), %v1065_v18, %v429_v19 }
   0xb   : > { %436 = vmatpush1.bf16.msra.mxu0 (!%p165_p2), %v1057_v2  ;;  %1037 = vmatpush1.bf16.msra.mxu1 (!%p165_p2), %v1057_v2 }
   0xc   : > { %437 = vmatprep.subr.bf16.mxu0 (!%p165_p2), %v1074_v1  ;;  %1028 = vmatprep.subr.bf16.mxu1 (!%p165_p2), %v1074_v1 }
   0xd   : > { %s1400_s23 = smov (!%p192_p3, %s926_s23), 63 }
   0xe   : > { %s993_s26 = sshll.u32 %s1400_s23, 4  ;;  %s930_s21 = sshll.u32 %s1400_s23, 2 }
   0xf   : > { %438 = vmatpush1.bf16.msra.mxu0 %v1058_v3  ;;  %1038 = vmatpush1.bf16.msra.mxu1 %v1058_v3  ;;  %s1135_s29 = scalar_lea.vmem %s1394_s0, %s993_s26  ;;  %s1269_s23 = scalar_lea.vmem %s1398_s4, %s930_s21 }
  0x10   : > { %439 = vmatprep.subr.bf16.mxu0 %v1074_v1  ;;  %1029 = vmatprep.subr.bf16.mxu1 %v1074_v1  ;;  %v206_v5 = vld [vmem:[%s1135_s29 + $0x8] sm:$0xff]  ;;  %v208_v6 = vld [vmem:[%s1135_s29 + $0x18] sm:$0xff]  ;;  %v205_v20 = vld [vmem:[%s1135_s29] sm:$0xff] }
  0x11   : > { %v238_v7 = vld [vmem:[%s1135_s29 + $0x108] sm:$0xff]  ;;  %v270_v9 = vpack.c.bf16 %v208_v6, %v206_v5  ;;  %v240_v10 = vld [vmem:[%s1135_s29 + $0x118] sm:$0xff]  ;;  %v207_v21 = vld [vmem:[%s1135_s29 + $0x10] sm:$0xff] }
  0x12   : > { %v286_v11 = vpack.c.bf16 %v240_v10, %v238_v7  ;;  %v237_v23 = vld [vmem:[%s1135_s29 + $0x100] sm:$0xff]  ;;  %v239_v24 = vld [vmem:[%s1135_s29 + $0x110] sm:$0xff]  ;;  %v210_v25 = vld [vmem:[%s1135_s29 + $0x28] sm:$0xff]  ;;  %v269_v29 = vpack.c.bf16 %v207_v21, %v205_v20 }
  0x13   : > { %440 = vmatpush1.bf16.msra.mxu0 %v1059_v4  ;;  %1039 = vmatpush1.bf16.msra.mxu1 %v1059_v4  ;;  %v212_v26 = vld [vmem:[%s1135_s29 + $0x38] sm:$0xff]  ;;  %v242_v27 = vld [vmem:[%s1135_s29 + $0x128] sm:$0xff]  ;;  %v285_v30 = vpack.c.bf16 %v239_v24, %v237_v23  ;;  %v209_v33 = vld [vmem:[%s1135_s29 + $0x20] sm:$0xff] }
  0x14   : > { %441 = vmatprep.subr.bf16.mxu0 %v1074_v1  ;;  %1030 = vmatprep.subr.bf16.mxu1 %v1074_v1  ;;  %v244_v28 = vld [vmem:[%s1135_s29 + $0x138] sm:$0xff]  ;;  %v272_v31 = vpack.c.bf16 %v212_v26, %v210_v25  ;;  %v211_v34 = vld [vmem:[%s1135_s29 + $0x30] sm:$0xff]  ;;  %v241_v35 = vld [vmem:[%s1135_s29 + $0x120] sm:$0xff] }
  0x15   : > { %941 = vmatprep.mubr.msk.bf16.mxu0 %vm377_vm0, %v270_v9  ;;  %949 = vmatprep.mubr.msk.bf16.mxu1 %vm377_vm0, %v286_v11  ;;  %v288_v32 = vpack.c.bf16 %v244_v28, %v242_v27  ;;  %v243_v36 = vld [vmem:[%s1135_s29 + $0x130] sm:$0xff]  ;;  %v214_v37 = vld [vmem:[%s1135_s29 + $0x48] sm:$0xff]  ;;  %v216_v38 = vld [vmem:[%s1135_s29 + $0x58] sm:$0xff]  ;;  %v271_v41 = vpack.c.bf16 %v211_v34, %v209_v33 }
  0x16   : > { %v246_v39 = vld [vmem:[%s1135_s29 + $0x148] sm:$0xff]  ;;  %v248_v40 = vld [vmem:[%s1135_s29 + $0x158] sm:$0xff]  ;;  %v287_v42 = vpack.c.bf16 %v243_v36, %v241_v35  ;;  %v274_v43 = vpack.c.bf16 %v216_v38, %v214_v37  ;;  %v213_v45 = vld [vmem:[%s1135_s29 + $0x40] sm:$0xff] }
  0x17   : > { %442 = vmatpush1.bf16.msra.mxu0 %v1060_v8  ;;  %1040 = vmatpush1.bf16.msra.mxu1 %v1060_v8  ;;  %v290_v44 = vpack.c.bf16 %v248_v40, %v246_v39  ;;  %v215_v46 = vld [vmem:[%s1135_s29 + $0x50] sm:$0xff]  ;;  %v245_v47 = vld [vmem:[%s1135_s29 + $0x140] sm:$0xff]  ;;  %v218_v49 = vld [vmem:[%s1135_s29 + $0x68] sm:$0xff] }
  0x18   : > { %443 = vmatprep.subr.bf16.mxu0 %v1074_v1  ;;  %1031 = vmatprep.subr.bf16.mxu1 %v1074_v1  ;;  %v247_v48 = vld [vmem:[%s1135_s29 + $0x150] sm:$0xff]  ;;  %v220_v50 = vld [vmem:[%s1135_s29 + $0x78] sm:$0xff]  ;;  %v250_v51 = vld [vmem:[%s1135_s29 + $0x168] sm:$0xff]  ;;  %v273_v53 = vpack.c.bf16 %v215_v46, %v213_v45 }
  0x19   : > { %v252_v52 = vld [vmem:[%s1135_s29 + $0x178] sm:$0xff]  ;;  %v289_v54 = vpack.c.bf16 %v247_v48, %v245_v47  ;;  %v276_v55 = vpack.c.bf16 %v220_v50, %v218_v49  ;;  %v217_v57 = vld [vmem:[%s1135_s29 + $0x60] sm:$0xff]  ;;  %v219_v58 = vld [vmem:[%s1135_s29 + $0x70] sm:$0xff] }
  0x1a   : > { %v292_v56 = vpack.c.bf16 %v252_v52, %v250_v51  ;;  %v249_v59 = vld [vmem:[%s1135_s29 + $0x160] sm:$0xff]  ;;  %v251_v60 = vld [vmem:[%s1135_s29 + $0x170] sm:$0xff]  ;;  %v222_v61 = vld [vmem:[%s1135_s29 + $0x88] sm:$0xff] }
  0x1b   : > { %444 = vmatpush1.bf16.msra.mxu0 %v1061_v12  ;;  %1041 = vmatpush1.bf16.msra.mxu1 %v1061_v12  ;;  %v224_v62 = vld [vmem:[%s1135_s29 + $0x98] sm:$0xff]  ;;  %v254_v63 = vld [vmem:[%s1135_s29 + $0x188] sm:$0xff]  ;;  %v291_v2 = vpack.c.bf16 %v251_v60, %v249_v59  ;;  %v221_v5 = vld [vmem:[%s1135_s29 + $0x80] sm:$0xff] }
  0x1c   : > { %445 = vmatprep.subr.bf16.mxu0 %v1074_v1  ;;  %1032 = vmatprep.subr.bf16.mxu1 %v1074_v1  ;;  %v256_v0 = vld [vmem:[%s1135_s29 + $0x198] sm:$0xff]  ;;  %v278_v3 = vpack.c.bf16 %v224_v62, %v222_v61  ;;  %v223_v6 = vld [vmem:[%s1135_s29 + $0x90] sm:$0xff]  ;;  %v253_v7 = vld [vmem:[%s1135_s29 + $0x180] sm:$0xff] }
  0x1d   : > { %v294_v4 = vpack.c.bf16 %v256_v0, %v254_v63  ;;  %v255_v8 = vld [vmem:[%s1135_s29 + $0x190] sm:$0xff]  ;;  %v226_v9 = vld [vmem:[%s1135_s29 + $0xa8] sm:$0xff]  ;;  %v228_v10 = vld [vmem:[%s1135_s29 + $0xb8] sm:$0xff] }
  0x1e   : > { %v258_v11 = vld [vmem:[%s1135_s29 + $0x1a8] sm:$0xff]  ;;  %v260_v12 = vld [vmem:[%s1135_s29 + $0x1b8] sm:$0xff]  ;;  %v280_v15 = vpack.c.bf16 %v228_v10, %v226_v9  ;;  %v227_v18 = vld [vmem:[%s1135_s29 + $0xb0] sm:$0xff] }
  0x1f   : > { %446 = vmatpush1.bf16.msra.mxu0 %v1062_v13  ;;  %1042 = vmatpush1.bf16.msra.mxu1 %v1062_v13  ;;  %v277_v13 = vpack.c.bf16 %v223_v6, %v221_v5  ;;  %v296_v16 = vpack.c.bf16 %v260_v12, %v258_v11  ;;  %v257_v19 = vld [vmem:[%s1135_s29 + $0x1a0] sm:$0xff]  ;;  %v259_v20 = vld [vmem:[%s1135_s29 + $0x1b0] sm:$0xff]  ;;  %v230_v21 = vld [vmem:[%s1135_s29 + $0xc8] sm:$0xff] }
  0x20   : > { %447 = vmatprep.subr.bf16.mxu0 %v1074_v1  ;;  %1033 = vmatprep.subr.bf16.mxu1 %v1074_v1  ;;  %v262_v23 = vld [vmem:[%s1135_s29 + $0x1c8] sm:$0xff]  ;;  %v264_v24 = vld [vmem:[%s1135_s29 + $0x1d8] sm:$0xff]  ;;  %v295_v26 = vpack.c.bf16 %v259_v20, %v257_v19  ;;  %v1250_v47 = vld [vmem:[%s1396_s2] ss:$0 sm:$0xff] }
  0x21   : > { %v298_v28 = vpack.c.bf16 %v264_v24, %v262_v23  ;;  %v234_v33 = vld [vmem:[%s1135_s29 + $0xe8] sm:$0xff]  ;;  %v236_v34 = vld [vmem:[%s1135_s29 + $0xf8] sm:$0xff]  ;;  %v1255_v49 = vld [vmem:[%s1397_s3] ss:$0 sm:$0xff] }
  0x22   : > { %v266_v35 = vld [vmem:[%s1135_s29 + $0x1e8] sm:$0xff]  ;;  %v268_v36 = vld [vmem:[%s1135_s29 + $0x1f8] sm:$0xff]  ;;  %v284_v39 = vpack.c.bf16 %v236_v34, %v234_v33 }
  0x23   : > { %448 = vmatpush1.bf16.msra.mxu0 %v1063_v14  ;;  %1043 = vmatpush1.bf16.msra.mxu1 %v1063_v14  ;;  %v293_v14 = vpack.c.bf16 %v255_v8, %v253_v7  ;;  %v300_v40 = vpack.c.bf16 %v268_v36, %v266_v35 }
  0x24   : > { %449 = vmatprep.subr.bf16.mxu0 %v1074_v1  ;;  %1034 = vmatprep.subr.bf16.mxu1 %v1074_v1 }
  0x27   : > { %450 = vmatpush1.bf16.msra.mxu0 %v1064_v17  ;;  %1044 = vmatpush1.bf16.msra.mxu1 %v1064_v17  ;;  %v225_v17 = vld [vmem:[%s1135_s29 + $0xa0] sm:$0xff] }
  0x28   : > { %451 = vmatprep.subr.bf16.mxu0 %v1074_v1  ;;  %1035 = vmatprep.subr.bf16.mxu1 %v1074_v1  ;;  %v275_v1 = vpack.c.bf16 %v219_v58, %v217_v57  ;;  %v279_v25 = vpack.c.bf16 %v227_v18, %v225_v17 }
  0x2b   : > { %452 = vmatpush1.bf16.msra.mxu0 %v431_v22  ;;  %1045 = vmatpush1.bf16.msra.mxu1 %v431_v22  ;;  %v232_v22 = vld [vmem:[%s1135_s29 + $0xd8] sm:$0xff] }
  0x2c   : > { %v282_v27 = vpack.c.bf16 %v232_v22, %v230_v21 }
  0x2e   : > { %466 = vmatmul.mubr.bf16.vlgmr.msra.gmra.mrb[0].mxu0 %v269_v29  ;;  %530 = vmatmul.mubr.bf16.vlgmr.msra.gmra.mrb[0].mxu1 %v285_v30  ;;  %v229_v29 = vld [vmem:[%s1135_s29 + $0xc0] sm:$0xff]  ;;  %v231_v30 = vld [vmem:[%s1135_s29 + $0xd0] sm:$0xff] }
  0x2f   : > { %942 = vmatprep.mubr.msk.bf16.mxu0 %vm377_vm0, %v272_v31  ;;  %950 = vmatprep.mubr.msk.bf16.mxu1 %vm377_vm0, %v288_v32  ;;  %v261_v31 = vld [vmem:[%s1135_s29 + $0x1c0] sm:$0xff]  ;;  %v263_v32 = vld [vmem:[%s1135_s29 + $0x1d0] sm:$0xff]  ;;  %v281_v37 = vpack.c.bf16 %v231_v30, %v229_v29 }
  0x30   : > { %v297_v38 = vpack.c.bf16 %v263_v32, %v261_v31 }
  0x36   : > { %474 = vmatmul.mubr.bf16.gmra.mrb[4].mxu0 %v271_v41  ;;  %538 = vmatmul.mubr.bf16.gmra.mrb[4].mxu1 %v287_v42  ;;  %v233_v41 = vld [vmem:[%s1135_s29 + $0xe0] sm:$0xff]  ;;  %v235_v42 = vld [vmem:[%s1135_s29 + $0xf0] sm:$0xff] }
  0x37   : > { %943 = vmatprep.mubr.msk.bf16.mxu0 %vm377_vm0, %v274_v43  ;;  %951 = vmatprep.mubr.msk.bf16.mxu1 %vm377_vm0, %v290_v44  ;;  %v265_v43 = vld [vmem:[%s1135_s29 + $0x1e0] sm:$0xff]  ;;  %v267_v44 = vld [vmem:[%s1135_s29 + $0x1f0] sm:$0xff]  ;;  %v283_v45 = vpack.c.bf16 %v235_v42, %v233_v41 }
  0x38   : > { %v299_v46 = vpack.c.bf16 %v267_v44, %v265_v43 }
  0x3e   : > { %482 = vmatmul.mubr.bf16.gmra.mrb[8].mxu0 %v273_v53  ;;  %546 = vmatmul.mubr.bf16.gmra.mrb[8].mxu1 %v289_v54 }
  0x3f   : > { %944 = vmatprep.mubr.msk.bf16.mxu0 %vm377_vm0, %v276_v55  ;;  %952 = vmatprep.mubr.msk.bf16.mxu1 %vm377_vm0, %v292_v56 }
  0x46   : > { %490 = vmatmul.mubr.bf16.gmra.mrb[12].mxu0 %v275_v1  ;;  %554 = vmatmul.mubr.bf16.gmra.mrb[12].mxu1 %v291_v2 }
  0x47   : > { %945 = vmatprep.mubr.msk.bf16.mxu0 %vm377_vm0, %v278_v3  ;;  %953 = vmatprep.mubr.msk.bf16.mxu1 %vm377_vm0, %v294_v4 }
  0x4e   : > { %498 = vmatmul.mubr.bf16.gmra.mrb[16].mxu0 %v277_v13  ;;  %562 = vmatmul.mubr.bf16.gmra.mrb[16].mxu1 %v293_v14 }
  0x4f   : > { %946 = vmatprep.mubr.msk.bf16.mxu0 %vm377_vm0, %v280_v15  ;;  %954 = vmatprep.mubr.msk.bf16.mxu1 %vm377_vm0, %v296_v16 }
  0x56   : > { %506 = vmatmul.mubr.bf16.gmra.mrb[20].mxu0 %v279_v25  ;;  %570 = vmatmul.mubr.bf16.gmra.mrb[20].mxu1 %v295_v26 }
  0x57   : > { %947 = vmatprep.mubr.msk.bf16.mxu0 %vm377_vm0, %v282_v27  ;;  %955 = vmatprep.mubr.msk.bf16.mxu1 %vm377_vm0, %v298_v28 }
  0x5e   : > { %514 = vmatmul.mubr.bf16.gmra.mrb[24].mxu0 %v281_v37  ;;  %578 = vmatmul.mubr.bf16.gmra.mrb[24].mxu1 %v297_v38 }
  0x5f   : > { %948 = vmatprep.mubr.msk.bf16.mxu0 %vm377_vm0, %v284_v39  ;;  %956 = vmatprep.mubr.msk.bf16.mxu1 %vm377_vm0, %v300_v40 }
  0x66   : > { %522 = vmatmul.mubr.bf16.gmra.mrb[28].mxu0 %v283_v45  ;;  %586 = vmatmul.mubr.bf16.gmra.mrb[28].mxu1 %v299_v46 }
 0x101   : > { %v467_v48 = vpop.f32.mrb[0].mxu0  ;;  %v531_v50 = vpop.f32.mrb[0].mxu1 }
 0x102   : > { %v601_v51 = vmul.f32 %v1250_v47, %v467_v48  ;;  %v617_v52 = vmul.f32 %v1250_v47, %v531_v50  ;;  %v469_v53 = vpop.f32.mrb[1].mxu0  ;;  %v533_v54 = vpop.f32.mrb[1].mxu1 }
 0x103   : > { %v470_v55 = vpop.f32.mrb[2].mxu0  ;;  %v534_v56 = vpop.f32.mrb[2].mxu1 }
 0x104   : > { %v640_v57 = vadd.f32 %v1255_v49, %v601_v51  ;;  %v656_v58 = vadd.f32 %v1255_v49, %v617_v52  ;;  %v602_v59 = vmul.f32 %v1250_v47, %v470_v55  ;;  %v618_v60 = vmul.f32 %v1250_v47, %v534_v56  ;;  %v472_v61 = vpop.f32.mrb[3].mxu0  ;;  %v536_v62 = vpop.f32.mrb[3].mxu1 }
 0x106   : > { %v672_v63 = vmax.f32 %v640_v57, 0.0  ;;  %v688_v0 = vmax.f32 %v656_v58, 0.0  ;;  %v641_v1 = vadd.f32 %v1255_v49, %v602_v59  ;;  %v657_v2 = vadd.f32 %v1255_v49, %v618_v60 }
 0x108   : > { %v994_v3 = vpack.c.bf16 %v672_v63, %v672_v63  ;;  %v1010_v4 = vpack.c.bf16 %v688_v0, %v688_v0  ;;  %v673_v5 = vmax.f32 %v641_v1, 0.0  ;;  %v689_v6 = vmax.f32 %v657_v2, 0.0 }
 0x109   : > { %v475_v7 = vpop.f32.mrb[4].mxu0  ;;  %v539_v8 = vpop.f32.mrb[4].mxu1 }
 0x10a   : > { %833 = vst.msk [vmem:[%s1269_s23] sm:$0xf] %vm832_vm3, %v994_v3  ;;  %849 = vst.msk [vmem:[%s1269_s23 + $0x40] sm:$0xf] %vm832_vm3, %v1010_v4  ;;  %v995_v9 = vpack.c.bf16 %v673_v5, %v673_v5  ;;  %v1011_v10 = vpack.c.bf16 %v689_v6, %v689_v6  ;;  %v603_v11 = vmul.f32 %v1250_v47, %v475_v7  ;;  %v477_v13 = vpop.f32.mrb[5].mxu0  ;;  %v541_v14 = vpop.f32.mrb[5].mxu1 }
 0x10b   : > { %v619_v12 = vmul.f32 %v1250_v47, %v539_v8  ;;  %v478_v15 = vpop.f32.mrb[6].mxu0  ;;  %v542_v16 = vpop.f32.mrb[6].mxu1 }
 0x10c   : > { %834 = vst.msk [vmem:[%s1269_s23 + $0x4] sm:$0xf] %vm832_vm3, %v995_v9  ;;  %850 = vst.msk [vmem:[%s1269_s23 + $0x44] sm:$0xf] %vm832_vm3, %v1011_v10  ;;  %v642_v17 = vadd.f32 %v1255_v49, %v603_v11  ;;  %v604_v19 = vmul.f32 %v1250_v47, %v478_v15  ;;  %v620_v20 = vmul.f32 %v1250_v47, %v542_v16  ;;  %v480_v21 = vpop.f32.mrb[7].mxu0  ;;  %v544_v22 = vpop.f32.mrb[7].mxu1 }
 0x10d   : > { %v658_v18 = vadd.f32 %v1255_v49, %v619_v12 }
 0x10e   : > { %v674_v23 = vmax.f32 %v642_v17, 0.0  ;;  %v643_v25 = vadd.f32 %v1255_v49, %v604_v19  ;;  %v659_v26 = vadd.f32 %v1255_v49, %v620_v20 }
 0x10f   : > { %v690_v24 = vmax.f32 %v658_v18, 0.0 }
 0x110   : > { %v996_v27 = vpack.c.bf16 %v674_v23, %v674_v23  ;;  %v675_v29 = vmax.f32 %v643_v25, 0.0  ;;  %v691_v30 = vmax.f32 %v659_v26, 0.0 }
 0x111   : > { %v1012_v28 = vpack.c.bf16 %v690_v24, %v690_v24  ;;  %v483_v31 = vpop.f32.mrb[8].mxu0  ;;  %v547_v32 = vpop.f32.mrb[8].mxu1 }
 0x112   : > { %835 = vst.msk [vmem:[%s1269_s23 + $0x8] sm:$0xf] %vm832_vm3, %v996_v27  ;;  %v997_v33 = vpack.c.bf16 %v675_v29, %v675_v29  ;;  %v1013_v34 = vpack.c.bf16 %v691_v30, %v691_v30  ;;  %v605_v35 = vmul.f32 %v1250_v47, %v483_v31  ;;  %v621_v36 = vmul.f32 %v1250_v47, %v547_v32  ;;  %v485_v37 = vpop.f32.mrb[9].mxu0  ;;  %v549_v38 = vpop.f32.mrb[9].mxu1 }
 0x113   : > { %851 = vst.msk [vmem:[%s1269_s23 + $0x48] sm:$0xf] %vm832_vm3, %v1012_v28  ;;  %v486_v39 = vpop.f32.mrb[10].mxu0  ;;  %v550_v40 = vpop.f32.mrb[10].mxu1 }
 0x114   : > { %836 = vst.msk [vmem:[%s1269_s23 + $0xc] sm:$0xf] %vm832_vm3, %v997_v33  ;;  %852 = vst.msk [vmem:[%s1269_s23 + $0x4c] sm:$0xf] %vm832_vm3, %v1013_v34  ;;  %v644_v41 = vadd.f32 %v1255_v49, %v605_v35  ;;  %v660_v42 = vadd.f32 %v1255_v49, %v621_v36  ;;  %v606_v43 = vmul.f32 %v1250_v47, %v486_v39  ;;  %v488_v45 = vpop.f32.mrb[11].mxu0  ;;  %v552_v46 = vpop.f32.mrb[11].mxu1 }
 0x115   : > { %v622_v44 = vmul.f32 %v1250_v47, %v550_v40 }
 0x116   : > { %v676_v48 = vmax.f32 %v644_v41, 0.0  ;;  %v692_v50 = vmax.f32 %v660_v42, 0.0  ;;  %v645_v51 = vadd.f32 %v1255_v49, %v606_v43 }
 0x117   : > { %v661_v52 = vadd.f32 %v1255_v49, %v622_v44 }
 0x118   : > { %v998_v53 = vpack.c.bf16 %v676_v48, %v676_v48  ;;  %v1014_v54 = vpack.c.bf16 %v692_v50, %v692_v50  ;;  %v677_v55 = vmax.f32 %v645_v51, 0.0 }
 0x119   : > { %v693_v56 = vmax.f32 %v661_v52, 0.0  ;;  %v491_v57 = vpop.f32.mrb[12].mxu0  ;;  %v555_v58 = vpop.f32.mrb[12].mxu1 }
 0x11a   : > { %837 = vst.msk [vmem:[%s1269_s23 + $0x10] sm:$0xf] %vm832_vm3, %v998_v53  ;;  %853 = vst.msk [vmem:[%s1269_s23 + $0x50] sm:$0xf] %vm832_vm3, %v1014_v54  ;;  %v999_v59 = vpack.c.bf16 %v677_v55, %v677_v55  ;;  %v607_v61 = vmul.f32 %v1250_v47, %v491_v57  ;;  %v623_v62 = vmul.f32 %v1250_v47, %v555_v58  ;;  %v493_v63 = vpop.f32.mrb[13].mxu0  ;;  %v557_v0 = vpop.f32.mrb[13].mxu1 }
 0x11b   : > { %v1015_v60 = vpack.c.bf16 %v693_v56, %v693_v56  ;;  %v494_v1 = vpop.f32.mrb[14].mxu0  ;;  %v558_v2 = vpop.f32.mrb[14].mxu1 }
 0x11c   : > { %838 = vst.msk [vmem:[%s1269_s23 + $0x14] sm:$0xf] %vm832_vm3, %v999_v59  ;;  %v646_v3 = vadd.f32 %v1255_v49, %v607_v61  ;;  %v662_v4 = vadd.f32 %v1255_v49, %v623_v62  ;;  %v608_v5 = vmul.f32 %v1250_v47, %v494_v1  ;;  %v624_v6 = vmul.f32 %v1250_v47, %v558_v2  ;;  %v496_v7 = vpop.f32.mrb[15].mxu0  ;;  %v560_v8 = vpop.f32.mrb[15].mxu1 }
 0x11d   : > { %854 = vst.msk [vmem:[%s1269_s23 + $0x54] sm:$0xf] %vm832_vm3, %v1015_v60 }
 0x11e   : > { %v678_v9 = vmax.f32 %v646_v3, 0.0  ;;  %v694_v10 = vmax.f32 %v662_v4, 0.0  ;;  %v647_v11 = vadd.f32 %v1255_v49, %v608_v5  ;;  %v663_v12 = vadd.f32 %v1255_v49, %v624_v6 }
 0x120   : > { %v1000_v13 = vpack.c.bf16 %v678_v9, %v678_v9  ;;  %v1016_v14 = vpack.c.bf16 %v694_v10, %v694_v10  ;;  %v679_v15 = vmax.f32 %v647_v11, 0.0  ;;  %v695_v16 = vmax.f32 %v663_v12, 0.0 }
 0x121   : > { %v499_v17 = vpop.f32.mrb[16].mxu0  ;;  %v563_v18 = vpop.f32.mrb[16].mxu1 }
 0x122   : > { %839 = vst.msk [vmem:[%s1269_s23 + $0x18] sm:$0xf] %vm832_vm3, %v1000_v13  ;;  %855 = vst.msk [vmem:[%s1269_s23 + $0x58] sm:$0xf] %vm832_vm3, %v1016_v14  ;;  %v1001_v19 = vpack.c.bf16 %v679_v15, %v679_v15  ;;  %v1017_v20 = vpack.c.bf16 %v695_v16, %v695_v16  ;;  %v609_v21 = vmul.f32 %v1250_v47, %v499_v17  ;;  %v501_v23 = vpop.f32.mrb[17].mxu0  ;;  %v565_v24 = vpop.f32.mrb[17].mxu1 }
 0x123   : > { %v625_v22 = vmul.f32 %v1250_v47, %v563_v18  ;;  %v502_v25 = vpop.f32.mrb[18].mxu0  ;;  %v566_v26 = vpop.f32.mrb[18].mxu1 }
 0x124   : > { %840 = vst.msk [vmem:[%s1269_s23 + $0x1c] sm:$0xf] %vm832_vm3, %v1001_v19  ;;  %856 = vst.msk [vmem:[%s1269_s23 + $0x5c] sm:$0xf] %vm832_vm3, %v1017_v20  ;;  %v648_v27 = vadd.f32 %v1255_v49, %v609_v21  ;;  %v610_v29 = vmul.f32 %v1250_v47, %v502_v25  ;;  %v626_v30 = vmul.f32 %v1250_v47, %v566_v26  ;;  %v504_v31 = vpop.f32.mrb[19].mxu0  ;;  %v568_v32 = vpop.f32.mrb[19].mxu1 }
 0x125   : > { %v664_v28 = vadd.f32 %v1255_v49, %v625_v22 }
 0x126   : > { %v680_v33 = vmax.f32 %v648_v27, 0.0  ;;  %v649_v35 = vadd.f32 %v1255_v49, %v610_v29  ;;  %v665_v36 = vadd.f32 %v1255_v49, %v626_v30 }
 0x127   : > { %v696_v34 = vmax.f32 %v664_v28, 0.0 }
 0x128   : > { %v1002_v37 = vpack.c.bf16 %v680_v33, %v680_v33  ;;  %v681_v39 = vmax.f32 %v649_v35, 0.0  ;;  %v697_v40 = vmax.f32 %v665_v36, 0.0 }
 0x129   : > { %v1018_v38 = vpack.c.bf16 %v696_v34, %v696_v34  ;;  %v507_v41 = vpop.f32.mrb[20].mxu0  ;;  %v571_v42 = vpop.f32.mrb[20].mxu1 }
 0x12a   : > { %841 = vst.msk [vmem:[%s1269_s23 + $0x20] sm:$0xf] %vm832_vm3, %v1002_v37  ;;  %v1003_v43 = vpack.c.bf16 %v681_v39, %v681_v39  ;;  %v1019_v44 = vpack.c.bf16 %v697_v40, %v697_v40  ;;  %v611_v45 = vmul.f32 %v1250_v47, %v507_v41  ;;  %v627_v46 = vmul.f32 %v1250_v47, %v571_v42  ;;  %v509_v48 = vpop.f32.mrb[21].mxu0  ;;  %v573_v50 = vpop.f32.mrb[21].mxu1 }
 0x12b   : > { %857 = vst.msk [vmem:[%s1269_s23 + $0x60] sm:$0xf] %vm832_vm3, %v1018_v38  ;;  %v510_v51 = vpop.f32.mrb[22].mxu0  ;;  %v574_v52 = vpop.f32.mrb[22].mxu1 }
 0x12c   : > { %842 = vst.msk [vmem:[%s1269_s23 + $0x24] sm:$0xf] %vm832_vm3, %v1003_v43  ;;  %858 = vst.msk [vmem:[%s1269_s23 + $0x64] sm:$0xf] %vm832_vm3, %v1019_v44  ;;  %v650_v53 = vadd.f32 %v1255_v49, %v611_v45  ;;  %v666_v54 = vadd.f32 %v1255_v49, %v627_v46  ;;  %v612_v55 = vmul.f32 %v1250_v47, %v510_v51  ;;  %v512_v57 = vpop.f32.mrb[23].mxu0  ;;  %v576_v58 = vpop.f32.mrb[23].mxu1 }
 0x12d   : > { %v628_v56 = vmul.f32 %v1250_v47, %v574_v52 }
 0x12e   : > { %v682_v59 = vmax.f32 %v650_v53, 0.0  ;;  %v698_v60 = vmax.f32 %v666_v54, 0.0  ;;  %v651_v61 = vadd.f32 %v1255_v49, %v612_v55 }
 0x12f   : > { %v667_v62 = vadd.f32 %v1255_v49, %v628_v56 }
 0x130   : > { %v1004_v63 = vpack.c.bf16 %v682_v59, %v682_v59  ;;  %v1020_v0 = vpack.c.bf16 %v698_v60, %v698_v60  ;;  %v683_v1 = vmax.f32 %v651_v61, 0.0 }
 0x131   : > { %v699_v2 = vmax.f32 %v667_v62, 0.0  ;;  %v515_v3 = vpop.f32.mrb[24].mxu0  ;;  %v579_v4 = vpop.f32.mrb[24].mxu1 }
 0x132   : > { %843 = vst.msk [vmem:[%s1269_s23 + $0x28] sm:$0xf] %vm832_vm3, %v1004_v63  ;;  %859 = vst.msk [vmem:[%s1269_s23 + $0x68] sm:$0xf] %vm832_vm3, %v1020_v0  ;;  %v1005_v5 = vpack.c.bf16 %v683_v1, %v683_v1  ;;  %v613_v7 = vmul.f32 %v1250_v47, %v515_v3  ;;  %v629_v8 = vmul.f32 %v1250_v47, %v579_v4  ;;  %v517_v9 = vpop.f32.mrb[25].mxu0  ;;  %v581_v10 = vpop.f32.mrb[25].mxu1 }
 0x133   : > { %v1021_v6 = vpack.c.bf16 %v699_v2, %v699_v2  ;;  %v518_v11 = vpop.f32.mrb[26].mxu0  ;;  %v582_v12 = vpop.f32.mrb[26].mxu1 }
 0x134   : > { %844 = vst.msk [vmem:[%s1269_s23 + $0x2c] sm:$0xf] %vm832_vm3, %v1005_v5  ;;  %v652_v13 = vadd.f32 %v1255_v49, %v613_v7  ;;  %v668_v14 = vadd.f32 %v1255_v49, %v629_v8  ;;  %v614_v15 = vmul.f32 %v1250_v47, %v518_v11  ;;  %v630_v16 = vmul.f32 %v1250_v47, %v582_v12  ;;  %v520_v17 = vpop.f32.mrb[27].mxu0  ;;  %v584_v18 = vpop.f32.mrb[27].mxu1 }
 0x135   : > { %860 = vst.msk [vmem:[%s1269_s23 + $0x6c] sm:$0xf] %vm832_vm3, %v1021_v6 }
 0x136   : > { %v684_v19 = vmax.f32 %v652_v13, 0.0  ;;  %v700_v20 = vmax.f32 %v668_v14, 0.0  ;;  %v653_v21 = vadd.f32 %v1255_v49, %v614_v15  ;;  %v669_v22 = vadd.f32 %v1255_v49, %v630_v16 }
 0x138   : > { %v1006_v23 = vpack.c.bf16 %v684_v19, %v684_v19  ;;  %v1022_v24 = vpack.c.bf16 %v700_v20, %v700_v20  ;;  %v685_v25 = vmax.f32 %v653_v21, 0.0  ;;  %v701_v26 = vmax.f32 %v669_v22, 0.0 }
 0x139   : > { %v523_v27 = vpop.f32.mrb[28].mxu0  ;;  %v587_v28 = vpop.f32.mrb[28].mxu1 }
 0x13a   : > { %845 = vst.msk [vmem:[%s1269_s23 + $0x30] sm:$0xf] %vm832_vm3, %v1006_v23  ;;  %861 = vst.msk [vmem:[%s1269_s23 + $0x70] sm:$0xf] %vm832_vm3, %v1022_v24  ;;  %v1007_v29 = vpack.c.bf16 %v685_v25, %v685_v25  ;;  %v1023_v30 = vpack.c.bf16 %v701_v26, %v701_v26  ;;  %v615_v31 = vmul.f32 %v1250_v47, %v523_v27  ;;  %v525_v33 = vpop.f32.mrb[29].mxu0  ;;  %v589_v34 = vpop.f32.mrb[29].mxu1 }
 0x13b   : > { %v631_v32 = vmul.f32 %v1250_v47, %v587_v28  ;;  %v526_v35 = vpop.f32.mrb[30].mxu0  ;;  %v590_v36 = vpop.f32.mrb[30].mxu1 }
 0x13c   : > { %846 = vst.msk [vmem:[%s1269_s23 + $0x34] sm:$0xf] %vm832_vm3, %v1007_v29  ;;  %862 = vst.msk [vmem:[%s1269_s23 + $0x74] sm:$0xf] %vm832_vm3, %v1023_v30  ;;  %v654_v37 = vadd.f32 %v1255_v49, %v615_v31  ;;  %v616_v39 = vmul.f32 %v1250_v47, %v526_v35  ;;  %v632_v40 = vmul.f32 %v1250_v47, %v590_v36  ;;  %v528_v41 = vpop.f32.mrb[31].mxu0  ;;  %v592_v42 = vpop.f32.mrb[31].mxu1 }
 0x13d   : > { %v670_v38 = vadd.f32 %v1255_v49, %v631_v32 }
 0x13e   : > { %v686_v43 = vmax.f32 %v654_v37, 0.0  ;;  %v655_v45 = vadd.f32 %v1255_v49, %v616_v39  ;;  %v671_v46 = vadd.f32 %v1255_v49, %v632_v40 }
 0x13f   : > { %v702_v44 = vmax.f32 %v670_v38, 0.0 }
 0x140   : > { %v1008_v48 = vpack.c.bf16 %v686_v43, %v686_v43  ;;  %v687_v51 = vmax.f32 %v655_v45, 0.0  ;;  %v703_v52 = vmax.f32 %v671_v46, 0.0 }
 0x141   : > { %v1024_v50 = vpack.c.bf16 %v702_v44, %v702_v44 }
 0x142   : > { %847 = vst.msk [vmem:[%s1269_s23 + $0x38] sm:$0xf] %vm832_vm3, %v1008_v48  ;;  %v1009_v53 = vpack.c.bf16 %v687_v51, %v687_v51  ;;  %v1025_v54 = vpack.c.bf16 %v703_v52, %v703_v52 }
 0x143   : > { %863 = vst.msk [vmem:[%s1269_s23 + $0x78] sm:$0xf] %vm832_vm3, %v1024_v50 }
 0x144   : > { %848 = vst.msk [vmem:[%s1269_s23 + $0x3c] sm:$0xf] %vm832_vm3, %v1009_v53  ;;  %864 = vst.msk [vmem:[%s1269_s23 + $0x7c] sm:$0xf] %vm832_vm3, %v1025_v54 }
 0x145 PF: > { %s14_s15 = sadd.s32 1, %s1072_s15  }
 0x146   : > { %p11_p4 = scmp.ge.s32.totalorder %s14_s15, 4  }
 0x148   :  { %13 = sbr.rel (!%p11_p4) target bundleno = 1 (0x1), region = 66 }

// kernel: densenet_forward.12
= control target key start
LH: loop header
LB: loop body
LE: loop exit
PB: predicated region body
PF: predicated region fallthrough
CT: control target
= control target key end

     0   :  { %s2492_s0 = inlined_call_operand.hbm [shape: bf16[2,64,16], index: 0, kind: input, shape index: {}]   ;;  %s2493_s1 = inlined_call_operand.hbm [shape: bf16[2,64,8], index: 1, kind: input, shape index: {}]   ;;  %s2494_s2 = inlined_call_operand.hbm [shape: bf16[2,64,8], index: 2, kind: input, shape index: {}]   ;;  %s2495_s3 = inlined_call_operand.hbm [shape: bf16[32,16], index: 3, kind: input, shape index: {}]   ;;  %s2496_s4 = inlined_call_operand.hbm [shape: f32[1,32], index: 4, kind: input, shape index: {}]   ;;  %s2497_s5 = inlined_call_operand.hbm [shape: f32[1,32], index: 5, kind: input, shape index: {}]   ;;  %s2498_s6 = inlined_call_operand.hbm [shape: bf16[2,16,16], index: 6, kind: output, shape index: {}]  }
   0x1   :  { %2524 = sst [smem:[#allocation25_spill]] %s2493_s1 }
   0x2   :  { %2525 = sst [smem:[#allocation26_spill]] %s2495_s3 }
   0x3   :  { %2526 = sst [smem:[#allocation27_spill]] %s2498_s6 }
   0x4   :  { %11 = vsyncpa [#allocation3], 0 }
   0x5   :  { %13 = vsyncpa [#allocation3 + $0x1], 0 }
   0x6   :  { %14 = vsyncpa [#allocation6], 0 }
   0x7   :  { %16 = vsyncpa [#allocation6 + $0x1], 0 }
   0x8   :  { %17 = vsyncpa [#allocation9], 0 }
   0x9   :  { %18 = vsyncpa [#allocation12], 0 }
   0xa   :  { %19 = vsyncpa [#allocation4], 0 }
   0xb   :  { %21 = vsyncpa [#allocation4 + $0x1], 0  ;;  %s2052_s21 = smov 0   ;;  %s2054_s22 = smov 0  }
   0xc   :  { %s2056_s23 = smov 0   ;;  %s2058_s24 = smov 0  }
   0xd LB: > { %2527 = sst [smem:[#allocation19_spill]] %s1989_s21  ;;  %s2073_s25 = sadd.s32 4294967295, %s2001_s24   ;;  %s2001_s24 = sphi %s2058_s24, %s2567_s24   ;;  %s1997_s23 = sphi %s2056_s23, %s2571_s23   ;;  %s1993_s22 = sphi %s2054_s22, %s2570_s22   ;;  %s1989_s21 = sphi %s2052_s21, %s2569_s21  }
   0xe   : > { %2528 = sst [smem:[#allocation20_spill]] %s2001_s24  ;;  %s1421_s26 = sadd.s32 4294967294, %s2001_s24  }
   0xf   : > { %s2077_s27 = sadd.s32 1, %s2001_s24   ;;  %s34_s28 = sadd.s32 1, %s1997_s23 }
  0x10   : > { %2529 = sst [smem:[#allocation21_spill]] %s2077_s27  ;;  %s31_s29 = ssub.s32 %s2001_s24, %s2077_s27 }
  0x11   : > { %p41_p0 = scmp.ne.s32.totalorder %s1997_s23, %s1993_s22  ;;  %p32_p1 = scmp.eq.s32.totalorder %s31_s29, 0 }
  0x12   : > { %p42_p2 = scmp.eq.s32.totalorder %s2001_s24, 0  ;;  %p47_p3 = scmp.ne.s32.totalorder %s1993_s22, %s1989_s21 }
  0x13   : > { %p2499_p4 = scmp.eq.s32.totalorder %s2073_s25, 0  ;;  %p186_p7 = scmp.eq.s32.totalorder %s2073_s25, 1 }
  0x14   : > { %s2089_s30 = scalar_select %p32_p1, %s1997_s23, %s34_s28  }
  0x15   : > { %p2091_p5 = por %p42_p2, %p41_p0  ;;  %p2097_p6 = por %p2499_p4, %p47_p3 }
  0x16   : > { %2530 = sst [smem:[#allocation22_spill]] %s2089_s30  ;;  %p192_p8 = scmp.eq.s32.totalorder %s1421_s26, 1 }
  0x17   : > { %s2531_s7 = scalar_select %p2091_p5, 1, 0 }
  0x18   : > { %s2532_s8 = scalar_select %p2097_p6, 1, 0 }
  0x19   : > { %p1422_p9 = scmp.ge.s32.totalorder %s2001_s24, 1  ;;  %p199_p10 = scmp.lt.s32.totalorder %s2001_s24, 3 }
  0x1a   : > { %p2104_p11 = por %p186_p7, %p41_p0  ;;  %p2108_p12 = por %p192_p8, %p47_p3 }
  0x1b   : > { %p2112_p13 = pnand %p1422_p9, %p199_p10  ;;  %s2003_s12 = smov [#allocation8]  }
  0x1c   : > { %s2533_s9 = scalar_select %p2104_p11, 1, 0 }
  0x1d   : > { %s2535_s10 = scalar_select %p2108_p12, 1, 0 }
  0x1e   : > { %2534 = sst [smem:[#allocation23_spill]] %s2533_s9  ;;  %p1674_p1 = pneg %p2112_p13 }
  0x1f   : > { %2536 = sst [smem:[#allocation24_spill]] %s2535_s10  ;;  %s211_s13 = sshll.u32 %s2003_s12, 4  ;;  %s212_s13 = int_to_ptr.vmem [resolvable:$true] %s211_s13 }
  0x20   : > { %s2537_s11 = scalar_select %p2112_p13, 1, 0 }
  0x21   : > { %p2120_p2 = pnand %p1674_p1, %p2499_p4  ;;  %s2503_s15 = sand.u32 1, %s1997_s23  }
  0x22   : > { %s2129_s16 = sshll.u32 %s2503_s15, 5  ;;  %s2539_s3 = sld [smem:[#allocation26_spill]] }
  0x23   : > { %s2538_s14 = scalar_select %p2120_p2, 1, 0 }
  0x24   : > { %p2139_p8 = pneg %p2120_p2 }
  0x26   : > { %s2540_s28 = scalar_select %p2139_p8, 1, 0 }
  0x28   : > { %s1749_s19 = scalar_lea.hbm %s2539_s3, 256 }
  0x29   : > { %p1750_p7 = scmp.ne.s32.totalorder %s2539_s3, %s1749_s19  ;;  %p1756_p1 = scmp.lt.u32.totalorder %s1749_s19, %s2539_s3 }
  0x2b   : > { %p1752_p9 = pnand %p2139_p8, %p1750_p7 }
  0x2d   : > { %p1753_p10 = pneg %p1752_p9 }
  0x2f   : > { %p1758_p0 = pnand %p1756_p1, %p1753_p10 }
  0x31   : > { %1761 = shalt.err (!%p1758_p0)
}
  0x32   : > { %s1762_s17 = scalar_lea.vmem %s212_s13, 256  ;;  %p1770_p11 = scmp.lt.s32.totalorder %s212_s13, %s212_s13 }
  0x33   : > { %p1763_p4 = scmp.ne.s32.totalorder %s212_s13, %s1762_s17  ;;  %p1771_p6 = scmp.lt.s32.totalorder %s1762_s17, %s1762_s17 }
  0x35   : > { %p1765_p3 = pnand %p1763_p4, %p2139_p8  ;;  %p1772_p13 = por %p1771_p6, %p1770_p11 }
  0x37   : > { %p1766_p12 = pneg %p1765_p3 }
  0x39   : > { %p1773_p5 = pnand %p1772_p13, %p1766_p12 }
  0x3b   : > { %1776 = shalt.err (!%p1773_p5)
}
  0x3c   : > { %s2506_s18 = smov 64   ;;  %s2508_s19 = smov 4  }
  0x3d   : > { %1677 = dma.hbm_to_vmem [thread:$0]  (!%p2120_p2), %s2539_s3, 256, %s212_s13, [#allocation9], %s2506_s18, %s2506_s18, %s2508_s19  }
  0x3e   : > { %s2159_s29 = sshll.u32 %s2001_s24, 9  ;;  %p2541_p4 = scmp.ne.s32.totalorder %s2531_s7, 0 }
  0x3f   : > { %p2542_p5 = scmp.lt.s32.totalorder %s2001_s24, 2  ;;  %s268_s17 = sand.u32 1, %s2001_s24  }
  0x40   : > { %s2544_s1 = sld [smem:[#allocation25_spill]]  ;;  %s272_s13 = scalar_lea.vmem [#allocation5], %s2129_s16 }
  0x41   : > { %p2165_p6 = pnand %p2542_p5, %p2541_p4  ;;  %s279_s20 = sshll.u32 %s272_s13, 4  ;;  %s2177_s20 = int_to_ptr.vmem [resolvable:$true] %s279_s20 }
  0x42   : > { %s2179_s7 = scalar_lea.sflag [#allocation6], %s268_s17 }
  0x43   : > { %s2543_s12 = scalar_select %p2165_p6, 1, 0 }
  0x44   : > { %p2185_p12 = pneg %p2165_p6 }
  0x46   : > { %s2174_s27 = scalar_lea.hbm %s2544_s1, %s2159_s29  ;;  %s1782_s19 = scalar_lea.hbm %s2544_s1, 1024 }
  0x47   : > { %s1777_s26 = scalar_lea.hbm %s2174_s27, 512  ;;  %p1783_p3 = scmp.lt.u32.totalorder %s2174_s27, %s2544_s1 }
  0x48   : > { %p1778_p11 = scmp.ne.s32.totalorder %s2174_s27, %s1777_s26  ;;  %p1784_p7 = scmp.lt.u32.totalorder %s1782_s19, %s1777_s26 }
  0x49   : > { %s2545_s18 = scalar_select %p2185_p12, 1, 0 }
  0x4a   : > { %p1780_p13 = pnand %p2185_p12, %p1778_p11  ;;  %p1785_p9 = por %p1784_p7, %p1783_p3 }
  0x4b   : > { %p1786_p10 = scmp.lt.u32.totalorder %s1777_s26, %s2174_s27 }
  0x4c   : > { %p1781_p0 = pneg %p1780_p13 }
  0x4d   : > { %p1787_p1 = por %p1786_p10, %p1785_p9 }
  0x4f   : > { %p1788_p4 = pnand %p1787_p1, %p1781_p0 }
  0x51   : > { %1791 = shalt.err (!%p1788_p4)
}
  0x52   : > { %s1792_s17 = scalar_lea.vmem %s2177_s20, 512  ;;  %s2006_s30 = smov [#allocation5]  }
  0x53   : > { %p1793_p5 = scmp.ne.s32.totalorder %s2177_s20, %s1792_s17  ;;  %s1797_s15 = sshll.u32 %s2006_s30, 4  ;;  %s1798_s15 = int_to_ptr.vmem [resolvable:$false] %s1797_s15 }
  0x54   : > { %s1799_s3 = scalar_lea.vmem %s1798_s15, 1024  ;;  %p1800_p2 = scmp.lt.s32.totalorder %s2177_s20, %s1798_s15 }
  0x55   : > { %p1795_p11 = pnand %p1793_p5, %p2185_p12  ;;  %p1801_p8 = scmp.lt.s32.totalorder %s1799_s3, %s1792_s17 }
  0x57   : > { %p1796_p13 = pneg %p1795_p11  ;;  %p1802_p3 = por %p1801_p8, %p1800_p2 }
  0x59   : > { %p1803_p7 = pnand %p1802_p3, %p1796_p13 }
  0x5b   : > { %1806 = shalt.err (!%p1803_p7)
}
  0x5c   : > { %s2546_s19 = smov 4   ;;  %s2547_s26 = smov 64  }
  0x5d   : > { %1690 = dma.hbm_to_vmem [thread:$0]  (!%p2165_p6), %s2174_s27, 512, %s2177_s20, %s2179_s7, %s2547_s26, %s2547_s26, %s2546_s19  }
  0x5e   : > { %s2007_s13 = smov [#allocation10]   ;;  %s2008_s30 = smov [#allocation11]  }
  0x5f   : > { %s225_s1 = sshll.u32 %s2007_s13, 4  ;;  %s236_s24 = sshll.u32 %s2008_s30, 4  ;;  %s226_s1 = int_to_ptr.vmem [resolvable:$true] %s225_s1  ;;  %s237_s24 = int_to_ptr.vmem [resolvable:$true] %s236_s24 }
  0x60   : > { %s1807_s3 = scalar_lea.hbm %s2496_s4, 16  ;;  %p2548_p8 = scmp.ne.s32.totalorder %s2540_s28, 0 }
  0x61   : > { %p1808_p2 = scmp.ne.s32.totalorder %s2496_s4, %s1807_s3  ;;  %p1814_p10 = scmp.lt.u32.totalorder %s1807_s3, %s2496_s4 }
  0x63   : > { %p1810_p0 = pnand %p1808_p2, %p2548_p8 }
  0x65   : > { %p1811_p9 = pneg %p1810_p0 }
  0x67   : > { %p1816_p1 = pnand %p1814_p10, %p1811_p9 }
  0x69   : > { %1819 = shalt.err (!%p1816_p1)
}
  0x6a   : > { %s1820_s27 = scalar_lea.vmem %s226_s1, 16  ;;  %s1827_s20 = scalar_lea.vmem %s226_s1, 32 }
  0x6b   : > { %p1821_p4 = scmp.ne.s32.totalorder %s226_s1, %s1820_s27  ;;  %p1828_p13 = scmp.lt.s32.totalorder %s226_s1, %s226_s1 }
  0x6c   : > { %p1829_p3 = scmp.lt.s32.totalorder %s1827_s20, %s1820_s27 }
  0x6d   : > { %p1823_p5 = pnand %p1821_p4, %p2548_p8 }
  0x6e   : > { %p1830_p7 = por %p1829_p3, %p1828_p13 }
  0x6f   : > { %p1824_p11 = pneg %p1823_p5 }
  0x71   : > { %p1831_p6 = pnand %p1830_p7, %p1824_p11 }
  0x73   : > { %1834 = shalt.err (!%p1831_p6)
}
  0x74   : > { %p2549_p2 = scmp.ne.s32.totalorder %s2538_s14, 0  ;;  %s1835_s13 = scalar_lea.hbm %s2497_s5, 16 }
  0x75   : > { %p1836_p0 = scmp.ne.s32.totalorder %s2497_s5, %s1835_s13  ;;  %p1842_p6 = scmp.lt.u32.totalorder %s1835_s13, %s2497_s5 }
  0x76   : > { %1680 = dma.hbm_to_vmem [thread:$0]  (!%p2549_p2), %s2496_s4, 16, %s226_s1, [#allocation9]  }
  0x77   : > { %p1838_p9 = pnand %p1836_p0, %p2548_p8 }
  0x79   : > { %p1839_p10 = pneg %p1838_p9 }
  0x7b   : > { %p1844_p1 = pnand %p1842_p6, %p1839_p10 }
  0x7d   : > { %1847 = shalt.err (!%p1844_p1)
}
  0x7e   : > { %s1848_s27 = scalar_lea.vmem %s237_s24, 16  ;;  %s1855_s1 = scalar_lea.vmem %s237_s24, 32 }
  0x7f   : > { %p1849_p4 = scmp.ne.s32.totalorder %s237_s24, %s1848_s27  ;;  %p1856_p13 = scmp.lt.s32.totalorder %s237_s24, %s237_s24 }
  0x80   : > { %p1857_p3 = scmp.lt.s32.totalorder %s1855_s1, %s1848_s27 }
  0x81   : > { %p1851_p5 = pnand %p1849_p4, %p2548_p8 }
  0x82   : > { %p1858_p7 = por %p1857_p3, %p1856_p13 }
  0x83   : > { %p1852_p11 = pneg %p1851_p5 }
  0x85   : > { %p1859_p12 = pnand %p1858_p7, %p1852_p11 }
  0x87   : > { %1862 = shalt.err (!%p1859_p12)
}
  0x88   : > { %1683 = dma.hbm_to_vmem [thread:$0]  (!%p2549_p2), %s2497_s5, 16, %s237_s24, [#allocation12]  }
  0x89   : > { %s2252_s6 = scalar_lea.hbm %s2492_s0, %s2159_s29  ;;  %s251_s9 = scalar_lea.vmem [#allocation2], %s2129_s16 }
  0x8a   : > { %s258_s14 = sshll.u32 %s251_s9, 4  ;;  %s2261_s15 = scalar_lea.hbm %s2494_s2, %s2159_s29  ;;  %s2255_s14 = int_to_ptr.vmem [resolvable:$true] %s258_s14 }
  0x8b   : > { %s2550_s17 = sand.u32 1, %s1997_s23   ;;  %s1863_s3 = scalar_lea.hbm %s2252_s6, 512 }
  0x8c   : > { %s2265_s24 = scalar_lea.sflag [#allocation3], %s2550_s17  ;;  %p1864_p12 = scmp.ne.s32.totalorder %s2252_s6, %s1863_s3 }
  0x8d   : > { %p2551_p8 = scmp.ne.s32.totalorder %s2545_s18, 0  ;;  %s1868_s20 = scalar_lea.hbm %s2492_s0, 1024 }
  0x8e   : > { %p1869_p9 = scmp.lt.u32.totalorder %s2252_s6, %s2492_s0  ;;  %p1870_p10 = scmp.lt.u32.totalorder %s1868_s20, %s1863_s3 }
  0x8f   : > { %p1866_p2 = pnand %p1864_p12, %p2551_p8  ;;  %p1872_p1 = scmp.lt.u32.totalorder %s1863_s3, %s2252_s6 }
  0x90   : > { %p1871_p6 = por %p1870_p10, %p1869_p9 }
  0x91   : > { %p1867_p0 = pneg %p1866_p2 }
  0x92   : > { %p1873_p4 = por %p1872_p1, %p1871_p6 }
  0x94   : > { %p1874_p5 = pnand %p1873_p4, %p1867_p0 }
  0x96   : > { %1877 = shalt.err (!%p1874_p5)
}
  0x97   : > { %s1878_s29 = scalar_lea.vmem %s2255_s14, 512  ;;  %s2009_s10 = smov [#allocation2]  }
  0x98   : > { %p1879_p11 = scmp.ne.s32.totalorder %s2255_s14, %s1878_s29  ;;  %s1883_s9 = sshll.u32 %s2009_s10, 4  ;;  %s1884_s9 = int_to_ptr.vmem [resolvable:$false] %s1883_s9 }
  0x99   : > { %s1885_s13 = scalar_lea.vmem %s1884_s9, 1024  ;;  %p1886_p7 = scmp.lt.s32.totalorder %s2255_s14, %s1884_s9 }
  0x9a   : > { %p1881_p13 = pnand %p1879_p11, %p2551_p8  ;;  %p1887_p12 = scmp.lt.s32.totalorder %s1885_s13, %s1878_s29 }
  0x9c   : > { %p1882_p3 = pneg %p1881_p13  ;;  %p1888_p2 = por %p1887_p12, %p1886_p7 }
  0x9e   : > { %p1889_p9 = pnand %p1888_p2, %p1882_p3 }
  0xa0   : > { %1892 = shalt.err (!%p1889_p9)
}
  0xa1   : > { %p2552_p0 = scmp.ne.s32.totalorder %s2543_s12, 0  ;;  %s293_s30 = scalar_lea.vmem [#allocation7], %s2129_s16 }
  0xa2   : > { %s300_s17 = sshll.u32 %s293_s30, 4  ;;  %s1893_s3 = scalar_lea.hbm %s2261_s15, 512  ;;  %s2293_s17 = int_to_ptr.vmem [resolvable:$true] %s300_s17 }
  0xa3   : > { %1687 = dma.hbm_to_vmem [thread:$0]  (!%p2552_p0), %s2252_s6, 512, %s2255_s14, %s2265_s24, %s2547_s26, %s2547_s26, %s2546_s19  }
  0xa4   : > { %p1894_p10 = scmp.ne.s32.totalorder %s2261_s15, %s1893_s3  ;;  %s1898_s20 = scalar_lea.hbm %s2494_s2, 1024 }
  0xa5   : > { %p1899_p4 = scmp.lt.u32.totalorder %s2261_s15, %s2494_s2  ;;  %p1900_p5 = scmp.lt.u32.totalorder %s1898_s20, %s1893_s3 }
  0xa6   : > { %p1896_p6 = pnand %p1894_p10, %p2551_p8  ;;  %p1902_p13 = scmp.lt.u32.totalorder %s1893_s3, %s2261_s15 }
  0xa7   : > { %p1901_p11 = por %p1900_p5, %p1899_p4 }
  0xa8   : > { %p1897_p1 = pneg %p1896_p6 }
  0xa9   : > { %p1903_p3 = por %p1902_p13, %p1901_p11 }
  0xab   : > { %p1904_p7 = pnand %p1903_p3, %p1897_p1 }
  0xad   : > { %1907 = shalt.err (!%p1904_p7)
}
  0xae   : > { %s1908_s16 = scalar_lea.vmem %s2293_s17, 512  ;;  %s2010_s6 = smov [#allocation7]  }
  0xaf   : > { %p1909_p12 = scmp.ne.s32.totalorder %s2293_s17, %s1908_s16  ;;  %s1913_s14 = sshll.u32 %s2010_s6, 4  ;;  %s1914_s14 = int_to_ptr.vmem [resolvable:$false] %s1913_s14 }
  0xb0   : > { %s1915_s24 = scalar_lea.vmem %s1914_s14, 1024  ;;  %p1916_p10 = scmp.lt.s32.totalorder %s2293_s17, %s1914_s14 }
  0xb1   : > { %p1911_p2 = pnand %p1909_p12, %p2551_p8  ;;  %p1917_p6 = scmp.lt.s32.totalorder %s1915_s24, %s1908_s16 }
  0xb3   : > { %p1912_p9 = pneg %p1911_p2  ;;  %p1918_p4 = por %p1917_p6, %p1916_p10 }
  0xb5   : > { %p1919_p5 = pnand %p1918_p4, %p1912_p9 }
  0xb7   : > { %1922 = shalt.err (!%p1919_p5)
}
  0xb8   : > { %1693 = dma.hbm_to_vmem [thread:$0]  (!%p2552_p0), %s2261_s15, 512, %s2293_s17, %s2179_s7, %s2547_s26, %s2547_s26, %s2546_s19  }
  0xb9   : > { %p2553_p8 = scmp.ne.s32.totalorder %s2537_s11, 0 }
  0xba   : > { %s2323_s18 = sand.u32 (!%p2553_p8), 1, %s1993_s22   ;;  %p2554_p1 = scmp.ne.s32.totalorder (!%p2553_p8), %s2532_s8, 0 }
  0xbb   : > { %312 = sbr.rel (%p2553_p8) target bundleno = 622 (0x26e), region = 44  ;;  %s1437_s29 = sshll.u32 (!%p2553_p8), %s2323_s18, 5 }
  0xbc   : > { %s315_s10 = scalar_lea.sflag (!%p2553_p8), [#allocation3], %s2323_s18  ;;  %s2327_s9 = scalar_lea.vmem (!%p2553_p8), [#allocation2], %s1437_s29 }
  0xc2   : > { %1968 = dma.done.wait (%p2554_p1), %s315_s10, 512  }
  0xc3   : > { %1970 = vsyncadd (%p2554_p1), %s315_s10, 4294966784  ;;  %s323_s12 = sand.u32 1, %s2073_s25   ;;  %s2334_s7 = scalar_lea.vmem [#allocation5], %s1437_s29 }
  0xc4   : > { %s324_s11 = scalar_lea.sflag [#allocation6], %s323_s12 }
  0xc5   : > { %1972 = dma.done.wait (%p2554_p1), %s324_s11, 1024  }
  0xc6   : > { %1974 = vsyncadd (%p2554_p1), %s324_s11, 4294966272  ;;  %s2340_s19 = scalar_lea.vmem [#allocation7], %s1437_s29  ;;  %p2555_p0 = scmp.eq.s32.totalorder %s2073_s25, 0 }
  0xc8   : > { %1976 = dma.done.wait (%p2555_p0), [#allocation9], 272   ;;  %p2556_p11 = pmov %p2555_p0 }
  0xc9   : > { %p2557_p13 = pmov %p2555_p0 }
  0xca   : > { %1978 = vsyncadd (%p2556_p11), [#allocation9], 4294967024 }
  0xcb   : > { %1980 = dma.done.wait (%p2557_p13), [#allocation12], 16   ;;  %p2558_p3 = pmov %p2555_p0 }
  0xcc   : > { %v1444_v0 = vld [vmem:[#allocation10] ss:$0 sm:$0xff]  ;;  %vm512_vm0 = vcmask 1043456   ;;  %s2011_s8 = smov 104   ;;  %s2012_s26 = smov 112   ;;  %v2350_v1 = vld [vmem:[#allocation8] sm:$0xff]  }
  0xcd   : > { %1982 = vsyncadd (%p2558_p3), [#allocation12], 4294967280  ;;  %681 = vrot.lane.b32.xlu1 %v1444_v0, %s2011_s8  ;;  %464 = vrot.lane.b32.xlu0 %v1444_v0, %s2012_s26  ;;  %v1533_v2 = vld [vmem:[%s2327_s9] sm:$0xff]   ;;  %v1445_v3 = vld [vmem:[#allocation11] ss:$0 sm:$0xff]  ;;  %vm587_vm1 = vcmask 130048  }
  0xce   : > { %v1534_v4 = vunpack.c.l.bf16 %v1533_v2  ;;  %v1535_v5 = vunpack.c.h.bf16 %v1533_v2  ;;  %v1580_v6 = vld [vmem:[%s2327_s9 + $0x8] sm:$0xff]   ;;  %1614 = vmatprep.subr.bf16.mxu0 %v2350_v1  ;;  %v1581_v22 = vld [vmem:[%s2327_s9 + $0x10] sm:$0xff]   ;;  %v1582_v25 = vld [vmem:[%s2327_s9 + $0x18] sm:$0xff]   ;;  %vm499_vm2 = vcmask 64512   ;;  %vm1221_vm3 = vcmask 1041409   ;;  %s1443_s15 = sshll.u32 %s2323_s18, 3 }
  0xcf   : > { %v498_v7 = vld [vmem:[#allocation8 + $0x8] sm:$0xf]  ;;  %v1538_v8 = vunpack.c.l.bf16 %v1580_v6  ;;  %v1539_v9 = vunpack.c.h.bf16 %v1580_v6  ;;  %v715_v11 = vld [vmem:[#allocation8 + $0xc] sm:$0xf]  ;;  %1615 = vmatpush3.bf16.msra.mxu0 %v2350_v1  ;;  %v1542_v29 = vunpack.c.l.bf16 %v1581_v22  ;;  %v1543_v30 = vunpack.c.h.bf16 %v1581_v22  ;;  %v1549_v47 = vld [vmem:[%s2334_s7] sm:$0xff]   ;;  %s2428_s13 = scalar_lea.vmem [#allocation13], %s1443_s15 }
  0xd0   : > { %1652 = vmatprep.subr.msk.bf16.mxu1 %vm512_vm0, %v498_v7  ;;  %v514_v10 = vsel %vm512_vm0, %v498_v7, 0  ;;  %v412_v12 = vmul.f32 %v1534_v4, %v1444_v0  ;;  %v413_v13 = vmul.f32 %v1535_v5, %v1444_v0  ;;  %1653 = vmatprep.subr.msk.bf16.mxu0 %vm512_vm0, %v715_v11  ;;  %v729_v28 = vsel %vm512_vm0, %v715_v11, 0  ;;  %v1565_v48 = vld [vmem:[%s2340_s19] sm:$0xff]   ;;  %v1583_v49 = vld [vmem:[%s2334_s7 + $0x8] sm:$0xff]   ;;  %v1584_v51 = vld [vmem:[%s2334_s7 + $0x10] sm:$0xff]   ;;  %s2559_s30 = sld [smem:[#allocation23_spill]] }
  0xd1   : > { %1605 = vmatpush3.bf16.msra.mxu1 %v514_v10  ;;  %692 = vrot.lane.b32.xlu1 %v1445_v3, %s2011_s8  ;;  %v414_v14 = vmul.f32 %v1538_v8, %v1444_v0  ;;  %v415_v15 = vmul.f32 %v1539_v9, %v1444_v0  ;;  %v1546_v31 = vunpack.c.l.bf16 %v1582_v25  ;;  %v1547_v32 = vunpack.c.h.bf16 %v1582_v25  ;;  %v1586_v50 = vld [vmem:[%s2340_s19 + $0x8] sm:$0xff]   ;;  %v1587_v52 = vld [vmem:[%s2340_s19 + $0x10] sm:$0xff]   ;;  %v1585_v57 = vld [vmem:[%s2334_s7 + $0x18] sm:$0xff]   ;;  %s1531_s17 = sshll.u32 %s2073_s25, 7  ;;  %s1276_s3 = sshll.u32 %s2428_s13, 4  ;;  %s2446_s3 = int_to_ptr.vmem [resolvable:$true] %s1276_s3 }
  0xd2   : > { %475 = vrot.lane.b32.xlu0 %v1445_v3, %s2012_s26  ;;  %v426_v16 = vadd.f32 %v1445_v3, %v412_v12  ;;  %v427_v17 = vadd.f32 %v1445_v3, %v413_v13  ;;  %1634 = vmatprep.subr.bf16.mxu1 %v2350_v1  ;;  %v416_v33 = vmul.f32 %v1542_v29, %v1444_v0  ;;  %v1550_v53 = vunpack.c.l.bf16 %v1549_v47  ;;  %v1588_v58 = vld [vmem:[%s2340_s19 + $0x18] sm:$0xff]   ;;  %s2560_s20 = sld [smem:[#allocation27_spill]]  ;;  %s1263_s25 = scalar_lea.sflag [#allocation4], %s2323_s18 }
  0xd3   : > { %v428_v18 = vadd.f32 %v1445_v3, %v414_v14  ;;  %v429_v19 = vadd.f32 %v1445_v3, %v415_v15  ;;  %v417_v34 = vmul.f32 %v1543_v30, %v1444_v0  ;;  %v418_v35 = vmul.f32 %v1546_v31, %v1444_v0  ;;  %s1923_s28 = scalar_lea.vmem %s2446_s3, 128  ;;  %s2014_s16 = smov [#allocation13]  }
  0xd4   : > { %v434_v20 = vmax.f32 %v426_v16, 0.0  ;;  %v435_v21 = vmax.f32 %v427_v17, 0.0  ;;  %v419_v36 = vmul.f32 %v1547_v32, %v1444_v0  ;;  %v430_v37 = vadd.f32 %v1445_v3, %v416_v33  ;;  %p1924_p7 = scmp.ne.s32.totalorder %s2446_s3, %s1923_s28  ;;  %s1927_s6 = sshll.u32 %s2014_s16, 4  ;;  %s1928_s6 = int_to_ptr.vmem [resolvable:$false] %s1927_s6 }
  0xd5   : > { %v436_v23 = vmax.f32 %v428_v18, 0.0  ;;  %v437_v24 = vmax.f32 %v429_v19, 0.0  ;;  %v431_v38 = vadd.f32 %v1445_v3, %v417_v34  ;;  %v432_v39 = vadd.f32 %v1445_v3, %v418_v35  ;;  %s1929_s14 = scalar_lea.vmem %s1928_s6, 256  ;;  %p1930_p10 = scmp.lt.s32.totalorder %s2446_s3, %s1928_s6 }
  0xd6   : > { %v442_v26 = vpack.c.bf16 %v435_v21, %v434_v20  ;;  %v433_v40 = vadd.f32 %v1445_v3, %v419_v36  ;;  %v438_v41 = vmax.f32 %v430_v37, 0.0  ;;  %v1551_v54 = vunpack.c.h.bf16 %v1549_v47  ;;  %p2561_p12 = scmp.ne.s32.totalorder %s2559_s30, 0  ;;  %p1931_p6 = scmp.lt.s32.totalorder %s1929_s14, %s1923_s28 }
  0xd7   : > { %v443_v27 = vpack.c.bf16 %v437_v24, %v436_v23  ;;  %v439_v42 = vmax.f32 %v431_v38, 0.0  ;;  %v440_v43 = vmax.f32 %v432_v39, 0.0  ;;  %v1566_v55 = vunpack.c.l.bf16 %v1565_v48 }
  0xd8   : > { %1616 = vmatprep.mubr.msk.bf16.mxu0 %vm587_vm1, %v442_v26  ;;  %v441_v44 = vmax.f32 %v433_v40, 0.0  ;;  %v1567_v56 = vunpack.c.h.bf16 %v1565_v48  ;;  %v1554_v59 = vunpack.c.l.bf16 %v1583_v49  ;;  %v1555_v60 = vunpack.c.h.bf16 %v1583_v49  ;;  %s2444_s21 = scalar_lea.hbm %s2560_s20, %s1531_s17  ;;  %p1925_p2 = pnand %p1924_p7, %p2561_p12 }
  0xd9   : > { %1617 = vmatmul.mubr.msk.bf16.vlgmr.msra.gmra.mrb[0].mxu0 %vm587_vm1, %v443_v27  ;;  %v2365_v45 = vpack.c.bf16 %v439_v42, %v438_v41  ;;  %v1570_v61 = vunpack.c.l.bf16 %v1586_v50  ;;  %v1571_v62 = vunpack.c.h.bf16 %v1586_v50  ;;  %v1558_v63 = vunpack.c.l.bf16 %v1584_v51  ;;  %p1932_p4 = por %p1931_p6, %p1930_p10 }
  0xda   : > { %1625 = vmatpush3.bf16.msra.mxu0 %v729_v28  ;;  %v2367_v46 = vpack.c.bf16 %v441_v44, %v440_v43  ;;  %v1559_v0 = vunpack.c.h.bf16 %v1584_v51  ;;  %v1574_v2 = vunpack.c.l.bf16 %v1587_v52  ;;  %v1575_v3 = vunpack.c.h.bf16 %v1587_v52  ;;  %p1926_p9 = pneg %p1925_p2 }
  0xdb   : > { %v1562_v6 = vunpack.c.l.bf16 %v1585_v57  ;;  %v1563_v7 = vunpack.c.h.bf16 %v1585_v57  ;;  %v1578_v8 = vunpack.c.l.bf16 %v1588_v58  ;;  %v1579_v9 = vunpack.c.h.bf16 %v1588_v58 }
  0xdc   : > { %vm1224_vm4 = vcmask 1042434   ;;  %vm1227_vm5 = vcmask 1043459   ;;  %vm1230_vm6 = vcmask 1044484   ;;  %vm1233_vm7 = vcmask 1045509   ;;  %p1933_p5 = pnand %p1932_p4, %p1926_p9 }
  0xdd   : > { %vm1236_vm8 = vcmask 1046534   ;;  %vm1239_vm9 = vcmask 1047559   ;;  %vm1259_vm10 = vcmask 125952  }
 0x13f   : > { %v682_v4 = vpop.permute.xlu1 %681  ;;  %v465_v5 = vpop.permute.xlu0 %464 }
 0x140   : > { %v467_v10 = vmul.f32 %v1550_v53, %v465_v5  ;;  %v468_v11 = vmul.f32 %v1551_v54, %v465_v5  ;;  %v684_v12 = vmul.f32 %v1566_v55, %v682_v4  ;;  %v685_v13 = vmul.f32 %v1567_v56, %v682_v4 }
 0x141   : > { %v469_v14 = vmul.f32 %v1554_v59, %v465_v5  ;;  %v470_v15 = vmul.f32 %v1555_v60, %v465_v5  ;;  %v686_v16 = vmul.f32 %v1570_v61, %v682_v4  ;;  %v687_v17 = vmul.f32 %v1571_v62, %v682_v4 }
 0x142   : > { %v471_v18 = vmul.f32 %v1558_v63, %v465_v5  ;;  %v472_v19 = vmul.f32 %v1559_v0, %v465_v5  ;;  %v688_v20 = vmul.f32 %v1574_v2, %v682_v4  ;;  %v689_v21 = vmul.f32 %v1575_v3, %v682_v4 }
 0x143   : > { %v693_v22 = vpop.permute.xlu1 %692  ;;  %v473_v24 = vmul.f32 %v1562_v6, %v465_v5  ;;  %v474_v25 = vmul.f32 %v1563_v7, %v465_v5  ;;  %v690_v26 = vmul.f32 %v1578_v8, %v682_v4  ;;  %v691_v27 = vmul.f32 %v1579_v9, %v682_v4 }
 0x144   : > { %v476_v23 = vpop.permute.xlu0 %475  ;;  %v695_v30 = vadd.f32 %v693_v22, %v684_v12  ;;  %v696_v31 = vadd.f32 %v693_v22, %v685_v13  ;;  %v697_v34 = vadd.f32 %v693_v22, %v686_v16  ;;  %v698_v35 = vadd.f32 %v693_v22, %v687_v17 }
 0x145   : > { %v478_v28 = vadd.f32 %v476_v23, %v467_v10  ;;  %v479_v29 = vadd.f32 %v476_v23, %v468_v11  ;;  %v480_v32 = vadd.f32 %v476_v23, %v469_v14  ;;  %v481_v33 = vadd.f32 %v476_v23, %v470_v15 }
 0x146   : > { %v703_v38 = vmax.f32 %v695_v30, 0.0  ;;  %v704_v39 = vmax.f32 %v696_v31, 0.0  ;;  %v705_v42 = vmax.f32 %v697_v34, 0.0  ;;  %v706_v43 = vmax.f32 %v698_v35, 0.0 }
 0x147   : > { %v486_v36 = vmax.f32 %v478_v28, 0.0  ;;  %v487_v37 = vmax.f32 %v479_v29, 0.0  ;;  %v488_v40 = vmax.f32 %v480_v32, 0.0  ;;  %v489_v41 = vmax.f32 %v481_v33, 0.0 }
 0x148   : > { %v711_v47 = vpack.c.bf16 %v704_v39, %v703_v38  ;;  %v482_v48 = vadd.f32 %v476_v23, %v471_v18  ;;  %v483_v49 = vadd.f32 %v476_v23, %v472_v19  ;;  %v712_v51 = vpack.c.bf16 %v706_v43, %v705_v42 }
 0x149   : > { %v494_v44 = vpack.c.bf16 %v487_v37, %v486_v36  ;;  %v495_v50 = vpack.c.bf16 %v489_v41, %v488_v40  ;;  %v699_v52 = vadd.f32 %v693_v22, %v688_v20  ;;  %v700_v53 = vadd.f32 %v693_v22, %v689_v21 }
 0x14a   : > { %1626 = vmatprep.mubr.msk.bf16.mxu0 %vm499_vm2, %v711_v47  ;;  %v490_v54 = vmax.f32 %v482_v48, 0.0  ;;  %v491_v55 = vmax.f32 %v483_v49, 0.0  ;;  %v484_v56 = vadd.f32 %v476_v23, %v473_v24  ;;  %v485_v57 = vadd.f32 %v476_v23, %v474_v25 }
 0x14b   : > { %1606 = vmatprep.mubr.msk.bf16.mxu1 %vm499_vm2, %v494_v44  ;;  %1627 = vmatmul.mubr.msk.bf16.vlgmr.msra.gmra.mrb[0].mxu0 %vm499_vm2, %v712_v51  ;;  %v707_v58 = vmax.f32 %v699_v52, 0.0  ;;  %v708_v59 = vmax.f32 %v700_v53, 0.0  ;;  %v701_v60 = vadd.f32 %v693_v22, %v690_v26  ;;  %v702_v61 = vadd.f32 %v693_v22, %v691_v27 }
 0x14c   : > { %1607 = vmatmul.mubr.msk.bf16.vlgmr.msra.gmra.mrb[0].mxu1 %vm499_vm2, %v495_v50  ;;  %v496_v62 = vpack.c.bf16 %v491_v55, %v490_v54  ;;  %v492_v63 = vmax.f32 %v484_v56, 0.0  ;;  %v493_v2 = vmax.f32 %v485_v57, 0.0  ;;  %v816_v8 = vlaneseq }
 0x14d   : > { %1635 = vmatpush3.bf16.msra.mxu1 %v2350_v1  ;;  %v713_v0 = vpack.c.bf16 %v708_v59, %v707_v58  ;;  %v709_v3 = vmax.f32 %v701_v60, 0.0  ;;  %v710_v4 = vmax.f32 %v702_v61, 0.0  ;;  %v2013_v1 = vmov 1983009808  }
 0x14e   : > { %1610 = vmatprep.mubr.msk.bf16.mxu1 %vm499_vm2, %v496_v62  ;;  %v497_v6 = vpack.c.bf16 %v493_v2, %v492_v63  ;;  %v814_v7 = vunpack.c.l.s4 %v2013_v1  ;;  %v817_v10 = vshrl.u32 %v816_v8, 7 }
 0x14f   : > { %1630 = vmatprep.mubr.msk.bf16.mxu0 %vm499_vm2, %v713_v0  ;;  %v714_v5 = vpack.c.bf16 %v710_v4, %v709_v3 }
 0x150   : > { %v815_v9 = vunpack.c.0.s8 %v814_v7 }
 0x152   : > { %v2390_v11 = vsub.s32 %v815_v9, %v817_v10 }
 0x153   : > { %1631 = vmatmul.mubr.msk.bf16.gmra.mrb[4].mxu0 %vm499_vm2, %v714_v5 }
 0x154   : > { %1611 = vmatmul.mubr.msk.bf16.gmra.mrb[4].mxu1 %vm499_vm2, %v497_v6 }
 0x155   : > { %1620 = vmatprep.mubr.msk.bf16.mxu1 %vm587_vm1, %v2365_v45 }
 0x160   : > { %1621 = vmatmul.mubr.msk.bf16.vlgmr.msra.gmra.mrb[4].mxu1 %vm587_vm1, %v2367_v46 }
 0x21e   : > { %v1628_v13 = vpop.f32.mrb[0].mxu0 }
 0x21f   : > { %v1608_v12 = vpop.f32.mrb[0].mxu1  ;;  %v765_v16 = vpop.f32.mrb[1].mxu0 }
 0x220   : > { %v1636_v14 = vadd.f32 %v1628_v13, %v1608_v12  ;;  %v550_v15 = vpop.f32.mrb[1].mxu1  ;;  %v1629_v19 = vpop.f32.mrb[2].mxu0 }
 0x221   : > { %v1637_v17 = vadd.f32 %v765_v16, %v550_v15  ;;  %v1609_v18 = vpop.f32.mrb[2].mxu1  ;;  %v768_v22 = vpop.f32.mrb[3].mxu0 }
 0x222   : > { %v846_v20 = vcombine.high %v1636_v14, %v1636_v14  ;;  %v853_v45 = vrot.slane %v1636_v14, %v2390_v11  ;;  %v1638_v21 = vadd.f32 %v1629_v19, %v1609_v18  ;;  %v553_v46 = vpop.f32.mrb[3].mxu1 }
 0x223   : > { %v812_v23 = vcombine.high %v1637_v17, %v1637_v17  ;;  %v819_v24 = vrot.slane %v1637_v17, %v2390_v11  ;;  %v1639_v25 = vadd.f32 %v768_v22, %v553_v46 }
 0x224   : > { %v860_v26 = vrot.slane %v846_v20, %v2390_v11  ;;  %v861_v27 = vcombine.high %v853_v45, %v853_v45  ;;  %v1467_v28 = vrot.slane %v853_v45, 9  ;;  %v863_v29 = vcombine.high %v1638_v21, %v1638_v21 }
 0x225   : > { %v826_v30 = vrot.slane %v812_v23, %v2390_v11  ;;  %v827_v31 = vcombine.high %v819_v24, %v819_v24  ;;  %v1459_v32 = vrot.slane %v819_v24, 9  ;;  %v870_v33 = vrot.slane %v1638_v21, %v2390_v11 }
 0x226   : > { %v862_v34 = vcombine.high %v860_v26, %v860_v26  ;;  %v1468_v35 = vrot.slane %v861_v27, 9  ;;  %v1469_v36 = vrot.slane %v860_v26, 9  ;;  %v2397_v40 = vpop.f32.mrb[4].mxu0  ;;  %v1084_v42 = vadd.f32 %v1467_v28, %v853_v45 }
 0x227   : > { %v828_v37 = vcombine.high %v826_v30, %v826_v30  ;;  %v1460_v38 = vrot.slane %v827_v31, 9  ;;  %v1461_v39 = vrot.slane %v826_v30, 9  ;;  %v1076_v43 = vadd.f32 %v1459_v32, %v819_v24  ;;  %v2400_v47 = vpop.f32.mrb[5].mxu0 }
 0x228   : > { %v1470_v41 = vrot.slane %v862_v34, 9  ;;  %v877_v44 = vrot.slane %v863_v29, %v2390_v11  ;;  %v1085_v48 = vadd.f32 %v1468_v35, %v861_v27  ;;  %v1086_v49 = vadd.f32 %v1469_v36, %v860_v26  ;;  %v2402_v52 = vpop.f32.mrb[6].mxu0 }
 0x229   : > { %v1462_v50 = vrot.slane %v828_v37, 9  ;;  %v878_v51 = vcombine.high %v870_v33, %v870_v33  ;;  %v1077_v53 = vadd.f32 %v1460_v38, %v827_v31  ;;  %v1471_v55 = vrot.slane %v870_v33, 9  ;;  %v2404_v57 = vpop.f32.mrb[7].mxu0 }
 0x22a   : > { %v879_v54 = vcombine.high %v877_v44, %v877_v44  ;;  %v1473_v56 = vrot.slane %v877_v44, 9  ;;  %v1078_v58 = vadd.f32 %v1461_v39, %v826_v30  ;;  %v829_v60 = vcombine.high %v1639_v25, %v1639_v25 }
 0x22b   : > { %v1472_v59 = vrot.slane %v878_v51, 9  ;;  %v836_v61 = vrot.slane %v1639_v25, %v2390_v11  ;;  %v1087_v62 = vadd.f32 %v1470_v41, %v862_v34  ;;  %v1088_v0 = vadd.f32 %v1471_v55, %v870_v33 }
 0x22c   : > { %v1474_v63 = vrot.slane %v879_v54, 9  ;;  %v1090_v2 = vadd.f32 %v1473_v56, %v877_v44  ;;  %v843_v4 = vrot.slane %v829_v60, %v2390_v11  ;;  %v1079_v1 = vadd.f32 %v1462_v50, %v828_v37 }
 0x22d   : > { %v1089_v3 = vadd.f32 %v1472_v59, %v878_v51  ;;  %v844_v5 = vcombine.high %v836_v61, %v836_v61  ;;  %v1463_v6 = vrot.slane %v836_v61, 9  ;;  %v1112_v8 = vadd.f32 %v1088_v0, %v1084_v42 }
 0x22e   : > { %v1091_v7 = vadd.f32 %v1474_v63, %v879_v54  ;;  %v1114_v9 = vadd.f32 %v1090_v2, %v1086_v49  ;;  %v845_v12 = vcombine.high %v843_v4, %v843_v4  ;;  %v1465_v14 = vrot.slane %v843_v4, 9 }
 0x22f   : > { %v1113_v10 = vadd.f32 %v1089_v3, %v1085_v48  ;;  %v1464_v13 = vrot.slane %v844_v5, 9  ;;  %v1128_v16 = vmul.f32 0.25, %v1112_v8  ;;  %v1080_v18 = vadd.f32 %v1463_v6, %v836_v61 }
 0x230   : > { %v1115_v15 = vadd.f32 %v1091_v7, %v1087_v62  ;;  %v1130_v17 = vmul.f32 0.25, %v1114_v9  ;;  %v1466_v20 = vrot.slane %v845_v12, 9  ;;  %v1082_v21 = vadd.f32 %v1465_v14, %v843_v4 }
 0x231   : > { %v1129_v19 = vmul.f32 0.25, %v1113_v10  ;;  %v1081_v45 = vadd.f32 %v1464_v13, %v844_v5  ;;  %v1519_v22 = vpack.c.bf16 %v1128_v16, %v1128_v16  ;;  %v1108_v24 = vadd.f32 %v1080_v18, %v1076_v43 }
 0x232   : > { %v1131_v46 = vmul.f32 0.25, %v1115_v15  ;;  %v1521_v23 = vpack.c.bf16 %v1130_v17, %v1130_v17  ;;  %v1083_v26 = vadd.f32 %v1466_v20, %v845_v12  ;;  %v1110_v28 = vadd.f32 %v1082_v21, %v1078_v58 }
 0x233   : > { %v1520_v25 = vpack.c.bf16 %v1129_v19, %v1129_v19  ;;  %v1109_v27 = vadd.f32 %v1081_v45, %v1077_v53  ;;  %v1622_v29 = vpop.f32.mrb[4].mxu1  ;;  %v1208_v31 = vunpack.c.l.b16 %v1519_v22  ;;  %v1124_v32 = vmul.f32 0.25, %v1108_v24 }
 0x234   : > { %v1522_v30 = vpack.c.bf16 %v1131_v46, %v1131_v46  ;;  %v650_v33 = vpop.f32.mrb[5].mxu1  ;;  %v1111_v34 = vadd.f32 %v1083_v26, %v1079_v1  ;;  %v1126_v36 = vmul.f32 0.25, %v1110_v28  ;;  %v1210_v39 = vunpack.c.l.b16 %v1521_v23 }
 0x235   : > { %v1125_v35 = vmul.f32 0.25, %v1109_v27  ;;  %v1623_v37 = vpop.f32.mrb[6].mxu1  ;;  %v1209_v38 = vunpack.c.l.b16 %v1520_v25  ;;  %v1515_v43 = vpack.c.bf16 %v1124_v32, %v1124_v32  ;;  %v1229_v50 = vrot.slane %v1208_v31, 4 }
 0x236   : > { %v653_v41 = vpop.f32.mrb[7].mxu1  ;;  %v1127_v42 = vmul.f32 0.25, %v1111_v34  ;;  %v1517_v48 = vpack.c.bf16 %v1126_v36, %v1126_v36  ;;  %v1211_v49 = vunpack.c.l.b16 %v1522_v30  ;;  %v1640_v51 = vadd.f32 %v2397_v40, %v1622_v29 }
 0x237   : > { %v1516_v44 = vpack.c.bf16 %v1125_v35, %v1125_v35  ;;  %v1641_v53 = vadd.f32 %v2400_v47, %v650_v33  ;;  %v1642_v58 = vadd.f32 %v2402_v52, %v1623_v37  ;;  %v1204_v63 = vunpack.c.l.b16 %v1515_v43 }
 0x238   : > { %v1518_v54 = vpack.c.bf16 %v1127_v42, %v1127_v42  ;;  %v1206_v56 = vunpack.c.l.b16 %v1517_v48  ;;  %v914_v59 = vcombine.high %v1640_v51, %v1640_v51  ;;  %v921_v60 = vrot.slane %v1640_v51, %v2390_v11 }
 0x239   : > { %v1205_v55 = vunpack.c.l.b16 %v1516_v44  ;;  %v880_v61 = vcombine.high %v1641_v53, %v1641_v53  ;;  %v887_v62 = vrot.slane %v1641_v53, %v2390_v11  ;;  %v931_v7 = vcombine.high %v1642_v58, %v1642_v58 }
 0x23a   : > { %v1207_v0 = vunpack.c.l.b16 %v1518_v54  ;;  %v1223_v3 = vrot.slane %v1206_v56, 6  ;;  %v928_v40 = vrot.slane %v914_v59, %v2390_v11  ;;  %v929_v47 = vcombine.high %v921_v60, %v921_v60 }
 0x23b   : > { %v1220_v2 = vrot.slane %v1205_v55, 7  ;;  %v1483_v4 = vrot.slane %v921_v60, 9  ;;  %v894_v5 = vrot.slane %v880_v61, %v2390_v11  ;;  %v895_v1 = vcombine.high %v887_v62, %v887_v62 }
 0x23c   : > { %v1226_v52 = vrot.slane %v1207_v0, 5  ;;  %v930_v9 = vcombine.high %v928_v40, %v928_v40  ;;  %v1484_v10 = vrot.slane %v929_v47, 9  ;;  %v1485_v12 = vrot.slane %v928_v40, 9 }
 0x23d   : > { %v1222_v6 = vsel %vm1221_vm3, %v1220_v2, %v1204_v63  ;;  %v1232_v13 = vrot.slane %v1209_v38, 3  ;;  %v896_v15 = vcombine.high %v894_v5, %v894_v5  ;;  %v1475_v16 = vrot.slane %v887_v62, 9 }
 0x23e   : > { %v1225_v8 = vsel %vm1224_vm4, %v1223_v3, %v1222_v6  ;;  %v1235_v17 = vrot.slane %v1210_v39, 2  ;;  %v1238_v18 = vrot.slane %v1211_v49, 1  ;;  %v1100_v20 = vadd.f32 %v1483_v4, %v921_v60 }
 0x23f   : > { %v1228_v14 = vsel %vm1227_vm5, %v1226_v52, %v1225_v8  ;;  %v1486_v21 = vrot.slane %v930_v9, 9  ;;  %v1101_v46 = vadd.f32 %v1484_v10, %v929_v47  ;;  %v1476_v22 = vrot.slane %v895_v1, 9 }
 0x240   : > { %v1231_v19 = vsel %vm1230_vm6, %v1229_v50, %v1228_v14  ;;  %v1102_v23 = vadd.f32 %v1485_v12, %v928_v40  ;;  %v1477_v24 = vrot.slane %v894_v5, 9  ;;  %v938_v25 = vrot.slane %v1642_v58, %v2390_v11 }
 0x241   : > { %v1234_v45 = vsel %vm1233_vm7, %v1232_v13, %v1231_v19  ;;  %v945_v26 = vrot.slane %v931_v7, %v2390_v11  ;;  %v1478_v27 = vrot.slane %v896_v15, 9  ;;  %v1092_v28 = vadd.f32 %v1475_v16, %v887_v62 }
 0x242   : > { %v1643_v29 = vadd.f32 %v2404_v57, %v653_v41  ;;  %v1237_v30 = vsel %vm1236_vm8, %v1235_v17, %v1234_v45  ;;  %v946_v31 = vcombine.high %v938_v25, %v938_v25  ;;  %v1487_v33 = vrot.slane %v938_v25, 9 }
 0x243   : > { %v947_v32 = vcombine.high %v945_v26, %v945_v26  ;;  %v1489_v34 = vrot.slane %v945_v26, 9  ;;  %v1103_v35 = vadd.f32 %v1486_v21, %v930_v9  ;;  %v1240_v38 = vsel %vm1239_vm9, %v1238_v18, %v1237_v30 }
 0x244   : > { %v897_v36 = vcombine.high %v1643_v29, %v1643_v29  ;;  %v904_v37 = vrot.slane %v1643_v29, %v2390_v11  ;;  %v1488_v39 = vrot.slane %v946_v31, 9  ;;  %v1104_v43 = vadd.f32 %v1487_v33, %v938_v25 }
 0x245   : > { %v1490_v42 = vrot.slane %v947_v32, 9  ;;  %v1106_v44 = vadd.f32 %v1489_v34, %v945_v26  ;;  %v1255_v49 = vpack.c.b16 %v1240_v38, %v1240_v38  ;;  %v1093_v60 = vadd.f32 %v1476_v22, %v895_v1 }
 0x246   : > { %v911_v48 = vrot.slane %v897_v36, %v2390_v11  ;;  %v912_v57 = vcombine.high %v904_v37, %v904_v37  ;;  %v1479_v41 = vrot.slane %v904_v37, 9  ;;  %v1105_v50 = vadd.f32 %v1488_v39, %v946_v31 }
 0x247   : > { %v1107_v51 = vadd.f32 %v1490_v42, %v947_v32  ;;  %v1120_v53 = vadd.f32 %v1104_v43, %v1100_v20  ;;  %v1122_v54 = vadd.f32 %v1106_v44, %v1102_v23  ;;  %1260 = vst.msk [vmem:[%s2428_s13] sm:$0xf] %vm1259_vm10, %v1255_v49  ;;  %v1094_v61 = vadd.f32 %v1477_v24, %v894_v5 }
 0x248   : > { %v913_v55 = vcombine.high %v911_v48, %v911_v48  ;;  %v1480_v56 = vrot.slane %v912_v57, 9  ;;  %v1481_v58 = vrot.slane %v911_v48, 9  ;;  %v1096_v59 = vadd.f32 %v1479_v41, %v904_v37 }
 0x249   : > { %v1121_v62 = vadd.f32 %v1105_v50, %v1101_v46  ;;  %v1123_v11 = vadd.f32 %v1107_v51, %v1103_v35  ;;  %v1095_v40 = vadd.f32 %v1478_v27, %v896_v15  ;;  %v1136_v47 = vmul.f32 0.25, %v1120_v53 }
 0x24a   : > { %v1482_v63 = vrot.slane %v913_v55, 9  ;;  %v1097_v0 = vadd.f32 %v1480_v56, %v912_v57  ;;  %v1098_v2 = vadd.f32 %v1481_v58, %v911_v48  ;;  %v1116_v3 = vadd.f32 %v1096_v59, %v1092_v28 }
 0x24b   : > { %v1137_v4 = vmul.f32 0.25, %v1121_v62  ;;  %v1138_v9 = vmul.f32 0.25, %v1122_v54  ;;  %v1139_v10 = vmul.f32 0.25, %v1123_v11  ;;  %v1527_v1 = vpack.c.bf16 %v1136_v47, %v1136_v47 }
 0x24c   : > { %v1099_v6 = vadd.f32 %v1482_v63, %v913_v55  ;;  %v1117_v52 = vadd.f32 %v1097_v0, %v1093_v60  ;;  %v1118_v7 = vadd.f32 %v1098_v2, %v1094_v61  ;;  %v1132_v8 = vmul.f32 0.25, %v1116_v3 }
 0x24d   : > { %v1528_v5 = vpack.c.bf16 %v1137_v4, %v1137_v4  ;;  %v1529_v20 = vpack.c.bf16 %v1138_v9, %v1138_v9  ;;  %v1530_v45 = vpack.c.bf16 %v1139_v10, %v1139_v10  ;;  %v1216_v22 = vunpack.c.l.b16 %v1527_v1 }
 0x24e   : > { %v1119_v12 = vadd.f32 %v1099_v6, %v1095_v40  ;;  %v1133_v13 = vmul.f32 0.25, %v1117_v52  ;;  %v1134_v14 = vmul.f32 0.25, %v1118_v7  ;;  %v1523_v17 = vpack.c.bf16 %v1132_v8, %v1132_v8 }
 0x24f   : > { %v1217_v23 = vunpack.c.l.b16 %v1528_v5  ;;  %v1218_v28 = vunpack.c.l.b16 %v1529_v20  ;;  %v1219_v29 = vunpack.c.l.b16 %v1530_v45  ;;  %v1247_v32 = vrot.slane %v1216_v22, 4 }
 0x250   : > { %v1135_v16 = vmul.f32 0.25, %v1119_v12  ;;  %v1524_v18 = vpack.c.bf16 %v1133_v13, %v1133_v13  ;;  %v1525_v19 = vpack.c.bf16 %v1134_v14, %v1134_v14  ;;  %v1212_v24 = vunpack.c.l.b16 %v1523_v17 }
 0x251   : > { %v1249_v34 = vrot.slane %v1217_v23, 3  ;;  %v1251_v36 = vrot.slane %v1218_v28, 2  ;;  %v1253_v38 = vrot.slane %v1219_v29, 1 }
 0x252   : > { %v1526_v15 = vpack.c.bf16 %v1135_v16, %v1135_v16  ;;  %v1213_v21 = vunpack.c.l.b16 %v1524_v18  ;;  %v1214_v46 = vunpack.c.l.b16 %v1525_v19 }
 0x254   : > { %v1215_v25 = vunpack.c.l.b16 %v1526_v15  ;;  %v1241_v26 = vrot.slane %v1213_v21, 7  ;;  %v1243_v27 = vrot.slane %v1214_v46, 6 }
 0x256   : > { %v1242_v30 = vsel %vm1221_vm3, %v1241_v26, %v1212_v24  ;;  %v1245_v31 = vrot.slane %v1215_v25, 5 }
 0x257   : > { %v1244_v33 = vsel %vm1224_vm4, %v1243_v27, %v1242_v30 }
 0x258   : > { %v1246_v35 = vsel %vm1227_vm5, %v1245_v31, %v1244_v33 }
 0x259   : > { %v1248_v37 = vsel %vm1230_vm6, %v1247_v32, %v1246_v35 }
 0x25a   : > { %v1250_v39 = vsel %vm1233_vm7, %v1249_v34, %v1248_v37 }
 0x25b   : > { %v1252_v42 = vsel %vm1236_vm8, %v1251_v36, %v1250_v39 }
 0x25c   : > { %v1254_v43 = vsel %vm1239_vm9, %v1253_v38, %v1252_v42 }
 0x25d   : > { %v1256_v44 = vpack.c.b16 %v1254_v43, %v1254_v43 }
 0x25f   : > { %1261 = vst.msk [vmem:[%s2428_s13 + $0x4] sm:$0xf] %vm1259_vm10, %v1256_v44 }
 0x260   : > { %1936 = shalt.err (!%p1933_p5)
}
 0x261   : > { %s1937_s24 = scalar_lea.hbm %s2444_s21, 128  ;;  %s1941_s9 = scalar_lea.hbm %s2560_s20, 256 }
 0x262   : > { %p1938_p8 = scmp.ne.s32.totalorder %s2444_s21, %s1937_s24  ;;  %p1942_p11 = scmp.lt.u32.totalorder %s2444_s21, %s2560_s20 }
 0x263   : > { %p1943_p13 = scmp.lt.u32.totalorder %s1941_s9, %s1937_s24  ;;  %p1945_p7 = scmp.lt.u32.totalorder %s1937_s24, %s2444_s21 }
 0x264   : > { %p1939_p1 = pnand %p1938_p8, %p2561_p12 }
 0x265   : > { %p1944_p3 = por %p1943_p13, %p1942_p11 }
 0x266   : > { %p1940_p0 = pneg %p1939_p1 }
 0x267   : > { %p1946_p2 = por %p1945_p7, %p1944_p3 }
 0x269   : > { %p1947_p9 = pnand %p1946_p2, %p1940_p0 }
 0x26b   : > { %1950 = shalt.err (!%p1947_p9)
}
 0x26c   : > { %s2015_s7 = smov 64   ;;  %s2016_s19 = smov 4  }
 0x26d   : > { %1672 = dma.vmem_to_hbm [thread:$0]  (%p2561_p12), %s2446_s3, 128, %s2444_s21, %s1263_s25, %s2015_s7, %s2015_s7, %s2016_s19  }
 0x26e PF: > { %s2562_s8 = sld [smem:[#allocation19_spill]]  ;;  %s2563_s26 = sld [smem:[#allocation24_spill]] }
 0x26f   : > { %s2564_s15 = sld [smem:[#allocation20_spill]] }
 0x274   : > { %s1291_s13 = sand.u32 1, %s2562_s8   ;;  %p2565_p10 = scmp.ne.s32.totalorder %s2563_s26, 0 }
 0x275   : > { %p2566_p6 = scmp.ge.s32.totalorder %s2564_s15, 2  ;;  %s1292_s17 = scalar_lea.sflag [#allocation4], %s1291_s13 }
 0x277   : > { %p1695_p4 = pnand %p2566_p6, %p2565_p10 }
 0x279   : > { %1984 = dma.done.wait (!%p1695_p4), %s1292_s17, 128  }
 0x27a   : > { %1986 = vsyncadd (!%p1695_p4), %s1292_s17, 4294967168  ;;  %s2567_s24 = sld [smem:[#allocation21_spill]]  ;;  %s2568_s27 = sld [smem:[#allocation22_spill]] }
 0x27b   : > { %s2569_s21 = smov %s1993_s22  ;;  %s2570_s22 = smov %s1997_s23 }
 0x280   : > { %p24_p5 = scmp.ge.s32.totalorder %s2567_s24, 4   ;;  %s2571_s23 = smov %s2568_s27 }
 0x282   :  { %26 = sbr.rel (!%p24_p5) target bundleno = 13 (0xd), region = 125 }
 0x289   :  { %1297 = vsyncpa [#allocation3], 1 }
 0x28a   :  { %1299 = vsyncpa [#allocation3 + $0x1], 1 }
 0x28b   :  { %1300 = vsyncpa [#allocation6], 1 }
 0x28c   :  { %1302 = vsyncpa [#allocation6 + $0x1], 1 }
 0x28d   :  { %1303 = vsyncpa [#allocation9], 1 }
 0x28e   :  { %1304 = vsyncpa [#allocation12], 1 }
 0x28f   :  { %1305 = vsyncpa [#allocation4], 1 }
 0x290   :  { %1307 = vsyncpa [#allocation4 + $0x1], 1 }

// kernel: densenet_forward.10
= control target key start
LH: loop header
LB: loop body
LE: loop exit
PB: predicated region body
PF: predicated region fallthrough
CT: control target
= control target key end

     0   :  { %12 = vsyncpa [#allocation4], 0  ;;  %s4107_s0 = inlined_call_operand.hbm [shape: bf16[2,64,16], index: 0, kind: input, shape index: {}]   ;;  %s4108_s1 = inlined_call_operand.hbm [shape: bf16[16,16], index: 1, kind: input, shape index: {}]   ;;  %s4109_s2 = inlined_call_operand.hbm [shape: f32[1,16], index: 2, kind: input, shape index: {}]   ;;  %s4110_s3 = inlined_call_operand.hbm [shape: f32[1,16], index: 3, kind: input, shape index: {}]   ;;  %s4111_s4 = inlined_call_operand.hbm [shape: f32[1,16], index: 4, kind: input, shape index: {}]   ;;  %s4112_s5 = inlined_call_operand.hbm [shape: f32[1,16], index: 5, kind: input, shape index: {}]   ;;  %s4113_s6 = inlined_call_operand.hbm [shape: bf16[9,16,8], index: 6, kind: input, shape index: {}]   ;;  %s4114_s7 = inlined_call_operand.hbm [shape: bf16[2,64,8], index: 7, kind: output, shape index: {}]  }
   0x1   :  { %14 = vsyncpa [#allocation4 + $0x1], 0 }
   0x2   :  { %15 = vsyncpa [#allocation7], 0 }
   0x3   :  { %16 = vsyncpa [#allocation10], 0 }
   0x4   :  { %17 = vsyncpa [#allocation13], 0 }
   0x5   :  { %18 = vsyncpa [#allocation5], 0 }
   0x6   :  { %20 = vsyncpa [#allocation5 + $0x1], 0  ;;  %s3341_s24 = smov 0   ;;  %s3343_s25 = smov 0  }
   0x7   :  { %s3345_s26 = smov 0   ;;  %s3347_s27 = smov 0  }
   0x8 LB: > { %s3288_s28 = smov [#allocation6]   ;;  %s3362_s30 = sadd.s32 4294967295, %s3286_s27   ;;  %s3286_s27 = sphi %s3347_s27, %s4150_s27   ;;  %s3282_s26 = sphi %s3345_s26, %s4149_s26   ;;  %s3278_s25 = sphi %s3343_s25, %s4148_s25   ;;  %s3274_s24 = sphi %s3341_s24, %s4147_s24  }
   0x9   : > { %s221_s29 = sshll.u32 %s3288_s28, 4  ;;  %p2470_p0 = scmp.ge.s32.totalorder %s3286_s27, 1  ;;  %s3367_s29 = int_to_ptr.vmem [resolvable:$true] %s221_s29 }
   0xa   : > { %p4115_p1 = scmp.eq.s32.totalorder %s3362_s30, 0  ;;  %p209_p2 = scmp.lt.s32.totalorder %s3286_s27, 3 }
   0xb   : > { %s3289_s9 = smov [#allocation9]   ;;  %s3290_s12 = smov [#allocation12]  }
   0xc   : > { %p3369_p3 = pnand %p2470_p0, %p209_p2  ;;  %s246_s10 = sshll.u32 %s3289_s9, 4  ;;  %s3382_s10 = int_to_ptr.vmem [resolvable:$true] %s246_s10 }
   0xd   : > { %s268_s13 = sshll.u32 %s3290_s12, 4  ;;  %s3010_s16 = scalar_lea.hbm %s4108_s1, 128  ;;  %s3384_s13 = int_to_ptr.vmem [resolvable:$true] %s268_s13 }
   0xe   : > { %s4119_s8 = scalar_select %p3369_p3, 1, 0 }
   0xf   : > { %p2904_p5 = pneg %p3369_p3  ;;  %p3011_p7 = scmp.ne.s32.totalorder %s4108_s1, %s3010_s16 }
  0x10   : > { %p3017_p11 = scmp.lt.u32.totalorder %s3010_s16, %s4108_s1 }
  0x11   : > { %p3378_p6 = pnand %p2904_p5, %p4115_p1 }
  0x13   : > { %p3394_p8 = pneg %p3378_p6 }
  0x15   : > { %p3013_p9 = pnand %p3394_p8, %p3011_p7 }
  0x17   : > { %p3014_p10 = pneg %p3013_p9 }
  0x19   : > { %p3019_p12 = pnand %p3017_p11, %p3014_p10 }
  0x1b   : > { %3022 = shalt.err (!%p3019_p12)
}
  0x1c   : > { %s3023_s22 = scalar_lea.vmem %s3367_s29, 128  ;;  %p3031_p5 = scmp.lt.s32.totalorder %s3367_s29, %s3367_s29 }
  0x1d   : > { %p3024_p13 = scmp.ne.s32.totalorder %s3367_s29, %s3023_s22  ;;  %p3032_p4 = scmp.lt.s32.totalorder %s3023_s22, %s3023_s22 }
  0x1f   : > { %p3026_p0 = pnand %p3024_p13, %p3394_p8  ;;  %p3033_p7 = por %p3032_p4, %p3031_p5 }
  0x21   : > { %p3027_p2 = pneg %p3026_p0 }
  0x23   : > { %p3034_p9 = pnand %p3033_p7, %p3027_p2 }
  0x25   : > { %3037 = shalt.err (!%p3034_p9)
}
  0x26   : > { %s4117_s23 = smov 64   ;;  %s3292_s28 = smov 4  }
  0x27   : > { %2907 = dma.hbm_to_vmem [thread:$0]  (!%p3378_p6), %s4108_s1, 128, %s3367_s29, [#allocation7], %s4117_s23, %s4117_s23, %s3292_s28  }
  0x28   : > { %s3038_s16 = scalar_lea.hbm %s4110_s3, 16 }
  0x29   : > { %p3039_p4 = scmp.ne.s32.totalorder %s4110_s3, %s3038_s16  ;;  %p3045_p12 = scmp.lt.u32.totalorder %s3038_s16, %s4110_s3 }
  0x2b   : > { %p3041_p10 = pnand %p3039_p4, %p3394_p8 }
  0x2d   : > { %p3042_p11 = pneg %p3041_p10 }
  0x2f   : > { %p3047_p13 = pnand %p3045_p12, %p3042_p11 }
  0x31   : > { %3050 = shalt.err (!%p3047_p13)
}
  0x32   : > { %s3051_s29 = scalar_lea.vmem %s3382_s10, 16  ;;  %s3058_s22 = scalar_lea.vmem %s3382_s10, 32 }
  0x33   : > { %p3052_p0 = scmp.ne.s32.totalorder %s3382_s10, %s3051_s29  ;;  %p3059_p7 = scmp.lt.s32.totalorder %s3382_s10, %s3382_s10 }
  0x34   : > { %p3060_p9 = scmp.lt.s32.totalorder %s3058_s22, %s3051_s29 }
  0x35   : > { %p3054_p2 = pnand %p3052_p0, %p3394_p8 }
  0x36   : > { %p3061_p4 = por %p3060_p9, %p3059_p7 }
  0x37   : > { %p3055_p5 = pneg %p3054_p2 }
  0x39   : > { %p3062_p10 = pnand %p3061_p4, %p3055_p5 }
  0x3b   : > { %3065 = shalt.err (!%p3062_p10)
}
  0x3c   : > { %2913 = dma.hbm_to_vmem [thread:$0]  (!%p3378_p6), %s4110_s3, 16, %s3382_s10, [#allocation10]  }
  0x3d   : > { %s3066_s16 = scalar_lea.hbm %s4112_s5, 16 }
  0x3e   : > { %p3067_p11 = scmp.ne.s32.totalorder %s4112_s5, %s3066_s16  ;;  %p3073_p0 = scmp.lt.u32.totalorder %s3066_s16, %s4112_s5 }
  0x40   : > { %p3069_p12 = pnand %p3067_p11, %p3394_p8 }
  0x42   : > { %p3070_p13 = pneg %p3069_p12 }
  0x44   : > { %p3075_p2 = pnand %p3073_p0, %p3070_p13 }
  0x46   : > { %3078 = shalt.err (!%p3075_p2)
}
  0x47   : > { %s3079_s10 = scalar_lea.vmem %s3384_s13, 16  ;;  %s3086_s29 = scalar_lea.vmem %s3384_s13, 32 }
  0x48   : > { %p3080_p5 = scmp.ne.s32.totalorder %s3384_s13, %s3079_s10  ;;  %p3087_p4 = scmp.lt.s32.totalorder %s3384_s13, %s3384_s13 }
  0x49   : > { %p3088_p10 = scmp.lt.s32.totalorder %s3086_s29, %s3079_s10 }
  0x4a   : > { %p3082_p7 = pnand %p3080_p5, %p3394_p8 }
  0x4b   : > { %p3089_p11 = por %p3088_p10, %p3087_p4 }
  0x4c   : > { %p3083_p9 = pneg %p3082_p7 }
  0x4e   : > { %p3090_p12 = pnand %p3089_p11, %p3083_p9 }
  0x50   : > { %3093 = shalt.err (!%p3090_p12)
}
  0x51   : > { %2919 = dma.hbm_to_vmem [thread:$0]  (!%p3378_p6), %s4112_s5, 16, %s3384_s13, [#allocation13]  }
  0x52   : > { %s3293_s12 = smov [#allocation8]   ;;  %s3294_s15 = smov [#allocation11]  }
  0x53   : > { %s235_s14 = sshll.u32 %s3293_s12, 4  ;;  %s257_s16 = sshll.u32 %s3294_s15, 4  ;;  %s236_s14 = int_to_ptr.vmem [resolvable:$true] %s235_s14  ;;  %s258_s16 = int_to_ptr.vmem [resolvable:$true] %s257_s16 }
  0x54   : > { %s3094_s20 = scalar_lea.hbm %s4109_s2, 16 }
  0x55   : > { %p3095_p13 = scmp.ne.s32.totalorder %s4109_s2, %s3094_s20  ;;  %p3101_p5 = scmp.lt.u32.totalorder %s3094_s20, %s4109_s2 }
  0x57   : > { %p3097_p0 = pnand %p3095_p13, %p3394_p8 }
  0x59   : > { %p3098_p2 = pneg %p3097_p0 }
  0x5b   : > { %p3103_p7 = pnand %p3101_p5, %p3098_p2 }
  0x5d   : > { %3106 = shalt.err (!%p3103_p7)
}
  0x5e   : > { %s3107_s13 = scalar_lea.vmem %s236_s14, 16  ;;  %s3114_s9 = scalar_lea.vmem %s236_s14, 32 }
  0x5f   : > { %p3108_p9 = scmp.ne.s32.totalorder %s236_s14, %s3107_s13  ;;  %p3115_p11 = scmp.lt.s32.totalorder %s236_s14, %s236_s14 }
  0x60   : > { %p3116_p12 = scmp.lt.s32.totalorder %s3114_s9, %s3107_s13 }
  0x61   : > { %p3110_p4 = pnand %p3108_p9, %p3394_p8 }
  0x62   : > { %p3117_p1 = por %p3116_p12, %p3115_p11 }
  0x63   : > { %p3111_p10 = pneg %p3110_p4 }
  0x65   : > { %p3118_p3 = pnand %p3117_p1, %p3111_p10 }
  0x67   : > { %3121 = shalt.err (!%p3118_p3)
}
  0x68   : > { %2910 = dma.hbm_to_vmem [thread:$0]  (!%p3378_p6), %s4109_s2, 16, %s236_s14, [#allocation7]  }
  0x69   : > { %s3122_s20 = scalar_lea.hbm %s4111_s4, 16 }
  0x6a   : > { %p3123_p13 = scmp.ne.s32.totalorder %s4111_s4, %s3122_s20  ;;  %p3129_p3 = scmp.lt.u32.totalorder %s3122_s20, %s4111_s4 }
  0x6c   : > { %p3125_p0 = pnand %p3123_p13, %p3394_p8 }
  0x6e   : > { %p3126_p1 = pneg %p3125_p0 }
  0x70   : > { %p3131_p2 = pnand %p3129_p3, %p3126_p1 }
  0x72   : > { %3134 = shalt.err (!%p3131_p2)
}
  0x73   : > { %s3135_s13 = scalar_lea.vmem %s258_s16, 16  ;;  %s3142_s14 = scalar_lea.vmem %s258_s16, 32 }
  0x74   : > { %p3136_p5 = scmp.ne.s32.totalorder %s258_s16, %s3135_s13  ;;  %p3143_p4 = scmp.lt.s32.totalorder %s258_s16, %s258_s16 }
  0x75   : > { %p3144_p10 = scmp.lt.s32.totalorder %s3142_s14, %s3135_s13 }
  0x76   : > { %p3138_p7 = pnand %p3136_p5, %p3394_p8 }
  0x77   : > { %p3145_p11 = por %p3144_p10, %p3143_p4 }
  0x78   : > { %p3139_p9 = pneg %p3138_p7 }
  0x7a   : > { %p3146_p12 = pnand %p3145_p11, %p3139_p9 }
  0x7c   : > { %3149 = shalt.err (!%p3146_p12)
}
  0x7d   : > { %2916 = dma.hbm_to_vmem [thread:$0]  (!%p3378_p6), %s4111_s4, 16, %s258_s16, [#allocation10]  }
  0x7e   : > { %s3295_s15 = smov [#allocation14]   ;;  %s3150_s21 = scalar_lea.hbm %s4113_s6, 1152 }
  0x7f   : > { %s278_s17 = sshll.u32 %s3295_s15, 4  ;;  %p3151_p13 = scmp.ne.s32.totalorder %s4113_s6, %s3150_s21  ;;  %s279_s17 = int_to_ptr.vmem [resolvable:$true] %s278_s17 }
  0x80   : > { %p3157_p3 = scmp.lt.u32.totalorder %s3150_s21, %s4113_s6 }
  0x81   : > { %p3153_p0 = pnand %p3151_p13, %p3394_p8 }
  0x83   : > { %p3154_p1 = pneg %p3153_p0 }
  0x85   : > { %p3159_p2 = pnand %p3157_p3, %p3154_p1 }
  0x87   : > { %3162 = shalt.err (!%p3159_p2)
}
  0x88   : > { %s3163_s16 = scalar_lea.vmem %s279_s17, 1152  ;;  %p3171_p4 = scmp.lt.s32.totalorder %s279_s17, %s279_s17 }
  0x89   : > { %p3164_p5 = scmp.ne.s32.totalorder %s279_s17, %s3163_s16  ;;  %p3172_p10 = scmp.lt.s32.totalorder %s3163_s16, %s3163_s16 }
  0x8b   : > { %p3166_p7 = pnand %p3164_p5, %p3394_p8  ;;  %p3173_p11 = por %p3172_p10, %p3171_p4 }
  0x8d   : > { %p3167_p9 = pneg %p3166_p7 }
  0x8f   : > { %p3174_p12 = pnand %p3173_p11, %p3167_p9 }
  0x91   : > { %3177 = shalt.err (!%p3174_p12)
}
  0x92   : > { %2922 = dma.hbm_to_vmem [thread:$0]  (!%p3378_p6), %s4113_s6, 1152, %s279_s17, [#allocation13], %s4117_s23, %s4117_s23, %s3292_s28  }
  0x93   : > { %s2469_s11 = sadd.s32 4294967294, %s3286_s27   ;;  %s3525_s19 = sadd.s32 1, %s3286_s27  }
  0x94   : > { %s30_s12 = ssub.s32 %s3286_s27, %s3525_s19  ;;  %s33_s15 = sadd.s32 1, %s3282_s26 }
  0x95   : > { %p31_p8 = scmp.eq.s32.totalorder %s30_s12, 0  ;;  %p40_p13 = scmp.ne.s32.totalorder %s3282_s26, %s3278_s25 }
  0x96   : > { %p41_p0 = scmp.eq.s32.totalorder %s3286_s27, 0  ;;  %p46_p1 = scmp.ne.s32.totalorder %s3278_s25, %s3274_s24 }
  0x97   : > { %s3536_s18 = scalar_select %p31_p8, %s3282_s26, %s33_s15  }
  0x98   : > { %p3538_p3 = por %p41_p0, %p40_p13  ;;  %p4123_p2 = scmp.eq.s32.totalorder %s3362_s30, 0 }
  0x99   : > { %p196_p5 = scmp.eq.s32.totalorder %s3362_s30, 1  ;;  %p202_p7 = scmp.eq.s32.totalorder %s2469_s11, 1 }
  0x9a   : > { %p3544_p6 = por %p4123_p2, %p46_p1  ;;  %p2937_p9 = scmp.lt.s32.totalorder %s3286_s27, 2 }
  0x9b   : > { %s292_s21 = sand.u32 1, %s3282_s26   ;;  %p3551_p4 = por %p196_p5, %p40_p13 }
  0x9c   : > { %p3555_p10 = por %p202_p7, %p46_p1  ;;  %s2478_s22 = sshll.u32 %s292_s21, 5 }
  0x9d   : > { %s4125_s10 = scalar_select %p3551_p4, 1, 0 }
  0x9e   : > { %s4126_s29 = scalar_select %p3555_p10, 1, 0 }
  0x9f   : > { %s2625_s13 = sshll.u32 %s3286_s27, 9  ;;  %s296_s11 = scalar_lea.vmem [#allocation3], %s2478_s22 }
  0xa0   : > { %s3563_s9 = scalar_lea.hbm %s4107_s0, %s2625_s13  ;;  %s303_s12 = sshll.u32 %s296_s11, 4  ;;  %s3565_s12 = int_to_ptr.vmem [resolvable:$true] %s303_s12 }
  0xa1   : > { %p3569_p11 = pnand %p2937_p9, %p3538_p3  ;;  %s3573_s23 = scalar_lea.sflag [#allocation4], %s292_s21 }
  0xa2   : > { %s3178_s16 = scalar_lea.hbm %s3563_s9, 512  ;;  %s3183_s20 = scalar_lea.hbm %s4107_s0, 1024 }
  0xa3   : > { %p3179_p12 = scmp.ne.s32.totalorder %s3563_s9, %s3178_s16  ;;  %p3180_p8 = pneg %p3569_p11 }
  0xa4   : > { %p3184_p1 = scmp.lt.u32.totalorder %s3563_s9, %s4107_s0  ;;  %p3185_p3 = scmp.lt.u32.totalorder %s3183_s20, %s3178_s16 }
  0xa5   : > { %p3181_p13 = pnand %p3180_p8, %p3179_p12  ;;  %p3187_p5 = scmp.lt.u32.totalorder %s3178_s16, %s3563_s9 }
  0xa6   : > { %p3186_p2 = por %p3185_p3, %p3184_p1 }
  0xa7   : > { %p3182_p0 = pneg %p3181_p13 }
  0xa8   : > { %p3188_p7 = por %p3187_p5, %p3186_p2 }
  0xaa   : > { %p3189_p9 = pnand %p3188_p7, %p3182_p0 }
  0xac   : > { %3192 = shalt.err (!%p3189_p9)
}
  0xad   : > { %s3193_s21 = scalar_lea.vmem %s3565_s12, 512  ;;  %s3296_s22 = smov [#allocation3]  }
  0xae   : > { %p3194_p12 = scmp.ne.s32.totalorder %s3565_s12, %s3193_s21  ;;  %s3198_s13 = sshll.u32 %s3296_s22, 4  ;;  %s3199_s13 = int_to_ptr.vmem [resolvable:$false] %s3198_s13 }
  0xaf   : > { %s3200_s14 = scalar_lea.vmem %s3199_s13, 1024  ;;  %p3201_p4 = scmp.lt.s32.totalorder %s3565_s12, %s3199_s13 }
  0xb0   : > { %p3196_p13 = pnand %p3194_p12, %p3180_p8  ;;  %p3202_p1 = scmp.lt.s32.totalorder %s3200_s14, %s3193_s21 }
  0xb2   : > { %p3197_p10 = pneg %p3196_p13  ;;  %p3203_p3 = por %p3202_p1, %p3201_p4 }
  0xb4   : > { %p3204_p2 = pnand %p3203_p3, %p3197_p10 }
  0xb6   : > { %3207 = shalt.err (!%p3204_p2)
}
  0xb7   : > { %s4128_s16 = smov 64   ;;  %p4129_p8 = scmp.ne.s32.totalorder %s4119_s8, 0 }
  0xb8   : > { %2926 = dma.hbm_to_vmem [thread:$0]  (!%p3569_p11), %s3563_s9, 512, %s3565_s12, %s3573_s23, %s4128_s16, %s4128_s16, %s3292_s28  }
  0xb9   : > { %315 = sbr.rel (%p4129_p8) target bundleno = 797 (0x31d), region = 48  ;;  %s3607_s20 = sand.u32 (!%p4129_p8), 1, %s3278_s25  }
  0xba   : > { %s2482_s11 = sshll.u32 (!%p4129_p8), %s3607_s20, 5  ;;  %s318_s21 = scalar_lea.sflag (!%p4129_p8), [#allocation4], %s3607_s20 }
  0xbb   : > { %s321_s15 = scalar_lea.vmem (!%p4129_p8), [#allocation3], %s2482_s11 }
  0xc0   : > { %3253 = dma.done.wait (%p3544_p6), %s318_s21, 512  }
  0xc1   : > { %3255 = vsyncadd (%p3544_p6), %s318_s21, 4294966784  ;;  %p4130_p4 = scmp.eq.s32.totalorder %s3362_s30, 0 }
  0xc3   : > { %3257 = dma.done.wait (%p4130_p4), [#allocation7], 144   ;;  %p4131_p10 = pmov %p4130_p4 }
  0xc4   : > { %p4132_p11 = pmov %p4130_p4 }
  0xc5   : > { %3259 = vsyncadd (%p4131_p10), [#allocation7], 4294967152 }
  0xc6   : > { %3261 = dma.done.wait (%p4132_p11), [#allocation10], 32   ;;  %p4133_p0 = pmov %p4130_p4 }
  0xc8   : > { %3263 = vsyncadd (%p4133_p0), [#allocation10], 4294967264  ;;  %p4134_p5 = pmov %p4133_p0 }
  0xc9   : > { %p4135_p7 = pmov %p4133_p0 }
  0xca   : > { %3265 = dma.done.wait (%p4134_p5), [#allocation13], 1168  }
  0xcb   : > { %3267 = vsyncadd (%p4135_p7), [#allocation13], 4294966128  ;;  %v2988_v0 = vld [vmem:[#allocation6] sm:$0xff]   ;;  %v2490_v1 = vld [vmem:[#allocation8] ss:$0 sm:$0xff]  ;;  %vm445_vm0 = vcmask 130048  }
  0xcc   : > { %v2644_v2 = vld [vmem:[%s321_s15] sm:$0xff]   ;;  %2712 = vmatprep.subr.bf16.mxu0 %v2988_v0  ;;  %v2659_v5 = vld [vmem:[%s321_s15 + $0x8] sm:$0xff]   ;;  %v2660_v6 = vld [vmem:[%s321_s15 + $0x10] sm:$0xff]   ;;  %vm559_vm1 = vcmask 125952   ;;  %vm561_vm2 = vcmask 122880   ;;  %v3297_v43 = vmov 0  }
  0xcd   : > { %v2645_v3 = vunpack.c.l.bf16 %v2644_v2  ;;  %v2646_v4 = vunpack.c.h.bf16 %v2644_v2  ;;  %v2661_v7 = vld [vmem:[%s321_s15 + $0x18] sm:$0xff]   ;;  %2713 = vmatpush3.bf16.msra.mxu0 %v2988_v0  ;;  %v2491_v8 = vld [vmem:[#allocation9] ss:$0 sm:$0xff]  ;;  %v2649_v9 = vunpack.c.l.bf16 %v2659_v5  ;;  %v2650_v10 = vunpack.c.h.bf16 %v2659_v5  ;;  %567 = vst.msk [vmem:[#allocation2 + $0x18] sm:$0xf] %vm559_vm1, %v3297_v43  ;;  %v2990_v45 = vld [vmem:[#allocation14 + $0x20] sm:$0xff]  }
  0xce   : > { %v2653_v11 = vunpack.c.l.bf16 %v2660_v6  ;;  %v2654_v12 = vunpack.c.h.bf16 %v2660_v6  ;;  %v2657_v15 = vunpack.c.l.bf16 %v2661_v7  ;;  %v2658_v16 = vunpack.c.h.bf16 %v2661_v7  ;;  %568 = vst.msk [vmem:[#allocation2 + $0x1c] sm:$0x1] %vm561_vm2, %v3297_v43  ;;  %562 = vst.msk [vmem:[#allocation2 + $0x4] sm:$0x1] %vm561_vm2, %v3297_v43  ;;  %v2989_v44 = vld [vmem:[#allocation14 + $0x8] sm:$0xff]   ;;  %2762 = vmatprep.subr.bf16.mxu1 %v2990_v45  ;;  %v3656_v47 = vld [vmem:[#allocation14] sm:$0xff]  }
  0xcf   : > { %v403_v13 = vmul.f32 %v2645_v3, %v2490_v1  ;;  %v404_v14 = vmul.f32 %v2646_v4, %v2490_v1  ;;  %v405_v17 = vmul.f32 %v2649_v9, %v2490_v1  ;;  %v406_v18 = vmul.f32 %v2650_v10, %v2490_v1  ;;  %560 = vst.msk [vmem:[#allocation2] sm:$0xf] %vm559_vm1, %v3297_v43  ;;  %v3653_v46 = vld [vmem:[#allocation14 + $0x28] sm:$0xff]   ;;  %v3661_v49 = vld [vmem:[#allocation11] ss:$0 sm:$0xff]  ;;  %s375_s8 = scalar_lea.vmem [#allocation15], %s2482_s11 }
  0xd0   : > { %v407_v19 = vmul.f32 %v2653_v11, %v2490_v1  ;;  %v408_v20 = vmul.f32 %v2654_v12, %v2490_v1  ;;  %v409_v23 = vmul.f32 %v2657_v15, %v2490_v1  ;;  %v410_v24 = vmul.f32 %v2658_v16, %v2490_v1  ;;  %563 = vst.msk [vmem:[#allocation2 + $0x8] sm:$0xf] %vm559_vm1, %v3297_v43  ;;  %v3663_v50 = vld [vmem:[#allocation12] ss:$0 sm:$0xff]  ;;  %s2642_s23 = sshll.u32 %s3362_s30, 9  ;;  %s2339_s28 = sshll.u32 %s375_s8, 4  ;;  %s4060_s28 = int_to_ptr.vmem [resolvable:$true] %s2339_s28 }
  0xd1   : > { %v417_v21 = vadd.f32 %v2491_v8, %v403_v13  ;;  %v418_v22 = vadd.f32 %v2491_v8, %v404_v14  ;;  %v419_v25 = vadd.f32 %v2491_v8, %v405_v17  ;;  %v420_v26 = vadd.f32 %v2491_v8, %v406_v18  ;;  %564 = vst.msk [vmem:[#allocation2 + $0xc] sm:$0x1] %vm561_vm2, %v3297_v43  ;;  %s4058_s12 = scalar_lea.hbm %s4114_s7, %s2642_s23  ;;  %s2326_s30 = scalar_lea.sflag [#allocation5], %s3607_s20 }
  0xd2   : > { %v421_v27 = vadd.f32 %v2491_v8, %v407_v19  ;;  %v422_v28 = vadd.f32 %v2491_v8, %v408_v20  ;;  %v423_v31 = vadd.f32 %v2491_v8, %v409_v23  ;;  %v424_v32 = vadd.f32 %v2491_v8, %v410_v24  ;;  %565 = vst.msk [vmem:[#allocation2 + $0x10] sm:$0xf] %vm559_vm1, %v3297_v43  ;;  %s3208_s22 = scalar_lea.vmem %s4060_s28, 512  ;;  %p4144_p9 = scmp.ne.s32.totalorder %s4125_s10, 0 }
  0xd3   : > { %v425_v29 = vmax.f32 %v417_v21, 0.0  ;;  %v426_v30 = vmax.f32 %v418_v22, 0.0  ;;  %v427_v33 = vmax.f32 %v419_v25, 0.0  ;;  %v428_v34 = vmax.f32 %v420_v26, 0.0  ;;  %566 = vst.msk [vmem:[#allocation2 + $0x14] sm:$0x1] %vm561_vm2, %v3297_v43  ;;  %2722 = vmatprep.subr.bf16.mxu0 %v2989_v44  ;;  %2763 = vmatpush3.bf16.msra.mxu1 %v2990_v45  ;;  %p3209_p6 = scmp.ne.s32.totalorder %s4060_s28, %s3208_s22 }
  0xd4   : > { %v429_v35 = vmax.f32 %v421_v27, 0.0  ;;  %v430_v36 = vmax.f32 %v422_v28, 0.0  ;;  %v431_v40 = vmax.f32 %v423_v31, 0.0  ;;  %v432_v41 = vmax.f32 %v424_v32, 0.0  ;;  %569 = vst.msk [vmem:[#allocation2 + $0x20] sm:$0xf] %vm559_vm1, %v3297_v43  ;;  %2772 = vmatprep.subr.bf16.mxu1 %v3653_v46 }
  0xd5   : > { %v433_v37 = vpack.c.bf16 %v426_v30, %v425_v29  ;;  %v434_v38 = vpack.c.bf16 %v428_v34, %v427_v33  ;;  %570 = vst.msk [vmem:[#allocation2 + $0x24] sm:$0x1] %vm561_vm2, %v3297_v43  ;;  %572 = vst.msk [vmem:[#allocation2 + $0x2c] sm:$0x1] %vm561_vm2, %v3297_v43  ;;  %vm695_vm3 = vsmask.f32 7938  ;;  %p3210_p12 = pnand %p3209_p6, %p4144_p9 }
  0xd6   : > { %v435_v39 = vpack.c.bf16 %v430_v36, %v429_v35  ;;  %v436_v42 = vpack.c.bf16 %v432_v41, %v431_v40  ;;  %571 = vst.msk [vmem:[#allocation2 + $0x28] sm:$0xf] %vm559_vm1, %v3297_v43  ;;  %573 = vst.msk [vmem:[#allocation2 + $0x30] sm:$0xf] %vm559_vm1, %v3297_v43  ;;  %v3659_v48 = vld [vmem:[#allocation2] sm:$0xf] }
  0xd7   : > { %2714 = vmatprep.mubr.msk.bf16.mxu0 %vm445_vm0, %v433_v37  ;;  %574 = vst.msk [vmem:[#allocation2 + $0x34] sm:$0x1] %vm561_vm2, %v3297_v43  ;;  %576 = vst.msk [vmem:[#allocation2 + $0x3c] sm:$0x1] %vm561_vm2, %v3297_v43  ;;  %v770_v52 = vshrl.u32 %v3659_v48, 16  ;;  %v773_v53 = vshll.u32 %v3659_v48, 16  ;;  %p3211_p13 = pneg %p3210_p12 }
  0xd8   : > { %2715 = vmatmul.mubr.msk.bf16.vlgmr.msra.gmra.mrb[0].mxu0 %vm445_vm0, %v434_v38  ;;  %575 = vst.msk [vmem:[#allocation2 + $0x38] sm:$0xf] %vm559_vm1, %v3297_v43  ;;  %577 = vst.msk [vmem:[#allocation2 + $0x40] sm:$0xf] %vm559_vm1, %v3297_v43  ;;  %vm701_vm4 = vsmask.f32 256 }
  0xd9   : > { %2718 = vmatprep.mubr.msk.bf16.mxu0 %vm445_vm0, %v435_v39  ;;  %578 = vst.msk [vmem:[#allocation2 + $0x44] sm:$0x1] %vm561_vm2, %v3297_v43  ;;  %580 = vst.msk [vmem:[#allocation2 + $0x4c] sm:$0x1] %vm561_vm2, %v3297_v43  ;;  %2723 = vmatpush3.bf16.msra.mxu0 %v2989_v44  ;;  %v3673_v63 = vrot.slane %v770_v52, 4  ;;  %v3675_v0 = vrot.slane %v773_v53, 5 }
  0xda   : > { %579 = vst.msk [vmem:[#allocation2 + $0x48] sm:$0xf] %vm559_vm1, %v3297_v43  ;;  %2732 = vmatprep.subr.bf16.mxu0 %v3656_v47  ;;  %v3679_v7 = vld [vmem:[#allocation2 + $0x4] sm:$0x1]  ;;  %v712_v18 = vld [vmem:[#allocation2 + $0x18] sm:$0xf]  ;;  %vm3688_vm7 = vmand %vm559_vm1, %vm695_vm3 }
  0xdb   : > { %v776_v11 = vor.u32 %v3675_v0, %v3673_v63  ;;  %v779_v12 = vshll.u32 %v3679_v7, 16  ;;  %v715_v19 = vld [vmem:[#allocation2 + $0x1c] sm:$0x1]  ;;  %vm766_vm5 = vsmask.f32 3328  ;;  %vm3695_vm8 = vmand %vm561_vm2, %vm701_vm4  ;;  %vm1106_vm10 = vcmask 1042432  }
  0xdc   : > { %vm767_vm6 = vsmask.f32 7440  ;;  %v697_v27 = vld [vmem:[#allocation2 + $0x8] sm:$0xf]  ;;  %v703_v34 = vld [vmem:[#allocation2 + $0xc] sm:$0x1] }
  0xdd   : > { %v718_v41 = vld [vmem:[#allocation2 + $0x20] sm:$0xf]  ;;  %v721_v45 = vld [vmem:[#allocation2 + $0x24] sm:$0x1]  ;;  %vm3731_vm9 = vmor %vm766_vm5, %vm767_vm6  ;;  %vm1107_vm11 = vcmask 1046532   ;;  %vm2316_vm13 = vcmask 60416  }
  0xde   : > { %vm3882_vm12 = vmor %vm1106_vm10, %vm1107_vm11  ;;  %s3298_s13 = smov [#allocation15]  }
  0xdf   : > { %s3212_s14 = sshll.u32 %s3298_s13, 4  ;;  %s3213_s14 = int_to_ptr.vmem [resolvable:$false] %s3212_s14 }
  0xe0   : > { %2719 = vmatmul.mubr.msk.bf16.gmra.mrb[4].mxu0 %vm445_vm0, %v436_v42  ;;  %s3214_s16 = scalar_lea.vmem %s3213_s14, 1024  ;;  %p3215_p1 = scmp.lt.s32.totalorder %s4060_s28, %s3213_s14 }
  0xe1   : > { %p3216_p3 = scmp.lt.s32.totalorder %s3214_s16, %s3208_s22 }
  0xe3   : > { %p3217_p2 = por %p3216_p3, %p3215_p1 }
  0xe5   : > { %p3218_p8 = pnand %p3217_p2, %p3211_p13 }
 0x1ab   : > { %v2716_v51 = vpop.f32.mrb[0].mxu0 }
 0x1ac   : > { %v531_v54 = vmul.f32 %v2716_v51, %v3661_v49  ;;  %v492_v55 = vpop.f32.mrb[1].mxu0 }
 0x1ad   : > { %v529_v56 = vmul.f32 %v3661_v49, %v492_v55  ;;  %v2717_v57 = vpop.f32.mrb[2].mxu0 }
 0x1ae   : > { %v545_v58 = vadd.f32 %v3663_v50, %v531_v54  ;;  %v532_v59 = vmul.f32 %v2717_v57, %v3661_v49  ;;  %v495_v60 = vpop.f32.mrb[3].mxu0  ;;  %v706_v57 = vld [vmem:[#allocation2 + $0x10] sm:$0xf] }
 0x1af   : > { %v543_v61 = vadd.f32 %v3663_v50, %v529_v56  ;;  %v530_v62 = vmul.f32 %v3661_v49, %v495_v60 }
 0x1b0   : > { %v553_v1 = vmax.f32 %v545_v58, 0.0  ;;  %v546_v2 = vadd.f32 %v3663_v50, %v532_v59  ;;  %v709_v58 = vld [vmem:[#allocation2 + $0x14] sm:$0x1] }
 0x1b1   : > { %v551_v3 = vmax.f32 %v543_v61, 0.0  ;;  %v544_v4 = vadd.f32 %v3663_v50, %v530_v62 }
 0x1b2   : > { %v2628_v5 = vpack.c.bf16 %v553_v1, %v553_v1  ;;  %v554_v6 = vmax.f32 %v546_v2, 0.0 }
 0x1b3   : > { %v2626_v8 = vpack.c.bf16 %v551_v3, %v551_v3  ;;  %v552_v9 = vmax.f32 %v544_v4, 0.0  ;;  %v2720_v10 = vpop.f32.mrb[4].mxu0 }
 0x1b4   : > { %v630_v13 = vshrl.u32 %v2628_v5, 16  ;;  %v633_v14 = vshll.u32 %v2628_v5, 16  ;;  %v2629_v15 = vpack.c.bf16 %v554_v6, %v554_v6  ;;  %v535_v16 = vmul.f32 %v2720_v10, %v3661_v49  ;;  %v508_v17 = vpop.f32.mrb[5].mxu0 }
 0x1b5   : > { %v614_v20 = vshrl.u32 %v2626_v8, 16  ;;  %v617_v21 = vshll.u32 %v2626_v8, 16  ;;  %v2627_v22 = vpack.c.bf16 %v552_v9, %v552_v9  ;;  %v533_v23 = vmul.f32 %v3661_v49, %v508_v17  ;;  %v2721_v24 = vpop.f32.mrb[6].mxu0 }
 0x1b6   : > { %v632_v25 = vrot.slane %v630_v13, 7  ;;  %v638_v28 = vshrl.u32 %v2629_v15, 16  ;;  %v641_v29 = vshll.u32 %v2629_v15, 16  ;;  %v549_v30 = vadd.f32 %v3663_v50, %v535_v16  ;;  %v511_v31 = vpop.f32.mrb[7].mxu0 }
 0x1b7   : > { %v616_v33 = vrot.slane %v614_v20, 7  ;;  %v622_v35 = vshrl.u32 %v2627_v22, 16  ;;  %v625_v36 = vshll.u32 %v2627_v22, 16  ;;  %v547_v37 = vadd.f32 %v3663_v50, %v533_v23  ;;  %v739_v20 = vld [vmem:[#allocation2 + $0x3c] sm:$0x1] }
 0x1b8   : > { %v635_v38 = vor.u32 %v633_v14, %v632_v25  ;;  %v636_v39 = vrot.slane %v632_v25, 4  ;;  %v640_v40 = vrot.slane %v638_v28, 7  ;;  %v557_v42 = vmax.f32 %v549_v30, 0.0  ;;  %v736_v14 = vld [vmem:[#allocation2 + $0x38] sm:$0xf] }
 0x1b9   : > { %v619_v43 = vor.u32 %v617_v21, %v616_v33  ;;  %v620_v44 = vrot.slane %v616_v33, 4  ;;  %v624_v51 = vrot.slane %v622_v35, 7  ;;  %v555_v52 = vmax.f32 %v547_v37, 0.0 }
 0x1ba   : > { %v713_v53 = vsel %vm3688_vm7, %v635_v38, %v712_v18  ;;  %v716_v54 = vsel %vm3695_vm8, %v636_v39, %v715_v19  ;;  %v643_v55 = vor.u32 %v641_v29, %v640_v40  ;;  %v644_v56 = vrot.slane %v640_v40, 4 }
 0x1bb   : > { %714 = vst [vmem:[#allocation2 + $0x18] sm:$0xf] %v713_v53  ;;  %717 = vst [vmem:[#allocation2 + $0x1c] sm:$0x1] %v716_v54  ;;  %v698_v59 = vsel %vm3688_vm7, %v619_v43, %v697_v27  ;;  %v704_v60 = vsel %vm3695_vm8, %v620_v44, %v703_v34  ;;  %v627_v61 = vor.u32 %v625_v36, %v624_v51  ;;  %v628_v62 = vrot.slane %v624_v51, 4 }
 0x1bc   : > { %699 = vst [vmem:[#allocation2 + $0x8] sm:$0xf] %v698_v59  ;;  %705 = vst [vmem:[#allocation2 + $0xc] sm:$0x1] %v704_v60  ;;  %v719_v1 = vsel %vm3688_vm7, %v643_v55, %v718_v41  ;;  %v722_v2 = vsel %vm3695_vm8, %v644_v56, %v721_v45  ;;  %v2632_v3 = vpack.c.bf16 %v557_v42, %v557_v42  ;;  %v3723_v17 = vrot.slane %v776_v11, 4 }
 0x1bd   : > { %v2630_v4 = vpack.c.bf16 %v555_v52, %v555_v52  ;;  %720 = vst [vmem:[#allocation2 + $0x20] sm:$0xf] %v719_v1  ;;  %723 = vst [vmem:[#allocation2 + $0x24] sm:$0x1] %v722_v2  ;;  %v707_v5 = vsel %vm3688_vm7, %v627_v61, %v706_v57  ;;  %v710_v6 = vsel %vm3695_vm8, %v628_v62, %v709_v58  ;;  %v3727_v18 = vrot.slane %v779_v12, 5 }
 0x1be   : > { %v536_v8 = vmul.f32 %v2721_v24, %v3661_v49  ;;  %v534_v9 = vmul.f32 %v3661_v49, %v511_v31  ;;  %708 = vst [vmem:[#allocation2 + $0x10] sm:$0xf] %v707_v5  ;;  %711 = vst [vmem:[#allocation2 + $0x14] sm:$0x1] %v710_v6  ;;  %v662_v10 = vshrl.u32 %v2632_v3, 16  ;;  %v665_v49 = vshll.u32 %v2632_v3, 16 }
 0x1bf   : > { %v646_v13 = vshrl.u32 %v2630_v4, 16  ;;  %v649_v22 = vshll.u32 %v2630_v4, 16  ;;  %v727_v24 = vld [vmem:[#allocation2 + $0x2c] sm:$0x1]  ;;  %v782_v34 = vsel %vm3731_vm9, %v3723_v17, %v3727_v18  ;;  %v742_v45 = vld [vmem:[#allocation2 + $0x40] sm:$0xf] }
 0x1c0   : > { %v550_v15 = vadd.f32 %v3663_v50, %v536_v8  ;;  %v548_v16 = vadd.f32 %v3663_v50, %v534_v9  ;;  %v664_v19 = vrot.slane %v662_v10, 7  ;;  %v724_v50 = vld [vmem:[#allocation2 + $0x28] sm:$0xf]  ;;  %v745_v51 = vld [vmem:[#allocation2 + $0x44] sm:$0x1] }
 0x1c1   : > { %v648_v21 = vrot.slane %v646_v13, 7  ;;  %v730_v60 = vld [vmem:[#allocation2 + $0x30] sm:$0xf]  ;;  %v733_v62 = vld [vmem:[#allocation2 + $0x34] sm:$0x1] }
 0x1c2   : > { %v558_v63 = vmax.f32 %v550_v15, 0.0  ;;  %v556_v0 = vmax.f32 %v548_v16, 0.0  ;;  %v667_v11 = vor.u32 %v665_v49, %v664_v19  ;;  %v668_v25 = vrot.slane %v664_v19, 4  ;;  %v3735_v28 = vld [vmem:[#allocation2 + $0x18] sm:$0xf] }
 0x1c3   : > { %v651_v27 = vor.u32 %v649_v22, %v648_v21  ;;  %v652_v12 = vrot.slane %v648_v21, 4  ;;  %v3737_v31 = vld [vmem:[#allocation2 + $0x8] sm:$0xf]  ;;  %v3739_v33 = vld [vmem:[#allocation2 + $0xc] sm:$0x1]  ;;  %v812_v35 = vshrl.u32 %v3735_v28, 16 }
 0x1c4   : > { %v2633_v29 = vpack.c.bf16 %v558_v63, %v558_v63  ;;  %v2631_v30 = vpack.c.bf16 %v556_v0, %v556_v0  ;;  %v737_v36 = vsel %vm3688_vm7, %v667_v11, %v736_v14  ;;  %v740_v37 = vsel %vm3695_vm8, %v668_v25, %v739_v20  ;;  %v3765_v10 = vld [vmem:[#allocation2 + $0x1c] sm:$0x1]  ;;  %v1369_v13 = vld [vmem:[#allocation2 + $0x8] sm:$0xf]  ;;  %v3778_v32 = vld [vmem:[#allocation2 + $0xc] sm:$0x1] }
 0x1c5   : > { %v725_v38 = vsel %vm3688_vm7, %v651_v27, %v724_v50  ;;  %v728_v39 = vsel %vm3695_vm8, %v652_v12, %v727_v24  ;;  %738 = vst [vmem:[#allocation2 + $0x38] sm:$0xf] %v737_v36  ;;  %741 = vst [vmem:[#allocation2 + $0x3c] sm:$0x1] %v740_v37  ;;  %v3754_v43 = vld [vmem:[#allocation2 + $0x10] sm:$0xf] }
 0x1c6   : > { %726 = vst [vmem:[#allocation2 + $0x28] sm:$0xf] %v725_v38  ;;  %729 = vst [vmem:[#allocation2 + $0x2c] sm:$0x1] %v728_v39  ;;  %v670_v40 = vshrl.u32 %v2633_v29, 16  ;;  %v673_v41 = vshll.u32 %v2633_v29, 16 }
 0x1c7   : > { %v654_v42 = vshrl.u32 %v2631_v30, 16  ;;  %v815_v44 = vshll.u32 %v3735_v28, 16  ;;  %v784_v52 = vshrl.u32 %v3737_v31, 16  ;;  %v787_v53 = vshll.u32 %v3737_v31, 16  ;;  %v3760_v55 = vld [vmem:[#allocation2 + $0x14] sm:$0x1] }
 0x1c8   : > { %v793_v54 = vshll.u32 %v3739_v33, 16  ;;  %v798_v56 = vshrl.u32 %v3754_v43, 16  ;;  %v672_v57 = vrot.slane %v670_v40, 7  ;;  %v657_v59 = vshll.u32 %v2631_v30, 16  ;;  %v1371_v49 = vld [vmem:[#allocation2 + $0x10] sm:$0xf] }
 0x1c9   : > { %v656_v58 = vrot.slane %v654_v42, 7  ;;  %v801_v61 = vshll.u32 %v3754_v43, 16  ;;  %v786_v1 = vrot.slane %v784_v52, 4  ;;  %v789_v2 = vrot.slane %v787_v53, 5  ;;  %v3780_v36 = vld [vmem:[#allocation2 + $0x14] sm:$0x1] }
 0x1ca   : > { %v800_v3 = vrot.slane %v798_v56, 4  ;;  %v807_v4 = vshll.u32 %v3760_v55, 16  ;;  %v675_v5 = vor.u32 %v673_v41, %v672_v57  ;;  %v676_v6 = vrot.slane %v672_v57, 4  ;;  %v1373_v41 = vld [vmem:[#allocation2 + $0x18] sm:$0xf] }
 0x1cb   : > { %v659_v8 = vor.u32 %v657_v59, %v656_v58  ;;  %v660_v9 = vrot.slane %v656_v58, 4  ;;  %v790_v14 = vor.u32 %v789_v2, %v786_v1  ;;  %v795_v15 = vrot.slane %v793_v54, 5  ;;  %v1375_v56 = vld [vmem:[#allocation2 + $0x20] sm:$0xf] }
 0x1cc   : > { %v803_v16 = vrot.slane %v801_v61, 5  ;;  %v814_v19 = vrot.slane %v812_v35, 4  ;;  %v743_v20 = vsel %vm3688_vm7, %v675_v5, %v742_v45  ;;  %v746_v21 = vsel %vm3695_vm8, %v676_v6, %v745_v51  ;;  %v3796_v61 = vld [vmem:[#allocation2 + $0x24] sm:$0x1]  ;;  %v3800_v5 = vld [vmem:[#allocation2 + $0x20] sm:$0xf] }
 0x1cd   : > { %v731_v22 = vsel %vm3688_vm7, %v659_v8, %v730_v60  ;;  %v734_v50 = vsel %vm3695_vm8, %v660_v9, %v733_v62  ;;  %744 = vst [vmem:[#allocation2 + $0x40] sm:$0xf] %v743_v20  ;;  %747 = vst [vmem:[#allocation2 + $0x44] sm:$0x1] %v746_v21  ;;  %v791_v24 = vrot.slane %v790_v14, 4  ;;  %v817_v0 = vrot.slane %v815_v44, 5 }
 0x1ce   : > { %732 = vst [vmem:[#allocation2 + $0x30] sm:$0xf] %v731_v22  ;;  %735 = vst [vmem:[#allocation2 + $0x34] sm:$0x1] %v734_v50  ;;  %v804_v63 = vor.u32 %v803_v16, %v800_v3  ;;  %v821_v11 = vshll.u32 %v3765_v10, 16  ;;  %v1386_v25 = vshrl.u32 %v1369_v13, 16 }
 0x1cf   : > { %v1389_v27 = vshll.u32 %v1369_v13, 16  ;;  %v1400_v12 = vshrl.u32 %v1371_v49, 16  ;;  %v796_v29 = vsel %vm3731_vm9, %v791_v24, %v795_v15  ;;  %v809_v30 = vrot.slane %v807_v4, 5  ;;  %v3798_v62 = vld [vmem:[#allocation14 + $0x10] sm:$0xff]   ;;  %v3804_v14 = vld [vmem:[#allocation2 + $0x24] sm:$0x1] }
 0x1d0   : > { %v805_v26 = vrot.slane %v804_v63, 4  ;;  %v818_v35 = vor.u32 %v817_v0, %v814_v19  ;;  %v2507_v37 = vcombine.low %v782_v34, %v796_v29  ;;  %v823_v38 = vrot.slane %v821_v11, 5  ;;  %v3794_v34 = vld [vmem:[#allocation2 + $0x1c] sm:$0x1]  ;;  %v3807_v20 = vld [vmem:[#allocation2 + $0x28] sm:$0xf] }
 0x1d1   : > { %v1388_v39 = vrot.slane %v1386_v25, 4  ;;  %v1391_v40 = vrot.slane %v1389_v27, 5  ;;  %v1402_v45 = vrot.slane %v1400_v12, 4  ;;  %v1403_v51 = vshll.u32 %v1371_v49, 16  ;;  %v3812_v50 = vld [vmem:[#allocation2 + $0x2c] sm:$0x1] }
 0x1d2   : > { %v810_v42 = vsel %vm3731_vm9, %v805_v26, %v809_v30  ;;  %v819_v44 = vrot.slane %v818_v35, 4  ;;  %2724 = vmatprep.mubr.msk.bf16.mxu0 %vm445_vm0, %v2507_v37  ;;  %v1395_v53 = vshll.u32 %v3778_v32, 16  ;;  %v1409_v54 = vshll.u32 %v3780_v36, 16 }
 0x1d3   : > { %v1392_v52 = vor.u32 %v1391_v40, %v1388_v39  ;;  %v1405_v18 = vrot.slane %v1403_v51, 5  ;;  %v1414_v57 = vshrl.u32 %v1373_v41, 16  ;;  %v1417_v58 = vshll.u32 %v1373_v41, 16  ;;  %v3824_v39 = vld [vmem:[#allocation2 + $0x38] sm:$0xf] }
 0x1d4   : > { %v824_v17 = vsel %vm3731_vm9, %v819_v44, %v823_v38  ;;  %v1428_v4 = vshrl.u32 %v1375_v56, 16  ;;  %v1397_v6 = vrot.slane %v1395_v53, 5  ;;  %v1411_v8 = vrot.slane %v1409_v54, 5  ;;  %v3833_v54 = vld [vmem:[#allocation2 + $0x3c] sm:$0x1] }
 0x1d5   : > { %v2508_v59 = vcombine.low %v810_v42, %v824_v17  ;;  %v1393_v60 = vrot.slane %v1392_v52, 4  ;;  %v1406_v1 = vor.u32 %v1405_v18, %v1402_v45  ;;  %v1416_v2 = vrot.slane %v1414_v57, 4  ;;  %v3820_v27 = vld [vmem:[#allocation2 + $0x30] sm:$0xf]  ;;  %v3831_v53 = vld [vmem:[#allocation2 + $0x34] sm:$0x1] }
 0x1d6   : > { %v1419_v3 = vrot.slane %v1417_v58, 5  ;;  %v1423_v9 = vshll.u32 %v3794_v34, 16  ;;  %v1431_v13 = vshll.u32 %v1375_v56, 16  ;;  %v1430_v19 = vrot.slane %v1428_v4, 4  ;;  %v1379_v4 = vld [vmem:[#allocation2 + $0x30] sm:$0xf] }
 0x1d7   : > { %2725 = vmatmul.mubr.msk.bf16.vlgmr.msra.gmra.mrb[8].mxu0 %vm445_vm0, %v2508_v59  ;;  %v1407_v15 = vrot.slane %v1406_v1, 4  ;;  %v1437_v49 = vshll.u32 %v3796_v61, 16  ;;  %v1398_v21 = vsel %vm3731_vm9, %v1393_v60, %v1397_v6  ;;  %v826_v24 = vshrl.u32 %v3800_v5, 16  ;;  %v1377_v59 = vld [vmem:[#allocation2 + $0x28] sm:$0xf]  ;;  %v3839_v6 = vld [vmem:[#allocation14 + $0x30] sm:$0xff]  }
 0x1d8   : > { %v1420_v16 = vor.u32 %v1419_v3, %v1416_v2  ;;  %2733 = vmatpush3.bf16.msra.mxu0 %v3656_v47  ;;  %v1433_v22 = vrot.slane %v1431_v13, 5  ;;  %v829_v11 = vshll.u32 %v3800_v5, 16  ;;  %v835_v25 = vshll.u32 %v3804_v14, 16 }
 0x1d9   : > { %2742 = vmatprep.subr.bf16.mxu0 %v3798_v62  ;;  %v1412_v63 = vsel %vm3731_vm9, %v1407_v15, %v1411_v8  ;;  %v828_v29 = vrot.slane %v826_v24, 4  ;;  %v840_v26 = vshrl.u32 %v3807_v20, 16  ;;  %v1425_v30 = vrot.slane %v1423_v9, 5 }
 0x1da   : > { %v1421_v0 = vrot.slane %v1420_v16, 4  ;;  %v2551_v47 = vcombine.low %v1398_v21, %v1412_v63  ;;  %v1434_v12 = vor.u32 %v1433_v22, %v1430_v19  ;;  %v1439_v35 = vrot.slane %v1437_v49, 5  ;;  %v3848_v63 = vld [vmem:[#allocation2 + $0x2c] sm:$0x1] }
 0x1db   : > { %v831_v37 = vrot.slane %v829_v11, 5  ;;  %v843_v38 = vshll.u32 %v3807_v20, 16  ;;  %v842_v41 = vrot.slane %v840_v26, 4  ;;  %v849_v42 = vshll.u32 %v3812_v50, 16 }
 0x1dc   : > { %2764 = vmatprep.mubr.msk.bf16.mxu1 %vm445_vm0, %v2551_v47  ;;  %v1435_v40 = vrot.slane %v1434_v12, 4  ;;  %v854_v44 = vshrl.u32 %v3820_v27, 16  ;;  %v1426_v45 = vsel %vm3731_vm9, %v1421_v0, %v1425_v30  ;;  %v857_v56 = vshll.u32 %v3820_v27, 16 }
 0x1dd   : > { %v832_v51 = vor.u32 %v831_v37, %v828_v29  ;;  %v845_v52 = vrot.slane %v843_v38, 5  ;;  %v837_v18 = vrot.slane %v835_v25, 5  ;;  %v868_v58 = vshrl.u32 %v3824_v39, 16  ;;  %v1381_v29 = vld [vmem:[#allocation2 + $0x38] sm:$0xf] }
 0x1de   : > { %v1440_v17 = vsel %vm3731_vm9, %v1435_v40, %v1439_v35  ;;  %v856_v57 = vrot.slane %v854_v44, 4  ;;  %v859_v3 = vrot.slane %v857_v56, 5  ;;  %v851_v8 = vrot.slane %v849_v42, 5  ;;  %v1383_v38 = vld [vmem:[#allocation2 + $0x40] sm:$0xf] }
 0x1df   : > { %v2552_v60 = vcombine.low %v1426_v45, %v1440_v17  ;;  %v833_v1 = vrot.slane %v832_v51, 4  ;;  %v846_v2 = vor.u32 %v845_v52, %v842_v41  ;;  %v863_v9 = vshll.u32 %v3831_v53, 16 }
 0x1e0   : > { %v870_v13 = vrot.slane %v868_v58, 4  ;;  %v871_v15 = vshll.u32 %v3824_v39, 16  ;;  %v860_v19 = vor.u32 %v859_v3, %v856_v57  ;;  %v877_v49 = vshll.u32 %v3833_v54, 16 }
 0x1e1   : > { %2765 = vmatmul.mubr.msk.bf16.vlgmr.msra.gmra.mrb[0].mxu1 %vm445_vm0, %v2552_v60  ;;  %v847_v16 = vrot.slane %v846_v2, 4  ;;  %v1442_v21 = vshrl.u32 %v1377_v59, 16  ;;  %v838_v22 = vsel %vm3731_vm9, %v833_v1, %v837_v18  ;;  %v1445_v0 = vshll.u32 %v1377_v59, 16 }
 0x1e2   : > { %2773 = vmatpush3.bf16.msra.mxu1 %v3653_v46  ;;  %v873_v24 = vrot.slane %v871_v15, 5  ;;  %v861_v25 = vrot.slane %v860_v19, 4  ;;  %v1456_v12 = vshrl.u32 %v1379_v4, 16  ;;  %v865_v30 = vrot.slane %v863_v9, 5  ;;  %v3853_v46 = vld [vmem:[#allocation2 + $0x34] sm:$0x1] }
 0x1e3   : > { %v852_v11 = vsel %vm3731_vm9, %v847_v16, %v851_v8  ;;  %v1444_v47 = vrot.slane %v1442_v21, 4  ;;  %2782 = vmatprep.subr.bf16.mxu1 %v3839_v6  ;;  %v1447_v37 = vrot.slane %v1445_v0, 5  ;;  %v879_v40 = vrot.slane %v877_v49, 5  ;;  %v3864_v8 = vld [vmem:[#allocation2 + $0x44] sm:$0x1] }
 0x1e4   : > { %v2509_v26 = vcombine.low %v838_v22, %v852_v11  ;;  %v874_v35 = vor.u32 %v873_v24, %v870_v13  ;;  %v1458_v41 = vrot.slane %v1456_v12, 4  ;;  %v1459_v42 = vshll.u32 %v1379_v4, 16  ;;  %v3862_v4 = vld [vmem:[#allocation2 + $0x3c] sm:$0x1]  ;;  %v1603_v19 = vld [vmem:[#allocation2 + $0x8] sm:$0xe] }
 0x1e5   : > { %v866_v44 = vsel %vm3731_vm9, %v861_v25, %v865_v30  ;;  %v1448_v51 = vor.u32 %v1447_v37, %v1444_v47  ;;  %v1470_v52 = vshrl.u32 %v1381_v29, 16  ;;  %v1451_v56 = vshll.u32 %v3848_v63, 16  ;;  %v1604_v49 = vld [vmem:[#allocation2 + $0x10] sm:$0xe]  ;;  %v1082_v21 = vld [vmem:[#allocation2] sm:$0xe] }
 0x1e6   : > { %2728 = vmatprep.mubr.msk.bf16.mxu0 %vm445_vm0, %v2509_v26  ;;  %v875_v45 = vrot.slane %v874_v35, 4  ;;  %v1461_v17 = vrot.slane %v1459_v42, 5  ;;  %v1465_v18 = vshll.u32 %v3853_v46, 16  ;;  %v1473_v57 = vshll.u32 %v1381_v29, 16 }
 0x1e7   : > { %v1472_v59 = vrot.slane %v1470_v52, 4  ;;  %v1484_v60 = vshrl.u32 %v1383_v38, 16  ;;  %v1449_v2 = vrot.slane %v1448_v51, 4  ;;  %v2516_v13 = vcombine.low %v3659_v48, %v3737_v31 }
 0x1e8   : > { %v880_v58 = vsel %vm3731_vm9, %v875_v45, %v879_v40  ;;  %v1462_v3 = vor.u32 %v1461_v17, %v1458_v41  ;;  %v1475_v9 = vrot.slane %v1473_v57, 5  ;;  %v1487_v16 = vshll.u32 %v1383_v38, 16  ;;  %v1606_v41 = vld [vmem:[#allocation2 + $0x20] sm:$0xe]  ;;  %v3886_v17 = vld [vmem:[#allocation14 + $0x18] sm:$0xff]  }
 0x1e9   : > { %v2510_v1 = vcombine.low %v866_v44, %v880_v58  ;;  %v1486_v15 = vrot.slane %v1484_v60, 4  ;;  %v1453_v22 = vrot.slane %v1451_v56, 5  ;;  %v1467_v0 = vrot.slane %v1465_v18, 5  ;;  %v1083_v56 = vld [vmem:[#allocation2 + $0x8] sm:$0xe] }
 0x1ea   : > { %v1463_v24 = vrot.slane %v1462_v3, 4  ;;  %v1476_v11 = vor.u32 %v1475_v9, %v1472_v59  ;;  %v1479_v25 = vshll.u32 %v3862_v4, 16  ;;  %v1489_v47 = vrot.slane %v1487_v16, 5  ;;  %v1608_v18 = vld [vmem:[#allocation2 + $0x30] sm:$0xe] }
 0x1eb   : > { %2729 = vmatmul.mubr.msk.bf16.gmra.mrb[12].mxu0 %vm445_vm0, %v2510_v1  ;;  %v1493_v12 = vshll.u32 %v3864_v8, 16  ;;  %v1633_v48 = vrot.slane %v3780_v36, 5  ;;  %v1454_v31 = vsel %vm3731_vm9, %v1449_v2, %v1453_v22  ;;  %v2561_v26 = vrot.slane %v1604_v49, 9  ;;  %v1605_v1 = vld [vmem:[#allocation2 + $0x18] sm:$0xe] }
 0x1ec   : > { %2734 = vmatprep.mubr.msk.bf16.mxu0 %vm445_vm0, %v2516_v13  ;;  %v1468_v29 = vsel %vm3731_vm9, %v1463_v24, %v1467_v0  ;;  %v1477_v35 = vrot.slane %v1476_v11, 4  ;;  %v1490_v37 = vor.u32 %v1489_v47, %v1486_v15  ;;  %v1629_v38 = vrot.slane %v3778_v32, 5  ;;  %v1610_v22 = vld [vmem:[#allocation2 + $0x40] sm:$0xe]  ;;  %v1087_v24 = vld [vmem:[#allocation2 + $0x28] sm:$0xe] }
 0x1ed   : > { %v2553_v30 = vcombine.low %v1454_v31, %v1468_v29  ;;  %v2560_v40 = vrot.slane %v1603_v19, 9  ;;  %v2525_v42 = vrot.slane %v1082_v21, 9  ;;  %v1111_v44 = vrot.slane %v3679_v7, 5  ;;  %v1084_v21 = vld [vmem:[#allocation2 + $0x10] sm:$0xe] }
 0x1ee   : > { %v1481_v36 = vrot.slane %v1479_v25, 5  ;;  %v1491_v45 = vrot.slane %v1490_v37, 4  ;;  %v1495_v51 = vrot.slane %v1493_v12, 5  ;;  %v1634_v32 = vsel %vm3882_vm12, %v2561_v26, %v1633_v48  ;;  %v1085_v11 = vld [vmem:[#allocation2 + $0x18] sm:$0xe] }
 0x1ef   : > { %2768 = vmatprep.mubr.msk.bf16.mxu1 %vm445_vm0, %v2553_v30  ;;  %v2517_v7 = vcombine.low %v3754_v43, %v3735_v28  ;;  %v1641_v57 = vrot.slane %v3796_v61, 5  ;;  %v2518_v60 = vcombine.low %v3800_v5, %v3807_v20  ;;  %v1630_v3 = vsel %vm3882_vm12, %v2560_v40, %v1629_v38  ;;  %v1607_v28 = vld [vmem:[#allocation2 + $0x28] sm:$0xe]  ;;  %v1086_v31 = vld [vmem:[#allocation2 + $0x20] sm:$0xe] }
 0x1f0   : > { %v1482_v58 = vsel %vm3731_vm9, %v1477_v35, %v1481_v36  ;;  %v1496_v59 = vsel %vm3731_vm9, %v1491_v45, %v1495_v51  ;;  %v2526_v43 = vrot.slane %v1083_v56, 9  ;;  %v1115_v61 = vrot.slane %v3739_v33, 5  ;;  %v1609_v30 = vld [vmem:[#allocation2 + $0x38] sm:$0xe]  ;;  %v1888_v45 = vld [vmem:[#allocation2 + $0x10] sm:$0xf] }
 0x1f1   : > { %v2554_v2 = vcombine.low %v1482_v58, %v1496_v59  ;;  %v2568_v9 = vcombine.low %v1630_v3, %v1634_v32  ;;  %v2563_v13 = vrot.slane %v1606_v41, 9  ;;  %v2565_v15 = vrot.slane %v1608_v18, 9  ;;  %v3927_v35 = vld [vmem:[#allocation14 + $0x38] sm:$0xff]  }
 0x1f2   : > { %v1649_v16 = vrot.slane %v3853_v46, 5  ;;  %v1637_v5 = vrot.slane %v3794_v34, 5  ;;  %v2562_v20 = vrot.slane %v1605_v1, 9  ;;  %v2564_v19 = vrot.slane %v1607_v28, 9  ;;  %v1890_v51 = vld [vmem:[#allocation2 + $0x18] sm:$0xf] }
 0x1f3   : > { %2735 = vmatmul.mubr.msk.bf16.vlgmr.msra.gmra.mrb[8].mxu0 %vm445_vm0, %v2517_v7  ;;  %2769 = vmatmul.mubr.msk.bf16.gmra.mrb[4].mxu1 %vm445_vm0, %v2554_v2  ;;  %v1645_v33 = vrot.slane %v3848_v63, 5  ;;  %v1112_v49 = vsel %vm3882_vm12, %v2525_v42, %v1111_v44  ;;  %v1116_v46 = vsel %vm3882_vm12, %v2526_v43, %v1115_v61  ;;  %v1642_v34 = vsel %vm3882_vm12, %v2563_v13, %v1641_v57  ;;  %v1089_v32 = vld [vmem:[#allocation2 + $0x38] sm:$0xe] }
 0x1f4   : > { %2738 = vmatprep.mubr.msk.bf16.mxu0 %vm445_vm0, %v2518_v60  ;;  %2743 = vmatpush3.bf16.msra.mxu0 %v3798_v62  ;;  %v1650_v62 = vsel %vm3882_vm12, %v2565_v15, %v1649_v16  ;;  %v1638_v0 = vsel %vm3882_vm12, %v2562_v20, %v1637_v5  ;;  %v2519_v63 = vcombine.low %v3820_v27, %v3824_v39  ;;  %v2527_v12 = vrot.slane %v1084_v21, 9  ;;  %v2998_v28 = vld [vmem:[#allocation2 + $0x10] ss:$8 sps:$4 sm:$0xff]   ;;  %v1894_v15 = vld [vmem:[#allocation2 + $0x28] sm:$0xf] }
 0x1f5   : > { %2752 = vmatprep.subr.bf16.mxu0 %v3886_v17  ;;  %2774 = vmatprep.mubr.msk.bf16.mxu1 %vm445_vm0, %v2568_v9  ;;  %v1646_v25 = vsel %vm3882_vm12, %v2564_v19, %v1645_v33  ;;  %v2533_v47 = vcombine.low %v1112_v49, %v1116_v46  ;;  %v1119_v48 = vrot.slane %v3760_v55, 5  ;;  %v2569_v29 = vcombine.low %v1638_v0, %v1642_v34  ;;  %v1896_v16 = vld [vmem:[#allocation2 + $0x30] sm:$0xf]  ;;  %v1892_v19 = vld [vmem:[#allocation2 + $0x20] sm:$0xf] }
 0x1f6   : > { %v2570_v26 = vcombine.low %v1646_v25, %v1650_v62  ;;  %v2530_v37 = vrot.slane %v1087_v24, 9  ;;  %v1131_v38 = vrot.slane %v3812_v50, 5  ;;  %v2567_v27 = vrot.slane %v1610_v22, 9  ;;  %v1898_v46 = vld [vmem:[#allocation2 + $0x38] sm:$0xf] }
 0x1f7   : > { %v1657_v39 = vrot.slane %v3864_v8, 5  ;;  %v2528_v40 = vrot.slane %v1085_v11, 9  ;;  %v1123_v41 = vrot.slane %v3765_v10, 5  ;;  %v2529_v55 = vrot.slane %v1086_v31, 9  ;;  %v1088_v8 = vld [vmem:[#allocation2 + $0x30] sm:$0xe] }
 0x1f8   : > { %v1127_v42 = vrot.slane %v3804_v14, 5  ;;  %v2566_v44 = vrot.slane %v1609_v30, 9  ;;  %v1653_v50 = vrot.slane %v3862_v4, 5  ;;  %v1120_v36 = vsel %vm3882_vm12, %v2527_v12, %v1119_v48  ;;  %v1902_v24 = vld [vmem:[#allocation2 + $0x48] sm:$0xf]  ;;  %v3968_v31 = vld [vmem:[#allocation14 + $0x40] sm:$0xff]  }
 0x1f9   : > { %v1132_v10 = vsel %vm3882_vm12, %v2530_v37, %v1131_v38  ;;  %v1658_v14 = vsel %vm3882_vm12, %v2567_v27, %v1657_v39  ;;  %v1905_v7 = vshrl.u32 %v1888_v45, 16  ;;  %v1908_v18 = vshll.u32 %v1888_v45, 16  ;;  %v3003_v0 = vld [vmem:[#allocation2 + $0x8] ss:$8 sps:$4 sm:$0xff]  }
 0x1fa   : > { %v1128_v4 = vsel %vm3882_vm12, %v2529_v55, %v1127_v42  ;;  %v1654_v57 = vsel %vm3882_vm12, %v2566_v44, %v1653_v50  ;;  %v2531_v59 = vrot.slane %v1088_v8, 9  ;;  %v1135_v60 = vrot.slane %v3831_v53, 5  ;;  %v3002_v30 = vld [vmem:[#allocation2 + $0x30] ss:$8 sps:$4 sm:$0xff]   ;;  %v1900_v42 = vld [vmem:[#allocation2 + $0x40] sm:$0xf] }
 0x1fb   : > { %2739 = vmatmul.mubr.msk.bf16.gmra.mrb[12].mxu0 %vm445_vm0, %v2519_v63  ;;  %2775 = vmatmul.mubr.msk.bf16.vlgmr.msra.gmra.mrb[0].mxu1 %vm445_vm0, %v2569_v29  ;;  %v2535_v58 = vcombine.low %v1128_v4, %v1132_v10  ;;  %v2571_v1 = vcombine.low %v1654_v57, %v1658_v14  ;;  %v1919_v2 = vshrl.u32 %v1890_v51, 16  ;;  %v1922_v3 = vshll.u32 %v1890_v51, 16  ;;  %v3964_v63 = vld [vmem:[#allocation2 + $0x1c] sm:$0x1]  ;;  %v3976_v8 = vld [vmem:[#allocation2 + $0x2c] sm:$0x1] }
 0x1fc   : > { %2744 = vmatprep.mubr.msk.bf16.mxu0 %vm445_vm0, %v2533_v47  ;;  %2783 = vmatpush3.bf16.msra.mxu1 %v3839_v6  ;;  %v1124_v6 = vsel %vm3882_vm12, %v2528_v40, %v1123_v41  ;;  %v2532_v43 = vrot.slane %v1089_v32, 9  ;;  %v1139_v61 = vrot.slane %v3833_v54, 5  ;;  %v1907_v9 = vrot.slane %v1905_v7, 4  ;;  %v3962_v54 = vld [vmem:[#allocation2 + $0x14] sm:$0x1] }
 0x1fd   : > { %2778 = vmatprep.mubr.msk.bf16.mxu1 %vm445_vm0, %v2570_v26  ;;  %2792 = vmatprep.subr.bf16.mxu1 %v3927_v35  ;;  %v2534_v56 = vcombine.low %v1120_v36, %v1124_v6  ;;  %v1910_v13 = vrot.slane %v1908_v18, 5  ;;  %v1136_v53 = vsel %vm3882_vm12, %v2531_v59, %v1135_v60  ;;  %v1921_v5 = vrot.slane %v1919_v2, 4  ;;  %v3001_v47 = vld [vmem:[#allocation2 + $0x20] ss:$8 sps:$4 sm:$0xff]   ;;  %v3978_v51 = vld [vmem:[#allocation2 + $0x24] sm:$0x1] }
 0x1fe   : > { %v1924_v20 = vrot.slane %v1922_v3, 5  ;;  %v1140_v33 = vsel %vm3882_vm12, %v2532_v43, %v1139_v61  ;;  %v1950_v49 = vshll.u32 %v1894_v15, 16  ;;  %v1961_v62 = vshrl.u32 %v1896_v16, 16  ;;  %v3980_v4 = vld [vmem:[#allocation2 + $0x34] sm:$0x1] }
 0x1ff   : > { %v2536_v21 = vcombine.low %v1136_v53, %v1140_v33  ;;  %v1911_v34 = vor.u32 %v1910_v13, %v1907_v9  ;;  %v1964_v22 = vshll.u32 %v1896_v16, 16  ;;  %v1933_v11 = vshrl.u32 %v1892_v19, 16  ;;  %v3006_v57 = vld [vmem:[#allocation2 + $0x18] ss:$8 sps:$4 sm:$0xff]   ;;  %v3008_v60 = vld [vmem:[#allocation2 + $0x28] ss:$8 sps:$4 sm:$0xff]  }
 0x200   : > { %v1936_v25 = vshll.u32 %v1892_v19, 16  ;;  %v1914_v12 = vshll.u32 %v3962_v54, 16  ;;  %v1925_v48 = vor.u32 %v1924_v20, %v1921_v5  ;;  %v1975_v29 = vshrl.u32 %v1898_v46, 16  ;;  %v3985_v3 = vld [vmem:[#allocation2 + $0x3c] sm:$0x1] }
 0x201   : > { %v1978_v26 = vshll.u32 %v1898_v46, 16  ;;  %v1952_v38 = vrot.slane %v1950_v49, 5  ;;  %v2003_v27 = vshrl.u32 %v1902_v24, 16  ;;  %v1912_v39 = vrot.slane %v1911_v34, 4  ;;  %v3004_v43 = vld [vmem:[#allocation2 + $0x40] ss:$8 sps:$4 sm:$0xff]  }
 0x202   : > { %v1928_v40 = vshll.u32 %v3964_v63, 16  ;;  %v1963_v41 = vrot.slane %v1961_v62, 4  ;;  %v1966_v55 = vrot.slane %v1964_v22, 5  ;;  %v1935_v44 = vrot.slane %v1933_v11, 4  ;;  %v3996_v34 = vld [vmem:[#allocation2 + $0x44] sm:$0x1] }
 0x203   : > { %2745 = vmatmul.mubr.msk.bf16.vlgmr.msra.gmra.mrb[8].mxu0 %vm445_vm0, %v2534_v56  ;;  %2779 = vmatmul.mubr.msk.bf16.gmra.mrb[4].mxu1 %vm445_vm0, %v2571_v1  ;;  %v1938_v50 = vrot.slane %v1936_v25, 5  ;;  %v2006_v36 = vshll.u32 %v1902_v24, 16  ;;  %v1916_v45 = vrot.slane %v1914_v12, 5  ;;  %v1926_v10 = vrot.slane %v1925_v48, 4  ;;  %v3998_v62 = vld [vmem:[#allocation2 + $0x4c] sm:$0x1] }
 0x204   : > { %2748 = vmatprep.mubr.msk.bf16.mxu0 %vm445_vm0, %v2535_v58  ;;  %2753 = vmatpush3.bf16.msra.mxu0 %v3886_v17  ;;  %v1947_v17 = vshrl.u32 %v1894_v15, 16  ;;  %v1977_v14 = vrot.slane %v1975_v29, 4  ;;  %v1980_v6 = vrot.slane %v1978_v26, 5  ;;  %v1989_v32 = vshrl.u32 %v1900_v42, 16  ;;  %v3009_v48 = vld [vmem:[#allocation2 + $0x38] ss:$8 sps:$4 sm:$0xff]  }
 0x205   : > { %2784 = vmatprep.mubr.msk.bf16.mxu1 %vm445_vm0, %v2998_v28  ;;  %v1917_v7 = vsel %vm3731_vm9, %v1912_v39, %v1916_v45  ;;  %v1930_v18 = vrot.slane %v1928_v40, 5  ;;  %v1967_v58 = vor.u32 %v1966_v55, %v1963_v41  ;;  %v2005_v59 = vrot.slane %v2003_v27, 4  ;;  %v2123_v55 = vld [vmem:[#allocation2 + $0x18] sm:$0xe] }
 0x206   : > { %v1949_v37 = vrot.slane %v1947_v17, 4  ;;  %v1939_v1 = vor.u32 %v1938_v50, %v1935_v44  ;;  %v1956_v2 = vshll.u32 %v3976_v8, 16  ;;  %v2008_v28 = vrot.slane %v2006_v36, 5 }
 0x207   : > { %v1931_v61 = vsel %vm3731_vm9, %v1926_v10, %v1930_v18  ;;  %v1942_v9 = vshll.u32 %v3978_v51, 16  ;;  %v1970_v13 = vshll.u32 %v3980_v4, 16  ;;  %v1981_v15 = vor.u32 %v1980_v6, %v1977_v14 }
 0x208   : > { %v1953_v56 = vor.u32 %v1952_v38, %v1949_v37  ;;  %v2586_v53 = vcombine.low %v1917_v7, %v1931_v61  ;;  %v1991_v5 = vrot.slane %v1989_v32, 4  ;;  %v1968_v19 = vrot.slane %v1967_v58, 4  ;;  %v2126_v32 = vld [vmem:[#allocation2 + $0x30] sm:$0xe]  ;;  %v2128_v61 = vld [vmem:[#allocation2 + $0x40] sm:$0xe] }
 0x209   : > { %v1984_v33 = vshll.u32 %v3985_v3, 16  ;;  %v1940_v17 = vrot.slane %v1939_v1, 4  ;;  %v1958_v49 = vrot.slane %v1956_v2, 5  ;;  %v1972_v46 = vrot.slane %v1970_v13, 5 }
 0x20a   : > { %v1954_v16 = vrot.slane %v1953_v56, 4  ;;  %v2009_v22 = vor.u32 %v2008_v28, %v2005_v59  ;;  %v1944_v24 = vrot.slane %v1942_v9, 5  ;;  %v2012_v25 = vshll.u32 %v3998_v62, 16  ;;  %v2125_v56 = vld [vmem:[#allocation2 + $0x28] sm:$0xe] }
 0x20b   : > { %2749 = vmatmul.mubr.msk.bf16.gmra.mrb[12].mxu0 %vm445_vm0, %v2536_v21  ;;  %2785 = vmatmul.mubr.msk.bf16.vlgmr.msra.gmra.mrb[0].mxu1 %vm445_vm0, %v3001_v47  ;;  %v1982_v21 = vrot.slane %v1981_v15, 4  ;;  %v1973_v47 = vsel %vm3731_vm9, %v1968_v19, %v1972_v46  ;;  %v1986_v12 = vrot.slane %v1984_v33, 5  ;;  %v1998_v26 = vshll.u32 %v3996_v34, 16 }
 0x20c   : > { %2754 = vmatprep.mubr.msk.bf16.mxu0 %vm445_vm0, %v3003_v0  ;;  %2793 = vmatpush3.bf16.msra.mxu1 %v3927_v35  ;;  %v1992_v35 = vshll.u32 %v1900_v42, 16  ;;  %v1959_v0 = vsel %vm3731_vm9, %v1954_v16, %v1958_v49  ;;  %v1945_v29 = vsel %vm3731_vm9, %v1940_v17, %v1944_v24  ;;  %v2010_v40 = vrot.slane %v2009_v22, 4 }
 0x20d   : > { %2788 = vmatprep.mubr.msk.bf16.mxu1 %vm445_vm0, %v3002_v30  ;;  %2802 = vmatprep.subr.bf16.mxu1 %v3968_v31  ;;  %v2122_v30 = vld [vmem:[#allocation2 + $0x10] sm:$0xe]  ;;  %v2587_v37 = vcombine.low %v1945_v29, %v1959_v0  ;;  %v1987_v38 = vsel %vm3731_vm9, %v1982_v21, %v1986_v12  ;;  %v2014_v41 = vrot.slane %v2012_v25, 5  ;;  %v2148_v44 = vrot.slane %v3962_v54, 5 }
 0x20e   : > { %v1994_v20 = vrot.slane %v1992_v35, 5  ;;  %v2588_v27 = vcombine.low %v1973_v47, %v1987_v38  ;;  %v2595_v42 = vrot.slane %v2122_v30, 9  ;;  %v2000_v50 = vrot.slane %v1998_v26, 5  ;;  %v2124_v35 = vld [vmem:[#allocation2 + $0x20] sm:$0xe] }
 0x20f   : > { %v2596_v36 = vrot.slane %v2123_v55, 9  ;;  %v2152_v45 = vrot.slane %v3964_v63, 5  ;;  %v2015_v14 = vsel %vm3731_vm9, %v2010_v40, %v2014_v41  ;;  %v2598_v18 = vrot.slane %v2125_v56, 9 }
 0x210   : > { %v1995_v11 = vor.u32 %v1994_v20, %v1991_v5  ;;  %v2149_v6 = vsel %vm3882_vm12, %v2595_v42, %v2148_v44  ;;  %v2160_v63 = vrot.slane %v3976_v8, 5  ;;  %v2599_v58 = vrot.slane %v2126_v32, 9 }
 0x211   : > { %v2164_v23 = vrot.slane %v3980_v4, 5  ;;  %v2597_v59 = vrot.slane %v2124_v35, 9  ;;  %v2168_v2 = vrot.slane %v3985_v3, 5  ;;  %v2172_v3 = vrot.slane %v3996_v34, 5 }
 0x212   : > { %v1996_v39 = vrot.slane %v1995_v11, 4  ;;  %v2161_v28 = vsel %vm3882_vm12, %v2598_v18, %v2160_v63  ;;  %v2176_v16 = vrot.slane %v3998_v62, 5 }
 0x213   : > { %2755 = vmatmul.mubr.msk.bf16.vlgmr.msra.gmra.mrb[8].mxu0 %vm445_vm0, %v3006_v57  ;;  %2789 = vmatmul.mubr.msk.bf16.gmra.mrb[4].mxu1 %vm445_vm0, %v3004_v43  ;;  %v2127_v57 = vld [vmem:[#allocation2 + $0x38] sm:$0xe]  ;;  %v2129_v43 = vld [vmem:[#allocation2 + $0x48] sm:$0xe]  ;;  %v2165_v8 = vsel %vm3882_vm12, %v2599_v58, %v2164_v23 }
 0x214   : > { %2758 = vmatprep.mubr.msk.bf16.mxu0 %vm445_vm0, %v3008_v60  ;;  %2794 = vmatprep.mubr.msk.bf16.mxu1 %vm445_vm0, %v2586_v53  ;;  %v2001_v10 = vsel %vm3731_vm9, %v1996_v39, %v2000_v50  ;;  %v2156_v60 = vrot.slane %v3978_v51, 5  ;;  %v2600_v1 = vrot.slane %v2127_v57, 9  ;;  %v2602_v15 = vrot.slane %v2129_v43, 9 }
 0x215   : > { %v2589_v54 = vcombine.low %v2001_v10, %v2015_v14  ;;  %v2601_v53 = vrot.slane %v2128_v61, 9 }
 0x216   : > { %v2157_v9 = vsel %vm3882_vm12, %v2597_v59, %v2156_v60  ;;  %v2169_v13 = vsel %vm3882_vm12, %v2600_v1, %v2168_v2  ;;  %v2177_v20 = vsel %vm3882_vm12, %v2602_v15, %v2176_v16 }
 0x217   : > { %v2604_v4 = vcombine.low %v2157_v9, %v2161_v28  ;;  %v2605_v51 = vcombine.low %v2165_v8, %v2169_v13  ;;  %v2173_v5 = vsel %vm3882_vm12, %v2601_v53, %v2172_v3 }
 0x218   : > { %v2606_v19 = vcombine.low %v2173_v5, %v2177_v20 }
 0x21b   : > { %2759 = vmatmul.mubr.msk.bf16.gmra.mrb[12].mxu0 %vm445_vm0, %v3009_v48  ;;  %2795 = vmatmul.mubr.msk.bf16.vlgmr.msra.gmra.mrb[0].mxu1 %vm445_vm0, %v2587_v37 }
 0x21c   : > { %2803 = vmatpush3.bf16.msra.mxu1 %v3968_v31  ;;  %2798 = vmatprep.mubr.msk.bf16.mxu1 %vm445_vm0, %v2588_v27  ;;  %v2153_v31 = vsel %vm3882_vm12, %v2596_v36, %v2152_v45 }
 0x21d   : > { %v2603_v7 = vcombine.low %v2149_v6, %v2153_v31 }
 0x223   : > { %2799 = vmatmul.mubr.msk.bf16.gmra.mrb[4].mxu1 %vm445_vm0, %v2589_v54 }
 0x224   : > { %2804 = vmatprep.mubr.msk.bf16.mxu1 %vm445_vm0, %v2603_v7 }
 0x22b   : > { %2805 = vmatmul.mubr.msk.bf16.vlgmr.msra.gmra.mrb[0].mxu1 %vm445_vm0, %v2604_v4 }
 0x22c   : > { %2808 = vmatprep.mubr.msk.bf16.mxu1 %vm445_vm0, %v2605_v51 }
 0x233   : > { %2809 = vmatmul.mubr.msk.bf16.gmra.mrb[4].mxu1 %vm445_vm0, %v2606_v19 }
 0x2e6   : > { %v2756_v33 = vpop.f32.mrb[8].mxu0 }
 0x2e7   : > { %v1330_v17 = vpop.f32.mrb[9].mxu0 }
 0x2e8   : > { %v2757_v49 = vpop.f32.mrb[10].mxu0 }
 0x2e9   : > { %v1333_v46 = vpop.f32.mrb[11].mxu0 }
 0x2ee   : > { %v2760_v21 = vpop.f32.mrb[12].mxu0 }
 0x2ef   : > { %v1346_v34 = vpop.f32.mrb[13].mxu0 }
 0x2f0   : > { %v2761_v62 = vpop.f32.mrb[14].mxu0 }
 0x2f1   : > { %v1349_v22 = vpop.f32.mrb[15].mxu0 }
 0x2fe   : > { %v2806_v24 = vpop.f32.mrb[0].mxu1 }
 0x2ff   : > { %v2812_v0 = vadd.f32 %v2806_v24, %v2756_v33  ;;  %v2245_v11 = vpop.f32.mrb[1].mxu1 }
 0x300   : > { %v2813_v25 = vadd.f32 %v2245_v11, %v1330_v17  ;;  %v2807_v47 = vpop.f32.mrb[2].mxu1 }
 0x301   : > { %v2636_v52 = vpack.c.bf16 %v2812_v0, %v2812_v0  ;;  %v2814_v12 = vadd.f32 %v2807_v47, %v2757_v49  ;;  %v2248_v48 = vpop.f32.mrb[3].mxu1 }
 0x302   : > { %v2634_v29 = vpack.c.bf16 %v2813_v25, %v2813_v25  ;;  %v2815_v26 = vadd.f32 %v2248_v48, %v1333_v46 }
 0x303   : > { %2319 = vst.msk [vmem:[%s375_s8 + $0x8] sm:$0xf] %vm2316_vm13, %v2636_v52  ;;  %v2637_v30 = vpack.c.bf16 %v2814_v12, %v2814_v12 }
 0x304   : > { %2317 = vst.msk [vmem:[%s375_s8] sm:$0xf] %vm2316_vm13, %v2634_v29  ;;  %v2635_v37 = vpack.c.bf16 %v2815_v26, %v2815_v26 }
 0x305   : > { %2320 = vst.msk [vmem:[%s375_s8 + $0xc] sm:$0xf] %vm2316_vm13, %v2637_v30 }
 0x306   : > { %2318 = vst.msk [vmem:[%s375_s8 + $0x4] sm:$0xf] %vm2316_vm13, %v2635_v37  ;;  %v2810_v38 = vpop.f32.mrb[4].mxu1 }
 0x307   : > { %v2816_v27 = vadd.f32 %v2810_v38, %v2760_v21  ;;  %v2261_v39 = vpop.f32.mrb[5].mxu1 }
 0x308   : > { %v2817_v40 = vadd.f32 %v2261_v39, %v1346_v34  ;;  %v2811_v41 = vpop.f32.mrb[6].mxu1 }
 0x309   : > { %v2640_v55 = vpack.c.bf16 %v2816_v27, %v2816_v27  ;;  %v2818_v42 = vadd.f32 %v2811_v41, %v2761_v62  ;;  %v2264_v44 = vpop.f32.mrb[7].mxu1 }
 0x30a   : > { %v2638_v50 = vpack.c.bf16 %v2817_v40, %v2817_v40  ;;  %v2819_v36 = vadd.f32 %v2264_v44, %v1349_v22 }
 0x30b   : > { %2323 = vst.msk [vmem:[%s375_s8 + $0x18] sm:$0xf] %vm2316_vm13, %v2640_v55  ;;  %v2641_v45 = vpack.c.bf16 %v2818_v42, %v2818_v42 }
 0x30c   : > { %2321 = vst.msk [vmem:[%s375_s8 + $0x10] sm:$0xf] %vm2316_vm13, %v2638_v50  ;;  %v2639_v10 = vpack.c.bf16 %v2819_v36, %v2819_v36 }
 0x30d   : > { %2324 = vst.msk [vmem:[%s375_s8 + $0x1c] sm:$0xf] %vm2316_vm13, %v2641_v45 }
 0x30e   : > { %2322 = vst.msk [vmem:[%s375_s8 + $0x14] sm:$0xf] %vm2316_vm13, %v2639_v10 }
 0x30f   : > { %3221 = shalt.err (!%p3218_p8)
}
 0x310   : > { %s3222_s11 = scalar_lea.hbm %s4058_s12, 512  ;;  %s3226_s8 = scalar_lea.hbm %s4114_s7, 1024 }
 0x311   : > { %p3223_p4 = scmp.ne.s32.totalorder %s4058_s12, %s3222_s11  ;;  %p3227_p0 = scmp.lt.u32.totalorder %s4058_s12, %s4114_s7 }
 0x312   : > { %p3228_p5 = scmp.lt.u32.totalorder %s3226_s8, %s3222_s11  ;;  %p3230_p6 = scmp.lt.u32.totalorder %s3222_s11, %s4058_s12 }
 0x313   : > { %p3224_p10 = pnand %p3223_p4, %p4144_p9 }
 0x314   : > { %p3229_p7 = por %p3228_p5, %p3227_p0 }
 0x315   : > { %p3225_p11 = pneg %p3224_p10 }
 0x316   : > { %p3231_p12 = por %p3230_p6, %p3229_p7 }
 0x318   : > { %p3232_p13 = pnand %p3231_p12, %p3225_p11 }
 0x31a   : > { %3235 = shalt.err (!%p3232_p13)
}
 0x31b   : > { %s3299_s9 = smov 64   ;;  %s3300_s22 = smov 4  }
 0x31c   : > { %2902 = dma.vmem_to_hbm [thread:$0]  (%p4144_p9), %s4060_s28, 512, %s4058_s12, %s2326_s30, %s3299_s9, %s3299_s9, %s3300_s22  }
 0x31d PF: > { %s2354_s13 = sand.u32 1, %s3274_s24   ;;  %p4145_p1 = scmp.ne.s32.totalorder %s4126_s29, 0 }
 0x31e   : > { %p4146_p3 = scmp.ge.s32.totalorder %s3286_s27, 2  ;;  %s2355_s14 = scalar_lea.sflag [#allocation5], %s2354_s13 }
 0x320   : > { %p2928_p2 = pnand %p4146_p3, %p4145_p1 }
 0x322   : > { %3269 = dma.done.wait (!%p2928_p2), %s2355_s14, 512  }
 0x323   : > { %3271 = vsyncadd (!%p2928_p2), %s2355_s14, 4294966784  ;;  %p23_p8 = scmp.ge.s32.totalorder %s3525_s19, 4   ;;  %s4147_s24 = smov %s3278_s25 }
 0x324   : > { %s4148_s25 = smov %s3282_s26  ;;  %s4149_s26 = smov %s3536_s18 }
 0x325   : > { %s4150_s27 = smov %s3525_s19  ;;  %25 = sbr.rel (!%p23_p8) target bundleno = 8 (0x8), region = 127 }
 0x32c   :  { %2360 = vsyncpa [#allocation4], 1 }
 0x32d   :  { %2362 = vsyncpa [#allocation4 + $0x1], 1 }
 0x32e   :  { %2363 = vsyncpa [#allocation7], 1 }
 0x32f   :  { %2364 = vsyncpa [#allocation10], 1 }
 0x330   :  { %2365 = vsyncpa [#allocation13], 1 }
 0x331   :  { %2366 = vsyncpa [#allocation5], 1 }
 0x332   :  { %2368 = vsyncpa [#allocation5 + $0x1], 1 }

// kernel: densenet_forward.11
= control target key start
LH: loop header
LB: loop body
LE: loop exit
PB: predicated region body
PF: predicated region fallthrough
CT: control target
= control target key end

     0   :  { %s4520_s0 = inlined_call_operand.hbm [shape: bf16[2,64,16], index: 0, kind: input, shape index: {}]   ;;  %s4521_s1 = inlined_call_operand.hbm [shape: bf16[2,64,8], index: 1, kind: input, shape index: {}]   ;;  %s4522_s2 = inlined_call_operand.hbm [shape: bf16[24,16], index: 2, kind: input, shape index: {}]   ;;  %s4523_s3 = inlined_call_operand.hbm [shape: f32[1,24], index: 3, kind: input, shape index: {}]   ;;  %s4524_s4 = inlined_call_operand.hbm [shape: f32[1,24], index: 4, kind: input, shape index: {}]   ;;  %s4525_s5 = inlined_call_operand.hbm [shape: f32[1,16], index: 5, kind: input, shape index: {}]   ;;  %s4526_s6 = inlined_call_operand.hbm [shape: f32[1,16], index: 6, kind: input, shape index: {}]   ;;  %s4527_s7 = inlined_call_operand.hbm [shape: bf16[9,16,8], index: 7, kind: input, shape index: {}]   ;;  %s4528_s8 = inlined_call_operand.hbm [shape: bf16[2,64,8], index: 8, kind: output, shape index: {}]  }
   0x1   :  { %4536 = sst [smem:[#allocation25_spill]] %s4522_s2 }
   0x2   :  { %4537 = sst [smem:[#allocation26_spill]] %s4523_s3 }
   0x3   :  { %4538 = sst [smem:[#allocation27_spill]] %s4524_s4 }
   0x4   :  { %4539 = sst [smem:[#allocation28_spill]] %s4525_s5 }
   0x5   :  { %4540 = sst [smem:[#allocation29_spill]] %s4526_s6 }
   0x6   :  { %13 = vsyncpa [#allocation4], 0 }
   0x7   :  { %15 = vsyncpa [#allocation4 + $0x1], 0 }
   0x8   :  { %16 = vsyncpa [#allocation7], 0 }
   0x9   :  { %18 = vsyncpa [#allocation7 + $0x1], 0 }
   0xa   :  { %19 = vsyncpa [#allocation10], 0 }
   0xb   :  { %20 = vsyncpa [#allocation13], 0 }
   0xc   :  { %21 = vsyncpa [#allocation16], 0 }
   0xd   :  { %22 = vsyncpa [#allocation5], 0 }
   0xe   :  { %24 = vsyncpa [#allocation5 + $0x1], 0  ;;  %s3669_s27 = smov 0   ;;  %s3671_s28 = smov 0  }
   0xf   :  { %s3673_s29 = smov 0   ;;  %s3675_s30 = smov 0  }
  0x10 LB: > { %s3609_s9 = smov [#allocation8]   ;;  %s3690_s11 = sadd.s32 4294967295, %s3607_s30   ;;  %s3607_s30 = sphi %s3675_s30, %s4580_s30   ;;  %s3603_s29 = sphi %s3673_s29, %s4579_s29   ;;  %s3599_s28 = sphi %s3671_s28, %s4578_s28   ;;  %s3595_s27 = sphi %s3669_s27, %s4577_s27  }
  0x11   : > { %s251_s10 = sshll.u32 %s3609_s9, 4  ;;  %p2693_p0 = scmp.ge.s32.totalorder %s3607_s30, 1  ;;  %s3695_s10 = int_to_ptr.vmem [resolvable:$true] %s251_s10 }
  0x12   : > { %p4531_p1 = scmp.eq.s32.totalorder %s3690_s11, 0  ;;  %p239_p2 = scmp.lt.s32.totalorder %s3607_s30, 3 }
  0x13   : > { %s3610_s13 = smov [#allocation9]   ;;  %s3611_s16 = smov [#allocation12]  }
  0x14   : > { %p3697_p3 = pnand %p2693_p0, %p239_p2  ;;  %s265_s14 = sshll.u32 %s3610_s13, 4  ;;  %s3710_s14 = int_to_ptr.vmem [resolvable:$true] %s265_s14 }
  0x15   : > { %s287_s17 = sshll.u32 %s3611_s16, 4  ;;  %s4543_s2 = sld [smem:[#allocation25_spill]]  ;;  %s3712_s17 = int_to_ptr.vmem [resolvable:$true] %s287_s17 }
  0x16   : > { %s4541_s12 = scalar_select %p3697_p3, 1, 0 }
  0x17   : > { %p3183_p5 = pneg %p3697_p3 }
  0x19   : > { %p3706_p6 = pnand %p3183_p5, %p4531_p1 }
  0x1b   : > { %s3293_s20 = scalar_lea.hbm %s4543_s2, 192  ;;  %p3722_p8 = pneg %p3706_p6 }
  0x1c   : > { %p3294_p7 = scmp.ne.s32.totalorder %s4543_s2, %s3293_s20  ;;  %p3300_p11 = scmp.lt.u32.totalorder %s3293_s20, %s4543_s2 }
  0x1e   : > { %p3296_p9 = pnand %p3722_p8, %p3294_p7 }
  0x20   : > { %p3297_p10 = pneg %p3296_p9 }
  0x22   : > { %p3302_p12 = pnand %p3300_p11, %p3297_p10 }
  0x24   : > { %3305 = shalt.err (!%p3302_p12)
}
  0x25   : > { %s3306_s26 = scalar_lea.vmem %s3695_s10, 192  ;;  %p3314_p5 = scmp.lt.s32.totalorder %s3695_s10, %s3695_s10 }
  0x26   : > { %p3307_p13 = scmp.ne.s32.totalorder %s3695_s10, %s3306_s26  ;;  %p3315_p4 = scmp.lt.s32.totalorder %s3306_s26, %s3306_s26 }
  0x28   : > { %p3309_p0 = pnand %p3307_p13, %p3722_p8  ;;  %p3316_p7 = por %p3315_p4, %p3314_p5 }
  0x2a   : > { %p3310_p2 = pneg %p3309_p0 }
  0x2c   : > { %p3317_p9 = pnand %p3316_p7, %p3310_p2 }
  0x2e   : > { %3320 = shalt.err (!%p3317_p9)
}
  0x2f   : > { %s4529_s9 = smov 64   ;;  %s4533_s13 = smov 4  }
  0x30   : > { %3186 = dma.hbm_to_vmem [thread:$0]  (!%p3706_p6), %s4543_s2, 192, %s3695_s10, [#allocation7], %s4529_s9, %s4529_s9, %s4533_s13  }
  0x31   : > { %s4545_s3 = sld [smem:[#allocation26_spill]] }
  0x37   : > { %s3321_s21 = scalar_lea.hbm %s4545_s3, 16 }
  0x38   : > { %p3322_p4 = scmp.ne.s32.totalorder %s4545_s3, %s3321_s21  ;;  %p3328_p12 = scmp.lt.u32.totalorder %s3321_s21, %s4545_s3 }
  0x3a   : > { %p3324_p10 = pnand %p3322_p4, %p3722_p8 }
  0x3c   : > { %p3325_p11 = pneg %p3324_p10 }
  0x3e   : > { %p3330_p13 = pnand %p3328_p12, %p3325_p11 }
  0x40   : > { %3333 = shalt.err (!%p3330_p13)
}
  0x41   : > { %s3334_s10 = scalar_lea.vmem %s3710_s14, 16  ;;  %s3341_s16 = scalar_lea.vmem %s3710_s14, 32 }
  0x42   : > { %p3335_p0 = scmp.ne.s32.totalorder %s3710_s14, %s3334_s10  ;;  %p3342_p7 = scmp.lt.s32.totalorder %s3710_s14, %s3710_s14 }
  0x43   : > { %p3343_p9 = scmp.lt.s32.totalorder %s3341_s16, %s3334_s10 }
  0x44   : > { %p3337_p2 = pnand %p3335_p0, %p3722_p8 }
  0x45   : > { %p3344_p4 = por %p3343_p9, %p3342_p7 }
  0x46   : > { %p3338_p5 = pneg %p3337_p2 }
  0x48   : > { %p3345_p10 = pnand %p3344_p4, %p3338_p5 }
  0x4a   : > { %3348 = shalt.err (!%p3345_p10)
}
  0x4b   : > { %3189 = dma.hbm_to_vmem [thread:$0]  (!%p3706_p6), %s4545_s3, 16, %s3710_s14, [#allocation10]  }
  0x4c   : > { %s4546_s5 = sld [smem:[#allocation28_spill]] }
  0x52   : > { %s3349_s22 = scalar_lea.hbm %s4546_s5, 16 }
  0x53   : > { %p3350_p11 = scmp.ne.s32.totalorder %s4546_s5, %s3349_s22  ;;  %p3356_p0 = scmp.lt.u32.totalorder %s3349_s22, %s4546_s5 }
  0x55   : > { %p3352_p12 = pnand %p3350_p11, %p3722_p8 }
  0x57   : > { %p3353_p13 = pneg %p3352_p12 }
  0x59   : > { %p3358_p2 = pnand %p3356_p0, %p3353_p13 }
  0x5b   : > { %3361 = shalt.err (!%p3358_p2)
}
  0x5c   : > { %s3362_s14 = scalar_lea.vmem %s3712_s17, 16  ;;  %s3369_s16 = scalar_lea.vmem %s3712_s17, 32 }
  0x5d   : > { %p3363_p5 = scmp.ne.s32.totalorder %s3712_s17, %s3362_s14  ;;  %p3370_p4 = scmp.lt.s32.totalorder %s3712_s17, %s3712_s17 }
  0x5e   : > { %p3371_p10 = scmp.lt.s32.totalorder %s3369_s16, %s3362_s14 }
  0x5f   : > { %p3365_p7 = pnand %p3363_p5, %p3722_p8 }
  0x60   : > { %p3372_p11 = por %p3371_p10, %p3370_p4 }
  0x61   : > { %p3366_p9 = pneg %p3365_p7 }
  0x63   : > { %p3373_p12 = pnand %p3372_p11, %p3366_p9 }
  0x65   : > { %3376 = shalt.err (!%p3373_p12)
}
  0x66   : > { %3195 = dma.hbm_to_vmem [thread:$0]  (!%p3706_p6), %s4546_s5, 16, %s3712_s17, [#allocation13]  }
  0x67   : > { %s3614_s20 = smov [#allocation11]   ;;  %s3615_s22 = smov [#allocation14]  }
  0x68   : > { %s276_s21 = sshll.u32 %s3614_s20, 4  ;;  %s298_s24 = sshll.u32 %s3615_s22, 4  ;;  %s277_s21 = int_to_ptr.vmem [resolvable:$true] %s276_s21  ;;  %s299_s24 = int_to_ptr.vmem [resolvable:$true] %s298_s24 }
  0x69   : > { %s4547_s4 = sld [smem:[#allocation27_spill]] }
  0x6f   : > { %s3377_s10 = scalar_lea.hbm %s4547_s4, 16 }
  0x70   : > { %p3378_p13 = scmp.ne.s32.totalorder %s4547_s4, %s3377_s10  ;;  %p3384_p5 = scmp.lt.u32.totalorder %s3377_s10, %s4547_s4 }
  0x72   : > { %p3380_p0 = pnand %p3378_p13, %p3722_p8 }
  0x74   : > { %p3381_p2 = pneg %p3380_p0 }
  0x76   : > { %p3386_p7 = pnand %p3384_p5, %p3381_p2 }
  0x78   : > { %3389 = shalt.err (!%p3386_p7)
}
  0x79   : > { %s3390_s17 = scalar_lea.vmem %s277_s21, 16  ;;  %s3397_s19 = scalar_lea.vmem %s277_s21, 32 }
  0x7a   : > { %p3391_p9 = scmp.ne.s32.totalorder %s277_s21, %s3390_s17  ;;  %p3398_p11 = scmp.lt.s32.totalorder %s277_s21, %s277_s21 }
  0x7b   : > { %p3399_p12 = scmp.lt.s32.totalorder %s3397_s19, %s3390_s17 }
  0x7c   : > { %p3393_p4 = pnand %p3391_p9, %p3722_p8 }
  0x7d   : > { %p3400_p1 = por %p3399_p12, %p3398_p11 }
  0x7e   : > { %p3394_p10 = pneg %p3393_p4 }
  0x80   : > { %p3401_p3 = pnand %p3400_p1, %p3394_p10 }
  0x82   : > { %3404 = shalt.err (!%p3401_p3)
}
  0x83   : > { %3192 = dma.hbm_to_vmem [thread:$0]  (!%p3706_p6), %s4547_s4, 16, %s277_s21, [#allocation10]  }
  0x84   : > { %s4548_s6 = sld [smem:[#allocation29_spill]] }
  0x8a   : > { %s3405_s26 = scalar_lea.hbm %s4548_s6, 16 }
  0x8b   : > { %p3406_p13 = scmp.ne.s32.totalorder %s4548_s6, %s3405_s26  ;;  %p3412_p3 = scmp.lt.u32.totalorder %s3405_s26, %s4548_s6 }
  0x8d   : > { %p3408_p0 = pnand %p3406_p13, %p3722_p8 }
  0x8f   : > { %p3409_p1 = pneg %p3408_p0 }
  0x91   : > { %p3414_p2 = pnand %p3412_p3, %p3409_p1 }
  0x93   : > { %3417 = shalt.err (!%p3414_p2)
}
  0x94   : > { %s3418_s17 = scalar_lea.vmem %s299_s24, 16  ;;  %s3425_s21 = scalar_lea.vmem %s299_s24, 32 }
  0x95   : > { %p3419_p5 = scmp.ne.s32.totalorder %s299_s24, %s3418_s17  ;;  %p3426_p4 = scmp.lt.s32.totalorder %s299_s24, %s299_s24 }
  0x96   : > { %p3427_p10 = scmp.lt.s32.totalorder %s3425_s21, %s3418_s17 }
  0x97   : > { %p3421_p7 = pnand %p3419_p5, %p3722_p8 }
  0x98   : > { %p3428_p11 = por %p3427_p10, %p3426_p4 }
  0x99   : > { %p3422_p9 = pneg %p3421_p7 }
  0x9b   : > { %p3429_p12 = pnand %p3428_p11, %p3422_p9 }
  0x9d   : > { %3432 = shalt.err (!%p3429_p12)
}
  0x9e   : > { %3198 = dma.hbm_to_vmem [thread:$0]  (!%p3706_p6), %s4548_s6, 16, %s299_s24, [#allocation13]  }
  0x9f   : > { %s3616_s22 = smov [#allocation15]   ;;  %s3433_s10 = scalar_lea.hbm %s4527_s7, 1152 }
  0xa0   : > { %s308_s9 = sshll.u32 %s3616_s22, 4  ;;  %p3434_p13 = scmp.ne.s32.totalorder %s4527_s7, %s3433_s10  ;;  %s309_s9 = int_to_ptr.vmem [resolvable:$true] %s308_s9 }
  0xa1   : > { %p3440_p3 = scmp.lt.u32.totalorder %s3433_s10, %s4527_s7 }
  0xa2   : > { %p3436_p0 = pnand %p3434_p13, %p3722_p8 }
  0xa4   : > { %p3437_p1 = pneg %p3436_p0 }
  0xa6   : > { %p3442_p2 = pnand %p3440_p3, %p3437_p1 }
  0xa8   : > { %3445 = shalt.err (!%p3442_p2)
}
  0xa9   : > { %s3446_s24 = scalar_lea.vmem %s309_s9, 1152  ;;  %p3454_p4 = scmp.lt.s32.totalorder %s309_s9, %s309_s9 }
  0xaa   : > { %p3447_p5 = scmp.ne.s32.totalorder %s309_s9, %s3446_s24  ;;  %p3455_p10 = scmp.lt.s32.totalorder %s3446_s24, %s3446_s24 }
  0xac   : > { %p3449_p7 = pnand %p3447_p5, %p3722_p8  ;;  %p3456_p11 = por %p3455_p10, %p3454_p4 }
  0xae   : > { %p3450_p9 = pneg %p3449_p7 }
  0xb0   : > { %p3457_p12 = pnand %p3456_p11, %p3450_p9 }
  0xb2   : > { %3460 = shalt.err (!%p3457_p12)
}
  0xb3   : > { %s4549_s21 = smov 64   ;;  %s2692_s15 = sadd.s32 4294967294, %s3607_s30  }
  0xb4   : > { %3201 = dma.hbm_to_vmem [thread:$0]  (!%p3706_p6), %s4527_s7, 1152, %s309_s9, [#allocation16], %s4549_s21, %s4549_s21, %s4533_s13  }
  0xb5   : > { %s3853_s23 = sadd.s32 1, %s3607_s30   ;;  %s37_s25 = sadd.s32 1, %s3603_s29 }
  0xb6   : > { %s34_s22 = ssub.s32 %s3607_s30, %s3853_s23  ;;  %p44_p13 = scmp.ne.s32.totalorder %s3603_s29, %s3599_s28 }
  0xb7   : > { %p35_p8 = scmp.eq.s32.totalorder %s34_s22, 0  ;;  %p45_p0 = scmp.eq.s32.totalorder %s3607_s30, 0 }
  0xb8   : > { %p50_p1 = scmp.ne.s32.totalorder %s3599_s28, %s3595_s27  ;;  %p4551_p2 = scmp.eq.s32.totalorder %s3690_s11, 0 }
  0xb9   : > { %s3864_s26 = scalar_select %p35_p8, %s3603_s29, %s37_s25  }
  0xba   : > { %p3866_p3 = por %p45_p0, %p44_p13  ;;  %p3872_p6 = por %p4551_p2, %p50_p1 }
  0xbb   : > { %p226_p5 = scmp.eq.s32.totalorder %s3690_s11, 1  ;;  %p232_p7 = scmp.eq.s32.totalorder %s2692_s15, 1 }
  0xbc   : > { %p3219_p9 = scmp.lt.s32.totalorder %s3607_s30, 2  ;;  %s322_s14 = sand.u32 1, %s3603_s29  }
  0xbd   : > { %p3879_p4 = por %p226_p5, %p44_p13  ;;  %p3883_p10 = por %p232_p7, %p50_p1 }
  0xbe   : > { %s2701_s17 = sshll.u32 %s322_s14, 5  ;;  %s2856_s24 = sshll.u32 %s3607_s30, 9 }
  0xbf   : > { %s4553_s16 = scalar_select %p3879_p4, 1, 0 }
  0xc0   : > { %s4554_s18 = scalar_select %p3883_p10, 1, 0 }
  0xc1   : > { %s3891_s22 = scalar_lea.hbm %s4520_s0, %s2856_s24  ;;  %s326_s15 = scalar_lea.vmem [#allocation3], %s2701_s17 }
  0xc2   : > { %s333_s25 = sshll.u32 %s326_s15, 4  ;;  %p3897_p11 = pnand %p3219_p9, %p3866_p3  ;;  %s3893_s25 = int_to_ptr.vmem [resolvable:$true] %s333_s25 }
  0xc3   : > { %s3904_s19 = scalar_lea.hbm %s4521_s1, %s2856_s24  ;;  %s347_s20 = scalar_lea.vmem [#allocation6], %s2701_s17 }
  0xc4   : > { %s3906_s4 = sshll.u32 %s347_s20, 4  ;;  %s3908_s5 = scalar_lea.sflag [#allocation4], %s322_s14  ;;  %s3940_s4 = int_to_ptr.vmem [resolvable:$true] %s3906_s4 }
  0xc5   : > { %s3461_s15 = scalar_lea.hbm %s3891_s22, 512  ;;  %p3463_p8 = pneg %p3897_p11 }
  0xc6   : > { %p3462_p12 = scmp.ne.s32.totalorder %s3891_s22, %s3461_s15  ;;  %s3466_s2 = scalar_lea.hbm %s4520_s0, 1024 }
  0xc7   : > { %p3467_p1 = scmp.lt.u32.totalorder %s3891_s22, %s4520_s0  ;;  %p3468_p3 = scmp.lt.u32.totalorder %s3466_s2, %s3461_s15 }
  0xc8   : > { %p3464_p13 = pnand %p3463_p8, %p3462_p12  ;;  %p3470_p5 = scmp.lt.u32.totalorder %s3461_s15, %s3891_s22 }
  0xc9   : > { %p3469_p2 = por %p3468_p3, %p3467_p1 }
  0xca   : > { %p3465_p0 = pneg %p3464_p13 }
  0xcb   : > { %p3471_p7 = por %p3470_p5, %p3469_p2 }
  0xcd   : > { %p3472_p9 = pnand %p3471_p7, %p3465_p0 }
  0xcf   : > { %3475 = shalt.err (!%p3472_p9)
}
  0xd0   : > { %s3476_s14 = scalar_lea.vmem %s3893_s25, 512  ;;  %s3617_s6 = smov [#allocation3]  }
  0xd1   : > { %p3477_p12 = scmp.ne.s32.totalorder %s3893_s25, %s3476_s14  ;;  %s3481_s17 = sshll.u32 %s3617_s6, 4  ;;  %s3482_s17 = int_to_ptr.vmem [resolvable:$false] %s3481_s17 }
  0xd2   : > { %s3483_s20 = scalar_lea.vmem %s3482_s17, 1024  ;;  %p3484_p4 = scmp.lt.s32.totalorder %s3893_s25, %s3482_s17 }
  0xd3   : > { %p3479_p13 = pnand %p3477_p12, %p3463_p8  ;;  %p3485_p1 = scmp.lt.s32.totalorder %s3483_s20, %s3476_s14 }
  0xd5   : > { %p3480_p10 = pneg %p3479_p13  ;;  %p3486_p3 = por %p3485_p1, %p3484_p4 }
  0xd7   : > { %p3487_p2 = pnand %p3486_p3, %p3480_p10 }
  0xd9   : > { %3490 = shalt.err (!%p3487_p2)
}
  0xda   : > { %s4556_s15 = smov 4   ;;  %s343_s10 = sand.u32 1, %s3607_s30  }
  0xdb   : > { %3205 = dma.hbm_to_vmem [thread:$0]  (!%p3897_p11), %s3891_s22, 512, %s3893_s25, %s3908_s5, %s4549_s21, %s4549_s21, %s4556_s15  }
  0xdc   : > { %s3943_s2 = scalar_lea.sflag [#allocation7], %s343_s10  ;;  %s3491_s3 = scalar_lea.hbm %s3904_s19, 512 }
  0xdd   : > { %p3492_p4 = scmp.ne.s32.totalorder %s3904_s19, %s3491_s3  ;;  %s3496_s6 = scalar_lea.hbm %s4521_s1, 1024 }
  0xde   : > { %p3497_p5 = scmp.lt.u32.totalorder %s3904_s19, %s4521_s1  ;;  %p3498_p7 = scmp.lt.u32.totalorder %s3496_s6, %s3491_s3 }
  0xdf   : > { %p3494_p10 = pnand %p3492_p4, %p3463_p8  ;;  %p3500_p12 = scmp.lt.u32.totalorder %s3491_s3, %s3904_s19 }
  0xe0   : > { %p3499_p9 = por %p3498_p7, %p3497_p5 }
  0xe1   : > { %p3495_p0 = pneg %p3494_p10 }
  0xe2   : > { %p3501_p13 = por %p3500_p12, %p3499_p9 }
  0xe4   : > { %p3502_p1 = pnand %p3501_p13, %p3495_p0 }
  0xe6   : > { %3505 = shalt.err (!%p3502_p1)
}
  0xe7   : > { %s3506_s5 = scalar_lea.vmem %s3940_s4, 512  ;;  %s3618_s22 = smov [#allocation6]  }
  0xe8   : > { %p3507_p3 = scmp.ne.s32.totalorder %s3940_s4, %s3506_s5  ;;  %s3511_s25 = sshll.u32 %s3618_s22, 4  ;;  %s3512_s25 = int_to_ptr.vmem [resolvable:$false] %s3511_s25 }
  0xe9   : > { %s3513_s10 = scalar_lea.vmem %s3512_s25, 1024  ;;  %p3514_p10 = scmp.lt.s32.totalorder %s3940_s4, %s3512_s25 }
  0xea   : > { %p3509_p2 = pnand %p3507_p3, %p3463_p8  ;;  %p3515_p5 = scmp.lt.s32.totalorder %s3513_s10, %s3506_s5 }
  0xec   : > { %p3510_p4 = pneg %p3509_p2  ;;  %p3516_p7 = por %p3515_p5, %p3514_p10 }
  0xee   : > { %p3517_p9 = pnand %p3516_p7, %p3510_p4 }
  0xf0   : > { %3520 = shalt.err (!%p3517_p9)
}
  0xf1   : > { %3208 = dma.hbm_to_vmem [thread:$0]  (!%p3897_p11), %s3904_s19, 512, %s3940_s4, %s3943_s2, %s4549_s21, %s4549_s21, %s4556_s15  }
  0xf2   : > { %p4557_p8 = scmp.ne.s32.totalorder %s4541_s12, 0 }
  0xf3   : > { %s3975_s3 = sand.u32 (!%p4557_p8), 1, %s3599_s28  }
  0xf4   : > { %366 = sbr.rel (%p4557_p8) target bundleno = 993 (0x3e1), region = 52  ;;  %s3978_s24 = sshll.u32 (!%p4557_p8), %s3975_s3, 5 }
  0xf5   : > { %s369_s13 = scalar_lea.sflag (!%p4557_p8), [#allocation4], %s3975_s3  ;;  %s3982_s14 = scalar_lea.vmem (!%p4557_p8), [#allocation3], %s3978_s24 }
  0xfb   : > { %3566 = dma.done.wait (%p3872_p6), %s369_s13, 512  }
  0xfc   : > { %3568 = vsyncadd (%p3872_p6), %s369_s13, 4294966784  ;;  %s377_s4 = sand.u32 1, %s3690_s11   ;;  %s3990_s21 = scalar_lea.vmem [#allocation6], %s3978_s24 }
  0xfd   : > { %s378_s12 = scalar_lea.sflag [#allocation7], %s377_s4 }
  0xfe   : > { %3570 = dma.done.wait (%p3872_p6), %s378_s12, 512  }
  0xff   : > { %3572 = vsyncadd (%p3872_p6), %s378_s12, 4294966784  ;;  %p4558_p11 = scmp.eq.s32.totalorder %s3690_s11, 0 }
 0x101   : > { %3574 = dma.done.wait (%p4558_p11), [#allocation7], 192   ;;  %p4559_p0 = pmov %p4558_p11 }
 0x103   : > { %3576 = vsyncadd (%p4559_p0), [#allocation7], 4294967104  ;;  %p4560_p12 = pmov %p4559_p0 }
 0x104   : > { %p4561_p13 = pmov %p4559_p0 }
 0x105   : > { %3578 = dma.done.wait (%p4560_p12), [#allocation10], 32  }
 0x106   : > { %3580 = vsyncadd (%p4561_p13), [#allocation10], 4294967264  ;;  %p4562_p1 = pmov %p4559_p0 }
 0x107   : > { %p4563_p3 = pmov %p4559_p0 }
 0x108   : > { %3582 = dma.done.wait (%p4562_p1), [#allocation13], 32  }
 0x109   : > { %3584 = vsyncadd (%p4563_p3), [#allocation13], 4294967264  ;;  %p4564_p6 = pmov %p4559_p0 }
 0x10a   : > { %p4565_p2 = pmov %p4559_p0 }
 0x10b   : > { %3586 = dma.done.wait (%p4564_p6), [#allocation16], 1152  }
 0x10c   : > { %3588 = vsyncadd (%p4565_p2), [#allocation16], 4294966144  ;;  %vm570_vm0 = vcmask 1043456   ;;  %v2717_v0 = vld [vmem:[#allocation9] ss:$0 sm:$0xff]  ;;  %s3619_s9 = smov 112  }
 0x10d   : > { %v556_v1 = vld [vmem:[#allocation8 + $0x8] sm:$0xf]  ;;  %522 = vrot.lane.b32.xlu0 %v2717_v0, %s3619_s9  ;;  %v2718_v3 = vld [vmem:[#allocation11] ss:$0 sm:$0xff]  ;;  %v4012_v4 = vld [vmem:[#allocation8] sm:$0xff]   ;;  %vm557_vm1 = vcmask 64512  }
 0x10e   : > { %3152 = vmatprep.subr.msk.bf16.mxu0 %vm570_vm0, %v556_v1  ;;  %v572_v2 = vsel %vm570_vm0, %v556_v1, 0  ;;  %v2876_v5 = vld [vmem:[%s3982_s14] sm:$0xff]   ;;  %v2907_v8 = vld [vmem:[%s3982_s14 + $0x8] sm:$0xff]   ;;  %v2908_v23 = vld [vmem:[%s3982_s14 + $0x10] sm:$0xff]   ;;  %vm645_vm2 = vcmask 130048   ;;  %vm759_vm3 = vcmask 125952  }
 0x10f   : > { %2969 = vmatpush3.bf16.msra.mxu0 %v572_v2  ;;  %v2877_v6 = vunpack.c.l.bf16 %v2876_v5  ;;  %v2878_v7 = vunpack.c.h.bf16 %v2876_v5  ;;  %v2881_v9 = vunpack.c.l.bf16 %v2907_v8  ;;  %v2882_v10 = vunpack.c.h.bf16 %v2907_v8  ;;  %v2909_v27 = vld [vmem:[%s3982_s14 + $0x18] sm:$0xff]   ;;  %v2892_v45 = vld [vmem:[%s3990_s21] sm:$0xff]   ;;  %v2910_v46 = vld [vmem:[%s3990_s21 + $0x8] sm:$0xff]   ;;  %s442_s19 = scalar_lea.vmem [#allocation17], %s3978_s24  ;;  %s2874_s15 = sshll.u32 %s3690_s11, 9 }
 0x110   : > { %2978 = vmatprep.subr.bf16.mxu0 %v4012_v4  ;;  %v2885_v25 = vunpack.c.l.bf16 %v2908_v23  ;;  %v2886_v26 = vunpack.c.h.bf16 %v2908_v23  ;;  %v2889_v29 = vunpack.c.l.bf16 %v2909_v27  ;;  %v2890_v30 = vunpack.c.h.bf16 %v2909_v27  ;;  %v2911_v47 = vld [vmem:[%s3990_s21 + $0x10] sm:$0xff]   ;;  %v2912_v55 = vld [vmem:[%s3990_s21 + $0x18] sm:$0xff]   ;;  %s2539_s2 = sshll.u32 %s442_s19, 4  ;;  %s4471_s20 = scalar_lea.hbm %s4528_s8, %s2874_s15  ;;  %s4473_s2 = int_to_ptr.vmem [resolvable:$true] %s2539_s2 }
 0x111   : > { %533 = vrot.lane.b32.xlu0 %v2718_v3, %s3619_s9  ;;  %v470_v11 = vmul.f32 %v2877_v6, %v2717_v0  ;;  %v471_v12 = vmul.f32 %v2878_v7, %v2717_v0  ;;  %v472_v13 = vmul.f32 %v2881_v9, %v2717_v0  ;;  %v473_v14 = vmul.f32 %v2882_v10, %v2717_v0  ;;  %v4065_v27 = vld [vmem:[#allocation15] sm:$0xff]   ;;  %s2526_s11 = scalar_lea.sflag [#allocation5], %s3975_s3  ;;  %s3521_s5 = scalar_lea.vmem %s4473_s2, 512 }
 0x112   : > { %v474_v31 = vmul.f32 %v2885_v25, %v2717_v0  ;;  %v475_v32 = vmul.f32 %v2886_v26, %v2717_v0  ;;  %v476_v33 = vmul.f32 %v2889_v29, %v2717_v0  ;;  %v477_v34 = vmul.f32 %v2890_v30, %v2717_v0  ;;  %v3273_v25 = vld [vmem:[#allocation15 + $0x8] sm:$0xff]   ;;  %v4062_v26 = vld [vmem:[#allocation15 + $0x20] sm:$0xff]   ;;  %v4070_v29 = vld [vmem:[#allocation12] ss:$0 sm:$0xff]  ;;  %p3522_p4 = scmp.ne.s32.totalorder %s4473_s2, %s3521_s5  ;;  %p4574_p10 = scmp.ne.s32.totalorder %s4553_s16, 0 }
 0x113   : > { %v484_v15 = vadd.f32 %v2718_v3, %v470_v11  ;;  %v485_v16 = vadd.f32 %v2718_v3, %v471_v12  ;;  %v486_v17 = vadd.f32 %v2718_v3, %v472_v13  ;;  %v487_v18 = vadd.f32 %v2718_v3, %v473_v14  ;;  %v4072_v30 = vld [vmem:[#allocation14] ss:$0 sm:$0xff]  ;;  %s3621_s22 = smov [#allocation17]  }
 0x114   : > { %v488_v35 = vadd.f32 %v2718_v3, %v474_v31  ;;  %v489_v36 = vadd.f32 %v2718_v3, %v475_v32  ;;  %v490_v37 = vadd.f32 %v2718_v3, %v476_v33  ;;  %v491_v38 = vadd.f32 %v2718_v3, %v477_v34  ;;  %p3523_p5 = pnand %p3522_p4, %p4574_p10  ;;  %s3525_s25 = sshll.u32 %s3621_s22, 4  ;;  %s3526_s25 = int_to_ptr.vmem [resolvable:$false] %s3525_s25 }
 0x115   : > { %v492_v19 = vmax.f32 %v484_v15, 0.0  ;;  %v493_v20 = vmax.f32 %v485_v16, 0.0  ;;  %v494_v21 = vmax.f32 %v486_v17, 0.0  ;;  %v495_v22 = vmax.f32 %v487_v18, 0.0  ;;  %s3527_s10 = scalar_lea.vmem %s3526_s25, 1024  ;;  %p3528_p9 = scmp.lt.s32.totalorder %s4473_s2, %s3526_s25 }
 0x116   : > { %v496_v39 = vmax.f32 %v488_v35, 0.0  ;;  %v497_v40 = vmax.f32 %v489_v36, 0.0  ;;  %v498_v41 = vmax.f32 %v490_v37, 0.0  ;;  %v499_v42 = vmax.f32 %v491_v38, 0.0  ;;  %p3524_p7 = pneg %p3523_p5  ;;  %p3529_p8 = scmp.lt.s32.totalorder %s3527_s10, %s3521_s5 }
 0x117   : > { %v4018_v24 = vpack.c.bf16 %v493_v20, %v492_v19  ;;  %v4021_v28 = vpack.c.bf16 %v495_v22, %v494_v21  ;;  %v2893_v48 = vunpack.c.l.bf16 %v2892_v45  ;;  %v2894_v49 = vunpack.c.h.bf16 %v2892_v45 }
 0x118   : > { %v502_v43 = vpack.c.bf16 %v497_v40, %v496_v39  ;;  %v503_v44 = vpack.c.bf16 %v499_v42, %v498_v41  ;;  %v2897_v50 = vunpack.c.l.bf16 %v2910_v46  ;;  %v2898_v51 = vunpack.c.h.bf16 %v2910_v46  ;;  %p3530_p11 = por %p3529_p8, %p3528_p9 }
 0x119   : > { %v2901_v53 = vunpack.c.l.bf16 %v2911_v47  ;;  %v2902_v54 = vunpack.c.h.bf16 %v2911_v47  ;;  %v2905_v63 = vunpack.c.l.bf16 %v2912_v55  ;;  %v2906_v0 = vunpack.c.h.bf16 %v2912_v55 }
 0x11a   : > { %vm761_vm4 = vcmask 122880   ;;  %vm895_vm5 = vsmask.f32 7938  ;;  %vm901_vm6 = vsmask.f32 256  ;;  %vm1306_vm12 = vcmask 1042432   ;;  %p3531_p0 = pnand %p3530_p11, %p3524_p7 }
 0x11b   : > { %vm966_vm7 = vsmask.f32 3328  ;;  %vm967_vm8 = vsmask.f32 7440  ;;  %vm4097_vm9 = vmand %vm759_vm3, %vm895_vm5  ;;  %vm1307_vm13 = vcmask 1046532   ;;  %vm2516_vm15 = vcmask 60416  }
 0x11c   : > { %vm4104_vm10 = vmand %vm761_vm4, %vm901_vm6 }
 0x11d   : > { %vm4140_vm11 = vmor %vm966_vm7, %vm967_vm8 }
 0x11e   : > { %vm4304_vm14 = vmor %vm1306_vm12, %vm1307_vm13 }
 0x17f   : > { %v523_v52 = vpop.permute.xlu0 %522 }
 0x180   : > { %v525_v56 = vmul.f32 %v2893_v48, %v523_v52  ;;  %v526_v57 = vmul.f32 %v2894_v49, %v523_v52  ;;  %v527_v58 = vmul.f32 %v2897_v50, %v523_v52  ;;  %v528_v59 = vmul.f32 %v2898_v51, %v523_v52 }
 0x181   : > { %v529_v61 = vmul.f32 %v2901_v53, %v523_v52  ;;  %v530_v62 = vmul.f32 %v2902_v54, %v523_v52  ;;  %v531_v14 = vmul.f32 %v2905_v63, %v523_v52  ;;  %v532_v15 = vmul.f32 %v2906_v0, %v523_v52 }
 0x183   : > { %v534_v60 = vpop.permute.xlu0 %533 }
 0x184   : > { %v536_v1 = vadd.f32 %v534_v60, %v525_v56  ;;  %v537_v2 = vadd.f32 %v534_v60, %v526_v57  ;;  %v538_v3 = vadd.f32 %v534_v60, %v527_v58  ;;  %v539_v5 = vadd.f32 %v534_v60, %v528_v59 }
 0x185   : > { %v540_v6 = vadd.f32 %v534_v60, %v529_v61  ;;  %v541_v7 = vadd.f32 %v534_v60, %v530_v62  ;;  %v542_v18 = vadd.f32 %v534_v60, %v531_v14  ;;  %v543_v19 = vadd.f32 %v534_v60, %v532_v15 }
 0x186   : > { %v544_v8 = vmax.f32 %v536_v1, 0.0  ;;  %v545_v9 = vmax.f32 %v537_v2, 0.0  ;;  %v546_v10 = vmax.f32 %v538_v3, 0.0  ;;  %v547_v11 = vmax.f32 %v539_v5, 0.0 }
 0x187   : > { %v548_v12 = vmax.f32 %v540_v6, 0.0  ;;  %v549_v13 = vmax.f32 %v541_v7, 0.0  ;;  %v550_v21 = vmax.f32 %v542_v18, 0.0  ;;  %v551_v22 = vmax.f32 %v543_v19, 0.0 }
 0x188   : > { %v552_v16 = vpack.c.bf16 %v545_v9, %v544_v8  ;;  %v553_v17 = vpack.c.bf16 %v547_v11, %v546_v10 }
 0x189   : > { %v554_v20 = vpack.c.bf16 %v549_v13, %v548_v12  ;;  %v555_v23 = vpack.c.bf16 %v551_v22, %v550_v21 }
 0x18a   : > { %2970 = vmatprep.mubr.msk.bf16.mxu0 %vm557_vm1, %v552_v16 }
 0x18b   : > { %2971 = vmatmul.mubr.msk.bf16.vlgmr.msra.gmra.mrb[0].mxu0 %vm557_vm1, %v553_v17 }
 0x18c   : > { %2979 = vmatpush3.bf16.msra.mxu0 %v4012_v4  ;;  %2974 = vmatprep.mubr.msk.bf16.mxu0 %vm557_vm1, %v554_v20  ;;  %v3620_v4 = vmov 0  }
 0x18d   : > { %767 = vst.msk [vmem:[#allocation2 + $0x18] sm:$0xf] %vm759_vm3, %v3620_v4  ;;  %760 = vst.msk [vmem:[#allocation2] sm:$0xf] %vm759_vm3, %v3620_v4  ;;  %2988 = vmatprep.subr.bf16.mxu0 %v3273_v25 }
 0x18e   : > { %768 = vst.msk [vmem:[#allocation2 + $0x1c] sm:$0x1] %vm761_vm4, %v3620_v4  ;;  %762 = vst.msk [vmem:[#allocation2 + $0x4] sm:$0x1] %vm761_vm4, %v3620_v4 }
 0x18f   : > { %763 = vst.msk [vmem:[#allocation2 + $0x8] sm:$0xf] %vm759_vm3, %v3620_v4  ;;  %765 = vst.msk [vmem:[#allocation2 + $0x10] sm:$0xf] %vm759_vm3, %v3620_v4 }
 0x190   : > { %764 = vst.msk [vmem:[#allocation2 + $0xc] sm:$0x1] %vm761_vm4, %v3620_v4  ;;  %766 = vst.msk [vmem:[#allocation2 + $0x14] sm:$0x1] %vm761_vm4, %v3620_v4 }
 0x191   : > { %769 = vst.msk [vmem:[#allocation2 + $0x20] sm:$0xf] %vm759_vm3, %v3620_v4  ;;  %771 = vst.msk [vmem:[#allocation2 + $0x28] sm:$0xf] %vm759_vm3, %v3620_v4 }
 0x192   : > { %770 = vst.msk [vmem:[#allocation2 + $0x24] sm:$0x1] %vm761_vm4, %v3620_v4  ;;  %772 = vst.msk [vmem:[#allocation2 + $0x2c] sm:$0x1] %vm761_vm4, %v3620_v4 }
 0x193   : > { %2975 = vmatmul.mubr.msk.bf16.gmra.mrb[4].mxu0 %vm557_vm1, %v555_v23  ;;  %773 = vst.msk [vmem:[#allocation2 + $0x30] sm:$0xf] %vm759_vm3, %v3620_v4  ;;  %775 = vst.msk [vmem:[#allocation2 + $0x38] sm:$0xf] %vm759_vm3, %v3620_v4 }
 0x194   : > { %2980 = vmatprep.mubr.msk.bf16.mxu0 %vm645_vm2, %v4018_v24  ;;  %774 = vst.msk [vmem:[#allocation2 + $0x34] sm:$0x1] %vm761_vm4, %v3620_v4  ;;  %776 = vst.msk [vmem:[#allocation2 + $0x3c] sm:$0x1] %vm761_vm4, %v3620_v4  ;;  %v4058_v24 = vld [vmem:[#allocation15 + $0x18] sm:$0xff]  }
 0x195   : > { %777 = vst.msk [vmem:[#allocation2 + $0x40] sm:$0xf] %vm759_vm3, %v3620_v4  ;;  %779 = vst.msk [vmem:[#allocation2 + $0x48] sm:$0xf] %vm759_vm3, %v3620_v4  ;;  %3078 = vmatprep.subr.bf16.mxu1 %v4058_v24  ;;  %v4088_v51 = vld [vmem:[#allocation2 + $0x4] sm:$0x1] }
 0x196   : > { %778 = vst.msk [vmem:[#allocation2 + $0x44] sm:$0x1] %vm761_vm4, %v3620_v4  ;;  %780 = vst.msk [vmem:[#allocation2 + $0x4c] sm:$0x1] %vm761_vm4, %v3620_v4  ;;  %3079 = vmatpush3.bf16.msra.mxu1 %v4058_v24  ;;  %v979_v56 = vshll.u32 %v4088_v51, 16 }
 0x197   : > { %3028 = vmatprep.subr.bf16.mxu1 %v4062_v26  ;;  %v912_v62 = vld [vmem:[#allocation2 + $0x18] sm:$0xf]  ;;  %v915_v63 = vld [vmem:[#allocation2 + $0x1c] sm:$0x1]  ;;  %v897_v8 = vld [vmem:[#allocation2 + $0x8] sm:$0xf] }
 0x198   : > { %v903_v15 = vld [vmem:[#allocation2 + $0xc] sm:$0x1]  ;;  %v918_v22 = vld [vmem:[#allocation2 + $0x20] sm:$0xf] }
 0x19b   : > { %2981 = vmatmul.mubr.msk.bf16.vlgmr.msra.gmra.mrb[0].mxu0 %vm645_vm2, %v4021_v28  ;;  %v4068_v28 = vld [vmem:[#allocation2] sm:$0xf] }
 0x19c   : > { %2984 = vmatprep.mubr.msk.bf16.mxu0 %vm645_vm2, %v502_v43  ;;  %2989 = vmatpush3.bf16.msra.mxu0 %v3273_v25  ;;  %v970_v32 = vshrl.u32 %v4068_v28, 16  ;;  %v973_v33 = vshll.u32 %v4068_v28, 16 }
 0x19d   : > { %2998 = vmatprep.subr.bf16.mxu0 %v4065_v27 }
 0x19e   : > { %v4082_v43 = vrot.slane %v970_v32, 4 }
 0x1a3   : > { %2985 = vmatmul.mubr.msk.bf16.gmra.mrb[4].mxu0 %vm645_vm2, %v503_v44  ;;  %v4084_v44 = vrot.slane %v973_v33, 5 }
 0x1a5   : > { %v976_v55 = vor.u32 %v4084_v44, %v4082_v43 }
 0x26e   : > { %v2982_v31 = vpop.f32.mrb[0].mxu0 }
 0x26f   : > { %v731_v34 = vmul.f32 %v2982_v31, %v4070_v29  ;;  %v692_v35 = vpop.f32.mrb[1].mxu0  ;;  %v921_v31 = vld [vmem:[#allocation2 + $0x24] sm:$0x1] }
 0x270   : > { %v729_v36 = vmul.f32 %v4070_v29, %v692_v35  ;;  %v2983_v37 = vpop.f32.mrb[2].mxu0 }
 0x271   : > { %v745_v38 = vadd.f32 %v4072_v30, %v731_v34  ;;  %v732_v39 = vmul.f32 %v2983_v37, %v4070_v29  ;;  %v695_v40 = vpop.f32.mrb[3].mxu0 }
 0x272   : > { %v743_v41 = vadd.f32 %v4072_v30, %v729_v36  ;;  %v730_v42 = vmul.f32 %v4070_v29, %v695_v40 }
 0x273   : > { %v753_v45 = vmax.f32 %v745_v38, 0.0  ;;  %v746_v46 = vadd.f32 %v4072_v30, %v732_v39  ;;  %v906_v38 = vld [vmem:[#allocation2 + $0x10] sm:$0xf]  ;;  %v909_v39 = vld [vmem:[#allocation2 + $0x14] sm:$0x1] }
 0x274   : > { %v751_v47 = vmax.f32 %v743_v41, 0.0  ;;  %v744_v48 = vadd.f32 %v4072_v30, %v730_v42 }
 0x275   : > { %v2860_v49 = vpack.c.bf16 %v753_v45, %v753_v45  ;;  %v754_v50 = vmax.f32 %v746_v46, 0.0 }
 0x276   : > { %v2858_v52 = vpack.c.bf16 %v751_v47, %v751_v47  ;;  %v752_v53 = vmax.f32 %v744_v48, 0.0  ;;  %v2986_v54 = vpop.f32.mrb[4].mxu0 }
 0x277   : > { %v830_v57 = vshrl.u32 %v2860_v49, 16  ;;  %v833_v58 = vshll.u32 %v2860_v49, 16  ;;  %v2861_v59 = vpack.c.bf16 %v754_v50, %v754_v50  ;;  %v735_v60 = vmul.f32 %v2986_v54, %v4070_v29  ;;  %v708_v61 = vpop.f32.mrb[5].mxu0 }
 0x278   : > { %v814_v0 = vshrl.u32 %v2858_v52, 16  ;;  %v817_v1 = vshll.u32 %v2858_v52, 16  ;;  %v2859_v2 = vpack.c.bf16 %v752_v53, %v752_v53  ;;  %v733_v3 = vmul.f32 %v4070_v29, %v708_v61  ;;  %v2987_v5 = vpop.f32.mrb[6].mxu0 }
 0x279   : > { %v832_v6 = vrot.slane %v830_v57, 7  ;;  %v838_v9 = vshrl.u32 %v2861_v59, 16  ;;  %v841_v10 = vshll.u32 %v2861_v59, 16  ;;  %v749_v11 = vadd.f32 %v4072_v30, %v735_v60  ;;  %v711_v12 = vpop.f32.mrb[7].mxu0  ;;  %v936_v59 = vld [vmem:[#allocation2 + $0x38] sm:$0xf] }
 0x27a   : > { %v816_v14 = vrot.slane %v814_v0, 7  ;;  %v822_v16 = vshrl.u32 %v2859_v2, 16  ;;  %v825_v17 = vshll.u32 %v2859_v2, 16  ;;  %v747_v18 = vadd.f32 %v4072_v30, %v733_v3 }
 0x27b   : > { %v835_v19 = vor.u32 %v833_v58, %v832_v6  ;;  %v836_v20 = vrot.slane %v832_v6, 4  ;;  %v840_v21 = vrot.slane %v838_v9, 7  ;;  %v757_v23 = vmax.f32 %v749_v11, 0.0  ;;  %v927_v6 = vld [vmem:[#allocation2 + $0x2c] sm:$0x1] }
 0x27c   : > { %v819_v4 = vor.u32 %v817_v1, %v816_v14  ;;  %v820_v25 = vrot.slane %v816_v14, 4  ;;  %v824_v32 = vrot.slane %v822_v16, 7  ;;  %v755_v33 = vmax.f32 %v747_v18, 0.0  ;;  %v939_v1 = vld [vmem:[#allocation2 + $0x3c] sm:$0x1] }
 0x27d   : > { %v913_v34 = vsel %vm4097_vm9, %v835_v19, %v912_v62  ;;  %v916_v35 = vsel %vm4104_vm10, %v836_v20, %v915_v63  ;;  %v843_v36 = vor.u32 %v841_v10, %v840_v21  ;;  %v844_v37 = vrot.slane %v840_v21, 4 }
 0x27e   : > { %914 = vst [vmem:[#allocation2 + $0x18] sm:$0xf] %v913_v34  ;;  %917 = vst [vmem:[#allocation2 + $0x1c] sm:$0x1] %v916_v35  ;;  %v898_v40 = vsel %vm4097_vm9, %v819_v4, %v897_v8  ;;  %v904_v41 = vsel %vm4104_vm10, %v820_v25, %v903_v15  ;;  %v827_v42 = vor.u32 %v825_v17, %v824_v32  ;;  %v828_v45 = vrot.slane %v824_v32, 4 }
 0x27f   : > { %899 = vst [vmem:[#allocation2 + $0x8] sm:$0xf] %v898_v40  ;;  %905 = vst [vmem:[#allocation2 + $0xc] sm:$0x1] %v904_v41  ;;  %v919_v46 = vsel %vm4097_vm9, %v843_v36, %v918_v22  ;;  %v922_v47 = vsel %vm4104_vm10, %v844_v37, %v921_v31  ;;  %v2864_v48 = vpack.c.bf16 %v757_v23, %v757_v23  ;;  %v4132_v62 = vrot.slane %v976_v55, 4 }
 0x280   : > { %v2862_v49 = vpack.c.bf16 %v755_v33, %v755_v33  ;;  %920 = vst [vmem:[#allocation2 + $0x20] sm:$0xf] %v919_v46  ;;  %923 = vst [vmem:[#allocation2 + $0x24] sm:$0x1] %v922_v47  ;;  %v907_v50 = vsel %vm4097_vm9, %v827_v42, %v906_v38  ;;  %v910_v52 = vsel %vm4104_vm10, %v828_v45, %v909_v39  ;;  %v4136_v63 = vrot.slane %v979_v56, 5 }
 0x281   : > { %v736_v53 = vmul.f32 %v2987_v5, %v4070_v29  ;;  %v734_v54 = vmul.f32 %v4070_v29, %v711_v12  ;;  %908 = vst [vmem:[#allocation2 + $0x10] sm:$0xf] %v907_v50  ;;  %911 = vst [vmem:[#allocation2 + $0x14] sm:$0x1] %v910_v52  ;;  %v862_v57 = vshrl.u32 %v2864_v48, 16  ;;  %v865_v29 = vshll.u32 %v2864_v48, 16 }
 0x282   : > { %v846_v58 = vshrl.u32 %v2862_v49, 16  ;;  %v849_v3 = vshll.u32 %v2862_v49, 16  ;;  %v982_v16 = vsel %vm4140_vm11, %v4132_v62, %v4136_v63  ;;  %v942_v32 = vld [vmem:[#allocation2 + $0x40] sm:$0xf]  ;;  %v945_v33 = vld [vmem:[#allocation2 + $0x44] sm:$0x1] }
 0x283   : > { %v750_v60 = vadd.f32 %v4072_v30, %v736_v53  ;;  %v748_v61 = vadd.f32 %v4072_v30, %v734_v54  ;;  %v864_v0 = vrot.slane %v862_v57, 7  ;;  %v924_v30 = vld [vmem:[#allocation2 + $0x28] sm:$0xf]  ;;  %v930_v42 = vld [vmem:[#allocation2 + $0x30] sm:$0xf] }
 0x284   : > { %v848_v2 = vrot.slane %v846_v58, 7  ;;  %v933_v46 = vld [vmem:[#allocation2 + $0x34] sm:$0x1] }
 0x285   : > { %v758_v43 = vmax.f32 %v750_v60, 0.0  ;;  %v756_v44 = vmax.f32 %v748_v61, 0.0  ;;  %v867_v55 = vor.u32 %v865_v29, %v864_v0  ;;  %v868_v8 = vrot.slane %v864_v0, 4  ;;  %v4144_v10 = vld [vmem:[#allocation2 + $0x18] sm:$0xf] }
 0x286   : > { %v851_v9 = vor.u32 %v849_v3, %v848_v2  ;;  %v852_v56 = vrot.slane %v848_v2, 4  ;;  %v4146_v14 = vld [vmem:[#allocation2 + $0x8] sm:$0xf]  ;;  %v4148_v15 = vld [vmem:[#allocation2 + $0xc] sm:$0x1]  ;;  %v1012_v17 = vshrl.u32 %v4144_v10, 16 }
 0x287   : > { %v2865_v11 = vpack.c.bf16 %v758_v43, %v758_v43  ;;  %v2863_v12 = vpack.c.bf16 %v756_v44, %v756_v44  ;;  %v937_v18 = vsel %vm4097_vm9, %v867_v55, %v936_v59  ;;  %v940_v19 = vsel %vm4104_vm10, %v868_v8, %v939_v1  ;;  %v4174_v58 = vld [vmem:[#allocation2 + $0x1c] sm:$0x1]  ;;  %v1569_v59 = vld [vmem:[#allocation2 + $0x8] sm:$0xf]  ;;  %v4184_v43 = vld [vmem:[#allocation2 + $0xc] sm:$0x1] }
 0x288   : > { %v925_v20 = vsel %vm4097_vm9, %v851_v9, %v924_v30  ;;  %v928_v21 = vsel %vm4104_vm10, %v852_v56, %v927_v6  ;;  %938 = vst [vmem:[#allocation2 + $0x38] sm:$0xf] %v937_v18  ;;  %941 = vst [vmem:[#allocation2 + $0x3c] sm:$0x1] %v940_v19  ;;  %v4163_v25 = vld [vmem:[#allocation2 + $0x10] sm:$0xf] }
 0x289   : > { %926 = vst [vmem:[#allocation2 + $0x28] sm:$0xf] %v925_v20  ;;  %929 = vst [vmem:[#allocation2 + $0x2c] sm:$0x1] %v928_v21  ;;  %v870_v22 = vshrl.u32 %v2865_v11, 16  ;;  %v873_v23 = vshll.u32 %v2865_v11, 16 }
 0x28a   : > { %v854_v4 = vshrl.u32 %v2863_v12, 16  ;;  %v1015_v31 = vshll.u32 %v4144_v10, 16  ;;  %v984_v34 = vshrl.u32 %v4146_v14, 16  ;;  %v987_v35 = vshll.u32 %v4146_v14, 16  ;;  %v4169_v37 = vld [vmem:[#allocation2 + $0x14] sm:$0x1] }
 0x28b   : > { %v993_v36 = vshll.u32 %v4148_v15, 16  ;;  %v998_v38 = vshrl.u32 %v4163_v25, 16  ;;  %v872_v39 = vrot.slane %v870_v22, 7  ;;  %v857_v41 = vshll.u32 %v2863_v12, 16  ;;  %v1571_v1 = vld [vmem:[#allocation2 + $0x10] sm:$0xf] }
 0x28c   : > { %v856_v40 = vrot.slane %v854_v4, 7  ;;  %v1001_v45 = vshll.u32 %v4163_v25, 16  ;;  %v986_v47 = vrot.slane %v984_v34, 4  ;;  %v989_v48 = vrot.slane %v987_v35, 5  ;;  %v4187_v56 = vld [vmem:[#allocation2 + $0x20] sm:$0xf] }
 0x28d   : > { %v1000_v49 = vrot.slane %v998_v38, 4  ;;  %v1007_v50 = vshll.u32 %v4169_v37, 16  ;;  %v875_v52 = vor.u32 %v873_v23, %v872_v39  ;;  %v876_v53 = vrot.slane %v872_v39, 4  ;;  %v4191_v20 = vld [vmem:[#allocation2 + $0x14] sm:$0x1] }
 0x28e   : > { %v859_v54 = vor.u32 %v857_v41, %v856_v40  ;;  %v860_v57 = vrot.slane %v856_v40, 4  ;;  %v990_v60 = vor.u32 %v989_v48, %v986_v47  ;;  %v995_v61 = vrot.slane %v993_v36, 5  ;;  %v4194_v22 = vld [vmem:[#allocation2 + $0x24] sm:$0x1]  ;;  %v4215_v47 = vld [vmem:[#allocation15 + $0x28] sm:$0xff]   ;;  %v4217_v48 = vld [vmem:[#allocation15 + $0x10] sm:$0xff]  }
 0x28f   : > { %v1003_v0 = vrot.slane %v1001_v45, 5  ;;  %v1014_v29 = vrot.slane %v1012_v17, 4  ;;  %v943_v2 = vsel %vm4097_vm9, %v875_v52, %v942_v32  ;;  %v946_v3 = vsel %vm4104_vm10, %v876_v53, %v945_v33 }
 0x290   : > { %v931_v30 = vsel %vm4097_vm9, %v859_v54, %v930_v42  ;;  %v934_v6 = vsel %vm4104_vm10, %v860_v57, %v933_v46  ;;  %944 = vst [vmem:[#allocation2 + $0x40] sm:$0xf] %v943_v2  ;;  %947 = vst [vmem:[#allocation2 + $0x44] sm:$0x1] %v946_v3  ;;  %v991_v44 = vrot.slane %v990_v60, 4  ;;  %v1017_v8 = vrot.slane %v1015_v31, 5 }
 0x291   : > { %932 = vst [vmem:[#allocation2 + $0x30] sm:$0xf] %v931_v30  ;;  %935 = vst [vmem:[#allocation2 + $0x34] sm:$0x1] %v934_v6  ;;  %v1004_v55 = vor.u32 %v1003_v0, %v1000_v49  ;;  %v1021_v9 = vshll.u32 %v4174_v58, 16  ;;  %v1009_v11 = vrot.slane %v1007_v50, 5 }
 0x292   : > { %v1586_v12 = vshrl.u32 %v1569_v59, 16  ;;  %v1589_v7 = vshll.u32 %v1569_v59, 16  ;;  %v1600_v17 = vshrl.u32 %v1571_v1, 16  ;;  %v996_v13 = vsel %vm4140_vm11, %v991_v44, %v995_v61  ;;  %v4201_v33 = vld [vmem:[#allocation2 + $0x28] sm:$0xf] }
 0x293   : > { %v1005_v18 = vrot.slane %v1004_v55, 4  ;;  %v1018_v19 = vor.u32 %v1017_v8, %v1014_v29  ;;  %v1595_v21 = vshll.u32 %v4184_v43, 16  ;;  %v2738_v23 = vcombine.low %v982_v16, %v996_v13  ;;  %v4211_v42 = vld [vmem:[#allocation2 + $0x2c] sm:$0x1]  ;;  %v4219_v59 = vld [vmem:[#allocation2 + $0x38] sm:$0xf] }
 0x294   : > { %v1023_v4 = vrot.slane %v1021_v9, 5  ;;  %v1588_v31 = vrot.slane %v1586_v12, 4  ;;  %v1591_v32 = vrot.slane %v1589_v7, 5  ;;  %v1602_v36 = vrot.slane %v1600_v17, 4  ;;  %v1573_v13 = vld [vmem:[#allocation2 + $0x18] sm:$0xf] }
 0x295   : > { %v1010_v34 = vsel %vm4140_vm11, %v1005_v18, %v1009_v11  ;;  %v1019_v35 = vrot.slane %v1018_v19, 4  ;;  %v1603_v38 = vshll.u32 %v1571_v1, 16  ;;  %2990 = vmatprep.mubr.msk.bf16.mxu0 %vm645_vm2, %v2738_v23  ;;  %v1609_v40 = vshll.u32 %v4191_v20, 16 }
 0x296   : > { %v1592_v39 = vor.u32 %v1591_v32, %v1588_v31  ;;  %v1026_v41 = vshrl.u32 %v4187_v56, 16  ;;  %v1029_v62 = vshll.u32 %v4187_v56, 16  ;;  %v1035_v45 = vshll.u32 %v4194_v22, 16 }
 0x297   : > { %v1024_v63 = vsel %vm4140_vm11, %v1019_v35, %v1023_v4  ;;  %v1605_v16 = vrot.slane %v1603_v38, 5  ;;  %v1040_v46 = vshrl.u32 %v4201_v33, 16  ;;  %v3276_v52 = vld [vmem:[#allocation2 + $0x38] ss:$8 sps:$4 sm:$0xff]   ;;  %v1597_v60 = vrot.slane %v1595_v21, 5 }
 0x298   : > { %v3274_v49 = vld [vmem:[#allocation2 + $0x28] ss:$8 sps:$4 sm:$0xff]   ;;  %v2739_v50 = vcombine.low %v1010_v34, %v1024_v63  ;;  %v1593_v53 = vrot.slane %v1592_v39, 4  ;;  %v1028_v57 = vrot.slane %v1026_v41, 4  ;;  %v1031_v61 = vrot.slane %v1029_v62, 5 }
 0x299   : > { %v1606_v54 = vor.u32 %v1605_v16, %v1602_v36  ;;  %3024 = vmatprep.mubr.msk.bf16.mxu1 %vm645_vm2, %v3274_v49  ;;  %v1042_v0 = vrot.slane %v1040_v46, 4  ;;  %v1043_v29 = vshll.u32 %v4201_v33, 16  ;;  %v4224_v1 = vld [vmem:[#allocation2 + $0x30] sm:$0xf]  ;;  %v1611_v3 = vrot.slane %v1609_v40, 5 }
 0x29a   : > { %2991 = vmatmul.mubr.msk.bf16.vlgmr.msra.gmra.mrb[8].mxu0 %vm645_vm2, %v2739_v50  ;;  %3025 = vmatmul.mubr.msk.bf16.vlgmr.msra.gmra.mrb[0].mxu1 %vm645_vm2, %v3276_v52  ;;  %v1049_v30 = vshll.u32 %v4211_v42, 16  ;;  %v1054_v6 = vshrl.u32 %v4224_v1, 16  ;;  %v1032_v44 = vor.u32 %v1031_v61, %v1028_v57  ;;  %v1037_v55 = vrot.slane %v1035_v45, 5  ;;  %v4231_v9 = vld [vmem:[#allocation2 + $0x34] sm:$0x1] }
 0x29b   : > { %v1607_v2 = vrot.slane %v1606_v54, 4  ;;  %2999 = vmatpush3.bf16.msra.mxu0 %v4065_v27  ;;  %3029 = vmatpush3.bf16.msra.mxu1 %v4062_v26  ;;  %v1045_v8 = vrot.slane %v1043_v29, 5  ;;  %v1057_v11 = vshll.u32 %v4224_v1, 16  ;;  %v1598_v12 = vsel %vm4140_vm11, %v1593_v53, %v1597_v60  ;;  %v4240_v27 = vld [vmem:[#allocation2 + $0x3c] sm:$0x1] }
 0x29c   : > { %3008 = vmatprep.subr.bf16.mxu0 %v4217_v48  ;;  %3038 = vmatprep.subr.bf16.mxu1 %v4215_v47  ;;  %v1056_v26 = vrot.slane %v1054_v6, 4  ;;  %v1068_v17 = vshrl.u32 %v4219_v59, 16  ;;  %v1033_v19 = vrot.slane %v1032_v44, 4  ;;  %v1051_v4 = vrot.slane %v1049_v30, 5  ;;  %v1575_v35 = vld [vmem:[#allocation2 + $0x20] sm:$0xf] }
 0x29d   : > { %v1612_v7 = vsel %vm4140_vm11, %v1607_v2, %v1611_v3  ;;  %v1046_v21 = vor.u32 %v1045_v8, %v1042_v0  ;;  %v1059_v23 = vrot.slane %v1057_v11, 5  ;;  %v1063_v31 = vshll.u32 %v4231_v9, 16  ;;  %v4249_v63 = vld [vmem:[#allocation2 + $0x1c] sm:$0x1]  ;;  %v4253_v49 = vld [vmem:[#allocation2 + $0x24] sm:$0x1] }
 0x29e   : > { %v2782_v18 = vcombine.low %v1598_v12, %v1612_v7  ;;  %v1070_v32 = vrot.slane %v1068_v17, 4  ;;  %v1071_v34 = vshll.u32 %v4219_v59, 16  ;;  %v1077_v39 = vshll.u32 %v4240_v27, 16  ;;  %v1577_v61 = vld [vmem:[#allocation2 + $0x28] sm:$0xf] }
 0x29f   : > { %v1047_v36 = vrot.slane %v1046_v21, 4  ;;  %v1060_v38 = vor.u32 %v1059_v23, %v1056_v26  ;;  %v1614_v40 = vshrl.u32 %v1573_v13, 16  ;;  %v1038_v41 = vsel %vm4140_vm11, %v1033_v19, %v1037_v55  ;;  %v1579_v30 = vld [vmem:[#allocation2 + $0x30] sm:$0xf]  ;;  %v1581_v21 = vld [vmem:[#allocation2 + $0x38] sm:$0xf] }
 0x2a0   : > { %3030 = vmatprep.mubr.msk.bf16.mxu1 %vm645_vm2, %v2782_v18  ;;  %v1073_v62 = vrot.slane %v1071_v34, 5  ;;  %v1617_v16 = vshll.u32 %v1573_v13, 16  ;;  %v1628_v52 = vshrl.u32 %v1575_v35, 16  ;;  %v1065_v54 = vrot.slane %v1063_v31, 5  ;;  %v4264_v18 = vld [vmem:[#allocation2 + $0x2c] sm:$0x1] }
 0x2a1   : > { %v1052_v45 = vsel %vm4140_vm11, %v1047_v36, %v1051_v4  ;;  %v1061_v46 = vrot.slane %v1060_v38, 4  ;;  %v1616_v50 = vrot.slane %v1614_v40, 4  ;;  %v1079_v0 = vrot.slane %v1077_v39, 5  ;;  %v4266_v31 = vld [vmem:[#allocation2 + $0x34] sm:$0x1] }
 0x2a2   : > { %v2740_v53 = vcombine.low %v1038_v41, %v1052_v45  ;;  %v1074_v57 = vor.u32 %v1073_v62, %v1070_v32  ;;  %v1619_v60 = vrot.slane %v1617_v16, 5  ;;  %v1623_v29 = vshll.u32 %v4249_v63, 16  ;;  %v4268_v41 = vld [vmem:[#allocation2] sm:$0xe] }
 0x2a3   : > { %v1630_v2 = vrot.slane %v1628_v52, 4  ;;  %v1631_v3 = vshll.u32 %v1575_v35, 16  ;;  %v1066_v6 = vsel %vm4140_vm11, %v1061_v46, %v1065_v54  ;;  %v1637_v8 = vshll.u32 %v4253_v49, 16  ;;  %v1583_v35 = vld [vmem:[#allocation2 + $0x40] sm:$0xf] }
 0x2a4   : > { %2994 = vmatprep.mubr.msk.bf16.mxu0 %vm645_vm2, %v2740_v53  ;;  %v1075_v44 = vrot.slane %v1074_v57, 4  ;;  %v1620_v55 = vor.u32 %v1619_v60, %v1616_v50  ;;  %v1642_v12 = vshrl.u32 %v1577_v61, 16  ;;  %v1645_v7 = vshll.u32 %v1577_v61, 16  ;;  %v4278_v60 = vld [vmem:[#allocation15 + $0x30] sm:$0xff]  }
 0x2a5   : > { %v1633_v11 = vrot.slane %v1631_v3, 5  ;;  %v2747_v13 = vcombine.low %v4068_v28, %v4146_v14  ;;  %v1656_v19 = vshrl.u32 %v1579_v30, 16  ;;  %v1625_v36 = vrot.slane %v1623_v29, 5  ;;  %v4281_v3 = vld [vmem:[#allocation2 + $0x3c] sm:$0x1] }
 0x2a6   : > { %v1080_v26 = vsel %vm4140_vm11, %v1075_v44, %v1079_v0  ;;  %v1621_v17 = vrot.slane %v1620_v55, 4  ;;  %v1644_v32 = vrot.slane %v1642_v12, 4  ;;  %v1647_v34 = vrot.slane %v1645_v7, 5  ;;  %v1804_v12 = vld [vmem:[#allocation2 + $0x10] sm:$0xe] }
 0x2a7   : > { %v2741_v23 = vcombine.low %v1066_v6, %v1080_v26  ;;  %v1634_v4 = vor.u32 %v1633_v11, %v1630_v2  ;;  %v1639_v38 = vrot.slane %v1637_v8, 5  ;;  %v1658_v39 = vrot.slane %v1656_v19, 4  ;;  %v1803_v11 = vld [vmem:[#allocation2 + $0x8] sm:$0xe] }
 0x2a8   : > { %v1659_v40 = vshll.u32 %v1579_v30, 16  ;;  %v1648_v14 = vor.u32 %v1647_v34, %v1644_v32  ;;  %v1651_v62 = vshll.u32 %v4264_v18, 16  ;;  %v1670_v16 = vshrl.u32 %v1581_v21, 16  ;;  %v4283_v30 = vld [vmem:[#allocation2 + $0x44] sm:$0x1] }
 0x2a9   : > { %2995 = vmatmul.mubr.msk.bf16.gmra.mrb[12].mxu0 %vm645_vm2, %v2741_v23  ;;  %v1635_v28 = vrot.slane %v1634_v4, 4  ;;  %v1665_v46 = vshll.u32 %v4266_v31, 16  ;;  %v1673_v50 = vshll.u32 %v1581_v21, 16  ;;  %v1684_v52 = vshrl.u32 %v1583_v35, 16 }
 0x2aa   : > { %3000 = vmatprep.mubr.msk.bf16.mxu0 %vm645_vm2, %v2747_v13  ;;  %v1661_v45 = vrot.slane %v1659_v40, 5  ;;  %v1626_v53 = vsel %vm4140_vm11, %v1621_v17, %v1625_v36  ;;  %v1672_v57 = vrot.slane %v1670_v16, 4  ;;  %v2756_v61 = vrot.slane %v4268_v41, 9  ;;  %v1806_v16 = vld [vmem:[#allocation2 + $0x20] sm:$0xe] }
 0x2ab   : > { %v1640_v54 = vsel %vm4140_vm11, %v1635_v28, %v1639_v38  ;;  %v1649_v29 = vrot.slane %v1648_v14, 4  ;;  %v1675_v6 = vrot.slane %v1673_v50, 5  ;;  %v2748_v44 = vcombine.low %v4163_v25, %v4144_v10  ;;  %v1283_v25 = vld [vmem:[#allocation2 + $0x8] sm:$0xe]  ;;  %v1808_v50 = vld [vmem:[#allocation2 + $0x30] sm:$0xe] }
 0x2ac   : > { %v2783_v0 = vcombine.low %v1626_v53, %v1640_v54  ;;  %v1662_v2 = vor.u32 %v1661_v45, %v1658_v39  ;;  %v1686_v55 = vrot.slane %v1684_v52, 4  ;;  %v1687_v8 = vshll.u32 %v1583_v35, 16  ;;  %v1805_v53 = vld [vmem:[#allocation2 + $0x18] sm:$0xe]  ;;  %v1284_v54 = vld [vmem:[#allocation2 + $0x10] sm:$0xe] }
 0x2ad   : > { %v1653_v7 = vrot.slane %v1651_v62, 5  ;;  %v1667_v17 = vrot.slane %v1665_v46, 5  ;;  %v1676_v13 = vor.u32 %v1675_v6, %v1672_v57  ;;  %v1679_v19 = vshll.u32 %v4281_v3, 16  ;;  %v1807_v6 = vld [vmem:[#allocation2 + $0x28] sm:$0xe] }
 0x2ae   : > { %3031 = vmatmul.mubr.msk.bf16.vlgmr.msra.gmra.mrb[4].mxu1 %vm645_vm2, %v2783_v0  ;;  %v1663_v26 = vrot.slane %v1662_v2, 4  ;;  %v1689_v21 = vrot.slane %v1687_v8, 5  ;;  %v1693_v23 = vshll.u32 %v4283_v30, 16  ;;  %v2749_v10 = vcombine.low %v4187_v56, %v4201_v33 }
 0x2af   : > { %3039 = vmatpush3.bf16.msra.mxu1 %v4215_v47  ;;  %v1654_v4 = vsel %vm4140_vm11, %v1649_v29, %v1653_v7  ;;  %v2792_v34 = vrot.slane %v1804_v12, 9  ;;  %v1833_v35 = vrot.slane %v4191_v20, 5  ;;  %v1677_v36 = vrot.slane %v1676_v13, 4 }
 0x2b0   : > { %v1668_v32 = vsel %vm4140_vm11, %v1663_v26, %v1667_v17  ;;  %3048 = vmatprep.subr.bf16.mxu1 %v4278_v60  ;;  %v1690_v38 = vor.u32 %v1689_v21, %v1686_v55  ;;  %v1311_v39 = vrot.slane %v4088_v51, 5  ;;  %v2791_v33 = vrot.slane %v1803_v11, 9  ;;  %v1285_v11 = vld [vmem:[#allocation2 + $0x18] sm:$0xe] }
 0x2b1   : > { %v2784_v47 = vcombine.low %v1654_v4, %v1668_v32  ;;  %3001 = vmatmul.mubr.msk.bf16.vlgmr.msra.gmra.mrb[8].mxu0 %vm645_vm2, %v2748_v44  ;;  %v1829_v20 = vrot.slane %v4184_v43, 5  ;;  %v2757_v40 = vrot.slane %v1283_v25, 9  ;;  %v1681_v41 = vrot.slane %v1679_v19, 5  ;;  %v1287_v44 = vld [vmem:[#allocation2 + $0x28] sm:$0xe] }
 0x2b2   : > { %3004 = vmatprep.mubr.msk.bf16.mxu0 %vm645_vm2, %v2749_v10  ;;  %3009 = vmatpush3.bf16.msra.mxu0 %v4217_v48  ;;  %v1691_v28 = vrot.slane %v1690_v38, 4  ;;  %v1695_v14 = vrot.slane %v1693_v23, 5  ;;  %v1315_v51 = vrot.slane %v4148_v15, 5  ;;  %v1834_v62 = vsel %vm4304_vm14, %v2792_v34, %v1833_v35  ;;  %v1810_v10 = vld [vmem:[#allocation2 + $0x40] sm:$0xe] }
 0x2b3   : > { %3034 = vmatprep.mubr.msk.bf16.mxu1 %vm645_vm2, %v2784_v47  ;;  %3018 = vmatprep.subr.bf16.mxu0 %v4058_v24  ;;  %v1682_v45 = vsel %vm4140_vm11, %v1677_v36, %v1681_v41  ;;  %v1312_v48 = vsel %vm4304_vm14, %v2756_v61, %v1311_v39  ;;  %v1830_v52 = vsel %vm4304_vm14, %v2791_v33, %v1829_v20  ;;  %v1841_v57 = vrot.slane %v4253_v49, 5  ;;  %v1809_v32 = vld [vmem:[#allocation2 + $0x38] sm:$0xe]  ;;  %v4351_v35 = vld [vmem:[#allocation15 + $0x38] sm:$0xff]   ;;  %v1288_v47 = vld [vmem:[#allocation2 + $0x30] sm:$0xe] }
 0x2b4   : > { %v1696_v43 = vsel %vm4140_vm11, %v1691_v28, %v1695_v14  ;;  %v1316_v46 = vsel %vm4304_vm14, %v2757_v40, %v1315_v51  ;;  %v2799_v0 = vcombine.low %v1830_v52, %v1834_v62  ;;  %v2750_v29 = vcombine.low %v4224_v1, %v4219_v59  ;;  %v1286_v1 = vld [vmem:[#allocation2 + $0x20] sm:$0xe]  ;;  %v1289_v41 = vld [vmem:[#allocation2 + $0x38] sm:$0xe] }
 0x2b5   : > { %v2785_v15 = vcombine.low %v1682_v45, %v1696_v43  ;;  %v2794_v2 = vrot.slane %v1806_v16, 9  ;;  %v2764_v61 = vcombine.low %v1312_v48, %v1316_v46  ;;  %v2796_v55 = vrot.slane %v1808_v50, 9  ;;  %v2088_v16 = vld [vmem:[#allocation2 + $0x10] sm:$0xf] }
 0x2b6   : > { %v1849_v8 = vrot.slane %v4266_v31, 5  ;;  %v1837_v12 = vrot.slane %v4249_v63, 5  ;;  %v2793_v49 = vrot.slane %v1805_v53, 9  ;;  %v2758_v7 = vrot.slane %v1284_v54, 9  ;;  %v3285_v53 = vld [vmem:[#allocation2 + $0x10] ss:$8 sps:$4 sm:$0xff]  }
 0x2b7   : > { %3035 = vmatmul.mubr.msk.bf16.gmra.mrb[0].mxu1 %vm645_vm2, %v2785_v15  ;;  %v1319_v59 = vrot.slane %v4169_v37, 5  ;;  %v2795_v26 = vrot.slane %v1807_v6, 9  ;;  %v1845_v17 = vrot.slane %v4264_v18, 5  ;;  %v2761_v13 = vrot.slane %v1287_v44, 9 }
 0x2b8   : > { %3040 = vmatprep.mubr.msk.bf16.mxu1 %vm645_vm2, %v2799_v0  ;;  %v1842_v31 = vsel %vm4304_vm14, %v2794_v2, %v1841_v57  ;;  %v2759_v19 = vrot.slane %v1285_v11, 9  ;;  %v1323_v63 = vrot.slane %v4174_v58, 5  ;;  %v1331_v21 = vrot.slane %v4211_v42, 5  ;;  %v2094_v0 = vld [vmem:[#allocation2 + $0x28] sm:$0xf] }
 0x2b9   : > { %3005 = vmatmul.mubr.msk.bf16.gmra.mrb[12].mxu0 %vm645_vm2, %v2750_v29  ;;  %v1850_v23 = vsel %vm4304_vm14, %v2796_v55, %v1849_v8  ;;  %v2760_v37 = vrot.slane %v1286_v1, 9  ;;  %v1327_v25 = vrot.slane %v4194_v22, 5  ;;  %v1838_v4 = vsel %vm4304_vm14, %v2793_v49, %v1837_v12  ;;  %v3288_v29 = vld [vmem:[#allocation2 + $0x8] ss:$8 sps:$4 sm:$0xff]   ;;  %v4380_v55 = vld [vmem:[#allocation2 + $0x14] sm:$0x1] }
 0x2ba   : > { %3010 = vmatprep.mubr.msk.bf16.mxu0 %vm645_vm2, %v2764_v61  ;;  %v1320_v18 = vsel %vm4304_vm14, %v2758_v7, %v1319_v59  ;;  %v2800_v34 = vcombine.low %v1838_v4, %v1842_v31  ;;  %v1846_v58 = vsel %vm4304_vm14, %v2795_v26, %v1845_v17  ;;  %v1332_v42 = vsel %vm4304_vm14, %v2761_v13, %v1331_v21  ;;  %v2096_v2 = vld [vmem:[#allocation2 + $0x30] sm:$0xf]  ;;  %v2092_v61 = vld [vmem:[#allocation2 + $0x20] sm:$0xf]  ;;  %v2098_v12 = vld [vmem:[#allocation2 + $0x38] sm:$0xf] }
 0x2bb   : > { %v2801_v36 = vcombine.low %v1846_v58, %v1850_v23  ;;  %v1324_v22 = vsel %vm4304_vm14, %v2759_v19, %v1323_v63  ;;  %v2798_v38 = vrot.slane %v1810_v10, 9  ;;  %v1857_v39 = vrot.slane %v4283_v30, 5  ;;  %v4382_v1 = vld [vmem:[#allocation2 + $0x1c] sm:$0x1]  ;;  %v2102_v13 = vld [vmem:[#allocation2 + $0x48] sm:$0xf] }
 0x2bc   : > { %v2765_v33 = vcombine.low %v1320_v18, %v1324_v22  ;;  %v2797_v20 = vrot.slane %v1809_v32, 9  ;;  %v1328_v40 = vsel %vm4304_vm14, %v2760_v37, %v1327_v25  ;;  %v1853_v28 = vrot.slane %v4281_v3, 5  ;;  %v2090_v3 = vld [vmem:[#allocation2 + $0x18] sm:$0xf]  ;;  %v3287_v31 = vld [vmem:[#allocation2 + $0x20] ss:$8 sps:$4 sm:$0xff]  }
 0x2bd   : > { %v2766_v14 = vcombine.low %v1328_v40, %v1332_v42  ;;  %v2762_v51 = vrot.slane %v1288_v47, 9  ;;  %v1335_v62 = vrot.slane %v4231_v9, 5  ;;  %v1858_v30 = vsel %vm4304_vm14, %v2798_v38, %v1857_v39  ;;  %v4385_v21 = vld [vmem:[#allocation15 + $0x40] sm:$0xff]   ;;  %v3289_v37 = vld [vmem:[#allocation2 + $0x30] ss:$8 sps:$4 sm:$0xff]  }
 0x2be   : > { %v2763_v45 = vrot.slane %v1289_v41, 9  ;;  %v2105_v43 = vshrl.u32 %v2088_v16, 16  ;;  %v2108_v48 = vshll.u32 %v2088_v16, 16  ;;  %v1854_v9 = vsel %vm4304_vm14, %v2797_v20, %v1853_v28  ;;  %v3290_v25 = vld [vmem:[#allocation2 + $0x18] ss:$8 sps:$4 sm:$0xff]  }
 0x2bf   : > { %3041 = vmatmul.mubr.msk.bf16.vlgmr.msra.gmra.mrb[4].mxu1 %vm645_vm2, %v2800_v34  ;;  %v1336_v46 = vsel %vm4304_vm14, %v2762_v51, %v1335_v62  ;;  %v2802_v50 = vcombine.low %v1854_v9, %v1858_v30  ;;  %v2119_v15 = vshrl.u32 %v2090_v3, 16  ;;  %v2122_v52 = vshll.u32 %v2090_v3, 16  ;;  %v2100_v47 = vld [vmem:[#allocation2 + $0x40] sm:$0xf]  ;;  %v4393_v40 = vld [vmem:[#allocation2 + $0x2c] sm:$0x1] }
 0x2c0   : > { %3049 = vmatpush3.bf16.msra.mxu1 %v4278_v60  ;;  %3044 = vmatprep.mubr.msk.bf16.mxu1 %vm645_vm2, %v2801_v36  ;;  %v1339_v60 = vrot.slane %v4240_v27, 5  ;;  %v2110_v57 = vrot.slane %v2108_v48, 5  ;;  %v2147_v8 = vshrl.u32 %v2094_v0, 16  ;;  %v2150_v11 = vshll.u32 %v2094_v0, 16  ;;  %v4402_v48 = vld [vmem:[#allocation2 + $0x3c] sm:$0x1] }
 0x2c1   : > { %3011 = vmatmul.mubr.msk.bf16.vlgmr.msra.gmra.mrb[8].mxu0 %vm645_vm2, %v2765_v33  ;;  %3058 = vmatprep.subr.bf16.mxu1 %v4351_v35  ;;  %v2121_v6 = vrot.slane %v2119_v15, 4  ;;  %v2124_v44 = vrot.slane %v2122_v52, 5  ;;  %v2161_v7 = vshrl.u32 %v2096_v2, 16  ;;  %v2164_v59 = vshll.u32 %v2096_v2, 16 }
 0x2c2   : > { %3014 = vmatprep.mubr.msk.bf16.mxu0 %vm645_vm2, %v2766_v14  ;;  %3019 = vmatpush3.bf16.msra.mxu0 %v4058_v24  ;;  %v1340_v54 = vsel %vm4304_vm14, %v2763_v45, %v1339_v60  ;;  %v2107_v24 = vrot.slane %v2105_v43, 4  ;;  %v2133_v26 = vshrl.u32 %v2092_v61, 16  ;;  %v2136_v17 = vshll.u32 %v2092_v61, 16  ;;  %v4395_v14 = vld [vmem:[#allocation2 + $0x24] sm:$0x1] }
 0x2c3   : > { %v2767_v27 = vcombine.low %v1336_v46, %v1340_v54  ;;  %v2114_v19 = vshll.u32 %v4380_v55, 16  ;;  %v2125_v63 = vor.u32 %v2124_v44, %v2121_v6  ;;  %v2175_v23 = vshrl.u32 %v2098_v12, 16 }
 0x2c4   : > { %v2111_v49 = vor.u32 %v2110_v57, %v2107_v24  ;;  %v2178_v10 = vshll.u32 %v2098_v12, 16  ;;  %v2149_v4 = vrot.slane %v2147_v8, 4  ;;  %v2152_v18 = vrot.slane %v2150_v11, 5  ;;  %v4411_v11 = vld [vmem:[#allocation2 + $0x44] sm:$0x1] }
 0x2c5   : > { %v2128_v34 = vshll.u32 %v4382_v1, 16  ;;  %v2163_v58 = vrot.slane %v2161_v7, 4  ;;  %v2166_v42 = vrot.slane %v2164_v59, 5  ;;  %v2135_v36 = vrot.slane %v2133_v26, 4  ;;  %v4413_v12 = vld [vmem:[#allocation2 + $0x4c] sm:$0x1] }
 0x2c6   : > { %v2112_v32 = vrot.slane %v2111_v49, 4  ;;  %v2138_v22 = vrot.slane %v2136_v17, 5  ;;  %v2203_v38 = vshrl.u32 %v2102_v13, 16  ;;  %v2206_v39 = vshll.u32 %v2102_v13, 16 }
 0x2c7   : > { %3045 = vmatmul.mubr.msk.bf16.gmra.mrb[0].mxu1 %vm645_vm2, %v2802_v50  ;;  %v2116_v33 = vrot.slane %v2114_v19, 5  ;;  %v2126_v20 = vrot.slane %v2125_v63, 4  ;;  %v2177_v41 = vrot.slane %v2175_v23, 4  ;;  %v2180_v28 = vrot.slane %v2178_v10, 5  ;;  %v3291_v50 = vld [vmem:[#allocation2 + $0x40] ss:$8 sps:$4 sm:$0xff]  }
 0x2c8   : > { %3050 = vmatprep.mubr.msk.bf16.mxu1 %vm645_vm2, %v3285_v53  ;;  %v2153_v51 = vor.u32 %v2152_v18, %v2149_v4  ;;  %v2189_v62 = vshrl.u32 %v2100_v47, 16  ;;  %v2192_v16 = vshll.u32 %v2100_v47, 16  ;;  %v2130_v45 = vrot.slane %v2128_v34, 5  ;;  %v2322_v23 = vld [vmem:[#allocation2 + $0x10] sm:$0xe] }
 0x2c9   : > { %3015 = vmatmul.mubr.msk.bf16.gmra.mrb[12].mxu0 %vm645_vm2, %v2767_v27  ;;  %v2117_v30 = vsel %vm4140_vm11, %v2112_v32, %v2116_v33  ;;  %v2167_v60 = vor.u32 %v2166_v42, %v2163_v58  ;;  %v2139_v3 = vor.u32 %v2138_v22, %v2135_v36  ;;  %v2156_v43 = vshll.u32 %v4393_v40, 16  ;;  %v2323_v34 = vld [vmem:[#allocation2 + $0x18] sm:$0xe] }
 0x2ca   : > { %3020 = vmatprep.mubr.msk.bf16.mxu0 %vm645_vm2, %v3288_v29  ;;  %v2205_v9 = vrot.slane %v2203_v38, 4  ;;  %v2208_v46 = vrot.slane %v2206_v39, 5  ;;  %v2131_v15 = vsel %vm4140_vm11, %v2126_v20, %v2130_v45  ;;  %v2142_v52 = vshll.u32 %v4395_v14, 16  ;;  %v2325_v20 = vld [vmem:[#allocation2 + $0x28] sm:$0xe] }
 0x2cb   : > { %v2181_v54 = vor.u32 %v2180_v28, %v2177_v41  ;;  %v2817_v27 = vcombine.low %v2117_v30, %v2131_v15  ;;  %v2154_v24 = vrot.slane %v2153_v51, 4  ;;  %v2191_v57 = vrot.slane %v2189_v62, 4  ;;  %v2326_v41 = vld [vmem:[#allocation2 + $0x30] sm:$0xe]  ;;  %v2324_v28 = vld [vmem:[#allocation2 + $0x20] sm:$0xe] }
 0x2cc   : > { %v2194_v0 = vrot.slane %v2192_v16, 5  ;;  %v2168_v29 = vrot.slane %v2167_v60, 4  ;;  %v2184_v2 = vshll.u32 %v4402_v48, 16  ;;  %v2140_v6 = vrot.slane %v2139_v3, 4  ;;  %v2327_v16 = vld [vmem:[#allocation2 + $0x38] sm:$0xe] }
 0x2cd   : > { %v2158_v44 = vrot.slane %v2156_v43, 5  ;;  %v2182_v8 = vrot.slane %v2181_v54, 4  ;;  %v2209_v49 = vor.u32 %v2208_v46, %v2205_v9  ;;  %v2144_v7 = vrot.slane %v2142_v52, 5  ;;  %v2329_v46 = vld [vmem:[#allocation2 + $0x48] sm:$0xe] }
 0x2ce   : > { %v2195_v26 = vor.u32 %v2194_v0, %v2191_v57  ;;  %v2212_v17 = vshll.u32 %v4413_v12, 16  ;;  %v2198_v63 = vshll.u32 %v4411_v11, 16  ;;  %v2826_v58 = vrot.slane %v2322_v23, 9 }
 0x2cf   : > { %3051 = vmatmul.mubr.msk.bf16.vlgmr.msra.gmra.mrb[4].mxu1 %vm645_vm2, %v3287_v31  ;;  %v2159_v59 = vsel %vm4140_vm11, %v2154_v24, %v2158_v44  ;;  %v2186_v31 = vrot.slane %v2184_v2, 5  ;;  %v2145_v19 = vsel %vm4140_vm11, %v2140_v6, %v2144_v7  ;;  %v2210_v18 = vrot.slane %v2209_v49, 4 }
 0x2d0   : > { %3059 = vmatpush3.bf16.msra.mxu1 %v4351_v35  ;;  %3054 = vmatprep.mubr.msk.bf16.mxu1 %vm645_vm2, %v3289_v37  ;;  %v4397_v35 = vld [vmem:[#allocation2 + $0x34] sm:$0x1]  ;;  %v2818_v10 = vcombine.low %v2145_v19, %v2159_v59  ;;  %v2196_v4 = vrot.slane %v2195_v26, 4  ;;  %v2214_v32 = vrot.slane %v2212_v17, 5  ;;  %v2348_v42 = vrot.slane %v4380_v55, 5 }
 0x2d1   : > { %3021 = vmatmul.mubr.msk.bf16.vlgmr.msra.gmra.mrb[8].mxu0 %vm645_vm2, %v3290_v25  ;;  %3068 = vmatprep.subr.bf16.mxu1 %v4385_v21  ;;  %v2170_v53 = vshll.u32 %v4397_v35, 16  ;;  %v2187_v37 = vsel %vm4140_vm11, %v2182_v8, %v2186_v31  ;;  %v2200_v47 = vrot.slane %v2198_v63, 5  ;;  %v2827_v36 = vrot.slane %v2323_v34, 9 }
 0x2d2   : > { %v2352_v22 = vrot.slane %v4382_v1, 5  ;;  %v2215_v39 = vsel %vm4140_vm11, %v2210_v18, %v2214_v32  ;;  %v2349_v33 = vsel %vm4304_vm14, %v2826_v58, %v2348_v42  ;;  %v2829_v62 = vrot.slane %v2325_v20, 9 }
 0x2d3   : > { %v2172_v61 = vrot.slane %v2170_v53, 5  ;;  %v2201_v38 = vsel %vm4140_vm11, %v2196_v4, %v2200_v47  ;;  %v2360_v1 = vrot.slane %v4393_v40, 5  ;;  %v2830_v30 = vrot.slane %v2326_v41, 9 }
 0x2d4   : > { %v2820_v55 = vcombine.low %v2201_v38, %v2215_v39  ;;  %v2364_v5 = vrot.slane %v4397_v35, 5  ;;  %v2828_v45 = vrot.slane %v2324_v28, 9  ;;  %v2356_v60 = vrot.slane %v4395_v14, 5 }
 0x2d5   : > { %v2173_v13 = vsel %vm4140_vm11, %v2168_v29, %v2172_v61  ;;  %v2831_v3 = vrot.slane %v2327_v16, 9  ;;  %v2368_v43 = vrot.slane %v4402_v48, 5  ;;  %v2361_v9 = vsel %vm4304_vm14, %v2829_v62, %v2360_v1 }
 0x2d6   : > { %v2819_v25 = vcombine.low %v2173_v13, %v2187_v37  ;;  %v2365_v40 = vsel %vm4304_vm14, %v2830_v30, %v2364_v5  ;;  %v2357_v15 = vsel %vm4304_vm14, %v2828_v45, %v2356_v60  ;;  %v2833_v53 = vrot.slane %v2329_v46, 9 }
 0x2d7   : > { %3055 = vmatmul.mubr.msk.bf16.gmra.mrb[0].mxu1 %vm645_vm2, %v3291_v50  ;;  %v2328_v50 = vld [vmem:[#allocation2 + $0x40] sm:$0xe]  ;;  %v2835_v35 = vcombine.low %v2357_v15, %v2361_v9  ;;  %v2369_v52 = vsel %vm4304_vm14, %v2831_v3, %v2368_v43  ;;  %v2372_v48 = vrot.slane %v4411_v11, 5 }
 0x2d8   : > { %3060 = vmatprep.mubr.msk.bf16.mxu1 %vm645_vm2, %v2817_v27  ;;  %v2836_v14 = vcombine.low %v2365_v40, %v2369_v52  ;;  %v2832_v54 = vrot.slane %v2328_v50, 9  ;;  %v2376_v27 = vrot.slane %v4413_v12, 5 }
 0x2da   : > { %v2373_v24 = vsel %vm4304_vm14, %v2832_v54, %v2372_v48  ;;  %v2377_v57 = vsel %vm4304_vm14, %v2833_v53, %v2376_v27 }
 0x2db   : > { %v2837_v0 = vcombine.low %v2373_v24, %v2377_v57 }
 0x2df   : > { %3061 = vmatmul.mubr.msk.bf16.vlgmr.msra.gmra.mrb[4].mxu1 %vm645_vm2, %v2818_v10 }
 0x2e0   : > { %3069 = vmatpush3.bf16.msra.mxu1 %v4385_v21  ;;  %3064 = vmatprep.mubr.msk.bf16.mxu1 %vm645_vm2, %v2819_v25  ;;  %v2353_v21 = vsel %vm4304_vm14, %v2827_v36, %v2352_v22 }
 0x2e1   : > { %v2834_v51 = vcombine.low %v2349_v33, %v2353_v21 }
 0x2e7   : > { %3065 = vmatmul.mubr.msk.bf16.gmra.mrb[0].mxu1 %vm645_vm2, %v2820_v55 }
 0x2e8   : > { %3070 = vmatprep.mubr.msk.bf16.mxu1 %vm645_vm2, %v2834_v51 }
 0x2ef   : > { %3071 = vmatmul.mubr.msk.bf16.vlgmr.msra.gmra.mrb[4].mxu1 %vm645_vm2, %v2835_v35 }
 0x2f0   : > { %3074 = vmatprep.mubr.msk.bf16.mxu1 %vm645_vm2, %v2836_v14 }
 0x2f7   : > { %3075 = vmatmul.mubr.msk.bf16.gmra.mrb[0].mxu1 %vm645_vm2, %v2837_v0 }
 0x39c   : > { %v3016_v29 = vpop.f32.mrb[12].mxu0 }
 0x39d   : > { %v1424_v2 = vpop.f32.mrb[13].mxu0 }
 0x39e   : > { %v3017_v6 = vpop.f32.mrb[14].mxu0 }
 0x39f   : > { %v1427_v44 = vpop.f32.mrb[15].mxu0 }
 0x3a4   : > { %v3022_v61 = vpop.f32.mrb[8].mxu0 }
 0x3a5   : > { %v1530_v8 = vpop.f32.mrb[9].mxu0 }
 0x3a6   : > { %v3023_v11 = vpop.f32.mrb[10].mxu0 }
 0x3a7   : > { %v1533_v12 = vpop.f32.mrb[11].mxu0 }
 0x3c2   : > { %v3072_v49 = vpop.f32.mrb[4].mxu1 }
 0x3c3   : > { %v3080_v7 = vadd.f32 %v3072_v49, %v3022_v61  ;;  %v2445_v59 = vpop.f32.mrb[5].mxu1 }
 0x3c4   : > { %v3081_v26 = vadd.f32 %v2445_v59, %v1530_v8  ;;  %v3073_v17 = vpop.f32.mrb[6].mxu1 }
 0x3c5   : > { %v2868_v56 = vpack.c.bf16 %v3080_v7, %v3080_v7  ;;  %v3082_v13 = vadd.f32 %v3073_v17, %v3023_v11  ;;  %v2448_v31 = vpop.f32.mrb[7].mxu1 }
 0x3c6   : > { %v2866_v19 = vpack.c.bf16 %v3081_v26, %v3081_v26  ;;  %v3083_v63 = vadd.f32 %v2448_v31, %v1533_v12 }
 0x3c7   : > { %2519 = vst.msk [vmem:[%s442_s19 + $0x8] sm:$0xf] %vm2516_vm15, %v2868_v56  ;;  %v2869_v23 = vpack.c.bf16 %v3082_v13, %v3082_v13 }
 0x3c8   : > { %2517 = vst.msk [vmem:[%s442_s19] sm:$0xf] %vm2516_vm15, %v2866_v19  ;;  %v2867_v10 = vpack.c.bf16 %v3083_v63, %v3083_v63 }
 0x3c9   : > { %2520 = vst.msk [vmem:[%s442_s19 + $0xc] sm:$0xf] %vm2516_vm15, %v2869_v23 }
 0x3ca   : > { %2518 = vst.msk [vmem:[%s442_s19 + $0x4] sm:$0xf] %vm2516_vm15, %v2867_v10  ;;  %v3076_v37 = vpop.f32.mrb[0].mxu1 }
 0x3cb   : > { %v3084_v25 = vadd.f32 %v3076_v37, %v3016_v29  ;;  %v2461_v4 = vpop.f32.mrb[1].mxu1 }
 0x3cc   : > { %v3085_v18 = vadd.f32 %v2461_v4, %v1424_v2  ;;  %v3077_v32 = vpop.f32.mrb[2].mxu1 }
 0x3cd   : > { %v2872_v34 = vpack.c.bf16 %v3084_v25, %v3084_v25  ;;  %v3086_v58 = vadd.f32 %v3077_v32, %v3017_v6  ;;  %v2464_v42 = vpop.f32.mrb[3].mxu1 }
 0x3ce   : > { %v2870_v47 = vpack.c.bf16 %v3085_v18, %v3085_v18  ;;  %v3087_v36 = vadd.f32 %v2464_v42, %v1427_v44 }
 0x3cf   : > { %2523 = vst.msk [vmem:[%s442_s19 + $0x18] sm:$0xf] %vm2516_vm15, %v2872_v34  ;;  %v2873_v22 = vpack.c.bf16 %v3086_v58, %v3086_v58 }
 0x3d0   : > { %2521 = vst.msk [vmem:[%s442_s19 + $0x10] sm:$0xf] %vm2516_vm15, %v2870_v47  ;;  %v2871_v38 = vpack.c.bf16 %v3087_v36, %v3087_v36 }
 0x3d1   : > { %2524 = vst.msk [vmem:[%s442_s19 + $0x1c] sm:$0xf] %vm2516_vm15, %v2873_v22 }
 0x3d2   : > { %2522 = vst.msk [vmem:[%s442_s19 + $0x14] sm:$0xf] %vm2516_vm15, %v2871_v38 }
 0x3d3   : > { %3534 = shalt.err (!%p3531_p0)
}
 0x3d4   : > { %s3535_s24 = scalar_lea.hbm %s4471_s20, 512  ;;  %s3539_s4 = scalar_lea.hbm %s4528_s8, 1024 }
 0x3d5   : > { %p3536_p12 = scmp.ne.s32.totalorder %s4471_s20, %s3535_s24  ;;  %p3540_p3 = scmp.lt.u32.totalorder %s4471_s20, %s4528_s8 }
 0x3d6   : > { %p3541_p6 = scmp.lt.u32.totalorder %s3539_s4, %s3535_s24  ;;  %p3543_p4 = scmp.lt.u32.totalorder %s3535_s24, %s4471_s20 }
 0x3d7   : > { %p3537_p13 = pnand %p3536_p12, %p4574_p10 }
 0x3d8   : > { %p3542_p2 = por %p3541_p6, %p3540_p3 }
 0x3d9   : > { %p3538_p1 = pneg %p3537_p13 }
 0x3da   : > { %p3544_p5 = por %p3543_p4, %p3542_p2 }
 0x3dc   : > { %p3545_p7 = pnand %p3544_p5, %p3538_p1 }
 0x3de   : > { %3548 = shalt.err (!%p3545_p7)
}
 0x3df   : > { %s3622_s9 = smov 64   ;;  %s3623_s19 = smov 4  }
 0x3e0   : > { %3181 = dma.vmem_to_hbm [thread:$0]  (%p4574_p10), %s4473_s2, 512, %s4471_s20, %s2526_s11, %s3622_s9, %s3622_s9, %s3623_s19  }
 0x3e1 PF: > { %s2554_s15 = sand.u32 1, %s3595_s27   ;;  %p4575_p9 = scmp.ne.s32.totalorder %s4554_s18, 0 }
 0x3e2   : > { %p4576_p8 = scmp.ge.s32.totalorder %s3607_s30, 2  ;;  %s2555_s6 = scalar_lea.sflag [#allocation5], %s2554_s15 }
 0x3e4   : > { %p3210_p11 = pnand %p4576_p8, %p4575_p9 }
 0x3e6   : > { %3590 = dma.done.wait (!%p3210_p11), %s2555_s6, 512  }
 0x3e7   : > { %3592 = vsyncadd (!%p3210_p11), %s2555_s6, 4294966784  ;;  %p27_p0 = scmp.ge.s32.totalorder %s3853_s23, 4   ;;  %s4577_s27 = smov %s3599_s28 }
 0x3e8   : > { %s4578_s28 = smov %s3603_s29  ;;  %s4579_s29 = smov %s3864_s26 }
 0x3e9   : > { %s4580_s30 = smov %s3853_s23  ;;  %29 = sbr.rel (!%p27_p0) target bundleno = 16 (0x10), region = 144 }
 0x3f0   :  { %2560 = vsyncpa [#allocation4], 1 }
 0x3f1   :  { %2562 = vsyncpa [#allocation4 + $0x1], 1 }
 0x3f2   :  { %2563 = vsyncpa [#allocation7], 1 }
 0x3f3   :  { %2565 = vsyncpa [#allocation7 + $0x1], 1 }
 0x3f4   :  { %2566 = vsyncpa [#allocation10], 1 }
 0x3f5   :  { %2567 = vsyncpa [#allocation13], 1 }
 0x3f6   :  { %2568 = vsyncpa [#allocation16], 1 }
 0x3f7   :  { %2569 = vsyncpa [#allocation5], 1 }
 0x3f8   :  { %2571 = vsyncpa [#allocation5 + $0x1], 1 }

// kernel: densenet_forward.13
= control target key start
LH: loop header
LB: loop body
LE: loop exit
PB: predicated region body
PF: predicated region fallthrough
CT: control target
= control target key end

     0   :  { %12 = vsyncpa [#allocation4], 0  ;;  %s2995_s0 = inlined_call_operand.hbm [shape: bf16[2,16,16], index: 0, kind: input, shape index: {}]   ;;  %s2996_s1 = inlined_call_operand.hbm [shape: bf16[16,16], index: 1, kind: input, shape index: {}]   ;;  %s2997_s2 = inlined_call_operand.hbm [shape: f32[1,16], index: 2, kind: input, shape index: {}]   ;;  %s2998_s3 = inlined_call_operand.hbm [shape: f32[1,16], index: 3, kind: input, shape index: {}]   ;;  %s2999_s4 = inlined_call_operand.hbm [shape: f32[1,16], index: 4, kind: input, shape index: {}]   ;;  %s3000_s5 = inlined_call_operand.hbm [shape: f32[1,16], index: 5, kind: input, shape index: {}]   ;;  %s3001_s6 = inlined_call_operand.hbm [shape: bf16[9,16,8], index: 6, kind: input, shape index: {}]   ;;  %s3002_s7 = inlined_call_operand.hbm [shape: bf16[2,16,8], index: 7, kind: output, shape index: {}]  }
   0x1   :  { %14 = vsyncpa [#allocation4 + $0x1], 0 }
   0x2   :  { %15 = vsyncpa [#allocation7], 0 }
   0x3   :  { %16 = vsyncpa [#allocation10], 0 }
   0x4   :  { %17 = vsyncpa [#allocation13], 0 }
   0x5   :  { %18 = vsyncpa [#allocation5], 0 }
   0x6   :  { %20 = vsyncpa [#allocation5 + $0x1], 0  ;;  %s2530_s24 = smov 0   ;;  %s2532_s25 = smov 0  }
   0x7   :  { %s2534_s26 = smov 0   ;;  %s2536_s27 = smov 0  }
   0x8 LB: > { %s2474_s28 = smov [#allocation6]   ;;  %s2551_s30 = sadd.s32 4294967295, %s2472_s27   ;;  %s2472_s27 = sphi %s2536_s27, %s3038_s27   ;;  %s2468_s26 = sphi %s2534_s26, %s3037_s26   ;;  %s2464_s25 = sphi %s2532_s25, %s3036_s25   ;;  %s2460_s24 = sphi %s2530_s24, %s3035_s24  }
   0x9   : > { %s221_s29 = sshll.u32 %s2474_s28, 4  ;;  %p1846_p0 = scmp.ge.s32.totalorder %s2472_s27, 1  ;;  %s2556_s29 = int_to_ptr.vmem [resolvable:$true] %s221_s29 }
   0xa   : > { %p3003_p1 = scmp.eq.s32.totalorder %s2551_s30, 0  ;;  %p209_p2 = scmp.lt.s32.totalorder %s2472_s27, 3 }
   0xb   : > { %s2475_s9 = smov [#allocation9]   ;;  %s2476_s12 = smov [#allocation12]  }
   0xc   : > { %p2558_p3 = pnand %p1846_p0, %p209_p2  ;;  %s246_s10 = sshll.u32 %s2475_s9, 4  ;;  %s2571_s10 = int_to_ptr.vmem [resolvable:$true] %s246_s10 }
   0xd   : > { %s268_s13 = sshll.u32 %s2476_s12, 4  ;;  %s2196_s16 = scalar_lea.hbm %s2996_s1, 128  ;;  %s2573_s13 = int_to_ptr.vmem [resolvable:$true] %s268_s13 }
   0xe   : > { %s3007_s8 = scalar_select %p2558_p3, 1, 0 }
   0xf   : > { %p2087_p5 = pneg %p2558_p3  ;;  %p2197_p7 = scmp.ne.s32.totalorder %s2996_s1, %s2196_s16 }
  0x10   : > { %p2203_p11 = scmp.lt.u32.totalorder %s2196_s16, %s2996_s1 }
  0x11   : > { %p2567_p6 = pnand %p2087_p5, %p3003_p1 }
  0x13   : > { %p2583_p8 = pneg %p2567_p6 }
  0x15   : > { %p2199_p9 = pnand %p2583_p8, %p2197_p7 }
  0x17   : > { %p2200_p10 = pneg %p2199_p9 }
  0x19   : > { %p2205_p12 = pnand %p2203_p11, %p2200_p10 }
  0x1b   : > { %2208 = shalt.err (!%p2205_p12)
}
  0x1c   : > { %s2209_s22 = scalar_lea.vmem %s2556_s29, 128  ;;  %p2217_p5 = scmp.lt.s32.totalorder %s2556_s29, %s2556_s29 }
  0x1d   : > { %p2210_p13 = scmp.ne.s32.totalorder %s2556_s29, %s2209_s22  ;;  %p2218_p4 = scmp.lt.s32.totalorder %s2209_s22, %s2209_s22 }
  0x1f   : > { %p2212_p0 = pnand %p2210_p13, %p2583_p8  ;;  %p2219_p7 = por %p2218_p4, %p2217_p5 }
  0x21   : > { %p2213_p2 = pneg %p2212_p0 }
  0x23   : > { %p2220_p9 = pnand %p2219_p7, %p2213_p2 }
  0x25   : > { %2223 = shalt.err (!%p2220_p9)
}
  0x26   : > { %s3005_s23 = smov 64   ;;  %s2478_s28 = smov 4  }
  0x27   : > { %2090 = dma.hbm_to_vmem [thread:$0]  (!%p2567_p6), %s2996_s1, 128, %s2556_s29, [#allocation7], %s3005_s23, %s3005_s23, %s2478_s28  }
  0x28   : > { %s2224_s16 = scalar_lea.hbm %s2998_s3, 16 }
  0x29   : > { %p2225_p4 = scmp.ne.s32.totalorder %s2998_s3, %s2224_s16  ;;  %p2231_p12 = scmp.lt.u32.totalorder %s2224_s16, %s2998_s3 }
  0x2b   : > { %p2227_p10 = pnand %p2225_p4, %p2583_p8 }
  0x2d   : > { %p2228_p11 = pneg %p2227_p10 }
  0x2f   : > { %p2233_p13 = pnand %p2231_p12, %p2228_p11 }
  0x31   : > { %2236 = shalt.err (!%p2233_p13)
}
  0x32   : > { %s2237_s29 = scalar_lea.vmem %s2571_s10, 16  ;;  %s2244_s22 = scalar_lea.vmem %s2571_s10, 32 }
  0x33   : > { %p2238_p0 = scmp.ne.s32.totalorder %s2571_s10, %s2237_s29  ;;  %p2245_p7 = scmp.lt.s32.totalorder %s2571_s10, %s2571_s10 }
  0x34   : > { %p2246_p9 = scmp.lt.s32.totalorder %s2244_s22, %s2237_s29 }
  0x35   : > { %p2240_p2 = pnand %p2238_p0, %p2583_p8 }
  0x36   : > { %p2247_p4 = por %p2246_p9, %p2245_p7 }
  0x37   : > { %p2241_p5 = pneg %p2240_p2 }
  0x39   : > { %p2248_p10 = pnand %p2247_p4, %p2241_p5 }
  0x3b   : > { %2251 = shalt.err (!%p2248_p10)
}
  0x3c   : > { %2096 = dma.hbm_to_vmem [thread:$0]  (!%p2567_p6), %s2998_s3, 16, %s2571_s10, [#allocation10]  }
  0x3d   : > { %s2252_s16 = scalar_lea.hbm %s3000_s5, 16 }
  0x3e   : > { %p2253_p11 = scmp.ne.s32.totalorder %s3000_s5, %s2252_s16  ;;  %p2259_p0 = scmp.lt.u32.totalorder %s2252_s16, %s3000_s5 }
  0x40   : > { %p2255_p12 = pnand %p2253_p11, %p2583_p8 }
  0x42   : > { %p2256_p13 = pneg %p2255_p12 }
  0x44   : > { %p2261_p2 = pnand %p2259_p0, %p2256_p13 }
  0x46   : > { %2264 = shalt.err (!%p2261_p2)
}
  0x47   : > { %s2265_s10 = scalar_lea.vmem %s2573_s13, 16  ;;  %s2272_s29 = scalar_lea.vmem %s2573_s13, 32 }
  0x48   : > { %p2266_p5 = scmp.ne.s32.totalorder %s2573_s13, %s2265_s10  ;;  %p2273_p4 = scmp.lt.s32.totalorder %s2573_s13, %s2573_s13 }
  0x49   : > { %p2274_p10 = scmp.lt.s32.totalorder %s2272_s29, %s2265_s10 }
  0x4a   : > { %p2268_p7 = pnand %p2266_p5, %p2583_p8 }
  0x4b   : > { %p2275_p11 = por %p2274_p10, %p2273_p4 }
  0x4c   : > { %p2269_p9 = pneg %p2268_p7 }
  0x4e   : > { %p2276_p12 = pnand %p2275_p11, %p2269_p9 }
  0x50   : > { %2279 = shalt.err (!%p2276_p12)
}
  0x51   : > { %2102 = dma.hbm_to_vmem [thread:$0]  (!%p2567_p6), %s3000_s5, 16, %s2573_s13, [#allocation13]  }
  0x52   : > { %s2479_s12 = smov [#allocation8]   ;;  %s2480_s15 = smov [#allocation11]  }
  0x53   : > { %s235_s14 = sshll.u32 %s2479_s12, 4  ;;  %s257_s16 = sshll.u32 %s2480_s15, 4  ;;  %s236_s14 = int_to_ptr.vmem [resolvable:$true] %s235_s14  ;;  %s258_s16 = int_to_ptr.vmem [resolvable:$true] %s257_s16 }
  0x54   : > { %s2280_s20 = scalar_lea.hbm %s2997_s2, 16 }
  0x55   : > { %p2281_p13 = scmp.ne.s32.totalorder %s2997_s2, %s2280_s20  ;;  %p2287_p5 = scmp.lt.u32.totalorder %s2280_s20, %s2997_s2 }
  0x57   : > { %p2283_p0 = pnand %p2281_p13, %p2583_p8 }
  0x59   : > { %p2284_p2 = pneg %p2283_p0 }
  0x5b   : > { %p2289_p7 = pnand %p2287_p5, %p2284_p2 }
  0x5d   : > { %2292 = shalt.err (!%p2289_p7)
}
  0x5e   : > { %s2293_s13 = scalar_lea.vmem %s236_s14, 16  ;;  %s2300_s9 = scalar_lea.vmem %s236_s14, 32 }
  0x5f   : > { %p2294_p9 = scmp.ne.s32.totalorder %s236_s14, %s2293_s13  ;;  %p2301_p11 = scmp.lt.s32.totalorder %s236_s14, %s236_s14 }
  0x60   : > { %p2302_p12 = scmp.lt.s32.totalorder %s2300_s9, %s2293_s13 }
  0x61   : > { %p2296_p4 = pnand %p2294_p9, %p2583_p8 }
  0x62   : > { %p2303_p1 = por %p2302_p12, %p2301_p11 }
  0x63   : > { %p2297_p10 = pneg %p2296_p4 }
  0x65   : > { %p2304_p3 = pnand %p2303_p1, %p2297_p10 }
  0x67   : > { %2307 = shalt.err (!%p2304_p3)
}
  0x68   : > { %2093 = dma.hbm_to_vmem [thread:$0]  (!%p2567_p6), %s2997_s2, 16, %s236_s14, [#allocation7]  }
  0x69   : > { %s2308_s20 = scalar_lea.hbm %s2999_s4, 16 }
  0x6a   : > { %p2309_p13 = scmp.ne.s32.totalorder %s2999_s4, %s2308_s20  ;;  %p2315_p3 = scmp.lt.u32.totalorder %s2308_s20, %s2999_s4 }
  0x6c   : > { %p2311_p0 = pnand %p2309_p13, %p2583_p8 }
  0x6e   : > { %p2312_p1 = pneg %p2311_p0 }
  0x70   : > { %p2317_p2 = pnand %p2315_p3, %p2312_p1 }
  0x72   : > { %2320 = shalt.err (!%p2317_p2)
}
  0x73   : > { %s2321_s13 = scalar_lea.vmem %s258_s16, 16  ;;  %s2328_s14 = scalar_lea.vmem %s258_s16, 32 }
  0x74   : > { %p2322_p5 = scmp.ne.s32.totalorder %s258_s16, %s2321_s13  ;;  %p2329_p4 = scmp.lt.s32.totalorder %s258_s16, %s258_s16 }
  0x75   : > { %p2330_p10 = scmp.lt.s32.totalorder %s2328_s14, %s2321_s13 }
  0x76   : > { %p2324_p7 = pnand %p2322_p5, %p2583_p8 }
  0x77   : > { %p2331_p11 = por %p2330_p10, %p2329_p4 }
  0x78   : > { %p2325_p9 = pneg %p2324_p7 }
  0x7a   : > { %p2332_p12 = pnand %p2331_p11, %p2325_p9 }
  0x7c   : > { %2335 = shalt.err (!%p2332_p12)
}
  0x7d   : > { %2099 = dma.hbm_to_vmem [thread:$0]  (!%p2567_p6), %s2999_s4, 16, %s258_s16, [#allocation10]  }
  0x7e   : > { %s2481_s15 = smov [#allocation14]   ;;  %s2336_s21 = scalar_lea.hbm %s3001_s6, 1152 }
  0x7f   : > { %s278_s17 = sshll.u32 %s2481_s15, 4  ;;  %p2337_p13 = scmp.ne.s32.totalorder %s3001_s6, %s2336_s21  ;;  %s279_s17 = int_to_ptr.vmem [resolvable:$true] %s278_s17 }
  0x80   : > { %p2343_p3 = scmp.lt.u32.totalorder %s2336_s21, %s3001_s6 }
  0x81   : > { %p2339_p0 = pnand %p2337_p13, %p2583_p8 }
  0x83   : > { %p2340_p1 = pneg %p2339_p0 }
  0x85   : > { %p2345_p2 = pnand %p2343_p3, %p2340_p1 }
  0x87   : > { %2348 = shalt.err (!%p2345_p2)
}
  0x88   : > { %s2349_s16 = scalar_lea.vmem %s279_s17, 1152  ;;  %p2357_p4 = scmp.lt.s32.totalorder %s279_s17, %s279_s17 }
  0x89   : > { %p2350_p5 = scmp.ne.s32.totalorder %s279_s17, %s2349_s16  ;;  %p2358_p10 = scmp.lt.s32.totalorder %s2349_s16, %s2349_s16 }
  0x8b   : > { %p2352_p7 = pnand %p2350_p5, %p2583_p8  ;;  %p2359_p11 = por %p2358_p10, %p2357_p4 }
  0x8d   : > { %p2353_p9 = pneg %p2352_p7 }
  0x8f   : > { %p2360_p12 = pnand %p2359_p11, %p2353_p9 }
  0x91   : > { %2363 = shalt.err (!%p2360_p12)
}
  0x92   : > { %2105 = dma.hbm_to_vmem [thread:$0]  (!%p2567_p6), %s3001_s6, 1152, %s279_s17, [#allocation13], %s3005_s23, %s3005_s23, %s2478_s28  }
  0x93   : > { %s1845_s11 = sadd.s32 4294967294, %s2472_s27   ;;  %s2714_s19 = sadd.s32 1, %s2472_s27  }
  0x94   : > { %s30_s12 = ssub.s32 %s2472_s27, %s2714_s19  ;;  %s33_s15 = sadd.s32 1, %s2468_s26 }
  0x95   : > { %p31_p8 = scmp.eq.s32.totalorder %s30_s12, 0  ;;  %p40_p13 = scmp.ne.s32.totalorder %s2468_s26, %s2464_s25 }
  0x96   : > { %p41_p0 = scmp.eq.s32.totalorder %s2472_s27, 0  ;;  %p46_p1 = scmp.ne.s32.totalorder %s2464_s25, %s2460_s24 }
  0x97   : > { %s2725_s18 = scalar_select %p31_p8, %s2468_s26, %s33_s15  }
  0x98   : > { %p2727_p3 = por %p41_p0, %p40_p13  ;;  %p3011_p2 = scmp.eq.s32.totalorder %s2551_s30, 0 }
  0x99   : > { %p196_p5 = scmp.eq.s32.totalorder %s2551_s30, 1  ;;  %p202_p7 = scmp.eq.s32.totalorder %s1845_s11, 1 }
  0x9a   : > { %p2733_p6 = por %p3011_p2, %p46_p1  ;;  %p2120_p9 = scmp.lt.s32.totalorder %s2472_s27, 2 }
  0x9b   : > { %s292_s21 = sand.u32 1, %s2468_s26   ;;  %p2740_p4 = por %p196_p5, %p40_p13 }
  0x9c   : > { %p2744_p10 = por %p202_p7, %p46_p1  ;;  %s1854_s22 = sshll.u32 %s292_s21, 3 }
  0x9d   : > { %s3013_s10 = scalar_select %p2740_p4, 1, 0 }
  0x9e   : > { %s3014_s29 = scalar_select %p2744_p10, 1, 0 }
  0x9f   : > { %s1937_s13 = sshll.u32 %s2472_s27, 7  ;;  %s296_s11 = scalar_lea.vmem [#allocation3], %s1854_s22 }
  0xa0   : > { %s2752_s9 = scalar_lea.hbm %s2995_s0, %s1937_s13  ;;  %s303_s12 = sshll.u32 %s296_s11, 4  ;;  %s2754_s12 = int_to_ptr.vmem [resolvable:$true] %s303_s12 }
  0xa1   : > { %p2758_p11 = pnand %p2120_p9, %p2727_p3  ;;  %s2762_s23 = scalar_lea.sflag [#allocation4], %s292_s21 }
  0xa2   : > { %s2364_s16 = scalar_lea.hbm %s2752_s9, 128  ;;  %s2369_s20 = scalar_lea.hbm %s2995_s0, 256 }
  0xa3   : > { %p2365_p12 = scmp.ne.s32.totalorder %s2752_s9, %s2364_s16  ;;  %p2366_p8 = pneg %p2758_p11 }
  0xa4   : > { %p2370_p1 = scmp.lt.u32.totalorder %s2752_s9, %s2995_s0  ;;  %p2371_p3 = scmp.lt.u32.totalorder %s2369_s20, %s2364_s16 }
  0xa5   : > { %p2367_p13 = pnand %p2366_p8, %p2365_p12  ;;  %p2373_p5 = scmp.lt.u32.totalorder %s2364_s16, %s2752_s9 }
  0xa6   : > { %p2372_p2 = por %p2371_p3, %p2370_p1 }
  0xa7   : > { %p2368_p0 = pneg %p2367_p13 }
  0xa8   : > { %p2374_p7 = por %p2373_p5, %p2372_p2 }
  0xaa   : > { %p2375_p9 = pnand %p2374_p7, %p2368_p0 }
  0xac   : > { %2378 = shalt.err (!%p2375_p9)
}
  0xad   : > { %s2379_s21 = scalar_lea.vmem %s2754_s12, 128  ;;  %s2482_s22 = smov [#allocation3]  }
  0xae   : > { %p2380_p12 = scmp.ne.s32.totalorder %s2754_s12, %s2379_s21  ;;  %s2384_s13 = sshll.u32 %s2482_s22, 4  ;;  %s2385_s13 = int_to_ptr.vmem [resolvable:$false] %s2384_s13 }
  0xaf   : > { %s2386_s14 = scalar_lea.vmem %s2385_s13, 256  ;;  %p2387_p4 = scmp.lt.s32.totalorder %s2754_s12, %s2385_s13 }
  0xb0   : > { %p2382_p13 = pnand %p2380_p12, %p2366_p8  ;;  %p2388_p1 = scmp.lt.s32.totalorder %s2386_s14, %s2379_s21 }
  0xb2   : > { %p2383_p10 = pneg %p2382_p13  ;;  %p2389_p3 = por %p2388_p1, %p2387_p4 }
  0xb4   : > { %p2390_p2 = pnand %p2389_p3, %p2383_p10 }
  0xb6   : > { %2393 = shalt.err (!%p2390_p2)
}
  0xb7   : > { %s3016_s16 = smov 64   ;;  %p3017_p8 = scmp.ne.s32.totalorder %s3007_s8, 0 }
  0xb8   : > { %2109 = dma.hbm_to_vmem [thread:$0]  (!%p2758_p11), %s2752_s9, 128, %s2754_s12, %s2762_s23, %s3016_s16, %s3016_s16, %s2478_s28  }
  0xb9   : > { %315 = sbr.rel (%p3017_p8) target bundleno = 754 (0x2f2), region = 48  ;;  %s2796_s20 = sand.u32 (!%p3017_p8), 1, %s2464_s25  }
  0xba   : > { %s1858_s11 = sshll.u32 (!%p3017_p8), %s2796_s20, 3  ;;  %s318_s21 = scalar_lea.sflag (!%p3017_p8), [#allocation4], %s2796_s20 }
  0xbb   : > { %s321_s15 = scalar_lea.vmem (!%p3017_p8), [#allocation3], %s1858_s11 }
  0xc0   : > { %2439 = dma.done.wait (%p2733_p6), %s318_s21, 128  }
  0xc1   : > { %2441 = vsyncadd (%p2733_p6), %s318_s21, 4294967168  ;;  %p3018_p4 = scmp.eq.s32.totalorder %s2551_s30, 0 }
  0xc3   : > { %2443 = dma.done.wait (%p3018_p4), [#allocation7], 144   ;;  %p3019_p10 = pmov %p3018_p4 }
  0xc4   : > { %p3020_p11 = pmov %p3018_p4 }
  0xc5   : > { %2445 = vsyncadd (%p3019_p10), [#allocation7], 4294967152 }
  0xc6   : > { %2447 = dma.done.wait (%p3020_p11), [#allocation10], 32   ;;  %p3021_p0 = pmov %p3018_p4 }
  0xc8   : > { %2449 = vsyncadd (%p3021_p0), [#allocation10], 4294967264  ;;  %p3022_p5 = pmov %p3021_p0 }
  0xc9   : > { %p3023_p7 = pmov %p3021_p0 }
  0xca   : > { %2451 = dma.done.wait (%p3022_p5), [#allocation13], 1168  }
  0xcb   : > { %2453 = vsyncadd (%p3023_p7), [#allocation13], 4294966128  ;;  %v2483_v0 = vmov 0.0   ;;  %vm2484_vm0 = vmmov 0   ;;  %v2174_v1 = vld [vmem:[#allocation6] sm:$0xff]   ;;  %v1946_v3 = vld [vmem:[%s321_s15] sm:$0xff]  }
  0xcc   : > { %1969 = vmatprep.subr.bf16.mxu0 %v2483_v0  ;;  %1971 = vmatprep.mubr.msk.bf16.mxu0 %vm2484_vm0, %v2483_v0  ;;  %v1866_v2 = vld [vmem:[#allocation8] ss:$0 sm:$0xff]  ;;  %v1867_v4 = vld [vmem:[#allocation9] ss:$0 sm:$0xff]  ;;  %v1947_v5 = vunpack.c.l.bf16 %v1946_v3  ;;  %v1948_v6 = vunpack.c.h.bf16 %v1946_v3  ;;  %vm412_vm1 = vcmask 130048   ;;  %vm475_vm2 = vcmask 124928  }
  0xcd   : > { %1999 = vmatprep.subr.bf16.mxu1 %v2483_v0  ;;  %2001 = vmatprep.mubr.msk.bf16.mxu1 %vm2484_vm0, %v2483_v0  ;;  %v2485_v14 = vmov 0   ;;  %v2175_v15 = vld [vmem:[#allocation14 + $0x8] sm:$0xff]   ;;  %v2176_v16 = vld [vmem:[#allocation14 + $0x20] sm:$0xff]   ;;  %v1870_v17 = vld [vmem:[#allocation11] ss:$0 sm:$0xff]  ;;  %vm842_vm12 = vcmask 1040384  }
  0xce   : > { %1970 = vmatpush3.bf16.msra.mxu0 %v2174_v1  ;;  %v391_v7 = vmul.f32 %v1947_v5, %v1866_v2  ;;  %v392_v8 = vmul.f32 %v1948_v6, %v1866_v2  ;;  %476 = vst.msk [vmem:[#allocation2] sm:$0x7] %vm475_vm2, %v2485_v14  ;;  %477 = vst.msk [vmem:[#allocation2 + $0x4] sm:$0x7] %vm475_vm2, %v2485_v14  ;;  %2000 = vmatpush3.bf16.msra.mxu1 %v2176_v16  ;;  %v1871_v18 = vld [vmem:[#allocation12] ss:$0 sm:$0xff] }
  0xcf   : > { %1975 = vmatprep.subr.bf16.mxu0 %v2483_v0  ;;  %478 = vst.msk [vmem:[#allocation2 + $0x8] sm:$0x7] %vm475_vm2, %v2485_v14  ;;  %481 = vst.msk [vmem:[#allocation2 + $0x14] sm:$0x7] %vm475_vm2, %v2485_v14  ;;  %2005 = vmatprep.subr.bf16.mxu1 %v2483_v0  ;;  %vm538_vm3 = vsmask.f32 2306 }
  0xd0   : > { %v399_v9 = vadd.f32 %v1867_v4, %v391_v7  ;;  %v400_v10 = vadd.f32 %v1867_v4, %v392_v8  ;;  %479 = vst.msk [vmem:[#allocation2 + $0xc] sm:$0x7] %vm475_vm2, %v2485_v14  ;;  %480 = vst.msk [vmem:[#allocation2 + $0x10] sm:$0x7] %vm475_vm2, %v2485_v14  ;;  %vm598_vm5 = vsmask.f32 1280 }
  0xd1   : > { %vm2837_vm4 = vmand %vm475_vm2, %vm538_vm3  ;;  %vm599_vm6 = vsmask.f32 3336  ;;  %vm601_vm8 = vsmask.f32 5392  ;;  %vm603_vm9 = vsmask.f32 7448 }
  0xd2   : > { %v401_v11 = vmax.f32 %v399_v9, 0.0  ;;  %v402_v12 = vmax.f32 %v400_v10, 0.0  ;;  %vm600_vm7 = vmor %vm598_vm5, %vm599_vm6  ;;  %vm843_vm13 = vcmask 1042434   ;;  %vm845_vm14 = vcmask 1044484   ;;  %s375_s8 = scalar_lea.vmem [#allocation15], %s1858_s11  ;;  %s1944_s28 = sshll.u32 %s2551_s30, 7 }
  0xd3   : > { %vm602_vm10 = vmor %vm600_vm7, %vm601_vm8  ;;  %vm847_vm3 = vcmask 1046534   ;;  %s1715_s23 = sshll.u32 %s375_s8, 4  ;;  %s2949_s12 = scalar_lea.hbm %s3002_s7, %s1944_s28  ;;  %s2951_s23 = int_to_ptr.vmem [resolvable:$true] %s1715_s23 }
  0xd4   : > { %v403_v13 = vpack.c.bf16 %v402_v12, %v401_v11  ;;  %v669_v12 = vlaneseq  ;;  %vm2850_vm11 = vmor %vm602_vm10, %vm603_vm9  ;;  %s1702_s22 = scalar_lea.sflag [#allocation5], %s2796_s20  ;;  %s2394_s30 = scalar_lea.vmem %s2951_s23, 128 }
  0xd5   : > { %v1876_v34 = vld.sshfl [vmem:[#allocation2] sm:$0x13 pattern:$0x76325410]  ;;  %v540_v41 = vld [vmem:[#allocation2 + $0x4] sm:$0x7]  ;;  %vm844_vm15 = vmor %vm842_vm12, %vm843_vm13  ;;  %p2395_p6 = scmp.ne.s32.totalorder %s2951_s23, %s2394_s30 }
  0xd6   : > { %1972 = vmatmul.mubr.msk.bf16.vlgmr.msra.gmra.mrb[0].mxu0 %vm412_vm1, %v403_v13  ;;  %v606_v43 = vshrl.u32 %v1876_v34, 16  ;;  %v609_v44 = vshll.u32 %v1876_v34, 16  ;;  %v543_v49 = vld [vmem:[#allocation2 + $0x8] sm:$0x7]  ;;  %v573_v52 = vcombine.high %v1876_v34, %v1876_v34  ;;  %vm2877_vm2 = vmor %vm844_vm15, %vm845_vm14  ;;  %p3032_p9 = scmp.ne.s32.totalorder %s3013_s10, 0  ;;  %s2487_s13 = smov [#allocation15]  }
  0xd7   : > { %1977 = vmatprep.mubr.msk.bf16.mxu0 %vm2484_vm0, %v2483_v0  ;;  %1976 = vmatpush3.bf16.msra.mxu0 %v2175_v15  ;;  %v546_v57 = vld [vmem:[#allocation2 + $0xc] sm:$0x7]  ;;  %v549_v59 = vld [vmem:[#allocation2 + $0x10] sm:$0x7]  ;;  %s2398_s14 = sshll.u32 %s2487_s13, 4  ;;  %s2399_s14 = int_to_ptr.vmem [resolvable:$false] %s2398_s14 }
  0xd8   : > { %1981 = vmatprep.subr.bf16.mxu0 %v2483_v0  ;;  %v608_v60 = vrot.slane %v606_v43, 6  ;;  %v611_v61 = vrot.slane %v609_v44, 7  ;;  %v615_v2 = vshll.u32 %v573_v52, 16  ;;  %p2396_p12 = pnand %p2395_p6, %p3032_p9  ;;  %s2400_s16 = scalar_lea.vmem %s2399_s14, 256 }
  0xd9   : > { %p2401_p1 = scmp.lt.s32.totalorder %s2951_s23, %s2399_s14  ;;  %p2402_p3 = scmp.lt.s32.totalorder %s2400_s16, %s2394_s30 }
  0xda   : > { %v612_v4 = vor.u32 %v611_v61, %v608_v60  ;;  %v617_v5 = vrot.slane %v615_v2, 7  ;;  %v2178_v2 = vld [vmem:[#allocation14] sm:$0xff]   ;;  %p2397_p13 = pneg %p2396_p12 }
  0xdb   : > { %p2403_p2 = por %p2402_p3, %p2401_p1 }
  0xdc   : > { %v613_v8 = vrot.slane %v612_v4, 2 }
  0xdd   : > { %p2404_p8 = pnand %p2403_p2, %p2397_p13 }
 0x1a9   : > { %v450_v19 = vpop.f32.mrb[0].mxu0 }
 0x1aa   : > { %v463_v20 = vmul.f32 %v1870_v17, %v450_v19  ;;  %v1973_v21 = vpop.f32.mrb[1].mxu0 }
 0x1ab   : > { %v453_v22 = vpop.f32.mrb[2].mxu0 }
 0x1ac   : > { %v471_v23 = vadd.f32 %v1871_v18, %v463_v20  ;;  %v464_v24 = vmul.f32 %v1870_v17, %v453_v22  ;;  %v1974_v25 = vpop.f32.mrb[3].mxu0  ;;  %v2486_v17 = vmov 1983009808  }
 0x1ae   : > { %v473_v26 = vmax.f32 %v471_v23, 0.0  ;;  %v472_v27 = vadd.f32 %v1871_v18, %v464_v24  ;;  %v667_v18 = vunpack.c.l.s4 %v2486_v17  ;;  %v2177_v17 = vld [vmem:[#allocation14 + $0x28] sm:$0xff]  }
 0x1b0   : > { %v484_v28 = vcombine.high %v473_v26, %v473_v26  ;;  %v1938_v29 = vpack.c.bf16 %v473_v26, %v473_v26  ;;  %v474_v30 = vmax.f32 %v472_v27, 0.0 }
 0x1b2   : > { %v1939_v31 = vpack.c.bf16 %v484_v28, %v484_v28  ;;  %v505_v32 = vshrl.u32 %v1938_v29, 16  ;;  %v485_v33 = vcombine.high %v474_v30, %v474_v30  ;;  %v1940_v35 = vpack.c.bf16 %v474_v30, %v474_v30 }
 0x1b3   : > { %v508_v37 = vshll.u32 %v1938_v29, 16 }
 0x1b4   : > { %v507_v36 = vrot.slane %v505_v32, 7  ;;  %v512_v38 = vshrl.u32 %v1939_v31, 16  ;;  %v1941_v39 = vpack.c.bf16 %v485_v33, %v485_v33  ;;  %v519_v42 = vshrl.u32 %v1940_v35, 16 }
 0x1b5   : > { %v515_v47 = vshll.u32 %v1939_v31, 16  ;;  %v522_v51 = vshll.u32 %v1940_v35, 16  ;;  %v618_v35 = vsel %vm2850_vm11, %v613_v8, %v617_v5 }
 0x1b6   : > { %v510_v45 = vor.u32 %v508_v37, %v507_v36  ;;  %v514_v46 = vrot.slane %v512_v38, 7  ;;  %v526_v48 = vshrl.u32 %v1941_v39, 16  ;;  %v521_v50 = vrot.slane %v519_v42, 7 }
 0x1b7   : > { %v529_v56 = vshll.u32 %v1941_v39, 16  ;;  %v668_v37 = vunpack.c.0.s8 %v667_v18  ;;  %v670_v38 = vshrl.u32 %v669_v12, 7 }
 0x1b8   : > { %v517_v53 = vor.u32 %v515_v47, %v514_v46  ;;  %v541_v54 = vsel %vm2837_vm4, %v510_v45, %v540_v41  ;;  %v528_v55 = vrot.slane %v526_v48, 7  ;;  %v524_v58 = vor.u32 %v522_v51, %v521_v50 }
 0x1b9   : > { %542 = vst [vmem:[#allocation2 + $0x4] sm:$0x7] %v541_v54 }
 0x1ba   : > { %v544_v62 = vsel %vm2837_vm4, %v517_v53, %v543_v49  ;;  %v531_v63 = vor.u32 %v529_v56, %v528_v55  ;;  %v547_v1 = vsel %vm2837_vm4, %v524_v58, %v546_v57  ;;  %v2862_v55 = vsub.s32 %v668_v37, %v670_v38  ;;  %v2182_v38 = vld [vmem:[#allocation14 + $0x10] sm:$0xff]  }
 0x1bb   : > { %545 = vst [vmem:[#allocation2 + $0x8] sm:$0x7] %v544_v62  ;;  %548 = vst [vmem:[#allocation2 + $0xc] sm:$0x7] %v547_v1 }
 0x1bc   : > { %v550_v3 = vsel %vm2837_vm4, %v531_v63, %v549_v59  ;;  %vm2889_vm4 = vmor %vm2877_vm2, %vm847_vm3 }
 0x1bd   : > { %551 = vst [vmem:[#allocation2 + $0x10] sm:$0x7] %v550_v3 }
 0x1c0   : > { %v1877_v6 = vld.sshfl [vmem:[#allocation2 + $0x4] sm:$0x13 pattern:$0x76325410] }
 0x1c1   : > { %v581_v7 = vcombine.high %v1877_v6, %v1877_v6  ;;  %v620_v9 = vshrl.u32 %v1877_v6, 16  ;;  %v623_v10 = vshll.u32 %v1877_v6, 16  ;;  %v1902_v5 = vld.sshfl [vmem:[#allocation2 + $0x4] sm:$0x12 pattern:$0x76325410] }
 0x1c2   : > { %v1878_v11 = vld.sshfl [vmem:[#allocation2 + $0x8] sm:$0x13 pattern:$0x76325410]  ;;  %v1200_v12 = vcombine.high %v1902_v5, %v1902_v5 }
 0x1c3   : > { %v1879_v13 = vld.sshfl [vmem:[#allocation2 + $0xc] sm:$0x13 pattern:$0x76325410]  ;;  %v589_v14 = vcombine.high %v1878_v11, %v1878_v11  ;;  %v622_v15 = vrot.slane %v620_v9, 6  ;;  %v625_v16 = vrot.slane %v623_v10, 7 }
 0x1c4   : > { %v597_v19 = vcombine.high %v1879_v13, %v1879_v13  ;;  %v629_v20 = vshll.u32 %v581_v7, 16  ;;  %v634_v21 = vshrl.u32 %v1878_v11, 16  ;;  %v637_v22 = vshll.u32 %v1878_v11, 16 }
 0x1c5   : > { %v626_v24 = vor.u32 %v625_v16, %v622_v15  ;;  %v648_v25 = vshrl.u32 %v1879_v13, 16  ;;  %v651_v26 = vshll.u32 %v1879_v13, 16  ;;  %v643_v30 = vshll.u32 %v589_v14, 16 }
 0x1c6   : > { %v631_v27 = vrot.slane %v629_v20, 7  ;;  %v636_v28 = vrot.slane %v634_v21, 6  ;;  %v639_v29 = vrot.slane %v637_v22, 7  ;;  %v657_v34 = vshll.u32 %v597_v19, 16 }
 0x1c7   : > { %v627_v31 = vrot.slane %v626_v24, 2  ;;  %v650_v32 = vrot.slane %v648_v25, 6  ;;  %v653_v33 = vrot.slane %v651_v26, 7  ;;  %v645_v45 = vrot.slane %v643_v30, 7 }
 0x1c8   : > { %v640_v36 = vor.u32 %v639_v29, %v636_v28  ;;  %v1899_v39 = vld.sshfl [vmem:[#allocation2 + $0x10] sm:$0x13 pattern:$0x76325410]  ;;  %v659_v48 = vrot.slane %v657_v34, 7  ;;  %v1227_v26 = vrot.slane %v1200_v12, 7 }
 0x1c9   : > { %v632_v40 = vsel %vm2850_vm11, %v627_v31, %v631_v27  ;;  %v654_v41 = vor.u32 %v653_v33, %v650_v32  ;;  %v1056_v42 = vcombine.high %v1899_v39, %v1899_v39  ;;  %v1100_v43 = vshrl.u32 %v1899_v39, 16  ;;  %v1905_v56 = vld.sshfl [vmem:[#allocation2 + $0x10] sm:$0x12 pattern:$0x76325410] }
 0x1ca   : > { %v641_v44 = vrot.slane %v640_v36, 2  ;;  %v1103_v46 = vshll.u32 %v1899_v39, 16  ;;  %v664_v49 = vcombine.low %v618_v35, %v632_v40  ;;  %v1903_v59 = vld.sshfl [vmem:[#allocation2 + $0x8] sm:$0x12 pattern:$0x76325410]  ;;  %v1224_v3 = vcombine.high %v1905_v56, %v1905_v56 }
 0x1cb   : > { %v655_v47 = vrot.slane %v654_v41, 2  ;;  %v1102_v50 = vrot.slane %v1100_v43, 6  ;;  %v1109_v53 = vshll.u32 %v1056_v42, 16  ;;  %v1208_v8 = vcombine.high %v1903_v59, %v1903_v59 }
 0x1cc   : > { %v646_v51 = vsel %vm2850_vm11, %v641_v44, %v645_v45  ;;  %v1105_v52 = vrot.slane %v1103_v46, 7  ;;  %v672_v60 = vrot.slane %v664_v49, %v2862_v55  ;;  %v1904_v61 = vld.sshfl [vmem:[#allocation2 + $0xc] sm:$0x12 pattern:$0x76325410]  ;;  %v1239_v13 = vrot.slane %v1224_v3, 7 }
 0x1cd   : > { %v660_v54 = vsel %vm2850_vm11, %v655_v47, %v659_v48  ;;  %v1111_v1 = vrot.slane %v1109_v53, 7  ;;  %v1116_v4 = vcombine.low %v632_v40, %v646_v51  ;;  %v1216_v9 = vcombine.high %v1904_v61, %v1904_v61  ;;  %v1884_v16 = vld.sshfl [vmem:[#allocation2] sm:$0x12 pattern:$0x76325410]  ;;  %v2181_v47 = vld [vmem:[#allocation14 + $0x30] sm:$0xff]  }
 0x1ce   : > { %v665_v57 = vcombine.low %v646_v51, %v660_v54  ;;  %v1106_v58 = vor.u32 %v1105_v52, %v1102_v50  ;;  %v2190_v18 = vld.sshfl [vmem:[#allocation2 + $0x8] sm:$0xf pattern:$0x76325410]  ;;  %v1231_v19 = vrot.slane %v1208_v8, 7  ;;  %v1909_v21 = vrot.slane %v1905_v56, 9 }
 0x1cf   : > { %v1124_v14 = vrot.slane %v1116_v4, %v2862_v55  ;;  %v1235_v20 = vrot.slane %v1216_v9, 7  ;;  %v2191_v25 = vld.sshfl [vmem:[#allocation2] sm:$0xf pattern:$0x76325410]  ;;  %v1907_v27 = vrot.slane %v1903_v59, 9  ;;  %v817_v30 = vcombine.high %v1884_v16, %v1884_v16 }
 0x1d0   : > { %v2866_v62 = vrot.slane %v665_v57, %v2862_v55  ;;  %v1107_v63 = vrot.slane %v1106_v58, 2  ;;  %v1908_v28 = vrot.slane %v1904_v61, 9  ;;  %v2895_v29 = vsel %vm2889_vm4, %v1909_v21, %v1239_v13  ;;  %v1917_v40 = vld.sshfl [vmem:[#allocation2 + $0x14] sm:$0x13 pattern:$0x76325410] }
 0x1d1   : > { %v1906_v31 = vrot.slane %v1902_v5, 9  ;;  %v1232_v32 = vsel %vm2889_vm4, %v1907_v27, %v1231_v19  ;;  %v1888_v36 = vrot.slane %v1884_v16, 9  ;;  %v851_v39 = vrot.slane %v817_v30, 7  ;;  %v2186_v61 = vld [vmem:[#allocation14 + $0x18] sm:$0xff]  }
 0x1d2   : > { %v680_v6 = vcombine.low %v672_v60, %v2866_v62  ;;  %v2872_v7 = vsel %vm2850_vm11, %v1107_v63, %v1111_v1  ;;  %v1236_v33 = vsel %vm2889_vm4, %v1908_v28, %v1235_v20  ;;  %v751_v41 = vcombine.low %v2191_v25, %v2190_v18  ;;  %v2192_v56 = vld.sshfl [vmem:[#allocation2 + $0x10] sm:$0xf pattern:$0x76325410] }
 0x1d3   : > { %v1117_v10 = vcombine.low %v660_v54, %v2872_v7  ;;  %v1245_v34 = vcombine.low %v1236_v33, %v2895_v29  ;;  %v1228_v35 = vsel %vm2889_vm4, %v1906_v31, %v1227_v26  ;;  %v1477_v43 = vshrl.u32 %v1917_v40, 16  ;;  %v2193_v60 = vld.sshfl [vmem:[#allocation2 + $0x8] sm:$0xf pattern:$0x76325410]  ;;  %v2185_v3 = vld [vmem:[#allocation14 + $0x38] sm:$0xff]  }
 0x1d4   : > { %1978 = vmatmul.mubr.msk.bf16.vlgmr.msra.gmra.mrb[4].mxu0 %vm412_vm1, %v680_v6  ;;  %v1244_v37 = vcombine.low %v1228_v35, %v1232_v32  ;;  %v1480_v44 = vshll.u32 %v1917_v40, 16  ;;  %v852_v46 = vsel %vm2889_vm4, %v1888_v36, %v851_v39  ;;  %v869_v48 = vcombine.low %v1232_v32, %v1236_v33  ;;  %v2194_v4 = vld.sshfl [vmem:[#allocation2 + $0xc] sm:$0xf pattern:$0x76325410] }
 0x1d5   : > { %v1131_v15 = vrot.slane %v1117_v10, %v2862_v55  ;;  %1982 = vmatpush3.bf16.msra.mxu0 %v2178_v2  ;;  %1983 = vmatprep.mubr.msk.bf16.mxu0 %vm2484_vm0, %v2483_v0  ;;  %v1259_v42 = vrot.slane %v1245_v34, %v2862_v55  ;;  %v868_v50 = vcombine.low %v852_v46, %v1228_v35  ;;  %v1479_v52 = vrot.slane %v1477_v43, 6  ;;  %v2195_v6 = vld.sshfl [vmem:[#allocation2 + $0x4] sm:$0xf pattern:$0x76325410] }
 0x1d6   : > { %1987 = vmatprep.subr.bf16.mxu0 %v2483_v0  ;;  %v1252_v45 = vrot.slane %v1244_v37, %v2862_v55  ;;  %v1433_v51 = vcombine.high %v1917_v40, %v1917_v40  ;;  %v1482_v53 = vrot.slane %v1480_v44, 7  ;;  %v883_v54 = vrot.slane %v869_v48, %v2862_v55  ;;  %v1923_v9 = vld.sshfl [vmem:[#allocation2 + $0x14] sm:$0x12 pattern:$0x76325410] }
 0x1d7   : > { %v1132_v22 = vcombine.low %v1124_v14, %v1131_v15  ;;  %v876_v57 = vrot.slane %v868_v50, %v2862_v55  ;;  %v1341_v5 = vcombine.low %v2193_v60, %v2192_v56  ;;  %v1601_v11 = vcombine.high %v1923_v9, %v1923_v9  ;;  %v2189_v15 = vld [vmem:[#allocation14 + $0x40] sm:$0xff]  }
 0x1d8   : > { %v1260_v49 = vcombine.low %v1252_v45, %v1259_v42  ;;  %v1483_v58 = vor.u32 %v1482_v53, %v1479_v52  ;;  %v1486_v59 = vshll.u32 %v1433_v51, 16  ;;  %v964_v12 = vcombine.low %v2195_v6, %v2194_v4 }
 0x1d9   : > { %2002 = vmatmul.mubr.msk.bf16.vlgmr.msra.gmra.mrb[0].mxu1 %vm412_vm1, %v1132_v22  ;;  %v884_v63 = vcombine.low %v876_v57, %v883_v54  ;;  %v1927_v14 = vrot.slane %v1923_v9, 9  ;;  %v1616_v23 = vrot.slane %v1601_v11, 7 }
 0x1da   : > { %2006 = vmatpush3.bf16.msra.mxu1 %v2177_v17  ;;  %2007 = vmatprep.mubr.msk.bf16.mxu1 %vm2484_vm0, %v2483_v0  ;;  %v1484_v1 = vrot.slane %v1483_v58, 2  ;;  %v1488_v2 = vrot.slane %v1486_v59, 7 }
 0x1db   : > { %2011 = vmatprep.subr.bf16.mxu1 %v2483_v0  ;;  %v1617_v17 = vsel %vm2889_vm4, %v1927_v14, %v1616_v23 }
 0x1dc   : > { %v1489_v8 = vsel %vm2850_vm11, %v1484_v1, %v1488_v2 }
 0x1dd   : > { %v1494_v10 = vcombine.low %v2872_v7, %v1489_v8  ;;  %v1622_v7 = vcombine.low %v2895_v29, %v1617_v17 }
 0x1df   : > { %v1508_v13 = vrot.slane %v1494_v10, %v2862_v55  ;;  %v1636_v18 = vrot.slane %v1622_v7, %v2862_v55 }
 0x1e0   : > { %1984 = vmatmul.mubr.msk.bf16.vlgmr.msra.gmra.mrb[4].mxu0 %vm412_vm1, %v751_v41 }
 0x1e1   : > { %1988 = vmatpush3.bf16.msra.mxu0 %v2182_v38  ;;  %1989 = vmatprep.mubr.msk.bf16.mxu0 %vm2484_vm0, %v2483_v0  ;;  %v1509_v16 = vcombine.low %v2866_v62, %v1508_v13  ;;  %v1637_v19 = vcombine.low %v883_v54, %v1636_v18 }
 0x1e2   : > { %1993 = vmatprep.subr.bf16.mxu0 %v2483_v0 }
 0x1e5   : > { %2008 = vmatmul.mubr.msk.bf16.vlgmr.msra.gmra.mrb[0].mxu1 %vm412_vm1, %v1260_v49 }
 0x1e6   : > { %2012 = vmatpush3.bf16.msra.mxu1 %v2181_v47  ;;  %2013 = vmatprep.mubr.msk.bf16.mxu1 %vm2484_vm0, %v2483_v0 }
 0x1e7   : > { %2017 = vmatprep.subr.bf16.mxu1 %v2483_v0 }
 0x1ec   : > { %1990 = vmatmul.mubr.msk.bf16.vlgmr.msra.gmra.mrb[4].mxu0 %vm412_vm1, %v884_v63 }
 0x1ed   : > { %1994 = vmatpush3.bf16.msra.mxu0 %v2186_v61  ;;  %1995 = vmatprep.mubr.msk.bf16.mxu0 %vm2484_vm0, %v2483_v0 }
 0x1f1   : > { %2014 = vmatmul.mubr.msk.bf16.vlgmr.msra.gmra.mrb[0].mxu1 %vm412_vm1, %v1341_v5 }
 0x1f2   : > { %2018 = vmatpush3.bf16.msra.mxu1 %v2185_v3  ;;  %2019 = vmatprep.mubr.msk.bf16.mxu1 %vm2484_vm0, %v2483_v0 }
 0x1f3   : > { %2023 = vmatprep.subr.bf16.mxu1 %v2483_v0 }
 0x1f8   : > { %1996 = vmatmul.mubr.msk.bf16.vlgmr.msra.gmra.mrb[4].mxu0 %vm412_vm1, %v964_v12 }
 0x1fd   : > { %2020 = vmatmul.mubr.msk.bf16.vlgmr.msra.gmra.mrb[0].mxu1 %vm412_vm1, %v1509_v16 }
 0x1fe   : > { %2024 = vmatpush3.bf16.msra.mxu1 %v2189_v15  ;;  %2025 = vmatprep.mubr.msk.bf16.mxu1 %vm2484_vm0, %v2483_v0  ;;  %vm1698_vm0 = vcmask 60416  }
 0x209   : > { %2026 = vmatmul.mubr.msk.bf16.vlgmr.msra.gmra.mrb[0].mxu1 %vm412_vm1, %v1637_v19 }
 0x2cb   : > { %v1008_v20 = vpop.f32.mrb[4].mxu0 }
 0x2cc   : > { %v1997_v21 = vpop.f32.mrb[5].mxu0 }
 0x2cd   : > { %v1011_v62 = vpop.f32.mrb[6].mxu0 }
 0x2ce   : > { %v1998_v22 = vpop.f32.mrb[7].mxu0 }
 0x2dc   : > { %v1681_v24 = vpop.f32.mrb[0].mxu1 }
 0x2dd   : > { %v2029_v25 = vadd.f32 %v1681_v24, %v1008_v20  ;;  %v2027_v26 = vpop.f32.mrb[1].mxu1 }
 0x2de   : > { %v1684_v0 = vpop.f32.mrb[2].mxu1 }
 0x2df   : > { %v1942_v27 = vpack.c.bf16 %v2029_v25, %v2029_v25  ;;  %v2030_v55 = vadd.f32 %v1684_v0, %v1011_v62  ;;  %v2028_v28 = vpop.f32.mrb[3].mxu1 }
 0x2e1   : > { %1699 = vst.msk [vmem:[%s375_s8] sm:$0xf] %vm1698_vm0, %v1942_v27  ;;  %v1943_v29 = vpack.c.bf16 %v2030_v55, %v2030_v55 }
 0x2e3   : > { %1700 = vst.msk [vmem:[%s375_s8 + $0x4] sm:$0xf] %vm1698_vm0, %v1943_v29 }
 0x2e4   : > { %2407 = shalt.err (!%p2404_p8)
}
 0x2e5   : > { %s2408_s11 = scalar_lea.hbm %s2949_s12, 128  ;;  %s2412_s8 = scalar_lea.hbm %s3002_s7, 256 }
 0x2e6   : > { %p2409_p4 = scmp.ne.s32.totalorder %s2949_s12, %s2408_s11  ;;  %p2413_p0 = scmp.lt.u32.totalorder %s2949_s12, %s3002_s7 }
 0x2e7   : > { %p2414_p5 = scmp.lt.u32.totalorder %s2412_s8, %s2408_s11  ;;  %p2416_p6 = scmp.lt.u32.totalorder %s2408_s11, %s2949_s12 }
 0x2e8   : > { %p2410_p10 = pnand %p2409_p4, %p3032_p9 }
 0x2e9   : > { %p2415_p7 = por %p2414_p5, %p2413_p0 }
 0x2ea   : > { %p2411_p11 = pneg %p2410_p10 }
 0x2eb   : > { %p2417_p12 = por %p2416_p6, %p2415_p7 }
 0x2ed   : > { %p2418_p13 = pnand %p2417_p12, %p2411_p11 }
 0x2ef   : > { %2421 = shalt.err (!%p2418_p13)
}
 0x2f0   : > { %s2488_s9 = smov 64   ;;  %s2489_s30 = smov 4  }
 0x2f1   : > { %2085 = dma.vmem_to_hbm [thread:$0]  (%p3032_p9), %s2951_s23, 128, %s2949_s12, %s1702_s22, %s2488_s9, %s2488_s9, %s2489_s30  }
 0x2f2 PF: > { %s1730_s13 = sand.u32 1, %s2460_s24   ;;  %p3033_p1 = scmp.ne.s32.totalorder %s3014_s29, 0 }
 0x2f3   : > { %p3034_p3 = scmp.ge.s32.totalorder %s2472_s27, 2  ;;  %s1731_s14 = scalar_lea.sflag [#allocation5], %s1730_s13 }
 0x2f5   : > { %p2111_p2 = pnand %p3034_p3, %p3033_p1 }
 0x2f7   : > { %2455 = dma.done.wait (!%p2111_p2), %s1731_s14, 128  }
 0x2f8   : > { %2457 = vsyncadd (!%p2111_p2), %s1731_s14, 4294967168  ;;  %p23_p8 = scmp.ge.s32.totalorder %s2714_s19, 4   ;;  %s3035_s24 = smov %s2464_s25 }
 0x2f9   : > { %s3036_s25 = smov %s2468_s26  ;;  %s3037_s26 = smov %s2725_s18 }
 0x2fa   : > { %s3038_s27 = smov %s2714_s19  ;;  %25 = sbr.rel (!%p23_p8) target bundleno = 8 (0x8), region = 127 }
 0x301   :  { %1736 = vsyncpa [#allocation4], 1 }
 0x302   :  { %1738 = vsyncpa [#allocation4 + $0x1], 1 }
 0x303   :  { %1739 = vsyncpa [#allocation7], 1 }
 0x304   :  { %1740 = vsyncpa [#allocation10], 1 }
 0x305   :  { %1741 = vsyncpa [#allocation13], 1 }
 0x306   :  { %1742 = vsyncpa [#allocation5], 1 }
 0x307   :  { %1744 = vsyncpa [#allocation5 + $0x1], 1 }

// kernel: densenet_forward.15
= control target key start
LH: loop header
LB: loop body
LE: loop exit
PB: predicated region body
PF: predicated region fallthrough
CT: control target
= control target key end

     0   :  { %s1811_s0 = inlined_call_operand.hbm [shape: bf16[2,16,16], index: 0, kind: input, shape index: {}]   ;;  %s1812_s1 = inlined_call_operand.hbm [shape: bf16[2,16,8], index: 1, kind: input, shape index: {}]   ;;  %s1813_s2 = inlined_call_operand.hbm [shape: bf16[2,16,8], index: 2, kind: input, shape index: {}]   ;;  %s1814_s3 = inlined_call_operand.hbm [shape: f32[1,32], index: 3, kind: input, shape index: {}]   ;;  %s1815_s4 = inlined_call_operand.hbm [shape: f32[1,32], index: 4, kind: input, shape index: {}]   ;;  %s1816_s5 = inlined_call_operand.hbm [shape: f32[32,128], index: 5, kind: input, shape index: {}]   ;;  %s1817_s6 = inlined_call_operand.hbm [shape: f32[1,128], index: 6, kind: input, shape index: {}]   ;;  %s1818_s7 = inlined_call_operand.hbm [shape: f32[2,1,128], index: 7, kind: output, shape index: {}]  }
   0x1   :  { %1839 = sst [smem:[#allocation25_spill]] %s1812_s1 }
   0x2   :  { %1840 = sst [smem:[#allocation26_spill]] %s1814_s3 }
   0x3   :  { %1841 = sst [smem:[#allocation27_spill]] %s1816_s5 }
   0x4   :  { %12 = vsyncpa [#allocation3], 0 }
   0x5   :  { %14 = vsyncpa [#allocation3 + $0x1], 0 }
   0x6   :  { %15 = vsyncpa [#allocation6], 0 }
   0x7   :  { %17 = vsyncpa [#allocation6 + $0x1], 0 }
   0x8   :  { %18 = vsyncpa [#allocation9], 0 }
   0x9   :  { %19 = vsyncpa [#allocation12], 0 }
   0xa   :  { %20 = vsyncpa [#allocation4], 0 }
   0xb   :  { %22 = vsyncpa [#allocation4 + $0x1], 0  ;;  %s1425_s24 = smov 0   ;;  %s1427_s25 = smov 0  }
   0xc   :  { %s1429_s26 = smov 0   ;;  %s1431_s27 = smov 0  }
   0xd LB: > { %1842 = sst [smem:[#allocation20_spill]] %s1354_s24  ;;  %s1446_s28 = sadd.s32 4294967295, %s1366_s27   ;;  %s1366_s27 = sphi %s1431_s27, %s1877_s27   ;;  %s1362_s26 = sphi %s1429_s26, %s1881_s26   ;;  %s1358_s25 = sphi %s1427_s25, %s1880_s25   ;;  %s1354_s24 = sphi %s1425_s24, %s1879_s24  }
   0xe   : > { %1843 = sst [smem:[#allocation21_spill]] %s1366_s27  ;;  %s902_s29 = sadd.s32 4294967294, %s1366_s27  }
   0xf   : > { %p48_p0 = scmp.ne.s32.totalorder %s1358_s25, %s1354_s24  ;;  %p1819_p1 = scmp.eq.s32.totalorder %s1446_s28, 0 }
  0x10   : > { %p214_p3 = scmp.eq.s32.totalorder %s902_s29, 1  ;;  %p903_p5 = scmp.ge.s32.totalorder %s1366_s27, 1 }
  0x11   : > { %p1455_p4 = por %p1819_p1, %p48_p0  ;;  %p221_p7 = scmp.lt.s32.totalorder %s1366_s27, 3 }
  0x12   : > { %p1460_p6 = por %p214_p3, %p48_p0  ;;  %s1368_s10 = smov [#allocation8]  }
  0x13   : > { %s1844_s30 = scalar_select %p1455_p4, 1, 0 }
  0x14   : > { %s1845_s8 = scalar_select %p1460_p6, 1, 0 }
  0x15   : > { %p1465_p8 = pnand %p903_p5, %p221_p7  ;;  %s234_s11 = sshll.u32 %s1368_s10, 4  ;;  %s235_s11 = int_to_ptr.vmem [resolvable:$true] %s234_s11 }
  0x16   : > { %1846 = sst [smem:[#allocation22_spill]] %s1845_s8  ;;  %s1369_s12 = smov [#allocation11]  }
  0x17   : > { %s1847_s9 = scalar_select %p1465_p8, 1, 0 }
  0x18   : > { %p1004_p10 = pneg %p1465_p8  ;;  %s255_s13 = sshll.u32 %s1369_s12, 4  ;;  %s1478_s13 = int_to_ptr.vmem [resolvable:$true] %s255_s13 }
  0x19   : > { %s1849_s3 = sld [smem:[#allocation26_spill]] }
  0x1a   : > { %p1474_p11 = pnand %p1004_p10, %p1819_p1 }
  0x1c   : > { %s1848_s14 = scalar_select %p1474_p11, 1, 0 }
  0x1d   : > { %p1488_p13 = pneg %p1474_p11 }
  0x1f   : > { %s1086_s17 = scalar_lea.hbm %s1849_s3, 16 }
  0x20   : > { %p1087_p12 = scmp.ne.s32.totalorder %s1849_s3, %s1086_s17  ;;  %p1093_p5 = scmp.lt.u32.totalorder %s1086_s17, %s1849_s3 }
  0x21   : > { %s1850_s20 = scalar_select %p1488_p13, 1, 0 }
  0x22   : > { %p1089_p0 = pnand %p1488_p13, %p1087_p12 }
  0x24   : > { %p1090_p3 = pneg %p1089_p0 }
  0x26   : > { %p1095_p7 = pnand %p1093_p5, %p1090_p3 }
  0x28   : > { %1098 = shalt.err (!%p1095_p7)
}
  0x29   : > { %s1099_s23 = scalar_lea.vmem %s235_s11, 16  ;;  %s1106_s29 = scalar_lea.vmem %s235_s11, 32 }
  0x2a   : > { %p1100_p10 = scmp.ne.s32.totalorder %s235_s11, %s1099_s23  ;;  %p1107_p2 = scmp.lt.s32.totalorder %s235_s11, %s235_s11 }
  0x2b   : > { %p1108_p6 = scmp.lt.s32.totalorder %s1106_s29, %s1099_s23 }
  0x2c   : > { %p1102_p9 = pnand %p1100_p10, %p1488_p13 }
  0x2d   : > { %p1109_p4 = por %p1108_p6, %p1107_p2 }
  0x2e   : > { %p1103_p1 = pneg %p1102_p9 }
  0x30   : > { %p1110_p8 = pnand %p1109_p4, %p1103_p1 }
  0x32   : > { %1113 = shalt.err (!%p1110_p8)
}
  0x33   : > { %1007 = dma.hbm_to_vmem [thread:$0]  (!%p1474_p11), %s1849_s3, 16, %s235_s11, [#allocation9]  }
  0x34   : > { %s1851_s5 = sld [smem:[#allocation27_spill]] }
  0x3a   : > { %s1114_s17 = scalar_lea.hbm %s1851_s5, 512 }
  0x3b   : > { %p1115_p9 = scmp.ne.s32.totalorder %s1851_s5, %s1114_s17  ;;  %p1121_p1 = scmp.lt.u32.totalorder %s1114_s17, %s1851_s5 }
  0x3d   : > { %p1117_p12 = pnand %p1115_p9, %p1488_p13 }
  0x3f   : > { %p1118_p2 = pneg %p1117_p12 }
  0x41   : > { %p1123_p4 = pnand %p1121_p1, %p1118_p2 }
  0x43   : > { %1126 = shalt.err (!%p1123_p4)
}
  0x44   : > { %s1127_s11 = scalar_lea.vmem %s1478_s13, 512  ;;  %p1135_p3 = scmp.lt.s32.totalorder %s1478_s13, %s1478_s13 }
  0x45   : > { %p1128_p6 = scmp.ne.s32.totalorder %s1478_s13, %s1127_s11  ;;  %p1136_p5 = scmp.lt.s32.totalorder %s1127_s11, %s1127_s11 }
  0x47   : > { %p1130_p8 = pnand %p1128_p6, %p1488_p13  ;;  %p1137_p7 = por %p1136_p5, %p1135_p3 }
  0x49   : > { %p1131_p0 = pneg %p1130_p8 }
  0x4b   : > { %p1138_p10 = pnand %p1137_p7, %p1131_p0 }
  0x4d   : > { %1141 = shalt.err (!%p1138_p10)
}
  0x4e   : > { %s1370_s23 = smov 128   ;;  %s1371_s29 = smov 8  }
  0x4f   : > { %1013 = dma.hbm_to_vmem [thread:$0]  (!%p1474_p11), %s1851_s5, 512, %s1478_s13, [#allocation12], %s1370_s23, %s1370_s23, %s1371_s29  }
  0x50   : > { %s1528_s15 = sadd.s32 1, %s1366_s27   ;;  %s35_s16 = sadd.s32 1, %s1362_s26 }
  0x51   : > { %1852 = sst [smem:[#allocation23_spill]] %s1528_s15  ;;  %s32_s17 = ssub.s32 %s1366_s27, %s1528_s15 }
  0x52   : > { %p42_p9 = scmp.ne.s32.totalorder %s1362_s26, %s1358_s25  ;;  %p33_p12 = scmp.eq.s32.totalorder %s32_s17, 0 }
  0x53   : > { %p43_p2 = scmp.eq.s32.totalorder %s1366_s27, 0  ;;  %p1853_p1 = scmp.eq.s32.totalorder %s1446_s28, 1 }
  0x54   : > { %p1035_p6 = scmp.lt.s32.totalorder %s1366_s27, 2  ;;  %s1822_s21 = sand.u32 1, %s1362_s26  }
  0x55   : > { %p1538_p4 = por %p1853_p1, %p42_p9  ;;  %p44_p8 = por %p43_p2, %p42_p9 }
  0x56   : > { %s1544_s19 = scalar_select %p33_p12, %s1362_s26, %s35_s16  }
  0x57   : > { %s1854_s18 = scalar_select %p1538_p4, 1, 0 }
  0x58   : > { %1855 = sst [smem:[#allocation24_spill]] %s1544_s19  ;;  %s1549_s13 = sshll.u32 %s1822_s21, 3 }
  0x59   : > { %s1552_s22 = sshll.u32 %s1366_s27, 7  ;;  %p1554_p0 = pnand %p1035_p6, %p44_p8 }
  0x5a   : > { %s301_s23 = sand.u32 1, %s1366_s27   ;;  %s1857_s1 = sld [smem:[#allocation25_spill]] }
  0x5b   : > { %s1856_s11 = scalar_select %p1554_p0, 1, 0 }
  0x5c   : > { %s305_s16 = scalar_lea.vmem [#allocation5], %s1549_s13  ;;  %s1372_s21 = smov [#allocation10]  }
  0x5d   : > { %s312_s17 = sshll.u32 %s305_s16, 4  ;;  %s1568_s3 = sshll.u32 %s1372_s21, 4  ;;  %s1566_s17 = int_to_ptr.vmem [resolvable:$true] %s312_s17  ;;  %s246_s3 = int_to_ptr.vmem [resolvable:$true] %s1568_s3 }
  0x5e   : > { %s1570_s5 = scalar_lea.sflag [#allocation6], %s301_s23  ;;  %p1576_p5 = pneg %p1554_p0 }
  0x60   : > { %s1563_s12 = scalar_lea.hbm %s1857_s1, %s1552_s22  ;;  %s1147_s15 = scalar_lea.hbm %s1857_s1, 256 }
  0x61   : > { %s1142_s19 = scalar_lea.hbm %s1563_s12, 128  ;;  %p1148_p9 = scmp.lt.u32.totalorder %s1563_s12, %s1857_s1 }
  0x62   : > { %p1143_p3 = scmp.ne.s32.totalorder %s1563_s12, %s1142_s19  ;;  %p1149_p12 = scmp.lt.u32.totalorder %s1147_s15, %s1142_s19 }
  0x63   : > { %s1858_s29 = scalar_select %p1576_p5, 1, 0 }
  0x64   : > { %p1145_p7 = pnand %p1576_p5, %p1143_p3  ;;  %p1150_p2 = por %p1149_p12, %p1148_p9 }
  0x65   : > { %p1151_p1 = scmp.lt.u32.totalorder %s1142_s19, %s1563_s12 }
  0x66   : > { %p1146_p10 = pneg %p1145_p7 }
  0x67   : > { %p1152_p6 = por %p1151_p1, %p1150_p2 }
  0x69   : > { %p1153_p8 = pnand %p1152_p6, %p1146_p10 }
  0x6b   : > { %1156 = shalt.err (!%p1153_p8)
}
  0x6c   : > { %s1157_s23 = scalar_lea.vmem %s1566_s17, 128  ;;  %s1373_s10 = smov [#allocation5]  }
  0x6d   : > { %p1158_p3 = scmp.ne.s32.totalorder %s1566_s17, %s1157_s23  ;;  %s1162_s16 = sshll.u32 %s1373_s10, 4  ;;  %s1163_s16 = int_to_ptr.vmem [resolvable:$false] %s1162_s16 }
  0x6e   : > { %s1164_s27 = scalar_lea.vmem %s1163_s16, 256  ;;  %p1165_p11 = scmp.lt.s32.totalorder %s1566_s17, %s1163_s16 }
  0x6f   : > { %p1160_p7 = pnand %p1158_p3, %p1576_p5  ;;  %p1166_p13 = scmp.lt.s32.totalorder %s1164_s27, %s1157_s23 }
  0x71   : > { %p1161_p4 = pneg %p1160_p7  ;;  %p1167_p9 = por %p1166_p13, %p1165_p11 }
  0x73   : > { %p1168_p12 = pnand %p1167_p9, %p1161_p4 }
  0x75   : > { %1171 = shalt.err (!%p1168_p12)
}
  0x76   : > { %s1835_s15 = smov 64   ;;  %s1375_s19 = smov 4  }
  0x77   : > { %1023 = dma.hbm_to_vmem [thread:$0]  (!%p1554_p0), %s1563_s12, 128, %s1566_s17, %s1570_s5, %s1835_s15, %s1835_s15, %s1375_s19  }
  0x78   : > { %s1172_s23 = scalar_lea.hbm %s1815_s4, 16  ;;  %p1859_p13 = scmp.ne.s32.totalorder %s1850_s20, 0 }
  0x79   : > { %p1173_p11 = scmp.ne.s32.totalorder %s1815_s4, %s1172_s23  ;;  %p1179_p2 = scmp.lt.u32.totalorder %s1172_s23, %s1815_s4 }
  0x7b   : > { %p1175_p4 = pnand %p1173_p11, %p1859_p13 }
  0x7d   : > { %p1176_p10 = pneg %p1175_p4 }
  0x7f   : > { %p1181_p1 = pnand %p1179_p2, %p1176_p10 }
  0x81   : > { %1184 = shalt.err (!%p1181_p1)
}
  0x82   : > { %s1185_s24 = scalar_lea.vmem %s246_s3, 16  ;;  %s1192_s12 = scalar_lea.vmem %s246_s3, 32 }
  0x83   : > { %p1186_p6 = scmp.ne.s32.totalorder %s246_s3, %s1185_s24  ;;  %p1193_p7 = scmp.lt.s32.totalorder %s246_s3, %s246_s3 }
  0x84   : > { %p1194_p9 = scmp.lt.s32.totalorder %s1192_s12, %s1185_s24 }
  0x85   : > { %p1188_p8 = pnand %p1186_p6, %p1859_p13 }
  0x86   : > { %p1195_p12 = por %p1194_p9, %p1193_p7 }
  0x87   : > { %p1189_p3 = pneg %p1188_p8 }
  0x89   : > { %p1196_p0 = pnand %p1195_p12, %p1189_p3 }
  0x8b   : > { %1199 = shalt.err (!%p1196_p0)
}
  0x8c   : > { %p1860_p11 = scmp.ne.s32.totalorder %s1848_s14, 0  ;;  %s1376_s1 = smov [#allocation13]  }
  0x8d   : > { %s269_s8 = sshll.u32 %s1376_s1, 4  ;;  %s1200_s16 = scalar_lea.hbm %s1817_s6, 16  ;;  %s270_s8 = int_to_ptr.vmem [resolvable:$true] %s269_s8 }
  0x8e   : > { %1010 = dma.hbm_to_vmem [thread:$0]  (!%p1860_p11), %s1815_s4, 16, %s246_s3, [#allocation9]  }
  0x8f   : > { %p1201_p4 = scmp.ne.s32.totalorder %s1817_s6, %s1200_s16  ;;  %p1207_p2 = scmp.lt.u32.totalorder %s1200_s16, %s1817_s6 }
  0x91   : > { %p1203_p0 = pnand %p1201_p4, %p1859_p13 }
  0x93   : > { %p1204_p10 = pneg %p1203_p0 }
  0x95   : > { %p1209_p1 = pnand %p1207_p2, %p1204_p10 }
  0x97   : > { %1212 = shalt.err (!%p1209_p1)
}
  0x98   : > { %s1213_s3 = scalar_lea.vmem %s270_s8, 16  ;;  %s1220_s17 = scalar_lea.vmem %s270_s8, 32 }
  0x99   : > { %p1214_p6 = scmp.ne.s32.totalorder %s270_s8, %s1213_s3  ;;  %p1221_p7 = scmp.lt.s32.totalorder %s270_s8, %s270_s8 }
  0x9a   : > { %p1222_p9 = scmp.lt.s32.totalorder %s1220_s17, %s1213_s3 }
  0x9b   : > { %p1216_p8 = pnand %p1214_p6, %p1859_p13 }
  0x9c   : > { %p1223_p12 = por %p1222_p9, %p1221_p7 }
  0x9d   : > { %p1217_p3 = pneg %p1216_p8 }
  0x9f   : > { %p1224_p5 = pnand %p1223_p12, %p1217_p3 }
  0xa1   : > { %1227 = shalt.err (!%p1224_p5)
}
  0xa2   : > { %1016 = dma.hbm_to_vmem [thread:$0]  (!%p1860_p11), %s1817_s6, 16, %s270_s8, [#allocation12]  }
  0xa3   : > { %s1644_s10 = scalar_lea.hbm %s1811_s0, %s1552_s22  ;;  %s284_s23 = scalar_lea.vmem [#allocation2], %s1549_s13 }
  0xa4   : > { %s291_s16 = sshll.u32 %s284_s23, 4  ;;  %s1861_s14 = sand.u32 1, %s1362_s26   ;;  %s1647_s16 = int_to_ptr.vmem [resolvable:$true] %s291_s16 }
  0xa5   : > { %s1651_s27 = scalar_lea.sflag [#allocation3], %s1861_s14  ;;  %s1228_s24 = scalar_lea.hbm %s1644_s10, 128 }
  0xa6   : > { %p1229_p5 = scmp.ne.s32.totalorder %s1644_s10, %s1228_s24  ;;  %p1862_p13 = scmp.ne.s32.totalorder %s1858_s29, 0 }
  0xa7   : > { %s1233_s3 = scalar_lea.hbm %s1811_s0, 256  ;;  %p1234_p0 = scmp.lt.u32.totalorder %s1644_s10, %s1811_s0 }
  0xa8   : > { %p1231_p11 = pnand %p1229_p5, %p1862_p13  ;;  %p1235_p10 = scmp.lt.u32.totalorder %s1233_s3, %s1228_s24 }
  0xa9   : > { %p1237_p1 = scmp.lt.u32.totalorder %s1228_s24, %s1644_s10 }
  0xaa   : > { %p1232_p4 = pneg %p1231_p11  ;;  %p1236_p2 = por %p1235_p10, %p1234_p0 }
  0xac   : > { %p1238_p6 = por %p1237_p1, %p1236_p2 }
  0xae   : > { %p1239_p8 = pnand %p1238_p6, %p1232_p4 }
  0xb0   : > { %1242 = shalt.err (!%p1239_p8)
}
  0xb1   : > { %s1243_s21 = scalar_lea.vmem %s1647_s16, 128  ;;  %s1377_s1 = smov [#allocation2]  }
  0xb2   : > { %p1244_p3 = scmp.ne.s32.totalorder %s1647_s16, %s1243_s21  ;;  %s1248_s20 = sshll.u32 %s1377_s1, 4  ;;  %s1249_s20 = int_to_ptr.vmem [resolvable:$false] %s1248_s20 }
  0xb3   : > { %s1250_s23 = scalar_lea.vmem %s1249_s20, 256  ;;  %p1251_p12 = scmp.lt.s32.totalorder %s1647_s16, %s1249_s20 }
  0xb4   : > { %p1246_p7 = pnand %p1244_p3, %p1862_p13  ;;  %p1252_p5 = scmp.lt.s32.totalorder %s1250_s23, %s1243_s21 }
  0xb6   : > { %p1247_p9 = pneg %p1246_p7  ;;  %p1253_p11 = por %p1252_p5, %p1251_p12 }
  0xb8   : > { %p1254_p0 = pnand %p1253_p11, %p1247_p9 }
  0xba   : > { %1257 = shalt.err (!%p1254_p0)
}
  0xbb   : > { %p1863_p4 = scmp.ne.s32.totalorder %s1856_s11, 0  ;;  %s1864_s14 = smov 64  }
  0xbc   : > { %s1682_s12 = scalar_lea.hbm %s1813_s2, %s1552_s22  ;;  %s326_s3 = scalar_lea.vmem [#allocation7], %s1549_s13 }
  0xbd   : > { %1020 = dma.hbm_to_vmem [thread:$0]  (!%p1863_p4), %s1644_s10, 128, %s1647_s16, %s1651_s27, %s1864_s14, %s1864_s14, %s1375_s19  }
  0xbe   : > { %s333_s17 = sshll.u32 %s326_s3, 4  ;;  %s1258_s15 = scalar_lea.hbm %s1682_s12, 128  ;;  %s1685_s17 = int_to_ptr.vmem [resolvable:$true] %s333_s17 }
  0xbf   : > { %p1259_p10 = scmp.ne.s32.totalorder %s1682_s12, %s1258_s15  ;;  %s1263_s16 = scalar_lea.hbm %s1813_s2, 256 }
  0xc0   : > { %p1264_p6 = scmp.lt.u32.totalorder %s1682_s12, %s1813_s2  ;;  %p1265_p8 = scmp.lt.u32.totalorder %s1263_s16, %s1258_s15 }
  0xc1   : > { %p1261_p2 = pnand %p1259_p10, %p1862_p13  ;;  %p1267_p7 = scmp.lt.u32.totalorder %s1258_s15, %s1682_s12 }
  0xc2   : > { %p1266_p3 = por %p1265_p8, %p1264_p6 }
  0xc3   : > { %p1262_p1 = pneg %p1261_p2 }
  0xc4   : > { %p1268_p9 = por %p1267_p7, %p1266_p3 }
  0xc6   : > { %p1269_p12 = pnand %p1268_p9, %p1262_p1 }
  0xc8   : > { %1272 = shalt.err (!%p1269_p12)
}
  0xc9   : > { %s1273_s13 = scalar_lea.vmem %s1685_s17, 128  ;;  %s1378_s1 = smov [#allocation7]  }
  0xca   : > { %p1274_p5 = scmp.ne.s32.totalorder %s1685_s17, %s1273_s13  ;;  %s1278_s20 = sshll.u32 %s1378_s1, 4  ;;  %s1279_s20 = int_to_ptr.vmem [resolvable:$false] %s1278_s20 }
  0xcb   : > { %s1280_s23 = scalar_lea.vmem %s1279_s20, 256  ;;  %p1281_p10 = scmp.lt.s32.totalorder %s1685_s17, %s1279_s20 }
  0xcc   : > { %p1276_p11 = pnand %p1274_p5, %p1862_p13  ;;  %p1282_p2 = scmp.lt.s32.totalorder %s1280_s23, %s1273_s13 }
  0xce   : > { %p1277_p0 = pneg %p1276_p11  ;;  %p1283_p6 = por %p1282_p2, %p1281_p10 }
  0xd0   : > { %p1284_p8 = pnand %p1283_p6, %p1277_p0 }
  0xd2   : > { %1287 = shalt.err (!%p1284_p8)
}
  0xd3   : > { %1026 = dma.hbm_to_vmem [thread:$0]  (!%p1863_p4), %s1682_s12, 128, %s1685_s17, %s1570_s5, %s1864_s14, %s1864_s14, %s1375_s19  }
  0xd4   : > { %p1865_p13 = scmp.ne.s32.totalorder %s1847_s9, 0 }
  0xd5   : > { %s1715_s29 = sand.u32 (!%p1865_p13), 1, %s1358_s25   ;;  %p1866_p1 = scmp.ne.s32.totalorder (!%p1865_p13), %s1844_s30, 0 }
  0xd6   : > { %345 = sbr.rel (%p1865_p13) target bundleno = 610 (0x262), region = 48  ;;  %s1718_s24 = sshll.u32 (!%p1865_p13), %s1715_s29, 3 }
  0xd7   : > { %s348_s11 = scalar_lea.sflag (!%p1865_p13), [#allocation3], %s1715_s29  ;;  %s351_s8 = scalar_lea.vmem (!%p1865_p13), [#allocation2], %s1718_s24 }
  0xdd   : > { %1333 = dma.done.wait (%p1866_p1), %s348_s11, 128  }
  0xde   : > { %1335 = vsyncadd (%p1866_p1), %s348_s11, 4294967168  ;;  %s356_s5 = sand.u32 1, %s1446_s28   ;;  %s360_s19 = scalar_lea.vmem [#allocation5], %s1718_s24 }
  0xdf   : > { %s357_s9 = scalar_lea.sflag [#allocation6], %s356_s5 }
  0xe0   : > { %1337 = dma.done.wait (%p1866_p1), %s357_s9, 256  }
  0xe1   : > { %1339 = vsyncadd (%p1866_p1), %s357_s9, 4294967040  ;;  %s369_s14 = scalar_lea.vmem [#allocation7], %s1718_s24  ;;  %p1867_p4 = scmp.eq.s32.totalorder %s1446_s28, 0 }
  0xe3   : > { %1341 = dma.done.wait (%p1867_p4), [#allocation9], 32   ;;  %p1868_p3 = pmov %p1867_p4 }
  0xe5   : > { %1343 = vsyncadd (%p1868_p3), [#allocation9], 4294967264  ;;  %p1869_p7 = pmov %p1868_p3 }
  0xe6   : > { %p1870_p9 = pmov %p1868_p3 }
  0xe7   : > { %1345 = dma.done.wait (%p1869_p7), [#allocation12], 528  }
  0xe8   : > { %1347 = vsyncadd (%p1870_p9), [#allocation12], 4294966768  ;;  %v926_v0 = vld [vmem:[#allocation8] ss:$0 sm:$0xff]  ;;  %v938_v1 = vld [vmem:[%s351_s8] sm:$0xff]   ;;  %s1379_s30 = smov 104  }
  0xe9   : > { %v939_v2 = vunpack.c.l.bf16 %v938_v1  ;;  %v940_v3 = vunpack.c.h.bf16 %v938_v1  ;;  %644 = vrot.lane.b32.xlu1 %v926_v0, %s1379_s30  ;;  %s1380_s12 = smov 112   ;;  %v927_v4 = vld [vmem:[#allocation10] ss:$0 sm:$0xff]  ;;  %vm450_vm0 = vcmask 130048   ;;  %v1381_v14 = vmov 0.0   ;;  %v565_v15 = vld [vmem:[#allocation11 + $0x10] sm:$0xff] }
  0xea   : > { %542 = vrot.lane.b32.xlu0 %v926_v0, %s1380_s12  ;;  %963 = vmatprep.subr.mxu0 %v1381_v14  ;;  %vm1382_vm1 = vmmov 0   ;;  %v462_v16 = vld [vmem:[#allocation11] sm:$0xff]  ;;  %v463_v17 = vld [vmem:[#allocation11 + $0x8] sm:$0xff]  ;;  %v1383_v20 = vmov 0.0|0.0   ;;  %vm554_vm2 = vcmask 64512   ;;  %s931_s3 = sshll.u32 %s1446_s28, 4 }
  0xeb   : > { %v438_v5 = vmul.f32 %v939_v2, %v926_v0  ;;  %v439_v6 = vmul.f32 %v940_v3, %v926_v0  ;;  %964 = vmatpush3.msra.mxu0 %v565_v15  ;;  %965 = vmatprep.mubr.msk.f32.mxu0 %vm1382_vm1, %v1381_v14  ;;  %v974_v19 = vpack.c.bf16 %v463_v17, %v462_v16  ;;  %v946_v27 = vld [vmem:[%s369_s14] sm:$0xff]   ;;  %v942_v28 = vld [vmem:[%s360_s19] sm:$0xff]   ;;  %s424_s17 = scalar_lea.vmem [#allocation14], %s1715_s29  ;;  %s1767_s16 = scalar_lea.hbm %s1818_s7, %s931_s3 }
  0xec   : > { %968 = vmatprep.subr.mxu0 %v1381_v14  ;;  %960 = vmatprep.mubr.msk.f32.mxu1 %vm1382_vm1, %v1381_v14  ;;  %v947_v29 = vunpack.c.l.bf16 %v946_v27  ;;  %v948_v30 = vunpack.c.h.bf16 %v946_v27  ;;  %v943_v31 = vunpack.c.l.bf16 %v942_v28  ;;  %v944_v32 = vunpack.c.h.bf16 %v942_v28  ;;  %v666_v3 = vld [vmem:[#allocation11 + $0x18] sm:$0xff]  ;;  %s755_s15 = sshll.u32 %s424_s17, 4  ;;  %s743_s27 = scalar_lea.sflag [#allocation4], %s1715_s29  ;;  %s1769_s15 = int_to_ptr.vmem [resolvable:$true] %s755_s15 }
  0xed   : > { %649 = vrot.lane.b32.xlu1 %v927_v4, %s1379_s30  ;;  %v446_v7 = vadd.f32 %v927_v4, %v438_v5  ;;  %v447_v8 = vadd.f32 %v927_v4, %v439_v6  ;;  %973 = vmatprep.subr.bf16.mxu1 %v1383_v20  ;;  %s1288_s22 = scalar_lea.vmem %s1769_s15, 16  ;;  %p1871_p5 = scmp.ne.s32.totalorder %s1854_s18, 0 }
  0xee   : > { %547 = vrot.lane.b32.xlu0 %v927_v4, %s1380_s12  ;;  %975 = vmatpush3.bf16.msra.mxu1 %v974_v19  ;;  %p1289_p12 = scmp.ne.s32.totalorder %s1769_s15, %s1288_s22  ;;  %s1384_s28 = smov [#allocation14]  }
  0xef   : > { %v448_v9 = vmax.f32 %v446_v7, 0.0  ;;  %v449_v10 = vmax.f32 %v447_v8, 0.0  ;;  %v427_v8 = vld [vmem:[#allocation13] sm:$0x1]  ;;  %s1292_s13 = sshll.u32 %s1384_s28, 4  ;;  %s1293_s13 = int_to_ptr.vmem [resolvable:$false] %s1292_s13 }
  0xf0   : > { %p1290_p11 = pnand %p1289_p12, %p1871_p5  ;;  %s1294_s1 = scalar_lea.vmem %s1293_s13, 32 }
  0xf1   : > { %v451_v11 = vsel %vm450_vm0, %v448_v9, 0.0  ;;  %v452_v12 = vsel %vm450_vm0, %v449_v10, 0.0  ;;  %p1295_p10 = scmp.lt.s32.totalorder %s1769_s15, %s1293_s13  ;;  %p1296_p2 = scmp.lt.s32.totalorder %s1294_s1, %s1288_s22 }
  0xf2   : > { %v453_v13 = vadd.f32 %v452_v12, %v451_v11  ;;  %p1291_p0 = pneg %p1290_p11 }
  0xf3   : > { %p1297_p6 = por %p1296_p2, %p1295_p10 }
  0xf4   : > { %v454_v18 = vrot.slane %v453_v13, 4 }
  0xf5   : > { %p1298_p8 = pnand %p1297_p6, %p1291_p0 }
  0xf6   : > { %v455_v21 = vadd.f32 %v454_v18, %v453_v13 }
  0xf8   : > { %v456_v22 = vrot.slane %v455_v21, 2 }
  0xfa   : > { %v457_v23 = vadd.f32 %v456_v22, %v455_v21 }
  0xfc   : > { %v458_v24 = vrot.slane %v457_v23, 1 }
  0xfe   : > { %v459_v25 = vadd.f32 %v458_v24, %v457_v23 }
 0x100   : > { %v461_v26 = vmul.f32 0.0625, %v459_v25 }
 0x102   : > { %961 = vmatmul.mubr.msk.f32.vlgmr.msra.gmra.mrb[0].mxu1 %vm450_vm0, %v461_v26 }
 0x15b   : > { %v645_v33 = vpop.permute.xlu1 %644 }
 0x15c   : > { %v543_v34 = vpop.permute.xlu0 %542  ;;  %v647_v35 = vmul.f32 %v947_v29, %v645_v33  ;;  %v648_v36 = vmul.f32 %v948_v30, %v645_v33 }
 0x15d   : > { %v545_v37 = vmul.f32 %v943_v31, %v543_v34  ;;  %v546_v38 = vmul.f32 %v944_v32, %v543_v34 }
 0x15f   : > { %v650_v39 = vpop.permute.xlu1 %649 }
 0x160   : > { %v548_v40 = vpop.permute.xlu0 %547  ;;  %v652_v41 = vadd.f32 %v650_v39, %v647_v35  ;;  %v653_v42 = vadd.f32 %v650_v39, %v648_v36 }
 0x161   : > { %v550_v43 = vadd.f32 %v548_v40, %v545_v37  ;;  %v551_v44 = vadd.f32 %v548_v40, %v546_v38 }
 0x162   : > { %v654_v45 = vmax.f32 %v652_v41, 0.0  ;;  %v655_v46 = vmax.f32 %v653_v42, 0.0 }
 0x163   : > { %v552_v47 = vmax.f32 %v550_v43, 0.0  ;;  %v553_v48 = vmax.f32 %v551_v44, 0.0 }
 0x164   : > { %v656_v49 = vsel %vm554_vm2, %v654_v45, 0.0  ;;  %v657_v50 = vsel %vm554_vm2, %v655_v46, 0.0 }
 0x165   : > { %v555_v51 = vsel %vm554_vm2, %v552_v47, 0.0  ;;  %v556_v52 = vsel %vm554_vm2, %v553_v48, 0.0  ;;  %v658_v53 = vadd.f32 %v657_v50, %v656_v49 }
 0x166   : > { %v557_v54 = vadd.f32 %v556_v52, %v555_v51 }
 0x167   : > { %v659_v55 = vrot.slane %v658_v53, 4 }
 0x168   : > { %v558_v56 = vrot.slane %v557_v54, 4 }
 0x169   : > { %v660_v57 = vadd.f32 %v659_v55, %v658_v53 }
 0x16a   : > { %v559_v58 = vadd.f32 %v558_v56, %v557_v54 }
 0x16b   : > { %v661_v59 = vrot.slane %v660_v57, 2 }
 0x16c   : > { %v560_v60 = vrot.slane %v559_v58, 2 }
 0x16d   : > { %v662_v62 = vadd.f32 %v661_v59, %v660_v57 }
 0x16e   : > { %v561_v61 = vadd.f32 %v560_v60, %v559_v58 }
 0x16f   : > { %v663_v1 = vrot.slane %v662_v62, 1 }
 0x170   : > { %v562_v63 = vrot.slane %v561_v61, 1 }
 0x171   : > { %v664_v4 = vadd.f32 %v663_v1, %v662_v62 }
 0x172   : > { %v563_v0 = vadd.f32 %v562_v63, %v561_v61 }
 0x173   : > { %v665_v5 = vmul.f32 0.0625, %v664_v4 }
 0x174   : > { %v564_v2 = vmul.f32 0.0625, %v563_v0 }
 0x176   : > { %966 = vmatmul.mubr.msk.f32.vlgmr.msra.gmra.mrb[0].mxu0 %vm554_vm2, %v564_v2 }
 0x177   : > { %969 = vmatpush3.msra.mxu0 %v666_v3  ;;  %970 = vmatprep.mubr.msk.f32.mxu0 %vm1382_vm1, %v1381_v14 }
 0x17e   : > { %971 = vmatmul.mubr.msk.f32.vlgmr.msra.gmra.mrb[0].mxu0 %vm554_vm2, %v665_v5 }
 0x1d5   : > { %v533_v6 = vpop.f32.mrb[0].mxu1 }
 0x1d6   : > { %v962_v7 = vpop.f32.mrb[1].mxu1  ;;  %v537_v9 = vadd.f32 %v533_v6, %v427_v8 }
 0x251   : > { %v736_v10 = vpop.f32.mrb[0].mxu0 }
 0x252   : > { %v977_v11 = vadd.f32 %v736_v10, %v537_v9  ;;  %v972_v12 = vpop.f32.mrb[1].mxu0 }
 0x254   : > { %741 = vst [vmem:[%s424_s17] sm:$0x1] %v977_v11 }
 0x255   : > { %1301 = shalt.err (!%p1298_p8)
}
 0x256   : > { %s1302_s20 = scalar_lea.hbm %s1767_s16, 16  ;;  %s1306_s24 = scalar_lea.hbm %s1818_s7, 32 }
 0x257   : > { %p1303_p13 = scmp.ne.s32.totalorder %s1767_s16, %s1302_s20  ;;  %p1307_p3 = scmp.lt.u32.totalorder %s1767_s16, %s1818_s7 }
 0x258   : > { %p1308_p7 = scmp.lt.u32.totalorder %s1306_s24, %s1302_s20  ;;  %p1310_p12 = scmp.lt.u32.totalorder %s1302_s20, %s1767_s16 }
 0x259   : > { %p1304_p1 = pnand %p1303_p13, %p1871_p5 }
 0x25a   : > { %p1309_p9 = por %p1308_p7, %p1307_p3 }
 0x25b   : > { %p1305_p4 = pneg %p1304_p1 }
 0x25c   : > { %p1311_p11 = por %p1310_p12, %p1309_p9 }
 0x25e   : > { %p1312_p0 = pnand %p1311_p11, %p1305_p4 }
 0x260   : > { %1315 = shalt.err (!%p1312_p0)
}
 0x261   : > { %1002 = dma.vmem_to_hbm [thread:$0]  (%p1871_p5), %s1769_s15, 16, %s1767_s16, %s743_s27  }
 0x262 PF: > { %s1872_s5 = sld [smem:[#allocation20_spill]]  ;;  %s1873_s9 = sld [smem:[#allocation22_spill]] }
 0x263   : > { %s1874_s19 = sld [smem:[#allocation21_spill]] }
 0x268   : > { %s767_s14 = sand.u32 1, %s1872_s5   ;;  %p1875_p10 = scmp.ne.s32.totalorder %s1873_s9, 0 }
 0x269   : > { %p1876_p2 = scmp.ge.s32.totalorder %s1874_s19, 2  ;;  %s768_s30 = scalar_lea.sflag [#allocation4], %s767_s14 }
 0x26b   : > { %p1028_p6 = pnand %p1876_p2, %p1875_p10 }
 0x26d   : > { %1349 = dma.done.wait (!%p1028_p6), %s768_s30, 16  }
 0x26e   : > { %1351 = vsyncadd (!%p1028_p6), %s768_s30, 4294967280  ;;  %s1877_s27 = sld [smem:[#allocation23_spill]]  ;;  %s1878_s12 = sld [smem:[#allocation24_spill]] }
 0x26f   : > { %s1879_s24 = smov %s1358_s25  ;;  %s1880_s25 = smov %s1362_s26 }
 0x274   : > { %p25_p8 = scmp.ge.s32.totalorder %s1877_s27, 4   ;;  %s1881_s26 = smov %s1878_s12 }
 0x276   :  { %27 = sbr.rel (!%p25_p8) target bundleno = 13 (0xd), region = 133 }
 0x27d   :  { %772 = vsyncpa [#allocation3], 1 }
 0x27e   :  { %774 = vsyncpa [#allocation3 + $0x1], 1 }
 0x27f   :  { %775 = vsyncpa [#allocation6], 1 }
 0x280   :  { %777 = vsyncpa [#allocation6 + $0x1], 1 }
 0x281   :  { %778 = vsyncpa [#allocation9], 1 }
 0x282   :  { %779 = vsyncpa [#allocation12], 1 }
 0x283   :  { %780 = vsyncpa [#allocation4], 1 }
 0x284   :  { %782 = vsyncpa [#allocation4 + $0x1], 1 }

// kernel: densenet_forward.14
= control target key start
LH: loop header
LB: loop body
LE: loop exit
PB: predicated region body
PF: predicated region fallthrough
CT: control target
= control target key end

     0   :  { %s3274_s0 = inlined_call_operand.hbm [shape: bf16[2,16,16], index: 0, kind: input, shape index: {}]   ;;  %s3275_s1 = inlined_call_operand.hbm [shape: bf16[2,16,8], index: 1, kind: input, shape index: {}]   ;;  %s3276_s2 = inlined_call_operand.hbm [shape: bf16[24,16], index: 2, kind: input, shape index: {}]   ;;  %s3277_s3 = inlined_call_operand.hbm [shape: f32[1,24], index: 3, kind: input, shape index: {}]   ;;  %s3278_s4 = inlined_call_operand.hbm [shape: f32[1,24], index: 4, kind: input, shape index: {}]   ;;  %s3279_s5 = inlined_call_operand.hbm [shape: f32[1,16], index: 5, kind: input, shape index: {}]   ;;  %s3280_s6 = inlined_call_operand.hbm [shape: f32[1,16], index: 6, kind: input, shape index: {}]   ;;  %s3281_s7 = inlined_call_operand.hbm [shape: bf16[9,16,8], index: 7, kind: input, shape index: {}]   ;;  %s3282_s8 = inlined_call_operand.hbm [shape: bf16[2,16,8], index: 8, kind: output, shape index: {}]  }
   0x1   :  { %3290 = sst [smem:[#allocation25_spill]] %s3276_s2 }
   0x2   :  { %3291 = sst [smem:[#allocation26_spill]] %s3277_s3 }
   0x3   :  { %3292 = sst [smem:[#allocation27_spill]] %s3278_s4 }
   0x4   :  { %3293 = sst [smem:[#allocation28_spill]] %s3279_s5 }
   0x5   :  { %3294 = sst [smem:[#allocation29_spill]] %s3280_s6 }
   0x6   :  { %13 = vsyncpa [#allocation4], 0 }
   0x7   :  { %15 = vsyncpa [#allocation4 + $0x1], 0 }
   0x8   :  { %16 = vsyncpa [#allocation7], 0 }
   0x9   :  { %18 = vsyncpa [#allocation7 + $0x1], 0 }
   0xa   :  { %19 = vsyncpa [#allocation10], 0 }
   0xb   :  { %20 = vsyncpa [#allocation13], 0 }
   0xc   :  { %21 = vsyncpa [#allocation16], 0 }
   0xd   :  { %22 = vsyncpa [#allocation5], 0 }
   0xe   :  { %24 = vsyncpa [#allocation5 + $0x1], 0  ;;  %s2760_s27 = smov 0   ;;  %s2762_s28 = smov 0  }
   0xf   :  { %s2764_s29 = smov 0   ;;  %s2766_s30 = smov 0  }
  0x10 LB: > { %s2697_s9 = smov [#allocation8]   ;;  %s2781_s11 = sadd.s32 4294967295, %s2695_s30   ;;  %s2695_s30 = sphi %s2766_s30, %s3332_s30   ;;  %s2691_s29 = sphi %s2764_s29, %s3331_s29   ;;  %s2687_s28 = sphi %s2762_s28, %s3330_s28   ;;  %s2683_s27 = sphi %s2760_s27, %s3329_s27  }
  0x11   : > { %s251_s10 = sshll.u32 %s2697_s9, 4  ;;  %p2003_p0 = scmp.ge.s32.totalorder %s2695_s30, 1  ;;  %s2786_s10 = int_to_ptr.vmem [resolvable:$true] %s251_s10 }
  0x12   : > { %p3285_p1 = scmp.eq.s32.totalorder %s2781_s11, 0  ;;  %p239_p2 = scmp.lt.s32.totalorder %s2695_s30, 3 }
  0x13   : > { %s2698_s13 = smov [#allocation9]   ;;  %s2699_s16 = smov [#allocation12]  }
  0x14   : > { %p2788_p3 = pnand %p2003_p0, %p239_p2  ;;  %s265_s14 = sshll.u32 %s2698_s13, 4  ;;  %s2801_s14 = int_to_ptr.vmem [resolvable:$true] %s265_s14 }
  0x15   : > { %s287_s17 = sshll.u32 %s2699_s16, 4  ;;  %s3297_s2 = sld [smem:[#allocation25_spill]]  ;;  %s2803_s17 = int_to_ptr.vmem [resolvable:$true] %s287_s17 }
  0x16   : > { %s3295_s12 = scalar_select %p2788_p3, 1, 0 }
  0x17   : > { %p2268_p5 = pneg %p2788_p3 }
  0x19   : > { %p2797_p6 = pnand %p2268_p5, %p3285_p1 }
  0x1b   : > { %s2381_s20 = scalar_lea.hbm %s3297_s2, 192  ;;  %p2813_p8 = pneg %p2797_p6 }
  0x1c   : > { %p2382_p7 = scmp.ne.s32.totalorder %s3297_s2, %s2381_s20  ;;  %p2388_p11 = scmp.lt.u32.totalorder %s2381_s20, %s3297_s2 }
  0x1e   : > { %p2384_p9 = pnand %p2813_p8, %p2382_p7 }
  0x20   : > { %p2385_p10 = pneg %p2384_p9 }
  0x22   : > { %p2390_p12 = pnand %p2388_p11, %p2385_p10 }
  0x24   : > { %2393 = shalt.err (!%p2390_p12)
}
  0x25   : > { %s2394_s26 = scalar_lea.vmem %s2786_s10, 192  ;;  %p2402_p5 = scmp.lt.s32.totalorder %s2786_s10, %s2786_s10 }
  0x26   : > { %p2395_p13 = scmp.ne.s32.totalorder %s2786_s10, %s2394_s26  ;;  %p2403_p4 = scmp.lt.s32.totalorder %s2394_s26, %s2394_s26 }
  0x28   : > { %p2397_p0 = pnand %p2395_p13, %p2813_p8  ;;  %p2404_p7 = por %p2403_p4, %p2402_p5 }
  0x2a   : > { %p2398_p2 = pneg %p2397_p0 }
  0x2c   : > { %p2405_p9 = pnand %p2404_p7, %p2398_p2 }
  0x2e   : > { %2408 = shalt.err (!%p2405_p9)
}
  0x2f   : > { %s3283_s9 = smov 64   ;;  %s3287_s13 = smov 4  }
  0x30   : > { %2271 = dma.hbm_to_vmem [thread:$0]  (!%p2797_p6), %s3297_s2, 192, %s2786_s10, [#allocation7], %s3283_s9, %s3283_s9, %s3287_s13  }
  0x31   : > { %s3299_s3 = sld [smem:[#allocation26_spill]] }
  0x37   : > { %s2409_s21 = scalar_lea.hbm %s3299_s3, 16 }
  0x38   : > { %p2410_p4 = scmp.ne.s32.totalorder %s3299_s3, %s2409_s21  ;;  %p2416_p12 = scmp.lt.u32.totalorder %s2409_s21, %s3299_s3 }
  0x3a   : > { %p2412_p10 = pnand %p2410_p4, %p2813_p8 }
  0x3c   : > { %p2413_p11 = pneg %p2412_p10 }
  0x3e   : > { %p2418_p13 = pnand %p2416_p12, %p2413_p11 }
  0x40   : > { %2421 = shalt.err (!%p2418_p13)
}
  0x41   : > { %s2422_s10 = scalar_lea.vmem %s2801_s14, 16  ;;  %s2429_s16 = scalar_lea.vmem %s2801_s14, 32 }
  0x42   : > { %p2423_p0 = scmp.ne.s32.totalorder %s2801_s14, %s2422_s10  ;;  %p2430_p7 = scmp.lt.s32.totalorder %s2801_s14, %s2801_s14 }
  0x43   : > { %p2431_p9 = scmp.lt.s32.totalorder %s2429_s16, %s2422_s10 }
  0x44   : > { %p2425_p2 = pnand %p2423_p0, %p2813_p8 }
  0x45   : > { %p2432_p4 = por %p2431_p9, %p2430_p7 }
  0x46   : > { %p2426_p5 = pneg %p2425_p2 }
  0x48   : > { %p2433_p10 = pnand %p2432_p4, %p2426_p5 }
  0x4a   : > { %2436 = shalt.err (!%p2433_p10)
}
  0x4b   : > { %2274 = dma.hbm_to_vmem [thread:$0]  (!%p2797_p6), %s3299_s3, 16, %s2801_s14, [#allocation10]  }
  0x4c   : > { %s3300_s5 = sld [smem:[#allocation28_spill]] }
  0x52   : > { %s2437_s22 = scalar_lea.hbm %s3300_s5, 16 }
  0x53   : > { %p2438_p11 = scmp.ne.s32.totalorder %s3300_s5, %s2437_s22  ;;  %p2444_p0 = scmp.lt.u32.totalorder %s2437_s22, %s3300_s5 }
  0x55   : > { %p2440_p12 = pnand %p2438_p11, %p2813_p8 }
  0x57   : > { %p2441_p13 = pneg %p2440_p12 }
  0x59   : > { %p2446_p2 = pnand %p2444_p0, %p2441_p13 }
  0x5b   : > { %2449 = shalt.err (!%p2446_p2)
}
  0x5c   : > { %s2450_s14 = scalar_lea.vmem %s2803_s17, 16  ;;  %s2457_s16 = scalar_lea.vmem %s2803_s17, 32 }
  0x5d   : > { %p2451_p5 = scmp.ne.s32.totalorder %s2803_s17, %s2450_s14  ;;  %p2458_p4 = scmp.lt.s32.totalorder %s2803_s17, %s2803_s17 }
  0x5e   : > { %p2459_p10 = scmp.lt.s32.totalorder %s2457_s16, %s2450_s14 }
  0x5f   : > { %p2453_p7 = pnand %p2451_p5, %p2813_p8 }
  0x60   : > { %p2460_p11 = por %p2459_p10, %p2458_p4 }
  0x61   : > { %p2454_p9 = pneg %p2453_p7 }
  0x63   : > { %p2461_p12 = pnand %p2460_p11, %p2454_p9 }
  0x65   : > { %2464 = shalt.err (!%p2461_p12)
}
  0x66   : > { %2280 = dma.hbm_to_vmem [thread:$0]  (!%p2797_p6), %s3300_s5, 16, %s2803_s17, [#allocation13]  }
  0x67   : > { %s2702_s20 = smov [#allocation11]   ;;  %s2703_s22 = smov [#allocation14]  }
  0x68   : > { %s276_s21 = sshll.u32 %s2702_s20, 4  ;;  %s298_s24 = sshll.u32 %s2703_s22, 4  ;;  %s277_s21 = int_to_ptr.vmem [resolvable:$true] %s276_s21  ;;  %s299_s24 = int_to_ptr.vmem [resolvable:$true] %s298_s24 }
  0x69   : > { %s3301_s4 = sld [smem:[#allocation27_spill]] }
  0x6f   : > { %s2465_s10 = scalar_lea.hbm %s3301_s4, 16 }
  0x70   : > { %p2466_p13 = scmp.ne.s32.totalorder %s3301_s4, %s2465_s10  ;;  %p2472_p5 = scmp.lt.u32.totalorder %s2465_s10, %s3301_s4 }
  0x72   : > { %p2468_p0 = pnand %p2466_p13, %p2813_p8 }
  0x74   : > { %p2469_p2 = pneg %p2468_p0 }
  0x76   : > { %p2474_p7 = pnand %p2472_p5, %p2469_p2 }
  0x78   : > { %2477 = shalt.err (!%p2474_p7)
}
  0x79   : > { %s2478_s17 = scalar_lea.vmem %s277_s21, 16  ;;  %s2485_s19 = scalar_lea.vmem %s277_s21, 32 }
  0x7a   : > { %p2479_p9 = scmp.ne.s32.totalorder %s277_s21, %s2478_s17  ;;  %p2486_p11 = scmp.lt.s32.totalorder %s277_s21, %s277_s21 }
  0x7b   : > { %p2487_p12 = scmp.lt.s32.totalorder %s2485_s19, %s2478_s17 }
  0x7c   : > { %p2481_p4 = pnand %p2479_p9, %p2813_p8 }
  0x7d   : > { %p2488_p1 = por %p2487_p12, %p2486_p11 }
  0x7e   : > { %p2482_p10 = pneg %p2481_p4 }
  0x80   : > { %p2489_p3 = pnand %p2488_p1, %p2482_p10 }
  0x82   : > { %2492 = shalt.err (!%p2489_p3)
}
  0x83   : > { %2277 = dma.hbm_to_vmem [thread:$0]  (!%p2797_p6), %s3301_s4, 16, %s277_s21, [#allocation10]  }
  0x84   : > { %s3302_s6 = sld [smem:[#allocation29_spill]] }
  0x8a   : > { %s2493_s26 = scalar_lea.hbm %s3302_s6, 16 }
  0x8b   : > { %p2494_p13 = scmp.ne.s32.totalorder %s3302_s6, %s2493_s26  ;;  %p2500_p3 = scmp.lt.u32.totalorder %s2493_s26, %s3302_s6 }
  0x8d   : > { %p2496_p0 = pnand %p2494_p13, %p2813_p8 }
  0x8f   : > { %p2497_p1 = pneg %p2496_p0 }
  0x91   : > { %p2502_p2 = pnand %p2500_p3, %p2497_p1 }
  0x93   : > { %2505 = shalt.err (!%p2502_p2)
}
  0x94   : > { %s2506_s17 = scalar_lea.vmem %s299_s24, 16  ;;  %s2513_s21 = scalar_lea.vmem %s299_s24, 32 }
  0x95   : > { %p2507_p5 = scmp.ne.s32.totalorder %s299_s24, %s2506_s17  ;;  %p2514_p4 = scmp.lt.s32.totalorder %s299_s24, %s299_s24 }
  0x96   : > { %p2515_p10 = scmp.lt.s32.totalorder %s2513_s21, %s2506_s17 }
  0x97   : > { %p2509_p7 = pnand %p2507_p5, %p2813_p8 }
  0x98   : > { %p2516_p11 = por %p2515_p10, %p2514_p4 }
  0x99   : > { %p2510_p9 = pneg %p2509_p7 }
  0x9b   : > { %p2517_p12 = pnand %p2516_p11, %p2510_p9 }
  0x9d   : > { %2520 = shalt.err (!%p2517_p12)
}
  0x9e   : > { %2283 = dma.hbm_to_vmem [thread:$0]  (!%p2797_p6), %s3302_s6, 16, %s299_s24, [#allocation13]  }
  0x9f   : > { %s2704_s22 = smov [#allocation15]   ;;  %s2521_s10 = scalar_lea.hbm %s3281_s7, 1152 }
  0xa0   : > { %s308_s9 = sshll.u32 %s2704_s22, 4  ;;  %p2522_p13 = scmp.ne.s32.totalorder %s3281_s7, %s2521_s10  ;;  %s309_s9 = int_to_ptr.vmem [resolvable:$true] %s308_s9 }
  0xa1   : > { %p2528_p3 = scmp.lt.u32.totalorder %s2521_s10, %s3281_s7 }
  0xa2   : > { %p2524_p0 = pnand %p2522_p13, %p2813_p8 }
  0xa4   : > { %p2525_p1 = pneg %p2524_p0 }
  0xa6   : > { %p2530_p2 = pnand %p2528_p3, %p2525_p1 }
  0xa8   : > { %2533 = shalt.err (!%p2530_p2)
}
  0xa9   : > { %s2534_s24 = scalar_lea.vmem %s309_s9, 1152  ;;  %p2542_p4 = scmp.lt.s32.totalorder %s309_s9, %s309_s9 }
  0xaa   : > { %p2535_p5 = scmp.ne.s32.totalorder %s309_s9, %s2534_s24  ;;  %p2543_p10 = scmp.lt.s32.totalorder %s2534_s24, %s2534_s24 }
  0xac   : > { %p2537_p7 = pnand %p2535_p5, %p2813_p8  ;;  %p2544_p11 = por %p2543_p10, %p2542_p4 }
  0xae   : > { %p2538_p9 = pneg %p2537_p7 }
  0xb0   : > { %p2545_p12 = pnand %p2544_p11, %p2538_p9 }
  0xb2   : > { %2548 = shalt.err (!%p2545_p12)
}
  0xb3   : > { %s3303_s21 = smov 64   ;;  %s2002_s15 = sadd.s32 4294967294, %s2695_s30  }
  0xb4   : > { %2286 = dma.hbm_to_vmem [thread:$0]  (!%p2797_p6), %s3281_s7, 1152, %s309_s9, [#allocation16], %s3303_s21, %s3303_s21, %s3287_s13  }
  0xb5   : > { %s2944_s23 = sadd.s32 1, %s2695_s30   ;;  %s37_s25 = sadd.s32 1, %s2691_s29 }
  0xb6   : > { %s34_s22 = ssub.s32 %s2695_s30, %s2944_s23  ;;  %p44_p13 = scmp.ne.s32.totalorder %s2691_s29, %s2687_s28 }
  0xb7   : > { %p35_p8 = scmp.eq.s32.totalorder %s34_s22, 0  ;;  %p45_p0 = scmp.eq.s32.totalorder %s2695_s30, 0 }
  0xb8   : > { %p50_p1 = scmp.ne.s32.totalorder %s2687_s28, %s2683_s27  ;;  %p3305_p2 = scmp.eq.s32.totalorder %s2781_s11, 0 }
  0xb9   : > { %s2955_s26 = scalar_select %p35_p8, %s2691_s29, %s37_s25  }
  0xba   : > { %p2957_p3 = por %p45_p0, %p44_p13  ;;  %p2963_p6 = por %p3305_p2, %p50_p1 }
  0xbb   : > { %p226_p5 = scmp.eq.s32.totalorder %s2781_s11, 1  ;;  %p232_p7 = scmp.eq.s32.totalorder %s2002_s15, 1 }
  0xbc   : > { %p2304_p9 = scmp.lt.s32.totalorder %s2695_s30, 2  ;;  %s322_s14 = sand.u32 1, %s2691_s29  }
  0xbd   : > { %p2970_p4 = por %p226_p5, %p44_p13  ;;  %p2974_p10 = por %p232_p7, %p50_p1 }
  0xbe   : > { %s2011_s17 = sshll.u32 %s322_s14, 3  ;;  %s2099_s24 = sshll.u32 %s2695_s30, 7 }
  0xbf   : > { %s3307_s16 = scalar_select %p2970_p4, 1, 0 }
  0xc0   : > { %s3308_s18 = scalar_select %p2974_p10, 1, 0 }
  0xc1   : > { %s2982_s22 = scalar_lea.hbm %s3274_s0, %s2099_s24  ;;  %s326_s15 = scalar_lea.vmem [#allocation3], %s2011_s17 }
  0xc2   : > { %s333_s25 = sshll.u32 %s326_s15, 4  ;;  %p2988_p11 = pnand %p2304_p9, %p2957_p3  ;;  %s2984_s25 = int_to_ptr.vmem [resolvable:$true] %s333_s25 }
  0xc3   : > { %s2995_s19 = scalar_lea.hbm %s3275_s1, %s2099_s24  ;;  %s347_s20 = scalar_lea.vmem [#allocation6], %s2011_s17 }
  0xc4   : > { %s2997_s4 = sshll.u32 %s347_s20, 4  ;;  %s2999_s5 = scalar_lea.sflag [#allocation4], %s322_s14  ;;  %s3031_s4 = int_to_ptr.vmem [resolvable:$true] %s2997_s4 }
  0xc5   : > { %s2549_s15 = scalar_lea.hbm %s2982_s22, 128  ;;  %p2551_p8 = pneg %p2988_p11 }
  0xc6   : > { %p2550_p12 = scmp.ne.s32.totalorder %s2982_s22, %s2549_s15  ;;  %s2554_s2 = scalar_lea.hbm %s3274_s0, 256 }
  0xc7   : > { %p2555_p1 = scmp.lt.u32.totalorder %s2982_s22, %s3274_s0  ;;  %p2556_p3 = scmp.lt.u32.totalorder %s2554_s2, %s2549_s15 }
  0xc8   : > { %p2552_p13 = pnand %p2551_p8, %p2550_p12  ;;  %p2558_p5 = scmp.lt.u32.totalorder %s2549_s15, %s2982_s22 }
  0xc9   : > { %p2557_p2 = por %p2556_p3, %p2555_p1 }
  0xca   : > { %p2553_p0 = pneg %p2552_p13 }
  0xcb   : > { %p2559_p7 = por %p2558_p5, %p2557_p2 }
  0xcd   : > { %p2560_p9 = pnand %p2559_p7, %p2553_p0 }
  0xcf   : > { %2563 = shalt.err (!%p2560_p9)
}
  0xd0   : > { %s2564_s14 = scalar_lea.vmem %s2984_s25, 128  ;;  %s2705_s6 = smov [#allocation3]  }
  0xd1   : > { %p2565_p12 = scmp.ne.s32.totalorder %s2984_s25, %s2564_s14  ;;  %s2569_s17 = sshll.u32 %s2705_s6, 4  ;;  %s2570_s17 = int_to_ptr.vmem [resolvable:$false] %s2569_s17 }
  0xd2   : > { %s2571_s20 = scalar_lea.vmem %s2570_s17, 256  ;;  %p2572_p4 = scmp.lt.s32.totalorder %s2984_s25, %s2570_s17 }
  0xd3   : > { %p2567_p13 = pnand %p2565_p12, %p2551_p8  ;;  %p2573_p1 = scmp.lt.s32.totalorder %s2571_s20, %s2564_s14 }
  0xd5   : > { %p2568_p10 = pneg %p2567_p13  ;;  %p2574_p3 = por %p2573_p1, %p2572_p4 }
  0xd7   : > { %p2575_p2 = pnand %p2574_p3, %p2568_p10 }
  0xd9   : > { %2578 = shalt.err (!%p2575_p2)
}
  0xda   : > { %s3310_s15 = smov 4   ;;  %s343_s10 = sand.u32 1, %s2695_s30  }
  0xdb   : > { %2290 = dma.hbm_to_vmem [thread:$0]  (!%p2988_p11), %s2982_s22, 128, %s2984_s25, %s2999_s5, %s3303_s21, %s3303_s21, %s3310_s15  }
  0xdc   : > { %s3034_s2 = scalar_lea.sflag [#allocation7], %s343_s10  ;;  %s2579_s3 = scalar_lea.hbm %s2995_s19, 128 }
  0xdd   : > { %p2580_p4 = scmp.ne.s32.totalorder %s2995_s19, %s2579_s3  ;;  %s2584_s6 = scalar_lea.hbm %s3275_s1, 256 }
  0xde   : > { %p2585_p5 = scmp.lt.u32.totalorder %s2995_s19, %s3275_s1  ;;  %p2586_p7 = scmp.lt.u32.totalorder %s2584_s6, %s2579_s3 }
  0xdf   : > { %p2582_p10 = pnand %p2580_p4, %p2551_p8  ;;  %p2588_p12 = scmp.lt.u32.totalorder %s2579_s3, %s2995_s19 }
  0xe0   : > { %p2587_p9 = por %p2586_p7, %p2585_p5 }
  0xe1   : > { %p2583_p0 = pneg %p2582_p10 }
  0xe2   : > { %p2589_p13 = por %p2588_p12, %p2587_p9 }
  0xe4   : > { %p2590_p1 = pnand %p2589_p13, %p2583_p0 }
  0xe6   : > { %2593 = shalt.err (!%p2590_p1)
}
  0xe7   : > { %s2594_s5 = scalar_lea.vmem %s3031_s4, 128  ;;  %s2706_s22 = smov [#allocation6]  }
  0xe8   : > { %p2595_p3 = scmp.ne.s32.totalorder %s3031_s4, %s2594_s5  ;;  %s2599_s25 = sshll.u32 %s2706_s22, 4  ;;  %s2600_s25 = int_to_ptr.vmem [resolvable:$false] %s2599_s25 }
  0xe9   : > { %s2601_s10 = scalar_lea.vmem %s2600_s25, 256  ;;  %p2602_p10 = scmp.lt.s32.totalorder %s3031_s4, %s2600_s25 }
  0xea   : > { %p2597_p2 = pnand %p2595_p3, %p2551_p8  ;;  %p2603_p5 = scmp.lt.s32.totalorder %s2601_s10, %s2594_s5 }
  0xec   : > { %p2598_p4 = pneg %p2597_p2  ;;  %p2604_p7 = por %p2603_p5, %p2602_p10 }
  0xee   : > { %p2605_p9 = pnand %p2604_p7, %p2598_p4 }
  0xf0   : > { %2608 = shalt.err (!%p2605_p9)
}
  0xf1   : > { %2293 = dma.hbm_to_vmem [thread:$0]  (!%p2988_p11), %s2995_s19, 128, %s3031_s4, %s3034_s2, %s3303_s21, %s3303_s21, %s3310_s15  }
  0xf2   : > { %p3311_p8 = scmp.ne.s32.totalorder %s3295_s12, 0 }
  0xf3   : > { %s3066_s3 = sand.u32 (!%p3311_p8), 1, %s2687_s28  }
  0xf4   : > { %366 = sbr.rel (%p3311_p8) target bundleno = 947 (0x3b3), region = 52  ;;  %s3069_s24 = sshll.u32 (!%p3311_p8), %s3066_s3, 3 }
  0xf5   : > { %s369_s13 = scalar_lea.sflag (!%p3311_p8), [#allocation4], %s3066_s3  ;;  %s372_s14 = scalar_lea.vmem (!%p3311_p8), [#allocation3], %s3069_s24 }
  0xfb   : > { %2654 = dma.done.wait (%p2963_p6), %s369_s13, 128  }
  0xfc   : > { %2656 = vsyncadd (%p2963_p6), %s369_s13, 4294967168  ;;  %s377_s4 = sand.u32 1, %s2781_s11   ;;  %s381_s21 = scalar_lea.vmem [#allocation6], %s3069_s24 }
  0xfd   : > { %s378_s12 = scalar_lea.sflag [#allocation7], %s377_s4 }
  0xfe   : > { %2658 = dma.done.wait (%p2963_p6), %s378_s12, 128  }
  0xff   : > { %2660 = vsyncadd (%p2963_p6), %s378_s12, 4294967168  ;;  %p3312_p11 = scmp.eq.s32.totalorder %s2781_s11, 0 }
 0x101   : > { %2662 = dma.done.wait (%p3312_p11), [#allocation7], 192   ;;  %p3313_p0 = pmov %p3312_p11 }
 0x103   : > { %2664 = vsyncadd (%p3313_p0), [#allocation7], 4294967104  ;;  %p3314_p12 = pmov %p3313_p0 }
 0x104   : > { %p3315_p13 = pmov %p3313_p0 }
 0x105   : > { %2666 = dma.done.wait (%p3314_p12), [#allocation10], 32  }
 0x106   : > { %2668 = vsyncadd (%p3315_p13), [#allocation10], 4294967264  ;;  %p3316_p1 = pmov %p3313_p0 }
 0x107   : > { %p3317_p3 = pmov %p3313_p0 }
 0x108   : > { %2670 = dma.done.wait (%p3316_p1), [#allocation13], 32  }
 0x109   : > { %2672 = vsyncadd (%p3317_p3), [#allocation13], 4294967264  ;;  %p3318_p6 = pmov %p3313_p0 }
 0x10a   : > { %p3319_p2 = pmov %p3313_p0 }
 0x10b   : > { %2674 = dma.done.wait (%p3318_p6), [#allocation16], 1152  }
 0x10c   : > { %2676 = vsyncadd (%p3319_p2), [#allocation16], 4294966144  ;;  %v2707_v0 = vmov 0.0   ;;  %vm2708_vm0 = vmmov 0   ;;  %vm495_vm1 = vcmask 1043456   ;;  %v2109_v2 = vld [vmem:[%s372_s14] sm:$0xff]  }
 0x10d   : > { %2138 = vmatprep.subr.bf16.mxu0 %v2707_v0  ;;  %2168 = vmatprep.subr.bf16.mxu1 %v2707_v0  ;;  %v2027_v1 = vld [vmem:[#allocation9] ss:$0 sm:$0xff]  ;;  %v2110_v3 = vunpack.c.l.bf16 %v2109_v2  ;;  %v2111_v4 = vunpack.c.h.bf16 %v2109_v2  ;;  %s2709_s9 = smov 112   ;;  %v2028_v5 = vld [vmem:[#allocation11] ss:$0 sm:$0xff]  ;;  %v2113_v15 = vld [vmem:[%s381_s21] sm:$0xff]  }
 0x10e   : > { %2140 = vmatprep.mubr.msk.bf16.mxu0 %vm2708_vm0, %v2707_v0  ;;  %2170 = vmatprep.mubr.msk.bf16.mxu1 %vm2708_vm0, %v2707_v0  ;;  %v490_v6 = vld [vmem:[#allocation8 + $0x8] sm:$0xf]  ;;  %v2114_v16 = vunpack.c.l.bf16 %v2113_v15  ;;  %v2115_v17 = vunpack.c.h.bf16 %v2113_v15  ;;  %vm491_vm2 = vcmask 64512   ;;  %v2359_v26 = vld [vmem:[#allocation8] sm:$0xff]   ;;  %vm546_vm3 = vcmask 130048   ;;  %v2360_v29 = vld [vmem:[#allocation15 + $0x18] sm:$0xff]  }
 0x10f   : > { %477 = vrot.lane.b32.xlu0 %v2027_v1, %s2709_s9  ;;  %v497_v7 = vsel %vm495_vm1, %v490_v6, 0  ;;  %v458_v8 = vmul.f32 %v2110_v3, %v2027_v1  ;;  %v459_v9 = vmul.f32 %v2111_v4, %v2027_v1  ;;  %vm609_vm4 = vcmask 124928   ;;  %2169 = vmatpush3.bf16.msra.mxu1 %v2360_v29  ;;  %v2364_v30 = vld [vmem:[#allocation15 + $0x8] sm:$0xff]   ;;  %v2032_v31 = vld [vmem:[#allocation12] ss:$0 sm:$0xff]  ;;  %s442_s19 = scalar_lea.vmem [#allocation17], %s3069_s24 }
 0x110   : > { %2139 = vmatpush3.bf16.msra.mxu0 %v497_v7  ;;  %v2710_v28 = vmov 0   ;;  %2174 = vmatprep.subr.bf16.mxu1 %v2707_v0  ;;  %v2033_v32 = vld [vmem:[#allocation14] ss:$0 sm:$0xff]  ;;  %vm672_vm5 = vsmask.f32 2306  ;;  %vm976_vm14 = vcmask 1040384  }
 0x111   : > { %2144 = vmatprep.subr.bf16.mxu0 %v2707_v0  ;;  %v466_v10 = vadd.f32 %v2028_v5, %v458_v8  ;;  %v467_v11 = vadd.f32 %v2028_v5, %v459_v9  ;;  %610 = vst.msk [vmem:[#allocation2] sm:$0x7] %vm609_vm4, %v2710_v28  ;;  %611 = vst.msk [vmem:[#allocation2 + $0x4] sm:$0x7] %vm609_vm4, %v2710_v28  ;;  %vm732_vm7 = vsmask.f32 1280 }
 0x112   : > { %612 = vst.msk [vmem:[#allocation2 + $0x8] sm:$0x7] %vm609_vm4, %v2710_v28  ;;  %615 = vst.msk [vmem:[#allocation2 + $0x14] sm:$0x7] %vm609_vm4, %v2710_v28  ;;  %vm733_vm8 = vsmask.f32 3336 }
 0x113   : > { %482 = vrot.lane.b32.xlu0 %v2028_v5, %s2709_s9  ;;  %v468_v12 = vmax.f32 %v466_v10, 0.0  ;;  %v469_v13 = vmax.f32 %v467_v11, 0.0  ;;  %613 = vst.msk [vmem:[#allocation2 + $0xc] sm:$0x7] %vm609_vm4, %v2710_v28  ;;  %614 = vst.msk [vmem:[#allocation2 + $0x10] sm:$0x7] %vm609_vm4, %v2710_v28 }
 0x114   : > { %vm3123_vm6 = vmand %vm609_vm4, %vm672_vm5  ;;  %vm735_vm9 = vsmask.f32 5392  ;;  %vm737_vm10 = vsmask.f32 7448  ;;  %vm977_vm15 = vcmask 1042434   ;;  %vm981_vm5 = vcmask 1046534  }
 0x115   : > { %v470_v14 = vpack.c.bf16 %v469_v13, %v468_v12  ;;  %vm734_vm11 = vmor %vm732_vm7, %vm733_vm8  ;;  %s1849_s15 = sshll.u32 %s442_s19, 4  ;;  %s2107_s2 = sshll.u32 %s2781_s11, 7  ;;  %s3230_s15 = int_to_ptr.vmem [resolvable:$true] %s1849_s15 }
 0x116   : > { %vm736_vm12 = vmor %vm734_vm11, %vm735_vm9  ;;  %s3228_s20 = scalar_lea.hbm %s3282_s8, %s2107_s2  ;;  %s1836_s5 = scalar_lea.sflag [#allocation5], %s3066_s3 }
 0x117   : > { %vm3139_vm13 = vmor %vm736_vm12, %vm737_vm10  ;;  %s2609_s11 = scalar_lea.vmem %s3230_s15, 128  ;;  %p3326_p10 = scmp.ne.s32.totalorder %s3307_s16, 0 }
 0x118   : > { %v2038_v48 = vld.sshfl [vmem:[#allocation2] sm:$0x13 pattern:$0x76325410]  ;;  %v674_v55 = vld [vmem:[#allocation2 + $0x4] sm:$0x7]  ;;  %vm978_vm1 = vmor %vm976_vm14, %vm977_vm15  ;;  %p2610_p4 = scmp.ne.s32.totalorder %s3230_s15, %s2609_s11 }
 0x119   : > { %v740_v57 = vshrl.u32 %v2038_v48, 16  ;;  %v743_v58 = vshll.u32 %v2038_v48, 16  ;;  %v677_v63 = vld [vmem:[#allocation2 + $0x8] sm:$0x7]  ;;  %s2712_s22 = smov [#allocation17]  }
 0x11a   : > { %v680_v7 = vld [vmem:[#allocation2 + $0xc] sm:$0x7]  ;;  %v683_v9 = vld [vmem:[#allocation2 + $0x10] sm:$0x7]  ;;  %p2611_p5 = pnand %p2610_p4, %p3326_p10  ;;  %s2613_s25 = sshll.u32 %s2712_s22, 4  ;;  %s2614_s25 = int_to_ptr.vmem [resolvable:$false] %s2613_s25 }
 0x11b   : > { %v742_v10 = vrot.slane %v740_v57, 6  ;;  %v745_v11 = vrot.slane %v743_v58, 7  ;;  %s2615_s10 = scalar_lea.vmem %s2614_s25, 256  ;;  %p2616_p9 = scmp.lt.s32.totalorder %s3230_s15, %s2614_s25 }
 0x11c   : > { %p2612_p7 = pneg %p2611_p5  ;;  %p2617_p8 = scmp.lt.s32.totalorder %s2615_s10, %s2609_s11 }
 0x11e   : > { %p2618_p11 = por %p2617_p8, %p2616_p9 }
 0x120   : > { %p2619_p0 = pnand %p2618_p11, %p2612_p7 }
 0x181   : > { %v478_v18 = vpop.permute.xlu0 %477 }
 0x182   : > { %v480_v19 = vmul.f32 %v2114_v16, %v478_v18  ;;  %v481_v20 = vmul.f32 %v2115_v17, %v478_v18  ;;  %v803_v17 = vlaneseq  ;;  %v707_v18 = vcombine.high %v2038_v48, %v2038_v48 }
 0x185   : > { %v483_v21 = vpop.permute.xlu0 %482 }
 0x186   : > { %v485_v22 = vadd.f32 %v483_v21, %v480_v19  ;;  %v486_v23 = vadd.f32 %v483_v21, %v481_v20  ;;  %v746_v20 = vor.u32 %v745_v11, %v742_v10 }
 0x188   : > { %v487_v24 = vmax.f32 %v485_v22, 0.0  ;;  %v488_v25 = vmax.f32 %v486_v23, 0.0  ;;  %v804_v22 = vshrl.u32 %v803_v17, 7  ;;  %v749_v23 = vshll.u32 %v707_v18, 16 }
 0x18a   : > { %v489_v27 = vpack.c.bf16 %v488_v25, %v487_v24 }
 0x18c   : > { %2141 = vmatmul.mubr.msk.bf16.vlgmr.msra.gmra.mrb[0].mxu0 %vm491_vm2, %v489_v27  ;;  %vm979_vm2 = vcmask 1044484  }
 0x18d   : > { %2145 = vmatpush3.bf16.msra.mxu0 %v2359_v26  ;;  %2146 = vmatprep.mubr.msk.bf16.mxu0 %vm2708_vm0, %v2707_v0  ;;  %v747_v26 = vrot.slane %v746_v20, 2  ;;  %vm980_vm4 = vmor %vm978_vm1, %vm979_vm2 }
 0x18e   : > { %2150 = vmatprep.subr.bf16.mxu0 %v2707_v0 }
 0x198   : > { %2147 = vmatmul.mubr.msk.bf16.vlgmr.msra.gmra.mrb[0].mxu0 %vm546_vm3, %v470_v14  ;;  %v2711_v14 = vmov 1983009808  }
 0x199   : > { %2152 = vmatprep.mubr.msk.bf16.mxu0 %vm2708_vm0, %v2707_v0  ;;  %2151 = vmatpush3.bf16.msra.mxu0 %v2364_v30  ;;  %v801_v15 = vunpack.c.l.s4 %v2711_v14 }
 0x19a   : > { %2156 = vmatprep.subr.bf16.mxu0 %v2707_v0 }
 0x19b   : > { %v802_v21 = vunpack.c.0.s8 %v801_v15 }
 0x19d   : > { %v3135_v30 = vsub.s32 %v802_v21, %v804_v22 }
 0x26b   : > { %v584_v33 = vpop.f32.mrb[0].mxu0 }
 0x26c   : > { %v597_v34 = vmul.f32 %v2032_v31, %v584_v33  ;;  %v2148_v35 = vpop.f32.mrb[1].mxu0 }
 0x26d   : > { %v587_v36 = vpop.f32.mrb[2].mxu0 }
 0x26e   : > { %v605_v37 = vadd.f32 %v2033_v32, %v597_v34  ;;  %v598_v38 = vmul.f32 %v2032_v31, %v587_v36  ;;  %v2149_v39 = vpop.f32.mrb[3].mxu0 }
 0x26f   : > { %v2363_v39 = vld [vmem:[#allocation15 + $0x20] sm:$0xff]  }
 0x270   : > { %v607_v40 = vmax.f32 %v605_v37, 0.0  ;;  %v606_v41 = vadd.f32 %v2033_v32, %v598_v38 }
 0x272   : > { %v618_v42 = vcombine.high %v607_v40, %v607_v40  ;;  %v2101_v43 = vpack.c.bf16 %v607_v40, %v607_v40  ;;  %v608_v44 = vmax.f32 %v606_v41, 0.0 }
 0x274   : > { %v2102_v45 = vpack.c.bf16 %v618_v42, %v618_v42  ;;  %v639_v46 = vshrl.u32 %v2101_v43, 16  ;;  %v619_v47 = vcombine.high %v608_v44, %v608_v44  ;;  %v2103_v49 = vpack.c.bf16 %v608_v44, %v608_v44 }
 0x275   : > { %v642_v51 = vshll.u32 %v2101_v43, 16  ;;  %v751_v44 = vrot.slane %v749_v23, 7 }
 0x276   : > { %v641_v50 = vrot.slane %v639_v46, 7  ;;  %v646_v52 = vshrl.u32 %v2102_v45, 16  ;;  %v2104_v53 = vpack.c.bf16 %v619_v47, %v619_v47  ;;  %v653_v56 = vshrl.u32 %v2103_v49, 16 }
 0x277   : > { %v649_v61 = vshll.u32 %v2102_v45, 16  ;;  %v656_v2 = vshll.u32 %v2103_v49, 16 }
 0x278   : > { %v644_v59 = vor.u32 %v642_v51, %v641_v50  ;;  %v648_v60 = vrot.slane %v646_v52, 7  ;;  %v660_v62 = vshrl.u32 %v2104_v53, 16  ;;  %v655_v1 = vrot.slane %v653_v56, 7 }
 0x279   : > { %v663_v6 = vshll.u32 %v2104_v53, 16 }
 0x27a   : > { %v651_v3 = vor.u32 %v649_v61, %v648_v60  ;;  %v675_v4 = vsel %vm3123_vm6, %v644_v59, %v674_v55  ;;  %v662_v5 = vrot.slane %v660_v62, 7  ;;  %v658_v8 = vor.u32 %v656_v2, %v655_v1 }
 0x27b   : > { %676 = vst [vmem:[#allocation2 + $0x4] sm:$0x7] %v675_v4  ;;  %v752_v60 = vsel %vm3139_vm13, %v747_v26, %v751_v44 }
 0x27c   : > { %v678_v12 = vsel %vm3123_vm6, %v651_v3, %v677_v63  ;;  %v665_v13 = vor.u32 %v663_v6, %v662_v5  ;;  %v681_v16 = vsel %vm3123_vm6, %v658_v8, %v680_v7 }
 0x27d   : > { %679 = vst [vmem:[#allocation2 + $0x8] sm:$0x7] %v678_v12  ;;  %682 = vst [vmem:[#allocation2 + $0xc] sm:$0x7] %v681_v16 }
 0x27e   : > { %v684_v19 = vsel %vm3123_vm6, %v665_v13, %v683_v9  ;;  %vm3172_vm6 = vmor %vm980_vm4, %vm981_vm5 }
 0x27f   : > { %685 = vst [vmem:[#allocation2 + $0x10] sm:$0x7] %v684_v19 }
 0x282   : > { %v2039_v24 = vld.sshfl [vmem:[#allocation2 + $0x4] sm:$0x13 pattern:$0x76325410] }
 0x283   : > { %v715_v25 = vcombine.high %v2039_v24, %v2039_v24  ;;  %v754_v27 = vshrl.u32 %v2039_v24, 16  ;;  %v757_v28 = vshll.u32 %v2039_v24, 16  ;;  %v2064_v21 = vld.sshfl [vmem:[#allocation2 + $0x4] sm:$0x12 pattern:$0x76325410] }
 0x284   : > { %v2375_v29 = vld.sshfl [vmem:[#allocation2 + $0x4] sm:$0xf pattern:$0x76325410] }
 0x285   : > { %v2040_v31 = vld.sshfl [vmem:[#allocation2 + $0x8] sm:$0x13 pattern:$0x76325410]  ;;  %v756_v34 = vrot.slane %v754_v27, 6  ;;  %v759_v35 = vrot.slane %v757_v28, 7 }
 0x286   : > { %v2376_v32 = vld.sshfl [vmem:[#allocation2 + $0xc] sm:$0xf pattern:$0x76325410]  ;;  %v723_v33 = vcombine.high %v2040_v31, %v2040_v31  ;;  %v763_v37 = vshll.u32 %v715_v25, 16  ;;  %v768_v38 = vshrl.u32 %v2040_v31, 16 }
 0x287   : > { %v2041_v36 = vld.sshfl [vmem:[#allocation2 + $0xc] sm:$0x13 pattern:$0x76325410]  ;;  %v760_v41 = vor.u32 %v759_v35, %v756_v34  ;;  %v771_v42 = vshll.u32 %v2040_v31, 16  ;;  %v1098_v48 = vcombine.low %v2375_v29, %v2376_v32  ;;  %v1334_v29 = vcombine.high %v2064_v21, %v2064_v21  ;;  %v2365_v34 = vld [vmem:[#allocation15 + $0x28] sm:$0xff]  }
 0x288   : > { %v731_v40 = vcombine.high %v2041_v36, %v2041_v36  ;;  %v2061_v43 = vld.sshfl [vmem:[#allocation2 + $0x10] sm:$0x13 pattern:$0x76325410]  ;;  %v770_v45 = vrot.slane %v768_v38, 6  ;;  %v777_v46 = vshll.u32 %v723_v33, 16 }
 0x289   : > { %v782_v47 = vshrl.u32 %v2041_v36, 16  ;;  %v761_v50 = vrot.slane %v760_v41, 2  ;;  %v773_v51 = vrot.slane %v771_v42, 7  ;;  %v785_v52 = vshll.u32 %v2041_v36, 16  ;;  %2171 = vmatmul.mubr.msk.bf16.vlgmr.msra.gmra.mrb[0].mxu1 %vm546_vm3, %v1098_v48  ;;  %v2366_v27 = vld [vmem:[#allocation15] sm:$0xff]  }
 0x28a   : > { %v765_v53 = vrot.slane %v763_v37, 7  ;;  %v1190_v55 = vcombine.high %v2061_v43, %v2061_v43  ;;  %v791_v58 = vshll.u32 %v731_v40, 16  ;;  %v1234_v59 = vshrl.u32 %v2061_v43, 16  ;;  %2175 = vmatpush3.bf16.msra.mxu1 %v2363_v39  ;;  %2176 = vmatprep.mubr.msk.bf16.mxu1 %vm2708_vm0, %v2707_v0 }
 0x28b   : > { %v784_v54 = vrot.slane %v782_v47, 6  ;;  %v774_v56 = vor.u32 %v773_v51, %v770_v45  ;;  %v787_v57 = vrot.slane %v785_v52, 7  ;;  %v1237_v62 = vshll.u32 %v2061_v43, 16  ;;  %2180 = vmatprep.subr.bf16.mxu1 %v2707_v0 }
 0x28c   : > { %v766_v61 = vsel %vm3139_vm13, %v761_v50, %v765_v53  ;;  %v779_v1 = vrot.slane %v777_v46, 7  ;;  %v1236_v3 = vrot.slane %v1234_v59, 6  ;;  %v1243_v5 = vshll.u32 %v1190_v55, 16 }
 0x28d   : > { %v775_v63 = vrot.slane %v774_v56, 2  ;;  %v788_v2 = vor.u32 %v787_v57, %v784_v54  ;;  %v1239_v4 = vrot.slane %v1237_v62, 7  ;;  %v793_v8 = vrot.slane %v791_v58, 7  ;;  %v2370_v57 = vld [vmem:[#allocation15 + $0x10] sm:$0xff]  }
 0x28e   : > { %v798_v9 = vcombine.low %v752_v60, %v766_v61  ;;  %v2067_v10 = vld.sshfl [vmem:[#allocation2 + $0x10] sm:$0x12 pattern:$0x76325410]  ;;  %v1245_v17 = vrot.slane %v1243_v5, 7  ;;  %v1361_v42 = vrot.slane %v1334_v29, 7 }
 0x28f   : > { %v780_v6 = vsel %vm3139_vm13, %v775_v63, %v779_v1  ;;  %v789_v7 = vrot.slane %v788_v2, 2  ;;  %v1240_v11 = vor.u32 %v1239_v4, %v1236_v3  ;;  %v2065_v12 = vld.sshfl [vmem:[#allocation2 + $0x8] sm:$0x12 pattern:$0x76325410]  ;;  %v1358_v18 = vcombine.high %v2067_v10, %v2067_v10  ;;  %v2369_v1 = vld [vmem:[#allocation15 + $0x30] sm:$0xff]  }
 0x290   : > { %v2066_v14 = vld.sshfl [vmem:[#allocation2 + $0xc] sm:$0x12 pattern:$0x76325410]  ;;  %v806_v19 = vrot.slane %v798_v9, %v3135_v30  ;;  %v1250_v20 = vcombine.low %v766_v61, %v780_v6  ;;  %v1342_v24 = vcombine.high %v2065_v12, %v2065_v12  ;;  %v2071_v37 = vrot.slane %v2067_v10, 9 }
 0x291   : > { %v794_v13 = vsel %vm3139_vm13, %v789_v7, %v793_v8  ;;  %v1241_v16 = vrot.slane %v1240_v11, 2  ;;  %v1350_v25 = vcombine.high %v2066_v14, %v2066_v14  ;;  %v1373_v31 = vrot.slane %v1358_v18, 7  ;;  %v2046_v40 = vld.sshfl [vmem:[#allocation2] sm:$0x12 pattern:$0x76325410] }
 0x292   : > { %v799_v15 = vcombine.low %v780_v6, %v794_v13  ;;  %v1258_v32 = vrot.slane %v1250_v20, %v3135_v30  ;;  %v1365_v35 = vrot.slane %v1342_v24, 7  ;;  %v2377_v41 = vld.sshfl [vmem:[#allocation2 + $0x8] sm:$0xf pattern:$0x76325410]  ;;  %v2069_v43 = vrot.slane %v2065_v12, 9 }
 0x293   : > { %v3163_v23 = vsel %vm3139_vm13, %v1241_v16, %v1245_v17  ;;  %v1369_v36 = vrot.slane %v1350_v25, 7  ;;  %v2070_v44 = vrot.slane %v2066_v14, 9  ;;  %v3178_v45 = vsel %vm3172_vm6, %v2071_v37, %v1373_v31  ;;  %v2378_v46 = vld.sshfl [vmem:[#allocation2] sm:$0xf pattern:$0x76325410] }
 0x294   : > { %v3159_v22 = vrot.slane %v799_v15, %v3135_v30  ;;  %v1251_v26 = vcombine.low %v794_v13, %v3163_v23  ;;  %v2068_v47 = vrot.slane %v2064_v21, 9  ;;  %v1366_v48 = vsel %vm3172_vm6, %v2069_v43, %v1365_v35  ;;  %v2079_v55 = vld.sshfl [vmem:[#allocation2 + $0x14] sm:$0x13 pattern:$0x76325410]  ;;  %v2373_v18 = vld [vmem:[#allocation15 + $0x38] sm:$0xff]  }
 0x295   : > { %v1370_v50 = vsel %vm3172_vm6, %v2070_v44, %v1369_v36  ;;  %v951_v52 = vcombine.high %v2046_v40, %v2046_v40  ;;  %v2050_v58 = vrot.slane %v2046_v40, 9  ;;  %v885_v60 = vcombine.low %v2378_v46, %v2377_v41  ;;  %v2379_v9 = vld.sshfl [vmem:[#allocation2 + $0x10] sm:$0xf pattern:$0x76325410] }
 0x296   : > { %v814_v28 = vcombine.low %v806_v19, %v3159_v22  ;;  %v1265_v33 = vrot.slane %v1251_v26, %v3135_v30  ;;  %v1379_v51 = vcombine.low %v1370_v50, %v3178_v45  ;;  %v1362_v53 = vsel %vm3172_vm6, %v2068_v47, %v1361_v42  ;;  %v2380_v13 = vld.sshfl [vmem:[#allocation2 + $0x8] sm:$0xf pattern:$0x76325410] }
 0x297   : > { %v1378_v54 = vcombine.low %v1362_v53, %v1366_v48  ;;  %v985_v59 = vrot.slane %v951_v52, 7  ;;  %v1611_v61 = vshrl.u32 %v2079_v55, 16  ;;  %v1614_v62 = vshll.u32 %v2079_v55, 16  ;;  %v2374_v29 = vld [vmem:[#allocation15 + $0x40] sm:$0xff]  }
 0x298   : > { %2153 = vmatmul.mubr.msk.bf16.vlgmr.msra.gmra.mrb[4].mxu0 %vm546_vm3, %v814_v28  ;;  %v1266_v38 = vcombine.low %v1258_v32, %v1265_v33  ;;  %v1393_v56 = vrot.slane %v1379_v51, %v3135_v30  ;;  %v1003_v4 = vcombine.low %v1366_v48, %v1370_v50  ;;  %v1567_v5 = vcombine.high %v2079_v55, %v2079_v55  ;;  %v2085_v21 = vld.sshfl [vmem:[#allocation2 + $0x14] sm:$0x12 pattern:$0x76325410] }
 0x299   : > { %2157 = vmatpush3.bf16.msra.mxu0 %v2366_v27  ;;  %2158 = vmatprep.mubr.msk.bf16.mxu0 %vm2708_vm0, %v2707_v0  ;;  %v1386_v63 = vrot.slane %v1378_v54, %v3135_v30  ;;  %v986_v3 = vsel %vm3172_vm6, %v2050_v58, %v985_v59  ;;  %v1613_v6 = vrot.slane %v1611_v61, 6  ;;  %v1616_v7 = vrot.slane %v1614_v62, 7 }
 0x29a   : > { %2162 = vmatprep.subr.bf16.mxu0 %v2707_v0  ;;  %2177 = vmatmul.mubr.msk.bf16.vlgmr.msra.gmra.mrb[0].mxu1 %vm546_vm3, %v1266_v38  ;;  %v1002_v8 = vcombine.low %v986_v3, %v1362_v53  ;;  %v1017_v10 = vrot.slane %v1003_v4, %v3135_v30  ;;  %v1620_v12 = vshll.u32 %v1567_v5, 16  ;;  %v1475_v19 = vcombine.low %v2380_v13, %v2379_v9 }
 0x29b   : > { %2181 = vmatpush3.bf16.msra.mxu1 %v2365_v34  ;;  %2182 = vmatprep.mubr.msk.bf16.mxu1 %vm2708_vm0, %v2707_v0  ;;  %v1394_v2 = vcombine.low %v1386_v63, %v1393_v56  ;;  %v1617_v11 = vor.u32 %v1616_v7, %v1613_v6  ;;  %v1735_v25 = vcombine.high %v2085_v21, %v2085_v21  ;;  %v2089_v27 = vrot.slane %v2085_v21, 9 }
 0x29c   : > { %2186 = vmatprep.subr.bf16.mxu1 %v2707_v0  ;;  %v1010_v14 = vrot.slane %v1002_v8, %v3135_v30  ;;  %v1622_v17 = vrot.slane %v1620_v12, 7 }
 0x29d   : > { %v1618_v16 = vrot.slane %v1617_v11, 2  ;;  %v1750_v28 = vrot.slane %v1735_v25, 7 }
 0x29e   : > { %v1018_v15 = vcombine.low %v1010_v14, %v1017_v10 }
 0x29f   : > { %v1623_v20 = vsel %vm3139_vm13, %v1618_v16, %v1622_v17  ;;  %v1751_v31 = vsel %vm3172_vm6, %v2089_v27, %v1750_v28 }
 0x2a0   : > { %v1628_v24 = vcombine.low %v3163_v23, %v1623_v20  ;;  %v1756_v23 = vcombine.low %v3178_v45, %v1751_v31 }
 0x2a2   : > { %v1642_v26 = vrot.slane %v1628_v24, %v3135_v30  ;;  %v1770_v32 = vrot.slane %v1756_v23, %v3135_v30 }
 0x2a4   : > { %2159 = vmatmul.mubr.msk.bf16.vlgmr.msra.gmra.mrb[4].mxu0 %vm546_vm3, %v885_v60  ;;  %v1643_v49 = vcombine.low %v3159_v22, %v1642_v26  ;;  %v1771_v33 = vcombine.low %v1017_v10, %v1770_v32 }
 0x2a5   : > { %2163 = vmatpush3.bf16.msra.mxu0 %v2370_v57  ;;  %2164 = vmatprep.mubr.msk.bf16.mxu0 %vm2708_vm0, %v2707_v0 }
 0x2a6   : > { %2183 = vmatmul.mubr.msk.bf16.vlgmr.msra.gmra.mrb[0].mxu1 %vm546_vm3, %v1394_v2 }
 0x2a7   : > { %2187 = vmatpush3.bf16.msra.mxu1 %v2369_v1  ;;  %2188 = vmatprep.mubr.msk.bf16.mxu1 %vm2708_vm0, %v2707_v0 }
 0x2a8   : > { %2192 = vmatprep.subr.bf16.mxu1 %v2707_v0 }
 0x2b0   : > { %2165 = vmatmul.mubr.msk.bf16.vlgmr.msra.gmra.mrb[4].mxu0 %vm546_vm3, %v1018_v15 }
 0x2b2   : > { %2189 = vmatmul.mubr.msk.bf16.vlgmr.msra.gmra.mrb[0].mxu1 %vm546_vm3, %v1475_v19 }
 0x2b3   : > { %2193 = vmatpush3.bf16.msra.mxu1 %v2373_v18  ;;  %2194 = vmatprep.mubr.msk.bf16.mxu1 %vm2708_vm0, %v2707_v0 }
 0x2b4   : > { %2198 = vmatprep.subr.bf16.mxu1 %v2707_v0 }
 0x2be   : > { %2195 = vmatmul.mubr.msk.bf16.vlgmr.msra.gmra.mrb[0].mxu1 %vm546_vm3, %v1643_v49 }
 0x2bf   : > { %2199 = vmatpush3.bf16.msra.mxu1 %v2374_v29  ;;  %2200 = vmatprep.mubr.msk.bf16.mxu1 %vm2708_vm0, %v2707_v0  ;;  %vm1832_vm0 = vcmask 60416  }
 0x2ca   : > { %2201 = vmatmul.mubr.msk.bf16.vlgmr.msra.gmra.mrb[0].mxu1 %vm546_vm3, %v1771_v33 }
 0x383   : > { %v1062_v34 = vpop.f32.mrb[4].mxu0 }
 0x384   : > { %v2166_v35 = vpop.f32.mrb[5].mxu0 }
 0x385   : > { %v1065_v22 = vpop.f32.mrb[6].mxu0 }
 0x386   : > { %v2167_v36 = vpop.f32.mrb[7].mxu0 }
 0x39d   : > { %v1815_v37 = vpop.f32.mrb[0].mxu1 }
 0x39e   : > { %v2204_v38 = vadd.f32 %v1815_v37, %v1062_v34  ;;  %v2202_v39 = vpop.f32.mrb[1].mxu1 }
 0x39f   : > { %v1818_v0 = vpop.f32.mrb[2].mxu1 }
 0x3a0   : > { %v2105_v40 = vpack.c.bf16 %v2204_v38, %v2204_v38  ;;  %v2205_v41 = vadd.f32 %v1818_v0, %v1065_v22  ;;  %v2203_v30 = vpop.f32.mrb[3].mxu1 }
 0x3a2   : > { %1833 = vst.msk [vmem:[%s442_s19] sm:$0xf] %vm1832_vm0, %v2105_v40  ;;  %v2106_v42 = vpack.c.bf16 %v2205_v41, %v2205_v41 }
 0x3a4   : > { %1834 = vst.msk [vmem:[%s442_s19 + $0x4] sm:$0xf] %vm1832_vm0, %v2106_v42 }
 0x3a5   : > { %2622 = shalt.err (!%p2619_p0)
}
 0x3a6   : > { %s2623_s24 = scalar_lea.hbm %s3228_s20, 128  ;;  %s2627_s4 = scalar_lea.hbm %s3282_s8, 256 }
 0x3a7   : > { %p2624_p12 = scmp.ne.s32.totalorder %s3228_s20, %s2623_s24  ;;  %p2628_p3 = scmp.lt.u32.totalorder %s3228_s20, %s3282_s8 }
 0x3a8   : > { %p2629_p6 = scmp.lt.u32.totalorder %s2627_s4, %s2623_s24  ;;  %p2631_p4 = scmp.lt.u32.totalorder %s2623_s24, %s3228_s20 }
 0x3a9   : > { %p2625_p13 = pnand %p2624_p12, %p3326_p10 }
 0x3aa   : > { %p2630_p2 = por %p2629_p6, %p2628_p3 }
 0x3ab   : > { %p2626_p1 = pneg %p2625_p13 }
 0x3ac   : > { %p2632_p5 = por %p2631_p4, %p2630_p2 }
 0x3ae   : > { %p2633_p7 = pnand %p2632_p5, %p2626_p1 }
 0x3b0   : > { %2636 = shalt.err (!%p2633_p7)
}
 0x3b1   : > { %s2713_s9 = smov 64   ;;  %s2714_s19 = smov 4  }
 0x3b2   : > { %2266 = dma.vmem_to_hbm [thread:$0]  (%p3326_p10), %s3230_s15, 128, %s3228_s20, %s1836_s5, %s2713_s9, %s2713_s9, %s2714_s19  }
 0x3b3 PF: > { %s1864_s2 = sand.u32 1, %s2683_s27   ;;  %p3327_p9 = scmp.ne.s32.totalorder %s3308_s18, 0 }
 0x3b4   : > { %p3328_p8 = scmp.ge.s32.totalorder %s2695_s30, 2  ;;  %s1865_s6 = scalar_lea.sflag [#allocation5], %s1864_s2 }
 0x3b6   : > { %p2295_p11 = pnand %p3328_p8, %p3327_p9 }
 0x3b8   : > { %2678 = dma.done.wait (!%p2295_p11), %s1865_s6, 128  }
 0x3b9   : > { %2680 = vsyncadd (!%p2295_p11), %s1865_s6, 4294967168  ;;  %p27_p0 = scmp.ge.s32.totalorder %s2944_s23, 4   ;;  %s3329_s27 = smov %s2687_s28 }
 0x3ba   : > { %s3330_s28 = smov %s2691_s29  ;;  %s3331_s29 = smov %s2955_s26 }
 0x3bb   : > { %s3332_s30 = smov %s2944_s23  ;;  %29 = sbr.rel (!%p27_p0) target bundleno = 16 (0x10), region = 144 }
 0x3c2   :  { %1870 = vsyncpa [#allocation4], 1 }
 0x3c3   :  { %1872 = vsyncpa [#allocation4 + $0x1], 1 }
 0x3c4   :  { %1873 = vsyncpa [#allocation7], 1 }
 0x3c5   :  { %1875 = vsyncpa [#allocation7 + $0x1], 1 }
 0x3c6   :  { %1876 = vsyncpa [#allocation10], 1 }
 0x3c7   :  { %1877 = vsyncpa [#allocation13], 1 }
 0x3c8   :  { %1878 = vsyncpa [#allocation16], 1 }
 0x3c9   :  { %1879 = vsyncpa [#allocation5], 1 }
 0x3ca   :  { %1881 = vsyncpa [#allocation5 + $0x1], 1 }

</bundles_post_ra>
